<compile_context>
chip_gen: v7x
topology: tpu7x:2x2x1
jax: 0.10.0
libtpu: 0.0.40
codegen_flags: <defaults>
</compile_context>

<pallas_src>
import functools

import jax
import jax.numpy as jnp
from jax.experimental import pallas as pl
from jax.experimental.pallas import tpu as pltpu


def _fused_kernel(x_ref, w0_ref, b0_ref, w1_ref, b1_ref, w2_ref, b2_ref,
                  w3_ref, b3_ref, w7_ref, b7_ref, o_ref,
                  xpad_ref, apad_a, apad_b, *, H, W, C, D):
    """Fused 5-layer dilated (dilation=D) 3x3 conv net for one batch element.

    x_ref   : (1, H*W, 1)      input image (Cin=1), row-major pixels
    w0_ref  : (9, C)           conv0 taps (Cin=1)
    w1..w3  : (9*C, C)         mid conv taps; row block t = tap t over Cin
    w7_ref  : (9, C)           conv7 taps (Cout=1)
    b*_ref  : (1, C) / (1, 1)  biases
    o_ref   : (1, H*W, 1)      output
    scratch : xpad (H+2D, W+2D, 1), two padded activation buffers
              (H+2D, W+2D, C) used ping-pong.
    """
    HW = H * W
    P = D
    Hp, Wp = H + 2 * P, W + 2 * P
    taps = tuple((ky * D, kx * D) for ky in range(3) for kx in range(3))

    # ----- per-step init: zero only the halo borders (interiors are fully
    # rewritten by every layer's store).  Runs every grid step -> safe on v7x
    # megacore "parallel" sharding.
    def zero_halo(ref):
        ref[0:P, :, :] = jnp.zeros((P, Wp, C), jnp.float32)          # top
        ref[P + H:Hp, :, :] = jnp.zeros((P, Wp, C), jnp.float32)     # bottom
        ref[P:P + H, 0:P, :] = jnp.zeros((H, P, C), jnp.float32)     # left
        ref[P:P + H, P + W:Wp, :] = jnp.zeros((H, P, C), jnp.float32)  # right

    zero_halo(apad_a)
    zero_halo(apad_b)
    xpad_ref[...] = jnp.zeros_like(xpad_ref)                 # tiny (Cin = 1)
    xpad_ref[P:P + H, P:P + W, :] = x_ref[0].reshape(H, W, 1)

    # ----- conv0 (1 -> C): 9 VPU broadcast-FMAs (no MXU, no staging) + ReLU
    acc0 = None
    for t, (dy, dx) in enumerate(taps):
        xs = xpad_ref[dy:dy + H, dx:dx + W, :].reshape(HW, 1)        # (HW, 1)
        contrib = xs * w0_ref[t:t + 1, :]                            # (HW, C)
        acc0 = contrib if acc0 is None else acc0 + contrib
    act0 = jnp.maximum(acc0 + b0_ref[...], 0.0)
    apad_a[P:P + H, P:P + W, :] = act0.reshape(H, W, C)

    # ----- conv1..conv3 (C -> C): 9 accumulating MXU matmuls per layer + ReLU
    def mid_layer(src_ref, dst_ref, w_ref, b_ref):
        acc = None
        for t, (dy, dx) in enumerate(taps):
            lhs = src_ref[dy:dy + H, dx:dx + W, :].reshape(HW, C)    # (HW, C)
            contrib = jnp.dot(lhs, w_ref[t * C:(t + 1) * C, :],
                              preferred_element_type=jnp.float32)
            acc = contrib if acc is None else acc + contrib
        a = jnp.maximum(acc + b_ref[...], 0.0)
        dst_ref[P:P + H, P:P + W, :] = a.reshape(H, W, C)

    mid_layer(apad_a, apad_b, w1_ref, b1_ref)
    mid_layer(apad_b, apad_a, w2_ref, b2_ref)
    mid_layer(apad_a, apad_b, w3_ref, b3_ref)

    # ----- conv7 (C -> 1): VPU multiply + XLU lane-reduce per tap, no ReLU
    acc7 = None
    for t, (dy, dx) in enumerate(taps):
        slab = apad_b[dy:dy + H, dx:dx + W, :].reshape(HW, C)
        contrib = jnp.sum(slab * w7_ref[t:t + 1, :], axis=-1, keepdims=True)
        acc7 = contrib if acc7 is None else acc7 + contrib
    o_ref[0] = (acc7 + b7_ref[...]).astype(o_ref.dtype)              # (HW, 1)


def ussrnet5_dilated_forward(x_nchw, kp, *, dilation=2):
    """Forward pass. x_nchw: (N, 1, H, W); kp: packed (flattened) params."""
    N, cin, H, W = x_nchw.shape
    assert cin == 1
    C = kp["b1"].shape[-1]
    D = dilation
    HW = H * W
    x = x_nchw.reshape(N, HW, 1)    # Cin=1: NCHW -> (N, HW, 1) is a pure reshape

    kern = functools.partial(_fused_kernel, H=H, W=W, C=C, D=D)
    out = pl.pallas_call(
        kern,
        out_shape=jax.ShapeDtypeStruct((N, HW, 1), x.dtype),
        grid_spec=pltpu.PrefetchScalarGridSpec(
            num_scalar_prefetch=0,
            grid=(N,),
            in_specs=[
                pl.BlockSpec((1, HW, 1), lambda n: (n, 0, 0)),
                pl.BlockSpec((9, C), lambda n: (0, 0)),
                pl.BlockSpec((1, C), lambda n: (0, 0)),
                pl.BlockSpec((9 * C, C), lambda n: (0, 0)),
                pl.BlockSpec((1, C), lambda n: (0, 0)),
                pl.BlockSpec((9 * C, C), lambda n: (0, 0)),
                pl.BlockSpec((1, C), lambda n: (0, 0)),
                pl.BlockSpec((9 * C, C), lambda n: (0, 0)),
                pl.BlockSpec((1, C), lambda n: (0, 0)),
                pl.BlockSpec((9, C), lambda n: (0, 0)),
                pl.BlockSpec((1, 1), lambda n: (0, 0)),
            ],
            out_specs=pl.BlockSpec((1, HW, 1), lambda n: (n, 0, 0)),
            scratch_shapes=[
                pltpu.VMEM((H + 2 * D, W + 2 * D, 1), jnp.float32),
                pltpu.VMEM((H + 2 * D, W + 2 * D, C), jnp.float32),
                pltpu.VMEM((H + 2 * D, W + 2 * D, C), jnp.float32),
            ],
        ),
        compiler_params=pltpu.CompilerParams(
            dimension_semantics=("parallel",)),
    )(x, kp["w0"], kp["b0"], kp["w1"], kp["b1"], kp["w2"], kp["b2"],
      kp["w3"], kp["b3"], kp["w7"], kp["b7"])
    return out.reshape(N, 1, H, W)


ussrnet5_forward = jax.jit(ussrnet5_dilated_forward)


def init_params(key, input_channels=1, kernel_size=3, channels=64):
    """PyTorch-style uniform(-1/sqrt(fan_in), +) init, HWIO layout."""
    def conv_init(k, cin, cout):
        kw, kb = jax.random.split(k)
        fan_in = cin * kernel_size * kernel_size
        bound = 1.0 / jnp.sqrt(fan_in)
        w = jax.random.uniform(kw, (kernel_size, kernel_size, cin, cout),
                               jnp.float32, -bound, bound)
        b = jax.random.uniform(kb, (cout,), jnp.float32, -bound, bound)
        return w, b

    keys = jax.random.split(key, 5)
    w0, b0 = conv_init(keys[0], input_channels, channels)
    w1, b1 = conv_init(keys[1], channels, channels)
    w2, b2 = conv_init(keys[2], channels, channels)
    w3, b3 = conv_init(keys[3], channels, channels)
    w7, b7 = conv_init(keys[4], channels, input_channels)
    return dict(w0=w0, b0=b0, w1=w1, b1=b1, w2=w2, b2=b2,
                w3=w3, b3=b3, w7=w7, b7=b7)


def pack_params(params):
    """Flatten HWIO weights into per-tap matrices for the kernel."""
    C = params["w0"].shape[-1]
    return dict(
        w0=params["w0"].reshape(9, C),            # (3,3,1,C) -> (9, C)
        b0=params["b0"].reshape(1, C),
        w1=params["w1"].reshape(9 * C, C), b1=params["b1"].reshape(1, C),
        w2=params["w2"].reshape(9 * C, C), b2=params["b2"].reshape(1, C),
        w3=params["w3"].reshape(9 * C, C), b3=params["b3"].reshape(1, C),
        w7=params["w7"].reshape(9, C),            # (3,3,C,1) -> (9, C)
        b7=params["b7"].reshape(1, 1),
    )


def ussrnet5_reference(x_nchw, params, *, dilation=2):
    """Pure-JAX reference (XLA dilated conv) for correctness checking."""
    def conv(x, w, b):
        y = jax.lax.conv_general_dilated(
            x, w, window_strides=(1, 1),
            padding=((dilation, dilation), (dilation, dilation)),
            rhs_dilation=(dilation, dilation),
            dimension_numbers=("NHWC", "HWIO", "NHWC"),
            precision=jax.lax.Precision.HIGHEST)
        return y + b[None, None, None, :]

    x = jnp.transpose(x_nchw, (0, 2, 3, 1))
    x = jax.nn.relu(conv(x, params["w0"], params["b0"]))
    x = jax.nn.relu(conv(x, params["w1"], params["b1"]))
    x = jax.nn.relu(conv(x, params["w2"], params["b2"]))
    x = jax.nn.relu(conv(x, params["w3"], params["b3"]))
    x = conv(x, params["w7"], params["b7"])
    return jnp.transpose(x, (0, 3, 1, 2))


if __name__ == "__main__":
    key = jax.random.PRNGKey(0)
    k_params, k_x = jax.random.split(key)

    # Module defaults: input_channels=1, hidden channels=64, dilation=2;
    # small test shapes: batch=2, 16x16 spatial, NCHW like PyTorch.
    params = init_params(k_params, input_channels=1, kernel_size=3, channels=64)
    x = jax.random.normal(k_x, (2, 1, 16, 16), jnp.float32)

    out = ussrnet5_forward(x, pack_params(params))
    out = jax.block_until_ready(out)

    ref = ussrnet5_reference(x, params)
    assert out.shape == (2, 1, 16, 16)
    max_err = jnp.max(jnp.abs(out - ref))
    assert jnp.allclose(out, ref, rtol=1e-3, atol=1e-3), f"mismatch vs ref: {max_err}"
    print("KERNEL_OK")
</pallas_src>

<mosaic_0001>
module attributes {stable_mosaic.version = 11 : i64} {
  func.func @_fused_kernel(%arg0: i32, %arg1: memref<1x256x1xf32, #tpu.memory_space<vmem>>, %arg2: memref<9x64xf32, #tpu.memory_space<vmem>>, %arg3: memref<1x64xf32, #tpu.memory_space<vmem>>, %arg4: memref<576x64xf32, #tpu.memory_space<vmem>>, %arg5: memref<1x64xf32, #tpu.memory_space<vmem>>, %arg6: memref<576x64xf32, #tpu.memory_space<vmem>>, %arg7: memref<1x64xf32, #tpu.memory_space<vmem>>, %arg8: memref<576x64xf32, #tpu.memory_space<vmem>>, %arg9: memref<1x64xf32, #tpu.memory_space<vmem>>, %arg10: memref<9x64xf32, #tpu.memory_space<vmem>>, %arg11: memref<1x1xf32, #tpu.memory_space<vmem>>, %arg12: memref<1x256x1xf32, #tpu.memory_space<vmem>>, %arg13: memref<20x20x1xf32, #tpu.memory_space<vmem>>, %arg14: memref<20x20x64xf32, #tpu.memory_space<vmem>>, %arg15: memref<20x20x64xf32, #tpu.memory_space<vmem>>) attributes {dimension_semantics = [#tpu.dimension_semantics<parallel>], iteration_bounds = array<i64: 2>, scalar_prefetch = 0 : i64, scratch_operands = 3 : i64, tpu.core_type = #tpu.core_type<tc>, window_params = [{transform_indices = @transform_0, window_bounds = array<i64: 1, 256, 1>}, {pipeline_mode = #tpu.pipeline_mode<synchronous>, transform_indices = @transform_1, window_bounds = array<i64: 9, 64>}, {pipeline_mode = #tpu.pipeline_mode<synchronous>, transform_indices = @transform_2, window_bounds = array<i64: 1, 64>}, {pipeline_mode = #tpu.pipeline_mode<synchronous>, transform_indices = @transform_3, window_bounds = array<i64: 576, 64>}, {pipeline_mode = #tpu.pipeline_mode<synchronous>, transform_indices = @transform_4, window_bounds = array<i64: 1, 64>}, {pipeline_mode = #tpu.pipeline_mode<synchronous>, transform_indices = @transform_5, window_bounds = array<i64: 576, 64>}, {pipeline_mode = #tpu.pipeline_mode<synchronous>, transform_indices = @transform_6, window_bounds = array<i64: 1, 64>}, {pipeline_mode = #tpu.pipeline_mode<synchronous>, transform_indices = @transform_7, window_bounds = array<i64: 576, 64>}, {pipeline_mode = #tpu.pipeline_mode<synchronous>, transform_indices = @transform_8, window_bounds = array<i64: 1, 64>}, {pipeline_mode = #tpu.pipeline_mode<synchronous>, transform_indices = @transform_9, window_bounds = array<i64: 9, 64>}, {pipeline_mode = #tpu.pipeline_mode<synchronous>, transform_indices = @transform_10, window_bounds = array<i64: 1, 1>}, {transform_indices = @transform_11, window_bounds = array<i64: 1, 256, 1>}]} {
    %cst = arith.constant 0.000000e+00 : f32
    %0 = vector.broadcast %cst : f32 to vector<2x20x64xf32>
    %c0 = arith.constant 0 : index
    %c0_0 = arith.constant 0 : index
    %c0_1 = arith.constant 0 : index
    %1 = vector.load %arg14[%c0, %c0_0, %c0_1] : memref<20x20x64xf32, #tpu.memory_space<vmem>>, vector<2x20x64xf32>
    tpu.vector_store %arg14[%c0, %c0_0, %c0_1], %0 {strides = array<i32>} : memref<20x20x64xf32, #tpu.memory_space<vmem>>, vector<2x20x64xf32>,
    %cst_2 = arith.constant 0.000000e+00 : f32
    %2 = vector.broadcast %cst_2 : f32 to vector<2x20x64xf32>
    %c18 = arith.constant 18 : index
    %c0_3 = arith.constant 0 : index
    %c0_4 = arith.constant 0 : index
    %3 = vector.load %arg14[%c18, %c0_3, %c0_4] : memref<20x20x64xf32, #tpu.memory_space<vmem>>, vector<2x20x64xf32>
    tpu.vector_store %arg14[%c18, %c0_3, %c0_4], %2 {strides = array<i32>} : memref<20x20x64xf32, #tpu.memory_space<vmem>>, vector<2x20x64xf32>,
    %cst_5 = arith.constant 0.000000e+00 : f32
    %4 = vector.broadcast %cst_5 : f32 to vector<16x2x64xf32>
    %c2 = arith.constant 2 : index
    %c0_6 = arith.constant 0 : index
    %c0_7 = arith.constant 0 : index
    %5 = vector.load %arg14[%c2, %c0_6, %c0_7] : memref<20x20x64xf32, #tpu.memory_space<vmem>>, vector<16x2x64xf32>
    tpu.vector_store %arg14[%c2, %c0_6, %c0_7], %4 {strides = array<i32>} : memref<20x20x64xf32, #tpu.memory_space<vmem>>, vector<16x2x64xf32>,
    %cst_8 = arith.constant 0.000000e+00 : f32
    %6 = vector.broadcast %cst_8 : f32 to vector<16x2x64xf32>
    %c2_9 = arith.constant 2 : index
    %c18_10 = arith.constant 18 : index
    %c0_11 = arith.constant 0 : index
    %7 = vector.load %arg14[%c2_9, %c18_10, %c0_11] : memref<20x20x64xf32, #tpu.memory_space<vmem>>, vector<16x2x64xf32>
    tpu.vector_store %arg14[%c2_9, %c18_10, %c0_11], %6 {strides = array<i32>} : memref<20x20x64xf32, #tpu.memory_space<vmem>>, vector<16x2x64xf32>,
    %cst_12 = arith.constant 0.000000e+00 : f32
    %8 = vector.broadcast %cst_12 : f32 to vector<2x20x64xf32>
    %c0_13 = arith.constant 0 : index
    %c0_14 = arith.constant 0 : index
    %c0_15 = arith.constant 0 : index
    %9 = vector.load %arg15[%c0_13, %c0_14, %c0_15] : memref<20x20x64xf32, #tpu.memory_space<vmem>>, vector<2x20x64xf32>
    tpu.vector_store %arg15[%c0_13, %c0_14, %c0_15], %8 {strides = array<i32>} : memref<20x20x64xf32, #tpu.memory_space<vmem>>, vector<2x20x64xf32>,
    %cst_16 = arith.constant 0.000000e+00 : f32
    %10 = vector.broadcast %cst_16 : f32 to vector<2x20x64xf32>
    %c18_17 = arith.constant 18 : index
    %c0_18 = arith.constant 0 : index
    %c0_19 = arith.constant 0 : index
    %11 = vector.load %arg15[%c18_17, %c0_18, %c0_19] : memref<20x20x64xf32, #tpu.memory_space<vmem>>, vector<2x20x64xf32>
    tpu.vector_store %arg15[%c18_17, %c0_18, %c0_19], %10 {strides = array<i32>} : memref<20x20x64xf32, #tpu.memory_space<vmem>>, vector<2x20x64xf32>,
    %cst_20 = arith.constant 0.000000e+00 : f32
    %12 = vector.broadcast %cst_20 : f32 to vector<16x2x64xf32>
    %c2_21 = arith.constant 2 : index
    %c0_22 = arith.constant 0 : index
    %c0_23 = arith.constant 0 : index
    %13 = vector.load %arg15[%c2_21, %c0_22, %c0_23] : memref<20x20x64xf32, #tpu.memory_space<vmem>>, vector<16x2x64xf32>
    tpu.vector_store %arg15[%c2_21, %c0_22, %c0_23], %12 {strides = array<i32>} : memref<20x20x64xf32, #tpu.memory_space<vmem>>, vector<16x2x64xf32>,
    %cst_24 = arith.constant 0.000000e+00 : f32
    %14 = vector.broadcast %cst_24 : f32 to vector<16x2x64xf32>
    %c2_25 = arith.constant 2 : index
    %c18_26 = arith.constant 18 : index
    %c0_27 = arith.constant 0 : index
    %15 = vector.load %arg15[%c2_25, %c18_26, %c0_27] : memref<20x20x64xf32, #tpu.memory_space<vmem>>, vector<16x2x64xf32>
    tpu.vector_store %arg15[%c2_25, %c18_26, %c0_27], %14 {strides = array<i32>} : memref<20x20x64xf32, #tpu.memory_space<vmem>>, vector<16x2x64xf32>,
    %cst_28 = arith.constant 0.000000e+00 : f32
    %16 = vector.broadcast %cst_28 : f32 to vector<20x20x1xf32>
    %c0_29 = arith.constant 0 : index
    %c0_30 = arith.constant 0 : index
    %c0_31 = arith.constant 0 : index
    %17 = vector.load %arg13[%c0_29, %c0_30, %c0_31] : memref<20x20x1xf32, #tpu.memory_space<vmem>>, vector<20x20x1xf32>
    tpu.vector_store %arg13[%c0_29, %c0_30, %c0_31], %16 {strides = array<i32>} : memref<20x20x1xf32, #tpu.memory_space<vmem>>, vector<20x20x1xf32>,
    %c0_32 = arith.constant 0 : index
    %c0_33 = arith.constant 0 : index
    %c0_34 = arith.constant 0 : index
    %18 = vector.load %arg1[%c0_32, %c0_33, %c0_34] : memref<1x256x1xf32, #tpu.memory_space<vmem>>, vector<1x256x1xf32>
    %19 = vector.shape_cast %18 : vector<1x256x1xf32> to vector<256x1xf32>
    %20 = vector.shape_cast %19 : vector<256x1xf32> to vector<16x16x1xf32>
    %c2_35 = arith.constant 2 : index
    %c2_36 = arith.constant 2 : index
    %c0_37 = arith.constant 0 : index
    %21 = vector.load %arg13[%c2_35, %c2_36, %c0_37] : memref<20x20x1xf32, #tpu.memory_space<vmem>>, vector<16x16x1xf32>
    tpu.vector_store %arg13[%c2_35, %c2_36, %c0_37], %20 {strides = array<i32>} : memref<20x20x1xf32, #tpu.memory_space<vmem>>, vector<16x16x1xf32>,
    %c0_38 = arith.constant 0 : index
    %c0_39 = arith.constant 0 : index
    %c0_40 = arith.constant 0 : index
    %22 = vector.load %arg13[%c0_38, %c0_39, %c0_40] : memref<20x20x1xf32, #tpu.memory_space<vmem>>, vector<16x16x1xf32>
    %23 = vector.shape_cast %22 : vector<16x16x1xf32> to vector<256x1xf32>
    %c0_41 = arith.constant 0 : index
    %c0_42 = arith.constant 0 : index
    %24 = vector.load %arg2[%c0_41, %c0_42] : memref<9x64xf32, #tpu.memory_space<vmem>>, vector<1x64xf32>
    %25 = vector.broadcast %23 : vector<256x1xf32> to vector<256x64xf32>
    %26 = vector.broadcast %24 : vector<1x64xf32> to vector<256x64xf32>
    %27 = arith.mulf %25, %26 : vector<256x64xf32>
    %c0_43 = arith.constant 0 : index
    %c2_44 = arith.constant 2 : index
    %c0_45 = arith.constant 0 : index
    %28 = vector.load %arg13[%c0_43, %c2_44, %c0_45] : memref<20x20x1xf32, #tpu.memory_space<vmem>>, vector<16x16x1xf32>
    %29 = vector.shape_cast %28 : vector<16x16x1xf32> to vector<256x1xf32>
    %c1 = arith.constant 1 : index
    %c0_46 = arith.constant 0 : index
    %30 = vector.load %arg2[%c1, %c0_46] : memref<9x64xf32, #tpu.memory_space<vmem>>, vector<1x64xf32>
    %31 = vector.broadcast %29 : vector<256x1xf32> to vector<256x64xf32>
    %32 = vector.broadcast %30 : vector<1x64xf32> to vector<256x64xf32>
    %33 = arith.mulf %31, %32 : vector<256x64xf32>
    %34 = arith.addf %27, %33 : vector<256x64xf32>
    %c0_47 = arith.constant 0 : index
    %c4 = arith.constant 4 : index
    %c0_48 = arith.constant 0 : index
    %35 = vector.load %arg13[%c0_47, %c4, %c0_48] : memref<20x20x1xf32, #tpu.memory_space<vmem>>, vector<16x16x1xf32>
    %36 = vector.shape_cast %35 : vector<16x16x1xf32> to vector<256x1xf32>
    %c2_49 = arith.constant 2 : index
    %c0_50 = arith.constant 0 : index
    %37 = vector.load %arg2[%c2_49, %c0_50] : memref<9x64xf32, #tpu.memory_space<vmem>>, vector<1x64xf32>
    %38 = vector.broadcast %36 : vector<256x1xf32> to vector<256x64xf32>
    %39 = vector.broadcast %37 : vector<1x64xf32> to vector<256x64xf32>
    %40 = arith.mulf %38, %39 : vector<256x64xf32>
    %41 = arith.addf %34, %40 : vector<256x64xf32>
    %c2_51 = arith.constant 2 : index
    %c0_52 = arith.constant 0 : index
    %c0_53 = arith.constant 0 : index
    %42 = vector.load %arg13[%c2_51, %c0_52, %c0_53] : memref<20x20x1xf32, #tpu.memory_space<vmem>>, vector<16x16x1xf32>
    %43 = vector.shape_cast %42 : vector<16x16x1xf32> to vector<256x1xf32>
    %c3 = arith.constant 3 : index
    %c0_54 = arith.constant 0 : index
    %44 = vector.load %arg2[%c3, %c0_54] : memref<9x64xf32, #tpu.memory_space<vmem>>, vector<1x64xf32>
    %45 = vector.broadcast %43 : vector<256x1xf32> to vector<256x64xf32>
    %46 = vector.broadcast %44 : vector<1x64xf32> to vector<256x64xf32>
    %47 = arith.mulf %45, %46 : vector<256x64xf32>
    %48 = arith.addf %41, %47 : vector<256x64xf32>
    %c2_55 = arith.constant 2 : index
    %c2_56 = arith.constant 2 : index
    %c0_57 = arith.constant 0 : index
    %49 = vector.load %arg13[%c2_55, %c2_56, %c0_57] : memref<20x20x1xf32, #tpu.memory_space<vmem>>, vector<16x16x1xf32>
    %50 = vector.shape_cast %49 : vector<16x16x1xf32> to vector<256x1xf32>
    %c4_58 = arith.constant 4 : index
    %c0_59 = arith.constant 0 : index
    %51 = vector.load %arg2[%c4_58, %c0_59] : memref<9x64xf32, #tpu.memory_space<vmem>>, vector<1x64xf32>
    %52 = vector.broadcast %50 : vector<256x1xf32> to vector<256x64xf32>
    %53 = vector.broadcast %51 : vector<1x64xf32> to vector<256x64xf32>
    %54 = arith.mulf %52, %53 : vector<256x64xf32>
    %55 = arith.addf %48, %54 : vector<256x64xf32>
    %c2_60 = arith.constant 2 : index
    %c4_61 = arith.constant 4 : index
    %c0_62 = arith.constant 0 : index
    %56 = vector.load %arg13[%c2_60, %c4_61, %c0_62] : memref<20x20x1xf32, #tpu.memory_space<vmem>>, vector<16x16x1xf32>
    %57 = vector.shape_cast %56 : vector<16x16x1xf32> to vector<256x1xf32>
    %c5 = arith.constant 5 : index
    %c0_63 = arith.constant 0 : index
    %58 = vector.load %arg2[%c5, %c0_63] : memref<9x64xf32, #tpu.memory_space<vmem>>, vector<1x64xf32>
    %59 = vector.broadcast %57 : vector<256x1xf32> to vector<256x64xf32>
    %60 = vector.broadcast %58 : vector<1x64xf32> to vector<256x64xf32>
    %61 = arith.mulf %59, %60 : vector<256x64xf32>
    %62 = arith.addf %55, %61 : vector<256x64xf32>
    %c4_64 = arith.constant 4 : index
    %c0_65 = arith.constant 0 : index
    %c0_66 = arith.constant 0 : index
    %63 = vector.load %arg13[%c4_64, %c0_65, %c0_66] : memref<20x20x1xf32, #tpu.memory_space<vmem>>, vector<16x16x1xf32>
    %64 = vector.shape_cast %63 : vector<16x16x1xf32> to vector<256x1xf32>
    %c6 = arith.constant 6 : index
    %c0_67 = arith.constant 0 : index
    %65 = vector.load %arg2[%c6, %c0_67] : memref<9x64xf32, #tpu.memory_space<vmem>>, vector<1x64xf32>
    %66 = vector.broadcast %64 : vector<256x1xf32> to vector<256x64xf32>
    %67 = vector.broadcast %65 : vector<1x64xf32> to vector<256x64xf32>
    %68 = arith.mulf %66, %67 : vector<256x64xf32>
    %69 = arith.addf %62, %68 : vector<256x64xf32>
    %c4_68 = arith.constant 4 : index
    %c2_69 = arith.constant 2 : index
    %c0_70 = arith.constant 0 : index
    %70 = vector.load %arg13[%c4_68, %c2_69, %c0_70] : memref<20x20x1xf32, #tpu.memory_space<vmem>>, vector<16x16x1xf32>
    %71 = vector.shape_cast %70 : vector<16x16x1xf32> to vector<256x1xf32>
    %c7 = arith.constant 7 : index
    %c0_71 = arith.constant 0 : index
    %72 = vector.load %arg2[%c7, %c0_71] : memref<9x64xf32, #tpu.memory_space<vmem>>, vector<1x64xf32>
    %73 = vector.broadcast %71 : vector<256x1xf32> to vector<256x64xf32>
    %74 = vector.broadcast %72 : vector<1x64xf32> to vector<256x64xf32>
    %75 = arith.mulf %73, %74 : vector<256x64xf32>
    %76 = arith.addf %69, %75 : vector<256x64xf32>
    %c4_72 = arith.constant 4 : index
    %c4_73 = arith.constant 4 : index
    %c0_74 = arith.constant 0 : index
    %77 = vector.load %arg13[%c4_72, %c4_73, %c0_74] : memref<20x20x1xf32, #tpu.memory_space<vmem>>, vector<16x16x1xf32>
    %78 = vector.shape_cast %77 : vector<16x16x1xf32> to vector<256x1xf32>
    %c8 = arith.constant 8 : index
    %c0_75 = arith.constant 0 : index
    %79 = vector.load %arg2[%c8, %c0_75] : memref<9x64xf32, #tpu.memory_space<vmem>>, vector<1x64xf32>
    %80 = vector.broadcast %78 : vector<256x1xf32> to vector<256x64xf32>
    %81 = vector.broadcast %79 : vector<1x64xf32> to vector<256x64xf32>
    %82 = arith.mulf %80, %81 : vector<256x64xf32>
    %83 = arith.addf %76, %82 : vector<256x64xf32>
    %c0_76 = arith.constant 0 : index
    %c0_77 = arith.constant 0 : index
    %84 = vector.load %arg3[%c0_76, %c0_77] : memref<1x64xf32, #tpu.memory_space<vmem>>, vector<1x64xf32>
    %85 = vector.broadcast %84 : vector<1x64xf32> to vector<256x64xf32>
    %86 = arith.addf %83, %85 : vector<256x64xf32>
    %cst_78 = arith.constant 0.000000e+00 : f32
    %87 = vector.broadcast %cst_78 : f32 to vector<256x64xf32>
    %88 = arith.maximumf %86, %87 : vector<256x64xf32>
    %89 = vector.shape_cast %88 : vector<256x64xf32> to vector<16x16x64xf32>
    %c2_79 = arith.constant 2 : index
    %c2_80 = arith.constant 2 : index
    %c0_81 = arith.constant 0 : index
    %90 = vector.load %arg14[%c2_79, %c2_80, %c0_81] : memref<20x20x64xf32, #tpu.memory_space<vmem>>, vector<16x16x64xf32>
    tpu.vector_store %arg14[%c2_79, %c2_80, %c0_81], %89 {strides = array<i32>} : memref<20x20x64xf32, #tpu.memory_space<vmem>>, vector<16x16x64xf32>,
    %c0_82 = arith.constant 0 : index
    %c0_83 = arith.constant 0 : index
    %c0_84 = arith.constant 0 : index
    %91 = vector.load %arg14[%c0_82, %c0_83, %c0_84] : memref<20x20x64xf32, #tpu.memory_space<vmem>>, vector<16x16x64xf32>
    %92 = vector.shape_cast %91 : vector<16x16x64xf32> to vector<256x64xf32>
    %c0_85 = arith.constant 0 : index
    %c0_86 = arith.constant 0 : index
    %93 = vector.load %arg4[%c0_85, %c0_86] : memref<576x64xf32, #tpu.memory_space<vmem>>, vector<64x64xf32>
    %cst_87 = arith.constant dense<0.000000e+00> : vector<256x64xf32>
    %94 = tpu.matmul %92, %93, %cst_87 {dimension_numbers = #tpu.dot_dimension_numbers<[1], [0], [0], [1], [0, 0, 1, 1], [], []>} : vector<256x64xf32>, vector<64x64xf32>, vector<256x64xf32> -> vector<256x64xf32>
    %c0_88 = arith.constant 0 : index
    %c2_89 = arith.constant 2 : index
    %c0_90 = arith.constant 0 : index
    %95 = vector.load %arg14[%c0_88, %c2_89, %c0_90] : memref<20x20x64xf32, #tpu.memory_space<vmem>>, vector<16x16x64xf32>
    %96 = vector.shape_cast %95 : vector<16x16x64xf32> to vector<256x64xf32>
    %c64 = arith.constant 64 : index
    %c0_91 = arith.constant 0 : index
    %97 = vector.load %arg4[%c64, %c0_91] : memref<576x64xf32, #tpu.memory_space<vmem>>, vector<64x64xf32>
    %cst_92 = arith.constant dense<0.000000e+00> : vector<256x64xf32>
    %98 = tpu.matmul %96, %97, %cst_92 {dimension_numbers = #tpu.dot_dimension_numbers<[1], [0], [0], [1], [0, 0, 1, 1], [], []>} : vector<256x64xf32>, vector<64x64xf32>, vector<256x64xf32> -> vector<256x64xf32>
    %99 = arith.addf %94, %98 : vector<256x64xf32>
    %c0_93 = arith.constant 0 : index
    %c4_94 = arith.constant 4 : index
    %c0_95 = arith.constant 0 : index
    %100 = vector.load %arg14[%c0_93, %c4_94, %c0_95] : memref<20x20x64xf32, #tpu.memory_space<vmem>>, vector<16x16x64xf32>
    %101 = vector.shape_cast %100 : vector<16x16x64xf32> to vector<256x64xf32>
    %c128 = arith.constant 128 : index
    %c0_96 = arith.constant 0 : index
    %102 = vector.load %arg4[%c128, %c0_96] : memref<576x64xf32, #tpu.memory_space<vmem>>, vector<64x64xf32>
    %cst_97 = arith.constant dense<0.000000e+00> : vector<256x64xf32>
    %103 = tpu.matmul %101, %102, %cst_97 {dimension_numbers = #tpu.dot_dimension_numbers<[1], [0], [0], [1], [0, 0, 1, 1], [], []>} : vector<256x64xf32>, vector<64x64xf32>, vector<256x64xf32> -> vector<256x64xf32>
    %104 = arith.addf %99, %103 : vector<256x64xf32>
    %c2_98 = arith.constant 2 : index
    %c0_99 = arith.constant 0 : index
    %c0_100 = arith.constant 0 : index
    %105 = vector.load %arg14[%c2_98, %c0_99, %c0_100] : memref<20x20x64xf32, #tpu.memory_space<vmem>>, vector<16x16x64xf32>
    %106 = vector.shape_cast %105 : vector<16x16x64xf32> to vector<256x64xf32>
    %c192 = arith.constant 192 : index
    %c0_101 = arith.constant 0 : index
    %107 = vector.load %arg4[%c192, %c0_101] : memref<576x64xf32, #tpu.memory_space<vmem>>, vector<64x64xf32>
    %cst_102 = arith.constant dense<0.000000e+00> : vector<256x64xf32>
    %108 = tpu.matmul %106, %107, %cst_102 {dimension_numbers = #tpu.dot_dimension_numbers<[1], [0], [0], [1], [0, 0, 1, 1], [], []>} : vector<256x64xf32>, vector<64x64xf32>, vector<256x64xf32> -> vector<256x64xf32>
    %109 = arith.addf %104, %108 : vector<256x64xf32>
    %c2_103 = arith.constant 2 : index
    %c2_104 = arith.constant 2 : index
    %c0_105 = arith.constant 0 : index
    %110 = vector.load %arg14[%c2_103, %c2_104, %c0_105] : memref<20x20x64xf32, #tpu.memory_space<vmem>>, vector<16x16x64xf32>
    %111 = vector.shape_cast %110 : vector<16x16x64xf32> to vector<256x64xf32>
    %c256 = arith.constant 256 : index
    %c0_106 = arith.constant 0 : index
    %112 = vector.load %arg4[%c256, %c0_106] : memref<576x64xf32, #tpu.memory_space<vmem>>, vector<64x64xf32>
    %cst_107 = arith.constant dense<0.000000e+00> : vector<256x64xf32>
    %113 = tpu.matmul %111, %112, %cst_107 {dimension_numbers = #tpu.dot_dimension_numbers<[1], [0], [0], [1], [0, 0, 1, 1], [], []>} : vector<256x64xf32>, vector<64x64xf32>, vector<256x64xf32> -> vector<256x64xf32>
    %114 = arith.addf %109, %113 : vector<256x64xf32>
    %c2_108 = arith.constant 2 : index
    %c4_109 = arith.constant 4 : index
    %c0_110 = arith.constant 0 : index
    %115 = vector.load %arg14[%c2_108, %c4_109, %c0_110] : memref<20x20x64xf32, #tpu.memory_space<vmem>>, vector<16x16x64xf32>
    %116 = vector.shape_cast %115 : vector<16x16x64xf32> to vector<256x64xf32>
    %c320 = arith.constant 320 : index
    %c0_111 = arith.constant 0 : index
    %117 = vector.load %arg4[%c320, %c0_111] : memref<576x64xf32, #tpu.memory_space<vmem>>, vector<64x64xf32>
    %cst_112 = arith.constant dense<0.000000e+00> : vector<256x64xf32>
    %118 = tpu.matmul %116, %117, %cst_112 {dimension_numbers = #tpu.dot_dimension_numbers<[1], [0], [0], [1], [0, 0, 1, 1], [], []>} : vector<256x64xf32>, vector<64x64xf32>, vector<256x64xf32> -> vector<256x64xf32>
    %119 = arith.addf %114, %118 : vector<256x64xf32>
    %c4_113 = arith.constant 4 : index
    %c0_114 = arith.constant 0 : index
    %c0_115 = arith.constant 0 : index
    %120 = vector.load %arg14[%c4_113, %c0_114, %c0_115] : memref<20x20x64xf32, #tpu.memory_space<vmem>>, vector<16x16x64xf32>
    %121 = vector.shape_cast %120 : vector<16x16x64xf32> to vector<256x64xf32>
    %c384 = arith.constant 384 : index
    %c0_116 = arith.constant 0 : index
    %122 = vector.load %arg4[%c384, %c0_116] : memref<576x64xf32, #tpu.memory_space<vmem>>, vector<64x64xf32>
    %cst_117 = arith.constant dense<0.000000e+00> : vector<256x64xf32>
    %123 = tpu.matmul %121, %122, %cst_117 {dimension_numbers = #tpu.dot_dimension_numbers<[1], [0], [0], [1], [0, 0, 1, 1], [], []>} : vector<256x64xf32>, vector<64x64xf32>, vector<256x64xf32> -> vector<256x64xf32>
    %124 = arith.addf %119, %123 : vector<256x64xf32>
    %c4_118 = arith.constant 4 : index
    %c2_119 = arith.constant 2 : index
    %c0_120 = arith.constant 0 : index
    %125 = vector.load %arg14[%c4_118, %c2_119, %c0_120] : memref<20x20x64xf32, #tpu.memory_space<vmem>>, vector<16x16x64xf32>
    %126 = vector.shape_cast %125 : vector<16x16x64xf32> to vector<256x64xf32>
    %c448 = arith.constant 448 : index
    %c0_121 = arith.constant 0 : index
    %127 = vector.load %arg4[%c448, %c0_121] : memref<576x64xf32, #tpu.memory_space<vmem>>, vector<64x64xf32>
    %cst_122 = arith.constant dense<0.000000e+00> : vector<256x64xf32>
    %128 = tpu.matmul %126, %127, %cst_122 {dimension_numbers = #tpu.dot_dimension_numbers<[1], [0], [0], [1], [0, 0, 1, 1], [], []>} : vector<256x64xf32>, vector<64x64xf32>, vector<256x64xf32> -> vector<256x64xf32>
    %129 = arith.addf %124, %128 : vector<256x64xf32>
    %c4_123 = arith.constant 4 : index
    %c4_124 = arith.constant 4 : index
    %c0_125 = arith.constant 0 : index
    %130 = vector.load %arg14[%c4_123, %c4_124, %c0_125] : memref<20x20x64xf32, #tpu.memory_space<vmem>>, vector<16x16x64xf32>
    %131 = vector.shape_cast %130 : vector<16x16x64xf32> to vector<256x64xf32>
    %c512 = arith.constant 512 : index
    %c0_126 = arith.constant 0 : index
    %132 = vector.load %arg4[%c512, %c0_126] : memref<576x64xf32, #tpu.memory_space<vmem>>, vector<64x64xf32>
    %cst_127 = arith.constant dense<0.000000e+00> : vector<256x64xf32>
    %133 = tpu.matmul %131, %132, %cst_127 {dimension_numbers = #tpu.dot_dimension_numbers<[1], [0], [0], [1], [0, 0, 1, 1], [], []>} : vector<256x64xf32>, vector<64x64xf32>, vector<256x64xf32> -> vector<256x64xf32>
    %134 = arith.addf %129, %133 : vector<256x64xf32>
    %c0_128 = arith.constant 0 : index
    %c0_129 = arith.constant 0 : index
    %135 = vector.load %arg5[%c0_128, %c0_129] : memref<1x64xf32, #tpu.memory_space<vmem>>, vector<1x64xf32>
    %136 = vector.broadcast %135 : vector<1x64xf32> to vector<256x64xf32>
    %137 = arith.addf %134, %136 : vector<256x64xf32>
    %cst_130 = arith.constant 0.000000e+00 : f32
    %138 = vector.broadcast %cst_130 : f32 to vector<256x64xf32>
    %139 = arith.maximumf %137, %138 : vector<256x64xf32>
    %140 = vector.shape_cast %139 : vector<256x64xf32> to vector<16x16x64xf32>
    %c2_131 = arith.constant 2 : index
    %c2_132 = arith.constant 2 : index
    %c0_133 = arith.constant 0 : index
    %141 = vector.load %arg15[%c2_131, %c2_132, %c0_133] : memref<20x20x64xf32, #tpu.memory_space<vmem>>, vector<16x16x64xf32>
    tpu.vector_store %arg15[%c2_131, %c2_132, %c0_133], %140 {strides = array<i32>} : memref<20x20x64xf32, #tpu.memory_space<vmem>>, vector<16x16x64xf32>,
    %c0_134 = arith.constant 0 : index
    %c0_135 = arith.constant 0 : index
    %c0_136 = arith.constant 0 : index
    %142 = vector.load %arg15[%c0_134, %c0_135, %c0_136] : memref<20x20x64xf32, #tpu.memory_space<vmem>>, vector<16x16x64xf32>
    %143 = vector.shape_cast %142 : vector<16x16x64xf32> to vector<256x64xf32>
    %c0_137 = arith.constant 0 : index
    %c0_138 = arith.constant 0 : index
    %144 = vector.load %arg6[%c0_137, %c0_138] : memref<576x64xf32, #tpu.memory_space<vmem>>, vector<64x64xf32>
    %cst_139 = arith.constant dense<0.000000e+00> : vector<256x64xf32>
    %145 = tpu.matmul %143, %144, %cst_139 {dimension_numbers = #tpu.dot_dimension_numbers<[1], [0], [0], [1], [0, 0, 1, 1], [], []>} : vector<256x64xf32>, vector<64x64xf32>, vector<256x64xf32> -> vector<256x64xf32>
    %c0_140 = arith.constant 0 : index
    %c2_141 = arith.constant 2 : index
    %c0_142 = arith.constant 0 : index
    %146 = vector.load %arg15[%c0_140, %c2_141, %c0_142] : memref<20x20x64xf32, #tpu.memory_space<vmem>>, vector<16x16x64xf32>
    %147 = vector.shape_cast %146 : vector<16x16x64xf32> to vector<256x64xf32>
    %c64_143 = arith.constant 64 : index
    %c0_144 = arith.constant 0 : index
    %148 = vector.load %arg6[%c64_143, %c0_144] : memref<576x64xf32, #tpu.memory_space<vmem>>, vector<64x64xf32>
    %cst_145 = arith.constant dense<0.000000e+00> : vector<256x64xf32>
    %149 = tpu.matmul %147, %148, %cst_145 {dimension_numbers = #tpu.dot_dimension_numbers<[1], [0], [0], [1], [0, 0, 1, 1], [], []>} : vector<256x64xf32>, vector<64x64xf32>, vector<256x64xf32> -> vector<256x64xf32>
    %150 = arith.addf %145, %149 : vector<256x64xf32>
    %c0_146 = arith.constant 0 : index
    %c4_147 = arith.constant 4 : index
    %c0_148 = arith.constant 0 : index
    %151 = vector.load %arg15[%c0_146, %c4_147, %c0_148] : memref<20x20x64xf32, #tpu.memory_space<vmem>>, vector<16x16x64xf32>
    %152 = vector.shape_cast %151 : vector<16x16x64xf32> to vector<256x64xf32>
    %c128_149 = arith.constant 128 : index
    %c0_150 = arith.constant 0 : index
    %153 = vector.load %arg6[%c128_149, %c0_150] : memref<576x64xf32, #tpu.memory_space<vmem>>, vector<64x64xf32>
    %cst_151 = arith.constant dense<0.000000e+00> : vector<256x64xf32>
    %154 = tpu.matmul %152, %153, %cst_151 {dimension_numbers = #tpu.dot_dimension_numbers<[1], [0], [0], [1], [0, 0, 1, 1], [], []>} : vector<256x64xf32>, vector<64x64xf32>, vector<256x64xf32> -> vector<256x64xf32>
    %155 = arith.addf %150, %154 : vector<256x64xf32>
    %c2_152 = arith.constant 2 : index
    %c0_153 = arith.constant 0 : index
    %c0_154 = arith.constant 0 : index
    %156 = vector.load %arg15[%c2_152, %c0_153, %c0_154] : memref<20x20x64xf32, #tpu.memory_space<vmem>>, vector<16x16x64xf32>
    %157 = vector.shape_cast %156 : vector<16x16x64xf32> to vector<256x64xf32>
    %c192_155 = arith.constant 192 : index
    %c0_156 = arith.constant 0 : index
    %158 = vector.load %arg6[%c192_155, %c0_156] : memref<576x64xf32, #tpu.memory_space<vmem>>, vector<64x64xf32>
    %cst_157 = arith.constant dense<0.000000e+00> : vector<256x64xf32>
    %159 = tpu.matmul %157, %158, %cst_157 {dimension_numbers = #tpu.dot_dimension_numbers<[1], [0], [0], [1], [0, 0, 1, 1], [], []>} : vector<256x64xf32>, vector<64x64xf32>, vector<256x64xf32> -> vector<256x64xf32>
    %160 = arith.addf %155, %159 : vector<256x64xf32>
    %c2_158 = arith.constant 2 : index
    %c2_159 = arith.constant 2 : index
    %c0_160 = arith.constant 0 : index
    %161 = vector.load %arg15[%c2_158, %c2_159, %c0_160] : memref<20x20x64xf32, #tpu.memory_space<vmem>>, vector<16x16x64xf32>
    %162 = vector.shape_cast %161 : vector<16x16x64xf32> to vector<256x64xf32>
    %c256_161 = arith.constant 256 : index
    %c0_162 = arith.constant 0 : index
    %163 = vector.load %arg6[%c256_161, %c0_162] : memref<576x64xf32, #tpu.memory_space<vmem>>, vector<64x64xf32>
    %cst_163 = arith.constant dense<0.000000e+00> : vector<256x64xf32>
    %164 = tpu.matmul %162, %163, %cst_163 {dimension_numbers = #tpu.dot_dimension_numbers<[1], [0], [0], [1], [0, 0, 1, 1], [], []>} : vector<256x64xf32>, vector<64x64xf32>, vector<256x64xf32> -> vector<256x64xf32>
    %165 = arith.addf %160, %164 : vector<256x64xf32>
    %c2_164 = arith.constant 2 : index
    %c4_165 = arith.constant 4 : index
    %c0_166 = arith.constant 0 : index
    %166 = vector.load %arg15[%c2_164, %c4_165, %c0_166] : memref<20x20x64xf32, #tpu.memory_space<vmem>>, vector<16x16x64xf32>
    %167 = vector.shape_cast %166 : vector<16x16x64xf32> to vector<256x64xf32>
    %c320_167 = arith.constant 320 : index
    %c0_168 = arith.constant 0 : index
    %168 = vector.load %arg6[%c320_167, %c0_168] : memref<576x64xf32, #tpu.memory_space<vmem>>, vector<64x64xf32>
    %cst_169 = arith.constant dense<0.000000e+00> : vector<256x64xf32>
    %169 = tpu.matmul %167, %168, %cst_169 {dimension_numbers = #tpu.dot_dimension_numbers<[1], [0], [0], [1], [0, 0, 1, 1], [], []>} : vector<256x64xf32>, vector<64x64xf32>, vector<256x64xf32> -> vector<256x64xf32>
    %170 = arith.addf %165, %169 : vector<256x64xf32>
    %c4_170 = arith.constant 4 : index
    %c0_171 = arith.constant 0 : index
    %c0_172 = arith.constant 0 : index
    %171 = vector.load %arg15[%c4_170, %c0_171, %c0_172] : memref<20x20x64xf32, #tpu.memory_space<vmem>>, vector<16x16x64xf32>
    %172 = vector.shape_cast %171 : vector<16x16x64xf32> to vector<256x64xf32>
    %c384_173 = arith.constant 384 : index
    %c0_174 = arith.constant 0 : index
    %173 = vector.load %arg6[%c384_173, %c0_174] : memref<576x64xf32, #tpu.memory_space<vmem>>, vector<64x64xf32>
    %cst_175 = arith.constant dense<0.000000e+00> : vector<256x64xf32>
    %174 = tpu.matmul %172, %173, %cst_175 {dimension_numbers = #tpu.dot_dimension_numbers<[1], [0], [0], [1], [0, 0, 1, 1], [], []>} : vector<256x64xf32>, vector<64x64xf32>, vector<256x64xf32> -> vector<256x64xf32>
    %175 = arith.addf %170, %174 : vector<256x64xf32>
    %c4_176 = arith.constant 4 : index
    %c2_177 = arith.constant 2 : index
    %c0_178 = arith.constant 0 : index
    %176 = vector.load %arg15[%c4_176, %c2_177, %c0_178] : memref<20x20x64xf32, #tpu.memory_space<vmem>>, vector<16x16x64xf32>
    %177 = vector.shape_cast %176 : vector<16x16x64xf32> to vector<256x64xf32>
    %c448_179 = arith.constant 448 : index
    %c0_180 = arith.constant 0 : index
    %178 = vector.load %arg6[%c448_179, %c0_180] : memref<576x64xf32, #tpu.memory_space<vmem>>, vector<64x64xf32>
    %cst_181 = arith.constant dense<0.000000e+00> : vector<256x64xf32>
    %179 = tpu.matmul %177, %178, %cst_181 {dimension_numbers = #tpu.dot_dimension_numbers<[1], [0], [0], [1], [0, 0, 1, 1], [], []>} : vector<256x64xf32>, vector<64x64xf32>, vector<256x64xf32> -> vector<256x64xf32>
    %180 = arith.addf %175, %179 : vector<256x64xf32>
    %c4_182 = arith.constant 4 : index
    %c4_183 = arith.constant 4 : index
    %c0_184 = arith.constant 0 : index
    %181 = vector.load %arg15[%c4_182, %c4_183, %c0_184] : memref<20x20x64xf32, #tpu.memory_space<vmem>>, vector<16x16x64xf32>
    %182 = vector.shape_cast %181 : vector<16x16x64xf32> to vector<256x64xf32>
    %c512_185 = arith.constant 512 : index
    %c0_186 = arith.constant 0 : index
    %183 = vector.load %arg6[%c512_185, %c0_186] : memref<576x64xf32, #tpu.memory_space<vmem>>, vector<64x64xf32>
    %cst_187 = arith.constant dense<0.000000e+00> : vector<256x64xf32>
    %184 = tpu.matmul %182, %183, %cst_187 {dimension_numbers = #tpu.dot_dimension_numbers<[1], [0], [0], [1], [0, 0, 1, 1], [], []>} : vector<256x64xf32>, vector<64x64xf32>, vector<256x64xf32> -> vector<256x64xf32>
    %185 = arith.addf %180, %184 : vector<256x64xf32>
    %c0_188 = arith.constant 0 : index
    %c0_189 = arith.constant 0 : index
    %186 = vector.load %arg7[%c0_188, %c0_189] : memref<1x64xf32, #tpu.memory_space<vmem>>, vector<1x64xf32>
    %187 = vector.broadcast %186 : vector<1x64xf32> to vector<256x64xf32>
    %188 = arith.addf %185, %187 : vector<256x64xf32>
    %cst_190 = arith.constant 0.000000e+00 : f32
    %189 = vector.broadcast %cst_190 : f32 to vector<256x64xf32>
    %190 = arith.maximumf %188, %189 : vector<256x64xf32>
    %191 = vector.shape_cast %190 : vector<256x64xf32> to vector<16x16x64xf32>
    %c2_191 = arith.constant 2 : index
    %c2_192 = arith.constant 2 : index
    %c0_193 = arith.constant 0 : index
    %192 = vector.load %arg14[%c2_191, %c2_192, %c0_193] : memref<20x20x64xf32, #tpu.memory_space<vmem>>, vector<16x16x64xf32>
    tpu.vector_store %arg14[%c2_191, %c2_192, %c0_193], %191 {strides = array<i32>} : memref<20x20x64xf32, #tpu.memory_space<vmem>>, vector<16x16x64xf32>,
    %c0_194 = arith.constant 0 : index
    %c0_195 = arith.constant 0 : index
    %c0_196 = arith.constant 0 : index
    %193 = vector.load %arg14[%c0_194, %c0_195, %c0_196] : memref<20x20x64xf32, #tpu.memory_space<vmem>>, vector<16x16x64xf32>
    %194 = vector.shape_cast %193 : vector<16x16x64xf32> to vector<256x64xf32>
    %c0_197 = arith.constant 0 : index
    %c0_198 = arith.constant 0 : index
    %195 = vector.load %arg8[%c0_197, %c0_198] : memref<576x64xf32, #tpu.memory_space<vmem>>, vector<64x64xf32>
    %cst_199 = arith.constant dense<0.000000e+00> : vector<256x64xf32>
    %196 = tpu.matmul %194, %195, %cst_199 {dimension_numbers = #tpu.dot_dimension_numbers<[1], [0], [0], [1], [0, 0, 1, 1], [], []>} : vector<256x64xf32>, vector<64x64xf32>, vector<256x64xf32> -> vector<256x64xf32>
    %c0_200 = arith.constant 0 : index
    %c2_201 = arith.constant 2 : index
    %c0_202 = arith.constant 0 : index
    %197 = vector.load %arg14[%c0_200, %c2_201, %c0_202] : memref<20x20x64xf32, #tpu.memory_space<vmem>>, vector<16x16x64xf32>
    %198 = vector.shape_cast %197 : vector<16x16x64xf32> to vector<256x64xf32>
    %c64_203 = arith.constant 64 : index
    %c0_204 = arith.constant 0 : index
    %199 = vector.load %arg8[%c64_203, %c0_204] : memref<576x64xf32, #tpu.memory_space<vmem>>, vector<64x64xf32>
    %cst_205 = arith.constant dense<0.000000e+00> : vector<256x64xf32>
    %200 = tpu.matmul %198, %199, %cst_205 {dimension_numbers = #tpu.dot_dimension_numbers<[1], [0], [0], [1], [0, 0, 1, 1], [], []>} : vector<256x64xf32>, vector<64x64xf32>, vector<256x64xf32> -> vector<256x64xf32>
    %201 = arith.addf %196, %200 : vector<256x64xf32>
    %c0_206 = arith.constant 0 : index
    %c4_207 = arith.constant 4 : index
    %c0_208 = arith.constant 0 : index
    %202 = vector.load %arg14[%c0_206, %c4_207, %c0_208] : memref<20x20x64xf32, #tpu.memory_space<vmem>>, vector<16x16x64xf32>
    %203 = vector.shape_cast %202 : vector<16x16x64xf32> to vector<256x64xf32>
    %c128_209 = arith.constant 128 : index
    %c0_210 = arith.constant 0 : index
    %204 = vector.load %arg8[%c128_209, %c0_210] : memref<576x64xf32, #tpu.memory_space<vmem>>, vector<64x64xf32>
    %cst_211 = arith.constant dense<0.000000e+00> : vector<256x64xf32>
    %205 = tpu.matmul %203, %204, %cst_211 {dimension_numbers = #tpu.dot_dimension_numbers<[1], [0], [0], [1], [0, 0, 1, 1], [], []>} : vector<256x64xf32>, vector<64x64xf32>, vector<256x64xf32> -> vector<256x64xf32>
    %206 = arith.addf %201, %205 : vector<256x64xf32>
    %c2_212 = arith.constant 2 : index
    %c0_213 = arith.constant 0 : index
    %c0_214 = arith.constant 0 : index
    %207 = vector.load %arg14[%c2_212, %c0_213, %c0_214] : memref<20x20x64xf32, #tpu.memory_space<vmem>>, vector<16x16x64xf32>
    %208 = vector.shape_cast %207 : vector<16x16x64xf32> to vector<256x64xf32>
    %c192_215 = arith.constant 192 : index
    %c0_216 = arith.constant 0 : index
    %209 = vector.load %arg8[%c192_215, %c0_216] : memref<576x64xf32, #tpu.memory_space<vmem>>, vector<64x64xf32>
    %cst_217 = arith.constant dense<0.000000e+00> : vector<256x64xf32>
    %210 = tpu.matmul %208, %209, %cst_217 {dimension_numbers = #tpu.dot_dimension_numbers<[1], [0], [0], [1], [0, 0, 1, 1], [], []>} : vector<256x64xf32>, vector<64x64xf32>, vector<256x64xf32> -> vector<256x64xf32>
    %211 = arith.addf %206, %210 : vector<256x64xf32>
    %c2_218 = arith.constant 2 : index
    %c2_219 = arith.constant 2 : index
    %c0_220 = arith.constant 0 : index
    %212 = vector.load %arg14[%c2_218, %c2_219, %c0_220] : memref<20x20x64xf32, #tpu.memory_space<vmem>>, vector<16x16x64xf32>
    %213 = vector.shape_cast %212 : vector<16x16x64xf32> to vector<256x64xf32>
    %c256_221 = arith.constant 256 : index
    %c0_222 = arith.constant 0 : index
    %214 = vector.load %arg8[%c256_221, %c0_222] : memref<576x64xf32, #tpu.memory_space<vmem>>, vector<64x64xf32>
    %cst_223 = arith.constant dense<0.000000e+00> : vector<256x64xf32>
    %215 = tpu.matmul %213, %214, %cst_223 {dimension_numbers = #tpu.dot_dimension_numbers<[1], [0], [0], [1], [0, 0, 1, 1], [], []>} : vector<256x64xf32>, vector<64x64xf32>, vector<256x64xf32> -> vector<256x64xf32>
    %216 = arith.addf %211, %215 : vector<256x64xf32>
    %c2_224 = arith.constant 2 : index
    %c4_225 = arith.constant 4 : index
    %c0_226 = arith.constant 0 : index
    %217 = vector.load %arg14[%c2_224, %c4_225, %c0_226] : memref<20x20x64xf32, #tpu.memory_space<vmem>>, vector<16x16x64xf32>
    %218 = vector.shape_cast %217 : vector<16x16x64xf32> to vector<256x64xf32>
    %c320_227 = arith.constant 320 : index
    %c0_228 = arith.constant 0 : index
    %219 = vector.load %arg8[%c320_227, %c0_228] : memref<576x64xf32, #tpu.memory_space<vmem>>, vector<64x64xf32>
    %cst_229 = arith.constant dense<0.000000e+00> : vector<256x64xf32>
    %220 = tpu.matmul %218, %219, %cst_229 {dimension_numbers = #tpu.dot_dimension_numbers<[1], [0], [0], [1], [0, 0, 1, 1], [], []>} : vector<256x64xf32>, vector<64x64xf32>, vector<256x64xf32> -> vector<256x64xf32>
    %221 = arith.addf %216, %220 : vector<256x64xf32>
    %c4_230 = arith.constant 4 : index
    %c0_231 = arith.constant 0 : index
    %c0_232 = arith.constant 0 : index
    %222 = vector.load %arg14[%c4_230, %c0_231, %c0_232] : memref<20x20x64xf32, #tpu.memory_space<vmem>>, vector<16x16x64xf32>
    %223 = vector.shape_cast %222 : vector<16x16x64xf32> to vector<256x64xf32>
    %c384_233 = arith.constant 384 : index
    %c0_234 = arith.constant 0 : index
    %224 = vector.load %arg8[%c384_233, %c0_234] : memref<576x64xf32, #tpu.memory_space<vmem>>, vector<64x64xf32>
    %cst_235 = arith.constant dense<0.000000e+00> : vector<256x64xf32>
    %225 = tpu.matmul %223, %224, %cst_235 {dimension_numbers = #tpu.dot_dimension_numbers<[1], [0], [0], [1], [0, 0, 1, 1], [], []>} : vector<256x64xf32>, vector<64x64xf32>, vector<256x64xf32> -> vector<256x64xf32>
    %226 = arith.addf %221, %225 : vector<256x64xf32>
    %c4_236 = arith.constant 4 : index
    %c2_237 = arith.constant 2 : index
    %c0_238 = arith.constant 0 : index
    %227 = vector.load %arg14[%c4_236, %c2_237, %c0_238] : memref<20x20x64xf32, #tpu.memory_space<vmem>>, vector<16x16x64xf32>
    %228 = vector.shape_cast %227 : vector<16x16x64xf32> to vector<256x64xf32>
    %c448_239 = arith.constant 448 : index
    %c0_240 = arith.constant 0 : index
    %229 = vector.load %arg8[%c448_239, %c0_240] : memref<576x64xf32, #tpu.memory_space<vmem>>, vector<64x64xf32>
    %cst_241 = arith.constant dense<0.000000e+00> : vector<256x64xf32>
    %230 = tpu.matmul %228, %229, %cst_241 {dimension_numbers = #tpu.dot_dimension_numbers<[1], [0], [0], [1], [0, 0, 1, 1], [], []>} : vector<256x64xf32>, vector<64x64xf32>, vector<256x64xf32> -> vector<256x64xf32>
    %231 = arith.addf %226, %230 : vector<256x64xf32>
    %c4_242 = arith.constant 4 : index
    %c4_243 = arith.constant 4 : index
    %c0_244 = arith.constant 0 : index
    %232 = vector.load %arg14[%c4_242, %c4_243, %c0_244] : memref<20x20x64xf32, #tpu.memory_space<vmem>>, vector<16x16x64xf32>
    %233 = vector.shape_cast %232 : vector<16x16x64xf32> to vector<256x64xf32>
    %c512_245 = arith.constant 512 : index
    %c0_246 = arith.constant 0 : index
    %234 = vector.load %arg8[%c512_245, %c0_246] : memref<576x64xf32, #tpu.memory_space<vmem>>, vector<64x64xf32>
    %cst_247 = arith.constant dense<0.000000e+00> : vector<256x64xf32>
    %235 = tpu.matmul %233, %234, %cst_247 {dimension_numbers = #tpu.dot_dimension_numbers<[1], [0], [0], [1], [0, 0, 1, 1], [], []>} : vector<256x64xf32>, vector<64x64xf32>, vector<256x64xf32> -> vector<256x64xf32>
    %236 = arith.addf %231, %235 : vector<256x64xf32>
    %c0_248 = arith.constant 0 : index
    %c0_249 = arith.constant 0 : index
    %237 = vector.load %arg9[%c0_248, %c0_249] : memref<1x64xf32, #tpu.memory_space<vmem>>, vector<1x64xf32>
    %238 = vector.broadcast %237 : vector<1x64xf32> to vector<256x64xf32>
    %239 = arith.addf %236, %238 : vector<256x64xf32>
    %cst_250 = arith.constant 0.000000e+00 : f32
    %240 = vector.broadcast %cst_250 : f32 to vector<256x64xf32>
    %241 = arith.maximumf %239, %240 : vector<256x64xf32>
    %242 = vector.shape_cast %241 : vector<256x64xf32> to vector<16x16x64xf32>
    %c2_251 = arith.constant 2 : index
    %c2_252 = arith.constant 2 : index
    %c0_253 = arith.constant 0 : index
    %243 = vector.load %arg15[%c2_251, %c2_252, %c0_253] : memref<20x20x64xf32, #tpu.memory_space<vmem>>, vector<16x16x64xf32>
    tpu.vector_store %arg15[%c2_251, %c2_252, %c0_253], %242 {strides = array<i32>} : memref<20x20x64xf32, #tpu.memory_space<vmem>>, vector<16x16x64xf32>,
    %c0_254 = arith.constant 0 : index
    %c0_255 = arith.constant 0 : index
    %c0_256 = arith.constant 0 : index
    %244 = vector.load %arg15[%c0_254, %c0_255, %c0_256] : memref<20x20x64xf32, #tpu.memory_space<vmem>>, vector<16x16x64xf32>
    %245 = vector.shape_cast %244 : vector<16x16x64xf32> to vector<256x64xf32>
    %c0_257 = arith.constant 0 : index
    %c0_258 = arith.constant 0 : index
    %246 = vector.load %arg10[%c0_257, %c0_258] : memref<9x64xf32, #tpu.memory_space<vmem>>, vector<1x64xf32>
    %247 = vector.broadcast %246 : vector<1x64xf32> to vector<256x64xf32>
    %248 = arith.mulf %245, %247 : vector<256x64xf32>
    %cst_259 = arith.constant dense<0.000000e+00> : vector<256xf32>
    %249 = vector.multi_reduction <add>, %248, %cst_259 [1] : vector<256x64xf32> to vector<256xf32>
    %250 = vector.shape_cast %249 : vector<256xf32> to vector<256x1xf32>
    %c0_260 = arith.constant 0 : index
    %c2_261 = arith.constant 2 : index
    %c0_262 = arith.constant 0 : index
    %251 = vector.load %arg15[%c0_260, %c2_261, %c0_262] : memref<20x20x64xf32, #tpu.memory_space<vmem>>, vector<16x16x64xf32>
    %252 = vector.shape_cast %251 : vector<16x16x64xf32> to vector<256x64xf32>
    %c1_263 = arith.constant 1 : index
    %c0_264 = arith.constant 0 : index
    %253 = vector.load %arg10[%c1_263, %c0_264] : memref<9x64xf32, #tpu.memory_space<vmem>>, vector<1x64xf32>
    %254 = vector.broadcast %253 : vector<1x64xf32> to vector<256x64xf32>
    %255 = arith.mulf %252, %254 : vector<256x64xf32>
    %cst_265 = arith.constant dense<0.000000e+00> : vector<256xf32>
    %256 = vector.multi_reduction <add>, %255, %cst_265 [1] : vector<256x64xf32> to vector<256xf32>
    %257 = vector.shape_cast %256 : vector<256xf32> to vector<256x1xf32>
    %258 = arith.addf %250, %257 : vector<256x1xf32>
    %c0_266 = arith.constant 0 : index
    %c4_267 = arith.constant 4 : index
    %c0_268 = arith.constant 0 : index
    %259 = vector.load %arg15[%c0_266, %c4_267, %c0_268] : memref<20x20x64xf32, #tpu.memory_space<vmem>>, vector<16x16x64xf32>
    %260 = vector.shape_cast %259 : vector<16x16x64xf32> to vector<256x64xf32>
    %c2_269 = arith.constant 2 : index
    %c0_270 = arith.constant 0 : index
    %261 = vector.load %arg10[%c2_269, %c0_270] : memref<9x64xf32, #tpu.memory_space<vmem>>, vector<1x64xf32>
    %262 = vector.broadcast %261 : vector<1x64xf32> to vector<256x64xf32>
    %263 = arith.mulf %260, %262 : vector<256x64xf32>
    %cst_271 = arith.constant dense<0.000000e+00> : vector<256xf32>
    %264 = vector.multi_reduction <add>, %263, %cst_271 [1] : vector<256x64xf32> to vector<256xf32>
    %265 = vector.shape_cast %264 : vector<256xf32> to vector<256x1xf32>
    %266 = arith.addf %258, %265 : vector<256x1xf32>
    %c2_272 = arith.constant 2 : index
    %c0_273 = arith.constant 0 : index
    %c0_274 = arith.constant 0 : index
    %267 = vector.load %arg15[%c2_272, %c0_273, %c0_274] : memref<20x20x64xf32, #tpu.memory_space<vmem>>, vector<16x16x64xf32>
    %268 = vector.shape_cast %267 : vector<16x16x64xf32> to vector<256x64xf32>
    %c3_275 = arith.constant 3 : index
    %c0_276 = arith.constant 0 : index
    %269 = vector.load %arg10[%c3_275, %c0_276] : memref<9x64xf32, #tpu.memory_space<vmem>>, vector<1x64xf32>
    %270 = vector.broadcast %269 : vector<1x64xf32> to vector<256x64xf32>
    %271 = arith.mulf %268, %270 : vector<256x64xf32>
    %cst_277 = arith.constant dense<0.000000e+00> : vector<256xf32>
    %272 = vector.multi_reduction <add>, %271, %cst_277 [1] : vector<256x64xf32> to vector<256xf32>
    %273 = vector.shape_cast %272 : vector<256xf32> to vector<256x1xf32>
    %274 = arith.addf %266, %273 : vector<256x1xf32>
    %c2_278 = arith.constant 2 : index
    %c2_279 = arith.constant 2 : index
    %c0_280 = arith.constant 0 : index
    %275 = vector.load %arg15[%c2_278, %c2_279, %c0_280] : memref<20x20x64xf32, #tpu.memory_space<vmem>>, vector<16x16x64xf32>
    %276 = vector.shape_cast %275 : vector<16x16x64xf32> to vector<256x64xf32>
    %c4_281 = arith.constant 4 : index
    %c0_282 = arith.constant 0 : index
    %277 = vector.load %arg10[%c4_281, %c0_282] : memref<9x64xf32, #tpu.memory_space<vmem>>, vector<1x64xf32>
    %278 = vector.broadcast %277 : vector<1x64xf32> to vector<256x64xf32>
    %279 = arith.mulf %276, %278 : vector<256x64xf32>
    %cst_283 = arith.constant dense<0.000000e+00> : vector<256xf32>
    %280 = vector.multi_reduction <add>, %279, %cst_283 [1] : vector<256x64xf32> to vector<256xf32>
    %281 = vector.shape_cast %280 : vector<256xf32> to vector<256x1xf32>
    %282 = arith.addf %274, %281 : vector<256x1xf32>
    %c2_284 = arith.constant 2 : index
    %c4_285 = arith.constant 4 : index
    %c0_286 = arith.constant 0 : index
    %283 = vector.load %arg15[%c2_284, %c4_285, %c0_286] : memref<20x20x64xf32, #tpu.memory_space<vmem>>, vector<16x16x64xf32>
    %284 = vector.shape_cast %283 : vector<16x16x64xf32> to vector<256x64xf32>
    %c5_287 = arith.constant 5 : index
    %c0_288 = arith.constant 0 : index
    %285 = vector.load %arg10[%c5_287, %c0_288] : memref<9x64xf32, #tpu.memory_space<vmem>>, vector<1x64xf32>
    %286 = vector.broadcast %285 : vector<1x64xf32> to vector<256x64xf32>
    %287 = arith.mulf %284, %286 : vector<256x64xf32>
    %cst_289 = arith.constant dense<0.000000e+00> : vector<256xf32>
    %288 = vector.multi_reduction <add>, %287, %cst_289 [1] : vector<256x64xf32> to vector<256xf32>
    %289 = vector.shape_cast %288 : vector<256xf32> to vector<256x1xf32>
    %290 = arith.addf %282, %289 : vector<256x1xf32>
    %c4_290 = arith.constant 4 : index
    %c0_291 = arith.constant 0 : index
    %c0_292 = arith.constant 0 : index
    %291 = vector.load %arg15[%c4_290, %c0_291, %c0_292] : memref<20x20x64xf32, #tpu.memory_space<vmem>>, vector<16x16x64xf32>
    %292 = vector.shape_cast %291 : vector<16x16x64xf32> to vector<256x64xf32>
    %c6_293 = arith.constant 6 : index
    %c0_294 = arith.constant 0 : index
    %293 = vector.load %arg10[%c6_293, %c0_294] : memref<9x64xf32, #tpu.memory_space<vmem>>, vector<1x64xf32>
    %294 = vector.broadcast %293 : vector<1x64xf32> to vector<256x64xf32>
    %295 = arith.mulf %292, %294 : vector<256x64xf32>
    %cst_295 = arith.constant dense<0.000000e+00> : vector<256xf32>
    %296 = vector.multi_reduction <add>, %295, %cst_295 [1] : vector<256x64xf32> to vector<256xf32>
    %297 = vector.shape_cast %296 : vector<256xf32> to vector<256x1xf32>
    %298 = arith.addf %290, %297 : vector<256x1xf32>
    %c4_296 = arith.constant 4 : index
    %c2_297 = arith.constant 2 : index
    %c0_298 = arith.constant 0 : index
    %299 = vector.load %arg15[%c4_296, %c2_297, %c0_298] : memref<20x20x64xf32, #tpu.memory_space<vmem>>, vector<16x16x64xf32>
    %300 = vector.shape_cast %299 : vector<16x16x64xf32> to vector<256x64xf32>
    %c7_299 = arith.constant 7 : index
    %c0_300 = arith.constant 0 : index
    %301 = vector.load %arg10[%c7_299, %c0_300] : memref<9x64xf32, #tpu.memory_space<vmem>>, vector<1x64xf32>
    %302 = vector.broadcast %301 : vector<1x64xf32> to vector<256x64xf32>
    %303 = arith.mulf %300, %302 : vector<256x64xf32>
    %cst_301 = arith.constant dense<0.000000e+00> : vector<256xf32>
    %304 = vector.multi_reduction <add>, %303, %cst_301 [1] : vector<256x64xf32> to vector<256xf32>
    %305 = vector.shape_cast %304 : vector<256xf32> to vector<256x1xf32>
    %306 = arith.addf %298, %305 : vector<256x1xf32>
    %c4_302 = arith.constant 4 : index
    %c4_303 = arith.constant 4 : index
    %c0_304 = arith.constant 0 : index
    %307 = vector.load %arg15[%c4_302, %c4_303, %c0_304] : memref<20x20x64xf32, #tpu.memory_space<vmem>>, vector<16x16x64xf32>
    %308 = vector.shape_cast %307 : vector<16x16x64xf32> to vector<256x64xf32>
    %c8_305 = arith.constant 8 : index
    %c0_306 = arith.constant 0 : index
    %309 = vector.load %arg10[%c8_305, %c0_306] : memref<9x64xf32, #tpu.memory_space<vmem>>, vector<1x64xf32>
    %310 = vector.broadcast %309 : vector<1x64xf32> to vector<256x64xf32>
    %311 = arith.mulf %308, %310 : vector<256x64xf32>
    %cst_307 = arith.constant dense<0.000000e+00> : vector<256xf32>
    %312 = vector.multi_reduction <add>, %311, %cst_307 [1] : vector<256x64xf32> to vector<256xf32>
    %313 = vector.shape_cast %312 : vector<256xf32> to vector<256x1xf32>
    %314 = arith.addf %306, %313 : vector<256x1xf32>
    %c0_308 = arith.constant 0 : index
    %c0_309 = arith.constant 0 : index
    %315 = vector.load %arg11[%c0_308, %c0_309] : memref<1x1xf32, #tpu.memory_space<vmem>>, vector<1x1xf32>
    %316 = vector.broadcast %315 : vector<1x1xf32> to vector<256x1xf32>
    %317 = arith.addf %314, %316 : vector<256x1xf32>
    %c0_310 = arith.constant 0 : index
    %c0_311 = arith.constant 0 : index
    %c0_312 = arith.constant 0 : index
    %318 = vector.load %arg12[%c0_310, %c0_311, %c0_312] : memref<1x256x1xf32, #tpu.memory_space<vmem>>, vector<1x256x1xf32>
    %319 = vector.shape_cast %318 : vector<1x256x1xf32> to vector<256x1xf32>
    %320 = vector.shape_cast %317 : vector<256x1xf32> to vector<1x256x1xf32>
    tpu.vector_store %arg12[%c0_310, %c0_311, %c0_312], %320 {strides = array<i32>} : memref<1x256x1xf32, #tpu.memory_space<vmem>>, vector<1x256x1xf32>,
    return
  }
  func.func @transform_0(%arg0: i32) -> (i32, i32, i32) {
    %c0_i32 = arith.constant 0 : i32
    %c0_i32_0 = arith.constant 0 : i32
    %c0_i32_1 = arith.constant 0 : i32
    return %arg0, %c0_i32, %c0_i32_0 : i32, i32, i32
  }
  func.func @transform_1(%arg0: i32) -> (i32, i32) {
    %c0_i32 = arith.constant 0 : i32
    %c0_i32_0 = arith.constant 0 : i32
    %c0_i32_1 = arith.constant 0 : i32
    return %c0_i32, %c0_i32_0 : i32, i32
  }
  func.func @transform_2(%arg0: i32) -> (i32, i32) {
    %c0_i32 = arith.constant 0 : i32
    %c0_i32_0 = arith.constant 0 : i32
    %c0_i32_1 = arith.constant 0 : i32
    return %c0_i32, %c0_i32_0 : i32, i32
  }
  func.func @transform_3(%arg0: i32) -> (i32, i32) {
    %c0_i32 = arith.constant 0 : i32
    %c0_i32_0 = arith.constant 0 : i32
    %c0_i32_1 = arith.constant 0 : i32
    return %c0_i32, %c0_i32_0 : i32, i32
  }
  func.func @transform_4(%arg0: i32) -> (i32, i32) {
    %c0_i32 = arith.constant 0 : i32
    %c0_i32_0 = arith.constant 0 : i32
    %c0_i32_1 = arith.constant 0 : i32
    return %c0_i32, %c0_i32_0 : i32, i32
  }
  func.func @transform_5(%arg0: i32) -> (i32, i32) {
    %c0_i32 = arith.constant 0 : i32
    %c0_i32_0 = arith.constant 0 : i32
    %c0_i32_1 = arith.constant 0 : i32
    return %c0_i32, %c0_i32_0 : i32, i32
  }
  func.func @transform_6(%arg0: i32) -> (i32, i32) {
    %c0_i32 = arith.constant 0 : i32
    %c0_i32_0 = arith.constant 0 : i32
    %c0_i32_1 = arith.constant 0 : i32
    return %c0_i32, %c0_i32_0 : i32, i32
  }
  func.func @transform_7(%arg0: i32) -> (i32, i32) {
    %c0_i32 = arith.constant 0 : i32
    %c0_i32_0 = arith.constant 0 : i32
    %c0_i32_1 = arith.constant 0 : i32
    return %c0_i32, %c0_i32_0 : i32, i32
  }
  func.func @transform_8(%arg0: i32) -> (i32, i32) {
    %c0_i32 = arith.constant 0 : i32
    %c0_i32_0 = arith.constant 0 : i32
    %c0_i32_1 = arith.constant 0 : i32
    return %c0_i32, %c0_i32_0 : i32, i32
  }
  func.func @transform_9(%arg0: i32) -> (i32, i32) {
    %c0_i32 = arith.constant 0 : i32
    %c0_i32_0 = arith.constant 0 : i32
    %c0_i32_1 = arith.constant 0 : i32
    return %c0_i32, %c0_i32_0 : i32, i32
  }
  func.func @transform_10(%arg0: i32) -> (i32, i32) {
    %c0_i32 = arith.constant 0 : i32
    %c0_i32_0 = arith.constant 0 : i32
    %c0_i32_1 = arith.constant 0 : i32
    return %c0_i32, %c0_i32_0 : i32, i32
  }
  func.func @transform_11(%arg0: i32) -> (i32, i32, i32) {
    %c0_i32 = arith.constant 0 : i32
    %c0_i32_0 = arith.constant 0 : i32
    %c0_i32_1 = arith.constant 0 : i32
    return %arg0, %c0_i32, %c0_i32_0 : i32, i32, i32
  }
}

</mosaic_0001>

<bundles_post_ra>
// kernel: ussrnet5_dilated_forward.1
= control target key start
LH: loop header
LB: loop body
LE: loop exit
PB: predicated region body
PF: predicated region fallthrough
CT: control target
= control target key end

     0   :  { %s20670_s19 = smov 0   ;;  %s26716_s0 = inlined_call_operand.vmem [shape: f32[2,256,1], index: 0, kind: input, shape index: {}]   ;;  %s26717_s1 = inlined_call_operand.vmem [shape: f32[9,64], index: 1, kind: input, shape index: {}]   ;;  %s26718_s2 = inlined_call_operand.vmem [shape: f32[1,64], index: 2, kind: input, shape index: {}]   ;;  %s26719_s3 = inlined_call_operand.vmem [shape: f32[576,64], index: 3, kind: input, shape index: {}]   ;;  %s26720_s4 = inlined_call_operand.vmem [shape: f32[1,64], index: 4, kind: input, shape index: {}]   ;;  %s26721_s5 = inlined_call_operand.vmem [shape: f32[576,64], index: 5, kind: input, shape index: {}]   ;;  %s26722_s6 = inlined_call_operand.vmem [shape: f32[1,64], index: 6, kind: input, shape index: {}]   ;;  %s26723_s7 = inlined_call_operand.vmem [shape: f32[576,64], index: 7, kind: input, shape index: {}]   ;;  %s26724_s8 = inlined_call_operand.vmem [shape: f32[1,64], index: 8, kind: input, shape index: {}]   ;;  %s26725_s9 = inlined_call_operand.vmem [shape: f32[9,64], index: 9, kind: input, shape index: {}]   ;;  %s26726_s10 = inlined_call_operand.<no memory space> [shape: f32[1,1], index: 10, kind: input, shape index: {}]   ;;  %s26727_s11 = inlined_call_operand.vmem [shape: f32[2,256,1], index: 11, kind: output, shape index: {}]  }
   0x1   :  { %v16_v0 = vstv %s26726_s10 }
   0x2   :  { %17 = vst [vmem:[#allocation5] sm:$0x1] %v16_v0 }
   0x3 LB: > { %s15629_s20 = sadd.s32 4294967295, %s20603_s19   ;;  %p15633_p0 = scmp.ge.s32.totalorder %s20603_s19, 1  ;;  %s20603_s19 = sphi %s20670_s19, %s23_s19  }
   0x4   : > { %p339_p1 = scmp.lt.s32.totalorder %s20603_s19, 3 }
   0x6   : > { %p340_p2 = pnand %p15633_p0, %p339_p1 }
   0x8   : > { %343 = sbr.rel (%p340_p2) target bundleno = 3257 (0xcb9), region = 64 }
   0xf   : > { %vm484_vm0 = vcmask 7168   ;;  %vm487_vm1 = vcmask 3072   ;;  %p20680_p3 = scmp.lt.s32.totalorder %s15629_s20, 1  ;;  %v20605_v1 = vmov 0   ;;  %v20606_v2 = vmov 0.0   ;;  %v3104_v45 = vld [vmem:[%s26719_s3 + $0x40] sm:$0xff] }
  0x10   : > { %20556 = vset.pattern.permute.xlu1 %v20605_v1  ;;  %20555 = vset.pattern.permute.xlu0 %v20605_v1  ;;  %486 = vst.msk [vmem:[#allocation2 + $0x8] sm:$0xff] %vm484_vm0, %v20606_v2  ;;  %485 = vst.msk [vmem:[#allocation2] sm:$0xff] %vm484_vm0, %v20606_v2  ;;  %v3105_v46 = vld [vmem:[%s26719_s3 + $0x48] sm:$0xff]  ;;  %v3106_v48 = vld [vmem:[%s26719_s3 + $0x50] sm:$0xff]  ;;  %vm389_vm2 = vcmask 523264   ;;  %vm392_vm3 = vcmask 519168  }
  0x11   : > { %489 = vst.msk [vmem:[#allocation2 + $0x18] sm:$0xff] %vm484_vm0, %v20606_v2  ;;  %490 = vst.msk [vmem:[#allocation2 + $0x20] sm:$0xff] %vm484_vm0, %v20606_v2  ;;  %s27054_s20 = smov (!%p20680_p3, %s15629_s20), 1  ;;  %v19337_v47 = vpack.c.bf16 %v3105_v46, %v3104_v45  ;;  %v3107_v49 = vld [vmem:[%s26719_s3 + $0x58] sm:$0xff]  ;;  %v3108_v53 = vld [vmem:[%s26719_s3 + $0x60] sm:$0xff]  ;;  %vm405_vm4 = vcmask 517120  }
  0x12   : > { %492 = vst.msk [vmem:[#allocation2 + $0x30] sm:$0xff] %vm484_vm0, %v20606_v2  ;;  %493 = vst.msk [vmem:[#allocation2 + $0x38] sm:$0xff] %vm484_vm0, %v20606_v2  ;;  %s16527_s21 = sshll.u32 %s27054_s20, 8  ;;  %v19341_v52 = vpack.c.bf16 %v3107_v49, %v3106_v48  ;;  %v3109_v54 = vld [vmem:[%s26719_s3 + $0x68] sm:$0xff]  ;;  %v3110_v57 = vld [vmem:[%s26719_s3 + $0x70] sm:$0xff] }
  0x13   : > { %495 = vst.msk [vmem:[#allocation2 + $0x48] sm:$0xff] %vm484_vm0, %v20606_v2  ;;  %496 = vst.msk [vmem:[#allocation2 + $0x50] sm:$0xff] %vm484_vm0, %v20606_v2  ;;  %s20816_s24 = scalar_lea.vmem %s26716_s0, %s16527_s21  ;;  %19338 = vmatprep.subr.bf16.mxu1 %v19337_v47  ;;  %v19345_v55 = vpack.c.bf16 %v3109_v54, %v3108_v53  ;;  %v3111_v58 = vld [vmem:[%s26719_s3 + $0x78] sm:$0xff]  ;;  %v4572_v61 = vld [vmem:[%s26719_s3 + $0x100] sm:$0xff]  ;;  %s25993_s18 = scalar_lea.vmem %s26727_s11, %s16527_s21 }
  0x14   : > { %498 = vst.msk [vmem:[#allocation2 + $0x60] sm:$0xff] %vm484_vm0, %v20606_v2  ;;  %499 = vst.msk [vmem:[#allocation2 + $0x68] sm:$0xff] %vm484_vm0, %v20606_v2  ;;  %v546_v3 = vld [vmem:[%s20816_s24] sm:$0xff]  ;;  %v547_v4 = vld [vmem:[%s20816_s24 + $0x8] sm:$0xff]  ;;  %19340 = vmatpush3.bf16.msra.mxu1 %v19337_v47  ;;  %v19349_v60 = vpack.c.bf16 %v3111_v58, %v3110_v57 }
  0x15   : > { %501 = vst.msk [vmem:[#allocation2 + $0x78] sm:$0xff] %vm484_vm0, %v20606_v2  ;;  %502 = vst.msk [vmem:[#allocation2 + $0x80] sm:$0xff] %vm484_vm0, %v20606_v2  ;;  %v548_v5 = vld [vmem:[%s20816_s24 + $0x10] sm:$0xff]  ;;  %v549_v6 = vld [vmem:[%s20816_s24 + $0x18] sm:$0xff]  ;;  %19342 = vmatprep.subr.bf16.mxu1 %v19341_v52 }
  0x16   : > { %504 = vst.msk [vmem:[#allocation2 + $0x90] sm:$0xff] %vm484_vm0, %v20606_v2  ;;  %505 = vst.msk [vmem:[#allocation2 + $0x98] sm:$0xff] %vm484_vm0, %v20606_v2  ;;  %v550_v7 = vld [vmem:[%s20816_s24 + $0x20] sm:$0xff]  ;;  %v551_v8 = vld [vmem:[%s20816_s24 + $0x28] sm:$0xff] }
  0x17   : > { %507 = vst.msk [vmem:[#allocation2 + $0xa8] sm:$0xff] %vm484_vm0, %v20606_v2  ;;  %508 = vst.msk [vmem:[#allocation2 + $0xb0] sm:$0xff] %vm484_vm0, %v20606_v2  ;;  %v612_v9 = vld [vmem:[#allocation2 + $0x8] sm:$0xff]  ;;  %v611_v10 = vld [vmem:[#allocation2] sm:$0xff] }
  0x18   : > { %510 = vst.msk [vmem:[#allocation2 + $0xc0] sm:$0xff] %vm484_vm0, %v20606_v2  ;;  %511 = vst.msk [vmem:[#allocation2 + $0xc8] sm:$0xff] %vm484_vm0, %v20606_v2  ;;  %651 = vperm.xlu1 %20556, %v612_v9   ;;  %646 = vperm.xlu0 %20555, %v611_v10   ;;  %v840_v12 = vld [vmem:[#allocation2 + $0x2] sm:$0xff]  ;;  %v552_v13 = vld [vmem:[%s20816_s24 + $0x30] sm:$0xff] }
  0x19   : > { %513 = vst.msk [vmem:[#allocation2 + $0xd8] sm:$0xff] %vm484_vm0, %v20606_v2  ;;  %514 = vst.msk [vmem:[#allocation2 + $0xe0] sm:$0xff] %vm484_vm0, %v20606_v2  ;;  %v553_v14 = vld [vmem:[%s20816_s24 + $0x38] sm:$0xff]  ;;  %v554_v15 = vld [vmem:[%s20816_s24 + $0x40] sm:$0xff]  ;;  %19344 = vmatpush3.bf16.msra.mxu1 %v19341_v52 }
  0x1a   : > { %516 = vst.msk [vmem:[#allocation2 + $0xf0] sm:$0xff] %vm484_vm0, %v20606_v2  ;;  %517 = vst.msk [vmem:[#allocation2 + $0xf8] sm:$0xff] %vm484_vm0, %v20606_v2  ;;  %v555_v16 = vld [vmem:[%s20816_s24 + $0x48] sm:$0xff]  ;;  %v842_v19 = vld [vmem:[#allocation2 + $0x1a] sm:$0xff]  ;;  %19346 = vmatprep.subr.bf16.mxu1 %v19345_v55 }
  0x1b   : > { %519 = vst.msk [vmem:[#allocation2 + $0x108] sm:$0xff] %vm484_vm0, %v20606_v2  ;;  %520 = vst.msk [vmem:[#allocation2 + $0x110] sm:$0xff] %vm484_vm0, %v20606_v2  ;;  %v1101_v18 = vld [vmem:[#allocation2 + $0x4] sm:$0xff]  ;;  %v613_v20 = vld [vmem:[#allocation2 + $0x18] sm:$0xff] }
  0x1c   : > { %522 = vst.msk [vmem:[#allocation2 + $0x120] sm:$0xff] %vm484_vm0, %v20606_v2  ;;  %523 = vst.msk [vmem:[#allocation2 + $0x128] sm:$0xff] %vm484_vm0, %v20606_v2  ;;  %875 = vperm.xlu0 %20555, %v840_v12   ;;  %v614_v21 = vld [vmem:[#allocation2 + $0x20] sm:$0xff]  ;;  %v556_v25 = vld [vmem:[%s20816_s24 + $0x50] sm:$0xff] }
  0x1d   : > { %525 = vst.msk [vmem:[#allocation2 + $0x138] sm:$0xff] %vm484_vm0, %v20606_v2  ;;  %526 = vst.msk [vmem:[#allocation2 + $0x140] sm:$0xff] %vm484_vm0, %v20606_v2  ;;  %v1103_v27 = vld [vmem:[#allocation2 + $0x1c] sm:$0xff]  ;;  %v559_v41 = vld [vmem:[%s20816_s24 + $0x68] sm:$0xff]  ;;  %19348 = vmatpush3.bf16.msra.mxu1 %v19345_v55 }
  0x1e   : > { %528 = vst.msk [vmem:[#allocation2 + $0x150] sm:$0xff] %vm484_vm0, %v20606_v2  ;;  %529 = vst.msk [vmem:[#allocation2 + $0x158] sm:$0xff] %vm484_vm0, %v20606_v2  ;;  %v557_v30 = vld [vmem:[%s20816_s24 + $0x58] sm:$0xff]  ;;  %v558_v39 = vld [vmem:[%s20816_s24 + $0x60] sm:$0xff]  ;;  %19350 = vmatprep.subr.bf16.mxu1 %v19349_v60 }
  0x1f   : > { %531 = vst.msk [vmem:[#allocation2 + $0x168] sm:$0xff] %vm484_vm0, %v20606_v2  ;;  %532 = vst.msk [vmem:[#allocation2 + $0x170] sm:$0xff] %vm484_vm0, %v20606_v2  ;;  %v4573_v62 = vld [vmem:[%s26719_s3 + $0x108] sm:$0xff]  ;;  %v560_v0 = vld [vmem:[%s20816_s24 + $0x70] sm:$0xff] }
  0x20   : > { %534 = vst.msk [vmem:[#allocation2 + $0x180] sm:$0xff] %vm484_vm0, %v20606_v2  ;;  %535 = vst.msk [vmem:[#allocation2 + $0x188] sm:$0xff] %vm484_vm0, %v20606_v2  ;;  %1136 = vperm.xlu0 %20555, %v1101_v18   ;;  %v20942_v63 = vpack.c.bf16 %v4573_v62, %v4572_v61 }
  0x21   : > { %537 = vst.msk [vmem:[#allocation2 + $0x198] sm:$0xff] %vm484_vm0, %v20606_v2  ;;  %538 = vst.msk [vmem:[#allocation2 + $0x1a0] sm:$0xff] %vm484_vm0, %v20606_v2  ;;  %19352 = vmatpush3.bf16.msra.mxu1 %v19349_v60 }
  0x22   : > { %540 = vst.msk [vmem:[#allocation2 + $0x1b0] sm:$0xff] %vm484_vm0, %v20606_v2  ;;  %541 = vst.msk [vmem:[#allocation2 + $0x1b8] sm:$0xff] %vm484_vm0, %v20606_v2  ;;  %19402 = vmatprep.subr.bf16.mxu0 %v20942_v63 }
  0x23   : > { %543 = vst.msk [vmem:[#allocation2 + $0x1c8] sm:$0xff] %vm484_vm0, %v20606_v2  ;;  %544 = vst.msk [vmem:[#allocation2 + $0x1d0] sm:$0xff] %vm484_vm0, %v20606_v2  ;;  %19404 = vmatpush3.bf16.msra.mxu0 %v20942_v63 }
  0x24   : > { %488 = vst.msk [vmem:[#allocation2 + $0x10] sm:$0xf] %vm487_vm1, %v20606_v2  ;;  %491 = vst.msk [vmem:[#allocation2 + $0x28] sm:$0xf] %vm487_vm1, %v20606_v2  ;;  %656 = vperm.xlu0 %20555, %v613_v20   ;;  %v563_v20 = vld [vmem:[%s20816_s24 + $0x88] sm:$0xff] }
  0x25   : > { %494 = vst.msk [vmem:[#allocation2 + $0x40] sm:$0xf] %vm487_vm1, %v20606_v2  ;;  %497 = vst.msk [vmem:[#allocation2 + $0x58] sm:$0xf] %vm487_vm1, %v20606_v2 }
  0x26   : > { %500 = vst.msk [vmem:[#allocation2 + $0x70] sm:$0xf] %vm487_vm1, %v20606_v2  ;;  %503 = vst.msk [vmem:[#allocation2 + $0x88] sm:$0xf] %vm487_vm1, %v20606_v2 }
  0x27   : > { %506 = vst.msk [vmem:[#allocation2 + $0xa0] sm:$0xf] %vm487_vm1, %v20606_v2  ;;  %509 = vst.msk [vmem:[#allocation2 + $0xb8] sm:$0xf] %vm487_vm1, %v20606_v2 }
  0x28   : > { %512 = vst.msk [vmem:[#allocation2 + $0xd0] sm:$0xf] %vm487_vm1, %v20606_v2  ;;  %515 = vst.msk [vmem:[#allocation2 + $0xe8] sm:$0xf] %vm487_vm1, %v20606_v2 }
  0x29   : > { %518 = vst.msk [vmem:[#allocation2 + $0x100] sm:$0xf] %vm487_vm1, %v20606_v2  ;;  %521 = vst.msk [vmem:[#allocation2 + $0x118] sm:$0xf] %vm487_vm1, %v20606_v2 }
  0x2a   : > { %524 = vst.msk [vmem:[#allocation2 + $0x130] sm:$0xf] %vm487_vm1, %v20606_v2  ;;  %527 = vst.msk [vmem:[#allocation2 + $0x148] sm:$0xf] %vm487_vm1, %v20606_v2 }
  0x2b   : > { %530 = vst.msk [vmem:[#allocation2 + $0x160] sm:$0xf] %vm487_vm1, %v20606_v2  ;;  %533 = vst.msk [vmem:[#allocation2 + $0x178] sm:$0xf] %vm487_vm1, %v20606_v2  ;;  %v841_v11 = vld [vmem:[#allocation2 + $0xa] sm:$0xff]  ;;  %v843_v24 = vld [vmem:[#allocation2 + $0x22] sm:$0xff] }
  0x2c   : > { %536 = vst.msk [vmem:[#allocation2 + $0x190] sm:$0xf] %vm487_vm1, %v20606_v2  ;;  %539 = vst.msk [vmem:[#allocation2 + $0x1a8] sm:$0xf] %vm487_vm1, %v20606_v2  ;;  %880 = vperm.xlu1 %20556, %v841_v11   ;;  %v1102_v17 = vld [vmem:[#allocation2 + $0xc] sm:$0xff]  ;;  %v1104_v29 = vld [vmem:[#allocation2 + $0x24] sm:$0xff] }
  0x2d   : > { %542 = vst.msk [vmem:[#allocation2 + $0x1c0] sm:$0xf] %vm487_vm1, %v20606_v2  ;;  %545 = vst.msk [vmem:[#allocation2 + $0x1d8] sm:$0xf] %vm487_vm1, %v20606_v2  ;;  %v561_v11 = vld [vmem:[%s20816_s24 + $0x78] sm:$0xff] }
  0x2e   : > { %579 = vst.msk [vmem:[#allocation2 + $0x32] sm:$0xff] %vm484_vm0, %v546_v3  ;;  %580 = vst.msk [vmem:[#allocation2 + $0x3a] sm:$0xff] %vm484_vm0, %v547_v4  ;;  %v20954_v3 = vld [vmem:[%s26719_s3 + $0x110] sm:$0xff]  ;;  %v20959_v4 = vld [vmem:[%s26719_s3 + $0x118] sm:$0xff] }
  0x2f   : > { %581 = vst.msk [vmem:[#allocation2 + $0x4a] sm:$0xff] %vm484_vm0, %v548_v5  ;;  %582 = vst.msk [vmem:[#allocation2 + $0x52] sm:$0xff] %vm484_vm0, %v549_v6  ;;  %v21094_v6 = vpack.c.bf16 %v20959_v4, %v20954_v3 }
  0x30   : > { %583 = vst.msk [vmem:[#allocation2 + $0x62] sm:$0xff] %vm484_vm0, %v550_v7  ;;  %584 = vst.msk [vmem:[#allocation2 + $0x6a] sm:$0xff] %vm484_vm0, %v551_v8  ;;  %1141 = vperm.xlu1 %20556, %v1102_v17   ;;  %v4576_v7 = vld [vmem:[%s26719_s3 + $0x120] sm:$0xff]  ;;  %v4577_v8 = vld [vmem:[%s26719_s3 + $0x128] sm:$0xff] }
  0x31   : > { %585 = vst.msk [vmem:[#allocation2 + $0x7a] sm:$0xff] %vm484_vm0, %v552_v13  ;;  %586 = vst.msk [vmem:[#allocation2 + $0x82] sm:$0xff] %vm484_vm0, %v553_v14  ;;  %19406 = vmatprep.subr.bf16.mxu0 %v21094_v6  ;;  %v21108_v10 = vpack.c.bf16 %v4577_v8, %v4576_v7  ;;  %v4578_v13 = vld [vmem:[%s26719_s3 + $0x130] sm:$0xff]  ;;  %v4579_v14 = vld [vmem:[%s26719_s3 + $0x138] sm:$0xff] }
  0x32   : > { %587 = vst.msk [vmem:[#allocation2 + $0x92] sm:$0xff] %vm484_vm0, %v554_v15  ;;  %588 = vst.msk [vmem:[#allocation2 + $0x9a] sm:$0xff] %vm484_vm0, %v555_v16  ;;  %19408 = vmatpush3.bf16.msra.mxu0 %v21094_v6  ;;  %v21123_v15 = vpack.c.bf16 %v4579_v14, %v4578_v13  ;;  %v562_v17 = vld [vmem:[%s20816_s24 + $0x80] sm:$0xff] }
  0x33   : > { %589 = vst.msk [vmem:[#allocation2 + $0xaa] sm:$0xff] %vm484_vm0, %v556_v25  ;;  %590 = vst.msk [vmem:[#allocation2 + $0xb2] sm:$0xff] %vm484_vm0, %v557_v30  ;;  %19410 = vmatprep.subr.bf16.mxu0 %v21108_v10  ;;  %v21229_v7 = vld [vmem:[%s26717_s1 + $0x1] ss:$0 sm:$0xff]  ;;  %v21234_v8 = vld [vmem:[%s26717_s1] ss:$0 sm:$0xff] }
  0x34   : > { %885 = vperm.xlu1 %20556, %v842_v19   ;;  %591 = vst.msk [vmem:[#allocation2 + $0xc2] sm:$0xff] %vm484_vm0, %v558_v39  ;;  %592 = vst.msk [vmem:[#allocation2 + $0xca] sm:$0xff] %vm484_vm0, %v559_v41  ;;  %v21249_v14 = vld [vmem:[%s26717_s1 + $0x3] ss:$0 sm:$0xff] }
  0x35   : > { %v1362_v22 = vld [vmem:[#allocation2 + $0x30] sm:$0xff]  ;;  %v1363_v23 = vld [vmem:[#allocation2 + $0x38] sm:$0xff]  ;;  %390 = vst.msk [vmem:[#allocation3] sm:$0xff] %vm389_vm2, %v20606_v2  ;;  %391 = vst.msk [vmem:[#allocation3 + $0x8] sm:$0xff] %vm389_vm2, %v20606_v2 }
  0x36   : > { %1397 = vperm.xlu0 %20555, %v1362_v22   ;;  %v1623_v26 = vld [vmem:[#allocation2 + $0x32] sm:$0xff]  ;;  %v1624_v28 = vld [vmem:[#allocation2 + $0x3a] sm:$0xff]  ;;  %v1364_v32 = vld [vmem:[#allocation2 + $0x48] sm:$0xff]  ;;  %394 = vst.msk [vmem:[#allocation3 + $0x18] sm:$0xff] %vm389_vm2, %v20606_v2  ;;  %19412 = vmatpush3.bf16.msra.mxu0 %v21108_v10 }
  0x37   : > { %v1884_v31 = vld [vmem:[#allocation2 + $0x34] sm:$0xff]  ;;  %v1885_v33 = vld [vmem:[#allocation2 + $0x3c] sm:$0xff]  ;;  %v1625_v35 = vld [vmem:[#allocation2 + $0x4a] sm:$0xff]  ;;  %395 = vst.msk [vmem:[#allocation3 + $0x20] sm:$0xff] %vm389_vm2, %v20606_v2  ;;  %19414 = vmatprep.subr.bf16.mxu0 %v21123_v15 }
  0x38   : > { %661 = vperm.xlu1 %20556, %v614_v21   ;;  %v1365_v34 = vld [vmem:[#allocation2 + $0x50] sm:$0xff]  ;;  %v20842_v36 = vld [vmem:[#allocation2 + $0x60] sm:$0xff]  ;;  %v20845_v37 = vld [vmem:[#allocation2 + $0x68] sm:$0xff]  ;;  %398 = vst.msk [vmem:[#allocation3 + $0x1b0] sm:$0xff] %vm389_vm2, %v20606_v2 }
  0x39   : > { %v1626_v38 = vld [vmem:[#allocation2 + $0x52] sm:$0xff]  ;;  %v20853_v42 = vld [vmem:[#allocation2 + $0x62] sm:$0xff]  ;;  %v20857_v43 = vld [vmem:[#allocation2 + $0x6a] sm:$0xff]  ;;  %399 = vst.msk [vmem:[#allocation3 + $0x1b8] sm:$0xff] %vm389_vm2, %v20606_v2 }
  0x3a   : > { %890 = vperm.xlu0 %20555, %v843_v24   ;;  %v1886_v40 = vld [vmem:[#allocation2 + $0x4c] sm:$0xff]  ;;  %v1887_v44 = vld [vmem:[#allocation2 + $0x54] sm:$0xff]  ;;  %v20873_v50 = vld [vmem:[#allocation2 + $0x64] sm:$0xff]  ;;  %401 = vst.msk [vmem:[#allocation3 + $0x1c8] sm:$0xff] %vm389_vm2, %v20606_v2  ;;  %19416 = vmatpush3.bf16.msra.mxu0 %v21123_v15 }
  0x3b   : > { %v20875_v51 = vld [vmem:[#allocation2 + $0x78] sm:$0xff]  ;;  %402 = vst.msk [vmem:[#allocation3 + $0x1d0] sm:$0xff] %vm389_vm2, %v20606_v2  ;;  %438 = vst.msk [vmem:[#allocation4] sm:$0xff] %vm389_vm2, %v20606_v2  ;;  %v20926_v56 = vld [vmem:[#allocation2 + $0x6c] sm:$0xff] }
  0x3c   : > { %1402 = vperm.xlu1 %20556, %v1363_v23   ;;  %439 = vst.msk [vmem:[#allocation4 + $0x8] sm:$0xff] %vm389_vm2, %v20606_v2  ;;  %441 = vst.msk [vmem:[#allocation4 + $0x18] sm:$0xff] %vm389_vm2, %v20606_v2  ;;  %v20934_v59 = vld [vmem:[#allocation2 + $0x80] sm:$0xff]  ;;  %v2150_v19 = vld [vmem:[#allocation2 + $0x90] sm:$0xff] }
  0x3d   : > { %442 = vst.msk [vmem:[#allocation4 + $0x20] sm:$0xff] %vm389_vm2, %v20606_v2  ;;  %445 = vst.msk [vmem:[#allocation4 + $0x1b0] sm:$0xff] %vm389_vm2, %v20606_v2  ;;  %v20949_v1 = vld [vmem:[#allocation3 + $0x2] sm:$0xff]  ;;  %v2409_v12 = vld [vmem:[#allocation2 + $0x7a] sm:$0xff] }
  0x3e   : > { %1146 = vperm.xlu0 %20555, %v1103_v27   ;;  %446 = vst.msk [vmem:[#allocation4 + $0x1b8] sm:$0xff] %vm389_vm2, %v20606_v2  ;;  %448 = vst.msk [vmem:[#allocation4 + $0x1c8] sm:$0xff] %vm389_vm2, %v20606_v2  ;;  %17625 = vmatprep.mubr.msk.f32.mxu1 %vm389_vm2, %v20949_v1  ;;  %v2410_v16 = vld [vmem:[#allocation2 + $0x82] sm:$0xff]  ;;  %v2411_v30 = vld [vmem:[#allocation2 + $0x92] sm:$0xff] }
  0x3f   : > { %449 = vst.msk [vmem:[#allocation4 + $0x1d0] sm:$0xff] %vm389_vm2, %v20606_v2  ;;  %26855 = vst [vmem:[#allocation6_spill] sm:$0xff] %v20942_v63  ;;  %v2670_v18 = vld [vmem:[#allocation2 + $0x7c] sm:$0xff]  ;;  %v2671_v21 = vld [vmem:[#allocation2 + $0x84] sm:$0xff] }
  0x40   : > { %1658 = vperm.xlu1 %20556, %v1623_v26   ;;  %393 = vst.msk [vmem:[#allocation3 + $0x10] sm:$0xf] %vm392_vm3, %v20606_v2  ;;  %396 = vst.msk [vmem:[#allocation3 + $0x28] sm:$0xf] %vm392_vm3, %v20606_v2  ;;  %v2672_v41 = vld [vmem:[#allocation2 + $0x94] sm:$0xff]  ;;  %v2673_v47 = vld [vmem:[#allocation2 + $0x9c] sm:$0xff] }
  0x41   : > { %400 = vst.msk [vmem:[#allocation3 + $0x1c0] sm:$0xf] %vm392_vm3, %v20606_v2  ;;  %403 = vst.msk [vmem:[#allocation3 + $0x1d8] sm:$0xf] %vm392_vm3, %v20606_v2  ;;  %v21182_v48 = vld [vmem:[#allocation2 + $0xb0] sm:$0xff]  ;;  %v21218_v4 = vld [vmem:[#allocation2 + $0xc0] sm:$0xff] }
  0x42   : > { %1151 = vperm.xlu0 %20555, %v1104_v29   ;;  %440 = vst.msk [vmem:[#allocation4 + $0x10] sm:$0xf] %vm392_vm3, %v20606_v2  ;;  %443 = vst.msk [vmem:[#allocation4 + $0x28] sm:$0xf] %vm392_vm3, %v20606_v2  ;;  %v564_v29 = vld [vmem:[%s20816_s24 + $0x90] sm:$0xff] }
  0x43   : > { %447 = vst.msk [vmem:[#allocation4 + $0x1c0] sm:$0xf] %vm392_vm3, %v20606_v2  ;;  %450 = vst.msk [vmem:[#allocation4 + $0x1d8] sm:$0xf] %vm392_vm3, %v20606_v2  ;;  %v2413_v55 = vld [vmem:[#allocation2 + $0xaa] sm:$0xff]  ;;  %v21205_v60 = vld [vmem:[#allocation2 + $0xb2] sm:$0xff] }
  0x44   : > { %1663 = vperm.xlu1 %20556, %v1624_v28   ;;  %593 = vst.msk [vmem:[#allocation2 + $0xda] sm:$0xff] %vm484_vm0, %v560_v0  ;;  %26856 = vst [vmem:[#allocation7_spill] sm:$0xff] %v21094_v6  ;;  %v21216_v3 = vld [vmem:[#allocation2 + $0xac] sm:$0xff] }
  0x45   : > { %422 = vst.msk [vmem:[#allocation3 + $0x42] sm:$0x3] %vm405_vm4, %v20606_v2  ;;  %406 = vst.msk [vmem:[#allocation3 + $0x30] sm:$0x3] %vm405_vm4, %v20606_v2 }
  0x46   : > { %666 = vperm.xlu0 %20555, %v1362_v22   ;;  %407 = vst.msk [vmem:[#allocation3 + $0x48] sm:$0x3] %vm405_vm4, %v20606_v2  ;;  %408 = vst.msk [vmem:[#allocation3 + $0x60] sm:$0x3] %vm405_vm4, %v20606_v2  ;;  %v2151_v22 = vld [vmem:[#allocation2 + $0x98] sm:$0xff] }
  0x47   : > { %409 = vst.msk [vmem:[#allocation3 + $0x78] sm:$0x3] %vm405_vm4, %v20606_v2  ;;  %410 = vst.msk [vmem:[#allocation3 + $0x90] sm:$0x3] %vm405_vm4, %v20606_v2  ;;  %v3073_v5 = vld [vmem:[#allocation3 + $0xa] sm:$0xff]  ;;  %v3075_v9 = vld [vmem:[#allocation3 + $0x22] sm:$0xff] }
  0x48   : > { %895 = vperm.xlu1 %20556, %v1623_v26   ;;  %411 = vst.msk [vmem:[#allocation3 + $0xa8] sm:$0x3] %vm405_vm4, %v20606_v2  ;;  %412 = vst.msk [vmem:[#allocation3 + $0xc0] sm:$0x3] %vm405_vm4, %v20606_v2  ;;  %17626 = vmatmul.mubr.msk.f32.vlgmr.msra.gmra.mrb[0].mxu1 %vm389_vm2, %v3073_v5 }
  0x49   : > { %413 = vst.msk [vmem:[#allocation3 + $0xd8] sm:$0x3] %vm405_vm4, %v20606_v2  ;;  %414 = vst.msk [vmem:[#allocation3 + $0xf0] sm:$0x3] %vm405_vm4, %v20606_v2 }
  0x4a   : > { %1407 = vperm.xlu0 %20555, %v1364_v32   ;;  %415 = vst.msk [vmem:[#allocation3 + $0x108] sm:$0x3] %vm405_vm4, %v20606_v2  ;;  %416 = vst.msk [vmem:[#allocation3 + $0x120] sm:$0x3] %vm405_vm4, %v20606_v2 }
  0x4b   : > { %417 = vst.msk [vmem:[#allocation3 + $0x138] sm:$0x3] %vm405_vm4, %v20606_v2  ;;  %418 = vst.msk [vmem:[#allocation3 + $0x150] sm:$0x3] %vm405_vm4, %v20606_v2 }
  0x4c   : > { %1919 = vperm.xlu1 %20556, %v1884_v31   ;;  %419 = vst.msk [vmem:[#allocation3 + $0x168] sm:$0x3] %vm405_vm4, %v20606_v2  ;;  %420 = vst.msk [vmem:[#allocation3 + $0x180] sm:$0x3] %vm405_vm4, %v20606_v2 }
  0x4d   : > { %421 = vst.msk [vmem:[#allocation3 + $0x198] sm:$0x3] %vm405_vm4, %v20606_v2  ;;  %423 = vst.msk [vmem:[#allocation3 + $0x5a] sm:$0x3] %vm405_vm4, %v20606_v2 }
  0x4e   : > { %671 = vperm.xlu0 %20555, %v1363_v23   ;;  %424 = vst.msk [vmem:[#allocation3 + $0x72] sm:$0x3] %vm405_vm4, %v20606_v2  ;;  %425 = vst.msk [vmem:[#allocation3 + $0x8a] sm:$0x3] %vm405_vm4, %v20606_v2 }
  0x4f   : > { %426 = vst.msk [vmem:[#allocation3 + $0xa2] sm:$0x3] %vm405_vm4, %v20606_v2  ;;  %427 = vst.msk [vmem:[#allocation3 + $0xba] sm:$0x3] %vm405_vm4, %v20606_v2 }
  0x50   : > { %900 = vperm.xlu1 %20556, %v1624_v28   ;;  %428 = vst.msk [vmem:[#allocation3 + $0xd2] sm:$0x3] %vm405_vm4, %v20606_v2  ;;  %429 = vst.msk [vmem:[#allocation3 + $0xea] sm:$0x3] %vm405_vm4, %v20606_v2 }
  0x51   : > { %430 = vst.msk [vmem:[#allocation3 + $0x102] sm:$0x3] %vm405_vm4, %v20606_v2  ;;  %431 = vst.msk [vmem:[#allocation3 + $0x11a] sm:$0x3] %vm405_vm4, %v20606_v2 }
  0x52   : > { %1412 = vperm.xlu0 %20555, %v1365_v34   ;;  %432 = vst.msk [vmem:[#allocation3 + $0x132] sm:$0x3] %vm405_vm4, %v20606_v2  ;;  %433 = vst.msk [vmem:[#allocation3 + $0x14a] sm:$0x3] %vm405_vm4, %v20606_v2 }
  0x53   : > { %434 = vst.msk [vmem:[#allocation3 + $0x162] sm:$0x3] %vm405_vm4, %v20606_v2  ;;  %435 = vst.msk [vmem:[#allocation3 + $0x17a] sm:$0x3] %vm405_vm4, %v20606_v2 }
  0x54   : > { %1924 = vperm.xlu1 %20556, %v1885_v33   ;;  %436 = vst.msk [vmem:[#allocation3 + $0x192] sm:$0x3] %vm405_vm4, %v20606_v2  ;;  %437 = vst.msk [vmem:[#allocation3 + $0x1aa] sm:$0x3] %vm405_vm4, %v20606_v2 }
  0x55   : > { %452 = vst.msk [vmem:[#allocation4 + $0x30] sm:$0x3] %vm405_vm4, %v20606_v2  ;;  %453 = vst.msk [vmem:[#allocation4 + $0x48] sm:$0x3] %vm405_vm4, %v20606_v2 }
  0x56   : > { %1156 = vperm.xlu0 %20555, %v1884_v31   ;;  %454 = vst.msk [vmem:[#allocation4 + $0x60] sm:$0x3] %vm405_vm4, %v20606_v2  ;;  %455 = vst.msk [vmem:[#allocation4 + $0x78] sm:$0x3] %vm405_vm4, %v20606_v2 }
  0x57   : > { %456 = vst.msk [vmem:[#allocation4 + $0x90] sm:$0x3] %vm405_vm4, %v20606_v2  ;;  %457 = vst.msk [vmem:[#allocation4 + $0xa8] sm:$0x3] %vm405_vm4, %v20606_v2 }
  0x58   : > { %1668 = vperm.xlu1 %20556, %v1625_v35   ;;  %458 = vst.msk [vmem:[#allocation4 + $0xc0] sm:$0x3] %vm405_vm4, %v20606_v2  ;;  %459 = vst.msk [vmem:[#allocation4 + $0xd8] sm:$0x3] %vm405_vm4, %v20606_v2 }
  0x59   : > { %460 = vst.msk [vmem:[#allocation4 + $0xf0] sm:$0x3] %vm405_vm4, %v20606_v2  ;;  %461 = vst.msk [vmem:[#allocation4 + $0x108] sm:$0x3] %vm405_vm4, %v20606_v2 }
  0x5a   : > { %2181 = vperm.xlu0 %20555, %v20842_v36   ;;  %462 = vst.msk [vmem:[#allocation4 + $0x120] sm:$0x3] %vm405_vm4, %v20606_v2  ;;  %463 = vst.msk [vmem:[#allocation4 + $0x138] sm:$0x3] %vm405_vm4, %v20606_v2 }
  0x5b   : > { %464 = vst.msk [vmem:[#allocation4 + $0x150] sm:$0x3] %vm405_vm4, %v20606_v2  ;;  %465 = vst.msk [vmem:[#allocation4 + $0x168] sm:$0x3] %vm405_vm4, %v20606_v2 }
  0x5c   : > { %1161 = vperm.xlu1 %20556, %v1885_v33   ;;  %466 = vst.msk [vmem:[#allocation4 + $0x180] sm:$0x3] %vm405_vm4, %v20606_v2  ;;  %467 = vst.msk [vmem:[#allocation4 + $0x198] sm:$0x3] %vm405_vm4, %v20606_v2  ;;  %v565_v33 = vld [vmem:[%s20816_s24 + $0x98] sm:$0xff] }
  0x5d   : > { %468 = vst.msk [vmem:[#allocation4 + $0x42] sm:$0x3] %vm405_vm4, %v20606_v2  ;;  %469 = vst.msk [vmem:[#allocation4 + $0x5a] sm:$0x3] %vm405_vm4, %v20606_v2 }
  0x5e   : > { %1673 = vperm.xlu0 %20555, %v1626_v38   ;;  %470 = vst.msk [vmem:[#allocation4 + $0x72] sm:$0x3] %vm405_vm4, %v20606_v2  ;;  %471 = vst.msk [vmem:[#allocation4 + $0x8a] sm:$0x3] %vm405_vm4, %v20606_v2 }
  0x5f   : > { %472 = vst.msk [vmem:[#allocation4 + $0xa2] sm:$0x3] %vm405_vm4, %v20606_v2  ;;  %473 = vst.msk [vmem:[#allocation4 + $0xba] sm:$0x3] %vm405_vm4, %v20606_v2 }
  0x60   : > { %2186 = vperm.xlu1 %20556, %v20845_v37   ;;  %474 = vst.msk [vmem:[#allocation4 + $0xd2] sm:$0x3] %vm405_vm4, %v20606_v2  ;;  %475 = vst.msk [vmem:[#allocation4 + $0xea] sm:$0x3] %vm405_vm4, %v20606_v2 }
  0x61   : > { %476 = vst.msk [vmem:[#allocation4 + $0x102] sm:$0x3] %vm405_vm4, %v20606_v2  ;;  %477 = vst.msk [vmem:[#allocation4 + $0x11a] sm:$0x3] %vm405_vm4, %v20606_v2 }
  0x62   : > { %676 = vperm.xlu0 %20555, %v1364_v32   ;;  %478 = vst.msk [vmem:[#allocation4 + $0x132] sm:$0x3] %vm405_vm4, %v20606_v2  ;;  %479 = vst.msk [vmem:[#allocation4 + $0x14a] sm:$0x3] %vm405_vm4, %v20606_v2 }
  0x63   : > { %480 = vst.msk [vmem:[#allocation4 + $0x162] sm:$0x3] %vm405_vm4, %v20606_v2  ;;  %481 = vst.msk [vmem:[#allocation4 + $0x17a] sm:$0x3] %vm405_vm4, %v20606_v2 }
  0x64   : > { %905 = vperm.xlu1 %20556, %v1625_v35   ;;  %482 = vst.msk [vmem:[#allocation4 + $0x192] sm:$0x3] %vm405_vm4, %v20606_v2  ;;  %483 = vst.msk [vmem:[#allocation4 + $0x1aa] sm:$0x3] %vm405_vm4, %v20606_v2  ;;  %v3074_v2 = vld [vmem:[#allocation3 + $0x1a] sm:$0xff] }
  0x65   : > { %17628 = vmatprep.mubr.msk.f32.mxu1 %vm389_vm2, %v3074_v2  ;;  %26857 = vst [vmem:[#allocation8_spill] sm:$0xff] %v21108_v10  ;;  %594 = vst.msk [vmem:[#allocation2 + $0xe2] sm:$0xff] %vm484_vm0, %v561_v11 }
  0x66   : > { %1417 = vperm.xlu0 %20555, %v20842_v36   ;;  %17629 = vmatmul.mubr.msk.f32.gmra.mrb[2].mxu1 %vm389_vm2, %v3075_v9  ;;  %26858 = vst [vmem:[#allocation9_spill] sm:$0xff] %v21123_v15  ;;  %595 = vst.msk [vmem:[#allocation2 + $0xf2] sm:$0xff] %vm484_vm0, %v562_v17  ;;  %v21239_v9 = vld [vmem:[%s26717_s1 + $0x2] ss:$0 sm:$0xff]  ;;  %v21253_v17 = vld [vmem:[#allocation2 + $0xc8] sm:$0xff] }
  0x67   : > { %596 = vst.msk [vmem:[#allocation2 + $0xfa] sm:$0xff] %vm484_vm0, %v563_v20  ;;  %597 = vst.msk [vmem:[#allocation2 + $0x10a] sm:$0xff] %vm484_vm0, %v564_v29  ;;  %v21262_v20 = vld [vmem:[%s26717_s1 + $0x4] ss:$0 sm:$0xff]  ;;  %v567_v15 = vld [vmem:[%s20816_s24 + $0xa8] sm:$0xff] }
  0x68   : > { %1929 = vperm.xlu1 %20556, %v1886_v40   ;;  %598 = vst.msk [vmem:[#allocation2 + $0x112] sm:$0xff] %vm484_vm0, %v565_v33  ;;  %600 = vst.msk [vmem:[#allocation2 + $0x12a] sm:$0xff] %vm484_vm0, %v567_v15  ;;  %v21333_v15 = vld [vmem:[%s26718_s2] ss:$0 sm:$0xff] }
  0x6a   : > { %2442 = vperm.xlu0 %20555, %v20853_v42  }
  0x6c   : > { %681 = vperm.xlu1 %20556, %v1365_v34  }
  0x6e   : > { %910 = vperm.xlu0 %20555, %v1626_v38  }
  0x70   : > { %1422 = vperm.xlu1 %20556, %v20845_v37  }
  0x72   : > { %1934 = vperm.xlu0 %20555, %v1887_v44  }
  0x74   : > { %2447 = vperm.xlu1 %20556, %v20857_v43  }
  0x76   : > { %1166 = vperm.xlu0 %20555, %v1886_v40  }
  0x78   : > { %1678 = vperm.xlu1 %20556, %v20853_v42  }
  0x7a   : > { %2191 = vperm.xlu0 %20555, %v20875_v51  }
  0x7c   : > { %2703 = vperm.xlu1 %20556, %v20873_v50  }
  0x7e   : > { %1171 = vperm.xlu0 %20555, %v1887_v44  }
  0x80   : > { %1683 = vperm.xlu1 %20556, %v20857_v43  }
  0x82   : > { %2196 = vperm.xlu0 %20555, %v20934_v59  }
  0x84   : > { %2708 = vperm.xlu1 %20556, %v20926_v56  }
  0x86   : > { %686 = vperm.xlu0 %20555, %v20842_v36   ;;  %v2412_v36 = vld [vmem:[#allocation2 + $0x9a] sm:$0xff] }
  0x88   : > { %915 = vperm.xlu1 %20556, %v20853_v42   ;;  %v21171_v42 = vld [vmem:[#allocation2 + $0xa8] sm:$0xff] }
  0x8a   : > { %1427 = vperm.xlu0 %20555, %v20875_v51  }
  0x8c   : > { %1939 = vperm.xlu1 %20556, %v20873_v50  }
  0x8e   : > { %2452 = vperm.xlu0 %20555, %v2409_v12  }
  0x90   : > { %691 = vperm.xlu1 %20556, %v20845_v37  }
  0x92   : > { %920 = vperm.xlu0 %20555, %v20857_v43  }
  0x94   : > { %1432 = vperm.xlu1 %20556, %v20934_v59  }
  0x96   : > { %1944 = vperm.xlu0 %20555, %v20926_v56  }
  0x97   : > { %v21137_v23 = vpop.permute.xlu1 %651  ;;  %v21139_v24 = vpop.permute.xlu0 %646 }
  0x98   : > { %2457 = vperm.xlu1 %20556, %v2410_v16  }
  0x9a   : > { %1176 = vperm.xlu0 %20555, %v20873_v50  }
  0x9b   : > { %v21143_v26 = vpop.permute.xlu0 %875 }
  0x9c   : > { %1688 = vperm.xlu1 %20556, %v2409_v12   ;;  %v1037_v13 = vmul.f32 %v21229_v7, %v21143_v26 }
  0x9e   : > { %2201 = vperm.xlu0 %20555, %v2150_v19  }
  0x9f   : > { %v21148_v28 = vpop.permute.xlu0 %1136 }
  0xa0   : > { %2713 = vperm.xlu1 %20556, %v2670_v18  }
  0xa2   : > { %1181 = vperm.xlu0 %20555, %v20926_v56  }
  0xa3   : > { %v21154_v32 = vpop.permute.xlu0 %656 }
  0xa4   : > { %1693 = vperm.xlu1 %20556, %v2410_v16  }
  0xa6   : > { %2206 = vperm.xlu0 %20555, %v2151_v22  }
  0xa8   : > { %2718 = vperm.xlu1 %20556, %v2671_v21  }
  0xaa   : > { %696 = vperm.xlu0 %20555, %v20875_v51  }
  0xab   : > { %v21141_v25 = vpop.permute.xlu1 %880 }
  0xac   : > { %925 = vperm.xlu1 %20556, %v2409_v12   ;;  %v1038_v33 = vmul.f32 %v21229_v7, %v21141_v25  ;;  %v809_v25 = vmul.f32 %v21234_v8, %v21137_v23 }
  0xae   : > { %1437 = vperm.xlu0 %20555, %v2150_v19  }
  0xaf   : > { %v21146_v27 = vpop.permute.xlu1 %1141 }
  0xb0   : > { %1949 = vperm.xlu1 %20556, %v2670_v18  }
  0xb2   : > { %2462 = vperm.xlu0 %20555, %v2411_v30  }
  0xb3   : > { %v21152_v31 = vpop.permute.xlu1 %885 }
  0xb4   : > { %701 = vperm.xlu1 %20556, %v20934_v59  }
  0xb5   : > { %v21161_v35 = vpop.permute.xlu0 %1397 }
  0xb6   : > { %930 = vperm.xlu0 %20555, %v2410_v16   ;;  %v21251_v16 = vld [vmem:[#allocation2 + $0xb4] sm:$0xff]  ;;  %v1559_v29 = vmul.f32 %v21249_v14, %v21161_v35  ;;  %v21284_v35 = vld [vmem:[%s26717_s1 + $0x6] ss:$0 sm:$0xff] }
  0xb7   : > { %v21159_v34 = vpop.permute.xlu1 %661 }
  0xb8   : > { %1442 = vperm.xlu1 %20556, %v2151_v22  }
  0xb9   : > { %v21165_v38 = vpop.permute.xlu0 %890 }
  0xba   : > { %1954 = vperm.xlu0 %20555, %v2671_v21  }
  0xbb   : > { %v21163_v37 = vpop.permute.xlu1 %1402 }
  0xbc   : > { %2467 = vperm.xlu1 %20556, %v2412_v36  }
  0xbd   : > { %v21169_v40 = vpop.permute.xlu0 %1146 }
  0xbe   : > { %1186 = vperm.xlu0 %20555, %v2670_v18   ;;  %v808_v18 = vmul.f32 %v21234_v8, %v21139_v24  ;;  %v21275_v24 = vld [vmem:[%s26717_s1 + $0x5] ss:$0 sm:$0xff] }
  0xbf   : > { %v21167_v39 = vpop.permute.xlu1 %1658 }
  0xc0   : > { %1698 = vperm.xlu1 %20556, %v2411_v30   ;;  %v1069_v26 = vadd.f32 %v1037_v13, %v808_v18  ;;  %v1299_v18 = vmul.f32 %v21239_v9, %v21146_v27 }
  0xc1   : > { %v21175_v44 = vpop.permute.xlu0 %1151 }
  0xc2   : > { %2211 = vperm.xlu0 %20555, %v21171_v42  }
  0xc3   : > { %v21173_v43 = vpop.permute.xlu1 %1663 }
  0xc4   : > { %2723 = vperm.xlu1 %20556, %v2672_v41  }
  0xc5   : > { %v21180_v46 = vpop.permute.xlu0 %666 }
  0xc6   : > { %1191 = vperm.xlu0 %20555, %v2671_v21  }
  0xc7   : > { %v21178_v45 = vpop.permute.xlu1 %895 }
  0xc8   : > { %1703 = vperm.xlu1 %20556, %v2412_v36  }
  0xc9   : > { %v21186_v50 = vpop.permute.xlu0 %1407 }
  0xca   : > { %2216 = vperm.xlu0 %20555, %v21182_v48  }
  0xcb   : > { %v21184_v49 = vpop.permute.xlu1 %1919 }
  0xcc   : > { %2728 = vperm.xlu1 %20556, %v2673_v47   ;;  %v2081_v13 = vmul.f32 %v21275_v24, %v21184_v49 }
  0xcd   : > { %v21191_v52 = vpop.permute.xlu0 %671 }
  0xce   : > { %706 = vperm.xlu0 %20555, %v2150_v19   ;;  %v1298_v19 = vmul.f32 %v21239_v9, %v21148_v28 }
  0xcf   : > { %v21189_v51 = vpop.permute.xlu1 %900 }
  0xd0   : > { %935 = vperm.xlu1 %20556, %v2411_v30   ;;  %v1330_v28 = vadd.f32 %v1298_v19, %v1069_v26  ;;  %v1820_v30 = vmul.f32 %v21262_v20, %v21167_v39  ;;  %v566_v39 = vld [vmem:[%s20816_s24 + $0xa0] sm:$0xff] }
  0xd1   : > { %v21195_v54 = vpop.permute.xlu0 %1412  ;;  %v21299_v19 = vld [vmem:[%s26717_s1 + $0x7] ss:$0 sm:$0xff]  ;;  %599 = vst.msk [vmem:[#allocation2 + $0x122] sm:$0xff] %vm484_vm0, %v566_v39 }
  0xd2   : > { %1447 = vperm.xlu0 %20555, %v21171_v42  }
  0xd3   : > { %v21193_v53 = vpop.permute.xlu1 %1924 }
  0xd4   : > { %1959 = vperm.xlu1 %20556, %v2672_v41  }
  0xd5   : > { %v21200_v57 = vpop.permute.xlu0 %1156 }
  0xd6   : > { %2472 = vperm.xlu0 %20555, %v2413_v55  }
  0xd7   : > { %v21198_v56 = vpop.permute.xlu1 %1668 }
  0xd8   : > { %711 = vperm.xlu1 %20556, %v2151_v22   ;;  %v1822_v10 = vmul.f32 %v21262_v20, %v21198_v56  ;;  %v1301_v56 = vmul.f32 %v21239_v9, %v21175_v44  ;;  %v569_v44 = vld [vmem:[%s20816_s24 + $0xb8] sm:$0xff] }
  0xd9   : > { %v2182_v59 = vpop.permute.xlu0 %2181  ;;  %602 = vst.msk [vmem:[#allocation2 + $0x142] sm:$0xff] %vm484_vm0, %v569_v44 }
  0xda   : > { %940 = vperm.xlu0 %20555, %v2412_v36   ;;  %v2343_v49 = vmul.f32 %v21284_v35, %v2182_v59  ;;  %v21316_v59 = vld [vmem:[%s26717_s1 + $0x8] ss:$0 sm:$0xff] }
  0xdb   : > { %v21202_v58 = vpop.permute.xlu1 %1161 }
  0xdc   : > { %1452 = vperm.xlu1 %20556, %v21182_v48  }
  0xdd   : > { %v21209_v62 = vpop.permute.xlu0 %1673 }
  0xde   : > { %1964 = vperm.xlu0 %20555, %v2673_v47  }
  0xdf   : > { %v21207_v61 = vpop.permute.xlu1 %2186 }
  0xe0   : > { %2477 = vperm.xlu1 %20556, %v21205_v60  }
  0xe1   : > { %v21214_v1 = vpop.permute.xlu0 %676 }
  0xe2   : > { %1196 = vperm.xlu0 %20555, %v2672_v41  }
  0xe3   : > { %v21212_v0 = vpop.permute.xlu1 %905 }
  0xe4   : > { %1708 = vperm.xlu1 %20556, %v2413_v55  }
  0xe5   : > { %v21222_v2 = vpop.permute.xlu0 %1417 }
  0xe6   : > { %2221 = vperm.xlu0 %20555, %v21218_v4  }
  0xe7   : > { %v21220_v5 = vpop.permute.xlu1 %1929 }
  0xe8   : > { %2733 = vperm.xlu1 %20556, %v21216_v3   ;;  %v2083_v63 = vmul.f32 %v21275_v24, %v21220_v5  ;;  %v1562_v5 = vmul.f32 %v21249_v14, %v21195_v54  ;;  %v1823_v54 = vmul.f32 %v21262_v20, %v21209_v62 }
  0xe9   : > { %v2443_v12 = vpop.permute.xlu0 %2442 }
  0xea   : > { %1201 = vperm.xlu0 %20555, %v2673_v47   ;;  %v1591_v47 = vadd.f32 %v1559_v29, %v1330_v28  ;;  %v2604_v27 = vmul.f32 %v21299_v19, %v2443_v12 }
  0xeb   : > { %v21241_v11 = vpop.permute.xlu1 %681 }
  0xec   : > { %1713 = vperm.xlu1 %20556, %v21205_v60   ;;  %v1852_v26 = vadd.f32 %v1820_v30, %v1591_v47  ;;  %v21318_v30 = vld [vmem:[#allocation2 + $0xc2] sm:$0xff] }
  0xed   : > { %v21266_v22 = vpop.permute.xlu0 %910 }
  0xee   : > { %2226 = vperm.xlu0 %20555, %v21253_v17   ;;  %v2113_v28 = vadd.f32 %v2081_v13, %v1852_v26 }
  0xef   : > { %v21264_v21 = vpop.permute.xlu1 %1422 }
  0xf0   : > { %2738 = vperm.xlu1 %20556, %v21251_v16  }
  0xf1   : > { %v21286_v41 = vpop.permute.xlu0 %1934 }
  0xf2   : > { %716 = vperm.xlu0 %20555, %v21171_v42   ;;  %v1560_v42 = vmul.f32 %v21249_v14, %v21163_v37  ;;  %v1821_v37 = vmul.f32 %v21262_v20, %v21173_v43 }
  0xf3   : > { %v2448_v36 = vpop.permute.xlu1 %2447 }
  0xf4   : > { %945 = vperm.xlu1 %20556, %v2413_v55   ;;  %v1070_v55 = vadd.f32 %v1038_v33, %v809_v25  ;;  %v2375_v33 = vadd.f32 %v2343_v49, %v2113_v28  ;;  %v2082_v25 = vmul.f32 %v21275_v24, %v21193_v53  ;;  %v2344_v49 = vmul.f32 %v21284_v35, %v21207_v61 }
  0xf5   : > { %v21307_v23 = vpop.permute.xlu0 %1166 }
  0xf6   : > { %1457 = vperm.xlu0 %20555, %v21218_v4   ;;  %v1331_v39 = vadd.f32 %v1299_v18, %v1070_v55  ;;  %v2636_v18 = vadd.f32 %v2604_v27, %v2375_v33  ;;  %v2605_v27 = vmul.f32 %v21299_v19, %v2448_v36 }
  0xf7   : > { %v21305_v29 = vpop.permute.xlu1 %1678 }
  0xf8   : > { %1969 = vperm.xlu1 %20556, %v21216_v3   ;;  %v1592_v12 = vadd.f32 %v1560_v42, %v1331_v39  ;;  %v21345_v39 = vld [vmem:[#allocation2 + $0xca] sm:$0xff] }
  0xf9   : > { %v21323_v13 = vpop.permute.xlu0 %2191 }
  0xfa   : > { %2482 = vperm.xlu0 %20555, %v21318_v30   ;;  %v1853_v43 = vadd.f32 %v1821_v37, %v1592_v12 }
  0xfb   : > { %v2704_v47 = vpop.permute.xlu1 %2703 }
  0xfc   : > { %v2865_v26 = vmul.f32 %v21316_v59, %v2704_v47  ;;  %721 = vperm.xlu1 %20556, %v21182_v48   ;;  %v2114_v28 = vadd.f32 %v2082_v25, %v1853_v43  ;;  %v21360_v43 = vld [vmem:[#allocation2 + $0xc4] sm:$0xff] }
  0xfd   : > { %v21339_v53 = vpop.permute.xlu0 %1171 }
  0xfe   : > { %v2897_v55 = vadd.f32 %v2865_v26, %v2636_v18  ;;  %950 = vperm.xlu0 %20555, %v21205_v60   ;;  %v2376_v37 = vadd.f32 %v2344_v49, %v2114_v28  ;;  %v21362_v49 = vld [vmem:[#allocation2 + $0xd8] sm:$0xff] }
  0xff   : > { %v21337_v42 = vpop.permute.xlu1 %1683 }
 0x100   : > { %v2936_v48 = vadd.f32 %v21333_v15, %v2897_v55  ;;  %1462 = vperm.xlu1 %20556, %v21253_v17   ;;  %v2637_v47 = vadd.f32 %v2605_v27, %v2376_v37 }
 0x101   : > { %v21347_v61 = vpop.permute.xlu0 %2196 }
 0x102   : > { %v2968_v33 = vmax.f32 %v2936_v48, 0.0  ;;  %1974 = vperm.xlu0 %20555, %v21251_v16   ;;  %v2346_v62 = vmul.f32 %v21284_v35, %v21347_v61 }
 0x103   : > { %v2709_v12 = vpop.permute.xlu1 %2708 }
 0x104   : > { %3000 = vst.msk [vmem:[#allocation3 + $0x32] sm:$0xff] %vm389_vm2, %v2968_v33  ;;  %v2866_v25 = vmul.f32 %v21316_v59, %v2709_v12  ;;  %2487 = vperm.xlu1 %20556, %v21345_v39   ;;  %v1039_v33 = vmul.f32 %v21229_v7, %v21152_v31  ;;  %v810_v12 = vmul.f32 %v21234_v8, %v21154_v32 }
 0x105   : > { %v21355_v60 = vpop.permute.xlu0 %686  ;;  %v1561_v32 = vmul.f32 %v21249_v14, %v21186_v50 }
 0x106   : > { %v2898_v36 = vadd.f32 %v2866_v25, %v2637_v47  ;;  %26860 = vst [vmem:[#allocation11_spill] sm:$0xff] %v21355_v60  ;;  %1206 = vperm.xlu0 %20555, %v21216_v3   ;;  %v21381_v47 = vld [vmem:[#allocation2 + $0xcc] sm:$0xff]  ;;  %v21383_v25 = vld [vmem:[#allocation2 + $0xe0] sm:$0xff]  ;;  %v1071_v31 = vadd.f32 %v1039_v33, %v810_v12  ;;  %v1040_v33 = vmul.f32 %v21229_v7, %v21165_v38 }
 0x107   : > { %v21353_v18 = vpop.permute.xlu1 %915 }
 0x108   : > { %26859 = vst [vmem:[#allocation10_spill] sm:$0xff] %v21353_v18  ;;  %v2937_v26 = vadd.f32 %v21333_v15, %v2898_v36  ;;  %1718 = vperm.xlu1 %20556, %v21318_v30   ;;  %v1300_v36 = vmul.f32 %v21239_v9, %v21169_v40 }
 0x109   : > { %v21366_v27 = vpop.permute.xlu0 %1427 }
 0x10a   : > { %v2969_v55 = vmax.f32 %v2937_v26, 0.0  ;;  %2231 = vperm.xlu0 %20555, %v21362_v49   ;;  %v1332_v40 = vadd.f32 %v1300_v36, %v1071_v31  ;;  %v811_v36 = vmul.f32 %v21234_v8, %v21159_v34  ;;  %v2345_v31 = vmul.f32 %v21284_v35, %v21323_v13 }
 0x10b   : > { %v21364_v28 = vpop.permute.xlu1 %1939  ;;  %v3076_v48 = vld [vmem:[#allocation3 + $0x32] sm:$0xff] }
 0x10c   : > { %3001 = vst.msk [vmem:[#allocation3 + $0x3a] sm:$0xff] %vm389_vm2, %v2969_v55  ;;  %2743 = vperm.xlu1 %20556, %v21360_v43   ;;  %17631 = vmatprep.mubr.msk.f32.mxu1 %vm389_vm2, %v3076_v48  ;;  %v1593_v6 = vadd.f32 %v1561_v32, %v1332_v40  ;;  %v1072_v32 = vadd.f32 %v1040_v33, %v811_v36 }
 0x10d   : > { %17881 = vmatprep.mubr.msk.f32.mxu0 %vm389_vm2, %v3076_v48  ;;  %v2453_v37 = vpop.permute.xlu0 %2452  ;;  %v2085_v18 = vmul.f32 %v21275_v24, %v21364_v28 }
 0x10e   : > { %1211 = vperm.xlu0 %20555, %v21251_v16   ;;  %v568_v16 = vld [vmem:[%s20816_s24 + $0xb0] sm:$0xff]  ;;  %v1854_v38 = vadd.f32 %v1822_v10, %v1593_v6  ;;  %v2606_v34 = vmul.f32 %v21299_v19, %v2453_v37  ;;  %v1333_v6 = vadd.f32 %v1301_v56, %v1072_v32  ;;  %v21427_v10 = vld [vmem:[#allocation2 + $0xe2] sm:$0xff] }
 0x10f   : > { %v21373_v3 = vpop.permute.xlu1 %691  ;;  %601 = vst.msk [vmem:[#allocation2 + $0x13a] sm:$0xff] %vm484_vm0, %v568_v16  ;;  %v21439_v56 = vld [vmem:[#allocation2 + $0xf0] sm:$0xff] }
 0x110   : > { %26861 = vst [vmem:[#allocation12_spill] sm:$0xff] %v21373_v3  ;;  %1723 = vperm.xlu1 %20556, %v21345_v39   ;;  %v2115_v3 = vadd.f32 %v2083_v63, %v1854_v38  ;;  %v1594_v33 = vadd.f32 %v1562_v5, %v1333_v6  ;;  %v2084_v63 = vmul.f32 %v21275_v24, %v21286_v41  ;;  %v21451_v6 = vld [vmem:[#allocation2 + $0xdc] sm:$0xff] }
 0x111   : > { %v21389_v55 = vpop.permute.xlu0 %920 }
 0x112   : > { %26862 = vst [vmem:[#allocation13_spill] sm:$0xff] %v21389_v55  ;;  %2236 = vperm.xlu0 %20555, %v21383_v25   ;;  %v2377_v13 = vadd.f32 %v2345_v31, %v2115_v3  ;;  %v1855_v32 = vadd.f32 %v1823_v54, %v1594_v33 }
 0x113   : > { %v21387_v26 = vpop.permute.xlu1 %1432  ;;  %v3077_v48 = vld [vmem:[#allocation3 + $0x3a] sm:$0xff] }
 0x114   : > { %2748 = vperm.xlu1 %20556, %v21381_v47   ;;  %17632 = vmatmul.mubr.msk.f32.gmra.mrb[4].mxu1 %vm389_vm2, %v3077_v48  ;;  %v2638_v37 = vadd.f32 %v2606_v34, %v2377_v13  ;;  %v2116_v44 = vadd.f32 %v2084_v63, %v1855_v32 }
 0x115   : > { %17882 = vmatmul.mubr.msk.f32.vlgmr.msra.gmra.mrb[0].mxu0 %vm389_vm2, %v3077_v48  ;;  %v21403_v50 = vpop.permute.xlu0 %1944  ;;  %v21413_v48 = vld [vmem:[#allocation2 + $0xda] sm:$0xff] }
 0x116   : > { %1467 = vperm.xlu0 %20555, %v21362_v49   ;;  %v2378_v54 = vadd.f32 %v2346_v62, %v2116_v44  ;;  %v21470_v44 = vld [vmem:[#allocation2 + $0xf2] sm:$0xff] }
 0x117   : > { %v2458_v12 = vpop.permute.xlu1 %2457 }
 0x118   : > { %1979 = vperm.xlu1 %20556, %v21360_v43   ;;  %v2607_v41 = vmul.f32 %v21299_v19, %v2458_v12  ;;  %v21459_v12 = vld [vmem:[#allocation2 + $0xe4] sm:$0xff] }
 0x119   : > { %v21421_v40 = vpop.permute.xlu0 %1176 }
 0x11a   : > { %26863 = vst [vmem:[#allocation14_spill] sm:$0xff] %v21421_v40  ;;  %2492 = vperm.xlu0 %20555, %v21413_v48   ;;  %v21508_v40 = vld [vmem:[#allocation2 + $0xfc] sm:$0xff] }
 0x11b   : > { %v21419_v16 = vpop.permute.xlu1 %1688 }
 0x11c   : > { %1472 = vperm.xlu1 %20556, %v21383_v25  }
 0x11d   : > { %v21432_v55 = vpop.permute.xlu0 %2201 }
 0x11e   : > { %1984 = vperm.xlu0 %20555, %v21381_v47  }
 0x11f   : > { %v2714_v36 = vpop.permute.xlu1 %2713 }
 0x120   : > { %v2867_v38 = vmul.f32 %v21316_v59, %v2714_v36  ;;  %2497 = vperm.xlu1 %20556, %v21427_v10   ;;  %v2639_v36 = vadd.f32 %v2607_v41, %v2378_v54 }
 0x121   : > { %v21445_v5 = vpop.permute.xlu0 %1181 }
 0x122   : > { %v2899_v3 = vadd.f32 %v2867_v38, %v2638_v37  ;;  %26864 = vst [vmem:[#allocation15_spill] sm:$0xff] %v21445_v5  ;;  %1728 = vperm.xlu0 %20555, %v21413_v48   ;;  %v21461_v37 = vld [vmem:[#allocation2 + $0xf8] sm:$0xff] }
 0x123   : > { %v21443_v31 = vpop.permute.xlu1 %1693 }
 0x124   : > { %v2938_v34 = vadd.f32 %v21333_v15, %v2899_v3  ;;  %2241 = vperm.xlu1 %20556, %v21439_v56  }
 0x125   : > { %v21453_v61 = vpop.permute.xlu0 %2206 }
 0x126   : > { %v2970_v13 = vmax.f32 %v2938_v34, 0.0  ;;  %2753 = vperm.xlu0 %20555, %v21451_v6  }
 0x127   : > { %v2719_v33 = vpop.permute.xlu1 %2718 }
 0x128   : > { %3002 = vst.msk [vmem:[#allocation3 + $0x4a] sm:$0xff] %vm389_vm2, %v2970_v13  ;;  %v2868_v63 = vmul.f32 %v21316_v59, %v2719_v33  ;;  %1733 = vperm.xlu1 %20556, %v21427_v10   ;;  %v21481_v33 = vld [vmem:[#allocation2 + $0xfa] sm:$0xff] }
 0x129   : > { %v21465_v62 = vpop.permute.xlu0 %696 }
 0x12a   : > { %v2900_v38 = vadd.f32 %v2868_v63, %v2639_v36  ;;  %26866 = vst [vmem:[#allocation17_spill] sm:$0xff] %v21465_v62  ;;  %2246 = vperm.xlu0 %20555, %v21461_v37   ;;  %v21493_v62 = vld [vmem:[#allocation2 + $0x108] sm:$0xff] }
 0x12b   : > { %v21463_v32 = vpop.permute.xlu1 %925 }
 0x12c   : > { %26865 = vst [vmem:[#allocation16_spill] sm:$0xff] %v21463_v32  ;;  %v2939_v3 = vadd.f32 %v21333_v15, %v2900_v38  ;;  %2758 = vperm.xlu1 %20556, %v21459_v12   ;;  %v1041_v38 = vmul.f32 %v21229_v7, %v21178_v45 }
 0x12d   : > { %v21474_v54 = vpop.permute.xlu0 %1437 }
 0x12e   : > { %v2971_v41 = vmax.f32 %v2939_v3, 0.0  ;;  %26867 = vst [vmem:[#allocation18_spill] sm:$0xff] %v21474_v54  ;;  %1989 = vperm.xlu0 %20555, %v21451_v6   ;;  %v812_v3 = vmul.f32 %v21234_v8, %v21180_v46  ;;  %v1563_v46 = vmul.f32 %v21249_v14, %v21222_v2  ;;  %v570_v54 = vld [vmem:[%s20816_s24 + $0xc0] sm:$0xff]  ;;  %v1042_v2 = vmul.f32 %v21229_v7, %v21189_v51 }
 0x12f   : > { %v21472_v34 = vpop.permute.xlu1 %1949  ;;  %v3078_v13 = vld [vmem:[#allocation3 + $0x4a] sm:$0xff]  ;;  %603 = vst.msk [vmem:[#allocation2 + $0x152] sm:$0xff] %vm484_vm0, %v570_v54  ;;  %v2347_v51 = vmul.f32 %v21284_v35, %v21432_v55 }
 0x130   : > { %3003 = vst.msk [vmem:[#allocation3 + $0x52] sm:$0xff] %vm389_vm2, %v2971_v41  ;;  %2502 = vperm.xlu1 %20556, %v21470_v44   ;;  %17634 = vmatprep.mubr.msk.f32.mxu1 %vm389_vm2, %v3078_v13  ;;  %v21491_v41 = vld [vmem:[#allocation2 + $0xf4] sm:$0xff]  ;;  %v1073_v45 = vadd.f32 %v1041_v38, %v812_v3  ;;  %v1824_v38 = vmul.f32 %v21262_v20, %v21305_v29 }
 0x131   : > { %17884 = vmatprep.mubr.msk.f32.mxu0 %vm389_vm2, %v3078_v13  ;;  %v2463_v63 = vpop.permute.xlu0 %2462  ;;  %v1302_v13 = vmul.f32 %v21239_v9, %v21200_v57  ;;  %v21510_v57 = vld [vmem:[#allocation2 + $0x110] sm:$0xff]  ;;  %v813_v3 = vmul.f32 %v21234_v8, %v21191_v52  ;;  %v1303_v29 = vmul.f32 %v21239_v9, %v21202_v58  ;;  %v571_v58 = vld [vmem:[%s20816_s24 + $0xc8] sm:$0xff] }
 0x132   : > { %1994 = vperm.xlu0 %20555, %v21459_v12   ;;  %604 = vst.msk [vmem:[#allocation2 + $0x15a] sm:$0xff] %vm484_vm0, %v571_v58 }
 0x133   : > { %v21483_v36 = vpop.permute.xlu1 %701  ;;  %v1074_v52 = vadd.f32 %v1042_v2, %v813_v3 }
 0x134   : > { %26868 = vst [vmem:[#allocation19_spill] sm:$0xff] %v21483_v36  ;;  %2507 = vperm.xlu1 %20556, %v21481_v33  }
 0x135   : > { %v21499_v32 = vpop.permute.xlu0 %930 }
 0x136   : > { %26870 = vst [vmem:[#allocation21_spill] sm:$0xff] %v21499_v32  ;;  %2251 = vperm.xlu0 %20555, %v21493_v62   ;;  %v1334_v32 = vadd.f32 %v1302_v13, %v1073_v45  ;;  %v1564_v13 = vmul.f32 %v21249_v14, %v21264_v21  ;;  %v1825_v21 = vmul.f32 %v21262_v20, %v21337_v42 }
 0x137   : > { %v21497_v36 = vpop.permute.xlu1 %1442  ;;  %v3079_v5 = vld [vmem:[#allocation3 + $0x52] sm:$0xff]  ;;  %v2348_v42 = vmul.f32 %v21284_v35, %v21453_v61 }
 0x138   : > { %26869 = vst [vmem:[#allocation20_spill] sm:$0xff] %v21497_v36  ;;  %2763 = vperm.xlu1 %20556, %v21491_v41   ;;  %17635 = vmatmul.mubr.msk.f32.gmra.mrb[6].mxu1 %vm389_vm2, %v3079_v5 }
 0x139   : > { %17885 = vmatmul.mubr.msk.f32.gmra.mrb[2].mxu0 %vm389_vm2, %v3079_v5  ;;  %v21519_v60 = vpop.permute.xlu0 %1954  ;;  %v1595_v5 = vadd.f32 %v1563_v46, %v1334_v32  ;;  %v2608_v46 = vmul.f32 %v21299_v19, %v2463_v63  ;;  %v21551_v63 = vld [vmem:[#allocation2 + $0x112] sm:$0xff] }
 0x13a   : > { %2256 = vperm.xlu0 %20555, %v21510_v57  }
 0x13b   : > { %v2468_v36 = vpop.permute.xlu1 %2467  ;;  %v1856_v54 = vadd.f32 %v1824_v38, %v1595_v5  ;;  %v1335_v38 = vadd.f32 %v1303_v29, %v1074_v52  ;;  %v21539_v5 = vld [vmem:[#allocation2 + $0x10a] sm:$0xff] }
 0x13c   : > { %2768 = vperm.xlu1 %20556, %v21508_v40  }
 0x13d   : > { %v21533_v32 = vpop.permute.xlu0 %1186  ;;  %v2117_v28 = vadd.f32 %v2085_v18, %v1856_v54  ;;  %v1596_v2 = vadd.f32 %v1564_v13, %v1335_v38  ;;  %v2086_v18 = vmul.f32 %v21275_v24, %v21403_v50  ;;  %v2609_v50 = vmul.f32 %v21299_v19, %v2468_v36  ;;  %v21571_v36 = vld [vmem:[#allocation2 + $0x114] sm:$0xff] }
 0x13e   : > { %26871 = vst [vmem:[#allocation22_spill] sm:$0xff] %v21533_v32  ;;  %726 = vperm.xlu0 %20555, %v21218_v4  }
 0x13f   : > { %v21531_v45 = vpop.permute.xlu1 %1698  ;;  %v2379_v55 = vadd.f32 %v2347_v51, %v2117_v28  ;;  %v1857_v29 = vadd.f32 %v1825_v21, %v1596_v2 }
 0x140   : > { %955 = vperm.xlu1 %20556, %v21318_v30  }
 0x141   : > { %v21544_v32 = vpop.permute.xlu0 %2211  ;;  %v2640_v30 = vadd.f32 %v2608_v46, %v2379_v55  ;;  %v2118_v13 = vadd.f32 %v2086_v18, %v1857_v29 }
 0x142   : > { %2512 = vperm.xlu0 %20555, %v21539_v5  }
 0x143   : > { %v2724_v3 = vpop.permute.xlu1 %2723  ;;  %v2380_v46 = vadd.f32 %v2348_v42, %v2118_v13 }
 0x144   : > { %v2869_v4 = vmul.f32 %v21316_v59, %v2724_v3  ;;  %731 = vperm.xlu1 %20556, %v21253_v17   ;;  %v21563_v17 = vld [vmem:[#allocation2 + $0x10c] sm:$0xff] }
 0x145   : > { %v21557_v52 = vpop.permute.xlu0 %1191  ;;  %v2641_v21 = vadd.f32 %v2609_v50, %v2380_v46  ;;  %v4968_v50 = vld [vmem:[%s26719_s3 + $0x158] sm:$0xff] }
 0x146   : > { %v2901_v54 = vadd.f32 %v2869_v4, %v2640_v30  ;;  %960 = vperm.xlu0 %20555, %v21345_v39   ;;  %v4965_v4 = vld [vmem:[%s26719_s3 + $0x140] sm:$0xff] }
 0x147   : > { %v21555_v51 = vpop.permute.xlu1 %1703 }
 0x148   : > { %v2940_v28 = vadd.f32 %v21333_v15, %v2901_v54  ;;  %2517 = vperm.xlu1 %20556, %v21551_v63  }
 0x149   : > { %v21565_v61 = vpop.permute.xlu0 %2216 }
 0x14a   : > { %v2972_v58 = vmax.f32 %v2940_v28, 0.0  ;;  %1216 = vperm.xlu0 %20555, %v21360_v43   ;;  %v4966_v43 = vld [vmem:[%s26719_s3 + $0x148] sm:$0xff] }
 0x14b   : > { %v2729_v38 = vpop.permute.xlu1 %2728  ;;  %v19417_v13 = vpack.c.bf16 %v4966_v43, %v4965_v4  ;;  %v1826_v43 = vmul.f32 %v21262_v20, %v21419_v16  ;;  %v2087_v16 = vmul.f32 %v21275_v24, %v21472_v34  ;;  %v1566_v34 = vmul.f32 %v21249_v14, %v21387_v26 }
 0x14c   : > { %3004 = vst.msk [vmem:[#allocation3 + $0x62] sm:$0xff] %vm389_vm2, %v2972_v58  ;;  %v2870_v55 = vmul.f32 %v21316_v59, %v2729_v38  ;;  %2773 = vperm.xlu1 %20556, %v21563_v17   ;;  %v814_v58 = vmul.f32 %v21234_v8, %v21214_v1  ;;  %v1304_v38 = vmul.f32 %v21239_v9, %v21307_v23  ;;  %v572_v23 = vld [vmem:[%s20816_s24 + $0xd0] sm:$0xff] }
 0x14d   : > { %v21575_v3 = vpop.permute.xlu0 %706  ;;  %19418 = vmatprep.subr.bf16.mxu0 %v19417_v13  ;;  %605 = vst.msk [vmem:[#allocation2 + $0x16a] sm:$0xff] %vm484_vm0, %v572_v23 }
 0x14e   : > { %v2902_v2 = vadd.f32 %v2870_v55, %v2641_v21  ;;  %1221 = vperm.xlu0 %20555, %v21381_v47   ;;  %v4967_v47 = vld [vmem:[%s26719_s3 + $0x150] sm:$0xff]  ;;  %19420 = vmatpush3.bf16.msra.mxu0 %v19417_v13  ;;  %v4969_v21 = vld [vmem:[%s26719_s3 + $0x160] sm:$0xff] }
 0x14f   : > { %v21573_v39 = vpop.permute.xlu1 %935 }
 0x150   : > { %v2941_v18 = vadd.f32 %v21333_v15, %v2902_v2  ;;  %2778 = vperm.xlu1 %20556, %v21571_v36  }
 0x151   : > { %v21588_v42 = vpop.permute.xlu0 %1447 }
 0x152   : > { %v2973_v30 = vmax.f32 %v2941_v18, 0.0  ;;  %736 = vperm.xlu0 %20555, %v21362_v49   ;;  %v1043_v49 = vmul.f32 %v21229_v7, %v21212_v0  ;;  %v4970_v0 = vld [vmem:[%s26719_s3 + $0x168] sm:$0xff] }
 0x153   : > { %v21586_v29 = vpop.permute.xlu1 %1959  ;;  %v3080_v54 = vld [vmem:[#allocation3 + $0x62] sm:$0xff] }
 0x154   : > { %3005 = vst.msk [vmem:[#allocation3 + $0x6a] sm:$0xff] %vm389_vm2, %v2973_v30  ;;  %965 = vperm.xlu1 %20556, %v21413_v48   ;;  %17637 = vmatprep.mubr.msk.f32.mxu1 %vm389_vm2, %v3080_v54  ;;  %v19421_v48 = vpack.c.bf16 %v4968_v50, %v4967_v47  ;;  %v1075_v18 = vadd.f32 %v1043_v49, %v814_v58 }
 0x155   : > { %17887 = vmatprep.mubr.msk.f32.mxu0 %vm389_vm2, %v3080_v54  ;;  %v2473_v46 = vpop.permute.xlu0 %2472  ;;  %v1565_v30 = vmul.f32 %v21249_v14, %v21366_v27  ;;  %v4971_v27 = vld [vmem:[%s26719_s3 + $0x170] sm:$0xff]  ;;  %v1044_v54 = vmul.f32 %v21229_v7, %v21266_v22  ;;  %v815_v49 = vmul.f32 %v21234_v8, %v21241_v11  ;;  %v1305_v22 = vmul.f32 %v21239_v9, %v21339_v53  ;;  %v573_v53 = vld [vmem:[%s20816_s24 + $0xd8] sm:$0xff] }
 0x156   : > { %1477 = vperm.xlu0 %20555, %v21439_v56   ;;  %19422 = vmatprep.subr.bf16.mxu0 %v19421_v48  ;;  %v1336_v4 = vadd.f32 %v1304_v38, %v1075_v18  ;;  %v2349_v38 = vmul.f32 %v21284_v35, %v21544_v32  ;;  %v2610_v11 = vmul.f32 %v21299_v19, %v2473_v46 }
 0x157   : > { %v21601_v28 = vpop.permute.xlu1 %711  ;;  %19424 = vmatpush3.bf16.msra.mxu0 %v19421_v48  ;;  %606 = vst.msk [vmem:[#allocation2 + $0x172] sm:$0xff] %vm484_vm0, %v573_v53  ;;  %v1827_v32 = vmul.f32 %v21262_v20, %v21443_v31  ;;  %v21705_v53 = vld [vmem:[#allocation2 + $0x120] sm:$0xff] }
 0x158   : > { %741 = vperm.xlu1 %20556, %v21383_v25   ;;  %v19425_v25 = vpack.c.bf16 %v4970_v0, %v4969_v21  ;;  %v1597_v48 = vadd.f32 %v1565_v30, %v1336_v4  ;;  %v1076_v21 = vadd.f32 %v1044_v54, %v815_v49  ;;  %v2088_v4 = vmul.f32 %v21275_v24, %v21519_v60 }
 0x159   : > { %v21619_v1 = vpop.permute.xlu0 %940 }
 0x15a   : > { %970 = vperm.xlu0 %20555, %v21427_v10   ;;  %19426 = vmatprep.subr.bf16.mxu0 %v19425_v25  ;;  %v4972_v10 = vld [vmem:[%s26719_s3 + $0x178] sm:$0xff]  ;;  %v1858_v58 = vadd.f32 %v1826_v43, %v1597_v48 }
 0x15b   : > { %v21617_v55 = vpop.permute.xlu1 %1452  ;;  %v3081_v2 = vld [vmem:[#allocation3 + $0x6a] sm:$0xff]  ;;  %19428 = vmatpush3.bf16.msra.mxu0 %v19425_v25  ;;  %v19429_v50 = vpack.c.bf16 %v4972_v10, %v4971_v27  ;;  %v1337_v25 = vadd.f32 %v1305_v22, %v1076_v21  ;;  %v2350_v27 = vmul.f32 %v21284_v35, %v21565_v61 }
 0x15c   : > { %1482 = vperm.xlu1 %20556, %v21461_v37   ;;  %17638 = vmatmul.mubr.msk.f32.gmra.mrb[8].mxu1 %vm389_vm2, %v3081_v2 }
 0x15d   : > { %17888 = vmatmul.mubr.msk.f32.gmra.mrb[4].mxu0 %vm389_vm2, %v3081_v2  ;;  %v21639_v47 = vpop.permute.xlu0 %1964  ;;  %19430 = vmatprep.subr.bf16.mxu0 %v19429_v50  ;;  %v1598_v18 = vadd.f32 %v1566_v34, %v1337_v25  ;;  %v574_v34 = vld [vmem:[%s20816_s24 + $0xe0] sm:$0xff] }
 0x15e   : > { %1226 = vperm.xlu0 %20555, %v21451_v6   ;;  %v2119_v6 = vadd.f32 %v2087_v16, %v1858_v58  ;;  %607 = vst.msk [vmem:[#allocation2 + $0x182] sm:$0xff] %vm484_vm0, %v574_v34  ;;  %v2089_v34 = vmul.f32 %v21275_v24, %v21586_v29 }
 0x15f   : > { %v2478_v13 = vpop.permute.xlu1 %2477  ;;  %19432 = vmatpush3.bf16.msra.mxu0 %v19429_v50 }
 0x160   : > { %1738 = vperm.xlu1 %20556, %v21470_v44   ;;  %v2381_v26 = vadd.f32 %v2349_v38, %v2119_v6  ;;  %v2611_v48 = vmul.f32 %v21299_v19, %v2478_v13 }
 0x161   : > { %v21655_v2 = vpop.permute.xlu0 %1196 }
 0x162   : > { %1231 = vperm.xlu0 %20555, %v21459_v12   ;;  %v2642_v46 = vadd.f32 %v2610_v11, %v2381_v26  ;;  %v1859_v12 = vadd.f32 %v1827_v32, %v1598_v18  ;;  %v26872_v26 = vld [vmem:[#allocation10_spill] sm:$0xff] }
 0x163   : > { %v21653_v0 = vpop.permute.xlu1 %1708  ;;  %v1045_v18 = vmul.f32 %v21229_v7, %v26872_v26  ;;  %v26878_v26 = vld [vmem:[#allocation15_spill] sm:$0xff] }
 0x164   : > { %1743 = vperm.xlu1 %20556, %v21481_v33   ;;  %v2120_v50 = vadd.f32 %v2088_v4, %v1859_v12 }
 0x165   : > { %v21664_v23 = vpop.permute.xlu0 %2221 }
 0x166   : > { %746 = vperm.xlu0 %20555, %v21439_v56   ;;  %v2382_v56 = vadd.f32 %v2350_v27, %v2120_v50 }
 0x167   : > { %v2734_v30 = vpop.permute.xlu1 %2733 }
 0x168   : > { %v2871_v43 = vmul.f32 %v21316_v59, %v2734_v30  ;;  %975 = vperm.xlu1 %20556, %v21470_v44   ;;  %v2643_v61 = vadd.f32 %v2611_v48, %v2382_v56  ;;  %v26873_v30 = vld [vmem:[#allocation11_spill] sm:$0xff] }
 0x169   : > { %v21675_v54 = vpop.permute.xlu0 %1201  ;;  %v816_v4 = vmul.f32 %v21234_v8, %v26873_v30  ;;  %v2351_v30 = vmul.f32 %v21284_v35, %v21664_v23  ;;  %v1829_v23 = vmul.f32 %v21262_v20, %v21555_v51 }
 0x16a   : > { %v2903_v31 = vadd.f32 %v2871_v43, %v2642_v46  ;;  %1487 = vperm.xlu0 %20555, %v21493_v62   ;;  %v21716_v46 = vld [vmem:[#allocation2 + $0x128] sm:$0xff] }
 0x16b   : > { %v21673_v10 = vpop.permute.xlu1 %1713  ;;  %v26874_v43 = vld [vmem:[#allocation14_spill] sm:$0xff]  ;;  %v1077_v48 = vadd.f32 %v1045_v18, %v816_v4 }
 0x16c   : > { %v2942_v60 = vadd.f32 %v21333_v15, %v2903_v31  ;;  %1999 = vperm.xlu1 %20556, %v21491_v41   ;;  %v1306_v12 = vmul.f32 %v21239_v9, %v26874_v43 }
 0x16d   : > { %v21681_v49 = vpop.permute.xlu0 %2226 }
 0x16e   : > { %v2974_v44 = vmax.f32 %v2942_v60, 0.0  ;;  %751 = vperm.xlu0 %20555, %v21461_v37   ;;  %v26875_v60 = vld [vmem:[#allocation18_spill] sm:$0xff]  ;;  %v2352_v51 = vmul.f32 %v21284_v35, %v21681_v49 }
 0x16f   : > { %v2739_v16 = vpop.permute.xlu1 %2738  ;;  %v1567_v56 = vmul.f32 %v21249_v14, %v26875_v60  ;;  %v21757_v60 = vld [vmem:[#allocation2 + $0x122] sm:$0xff] }
 0x170   : > { %3006 = vst.msk [vmem:[#allocation3 + $0x7a] sm:$0xff] %vm389_vm2, %v2974_v44  ;;  %v2872_v22 = vmul.f32 %v21316_v59, %v2739_v16  ;;  %980 = vperm.xlu1 %20556, %v21481_v33   ;;  %v1828_v44 = vmul.f32 %v21262_v20, %v21531_v45  ;;  %v26876_v16 = vld [vmem:[#allocation13_spill] sm:$0xff]  ;;  %v1307_v45 = vmul.f32 %v21239_v9, %v26878_v26 }
 0x171   : > { %v21689_v38 = vpop.permute.xlu0 %716 }
 0x172   : > { %v2904_v13 = vadd.f32 %v2872_v22, %v2643_v61  ;;  %1492 = vperm.xlu0 %20555, %v21510_v57   ;;  %v1046_v61 = vmul.f32 %v21229_v7, %v26876_v16 }
 0x173   : > { %v21687_v58 = vpop.permute.xlu1 %945 }
 0x174   : > { %v2943_v21 = vadd.f32 %v21333_v15, %v2904_v13  ;;  %2004 = vperm.xlu1 %20556, %v21508_v40  }
 0x175   : > { %v21698_v33 = vpop.permute.xlu0 %1457 }
 0x176   : > { %v2975_v6 = vmax.f32 %v2943_v21, 0.0  ;;  %1236 = vperm.xlu0 %20555, %v21491_v41   ;;  %v575_v41 = vld [vmem:[%s20816_s24 + $0xe8] sm:$0xff] }
 0x177   : > { %v21696_v11 = vpop.permute.xlu1 %1969  ;;  %v3082_v37 = vld [vmem:[#allocation3 + $0x7a] sm:$0xff]  ;;  %608 = vst.msk [vmem:[#allocation2 + $0x18a] sm:$0xff] %vm484_vm0, %v575_v41  ;;  %v26879_v41 = vld [vmem:[#allocation20_spill] sm:$0xff] }
 0x178   : > { %3007 = vst.msk [vmem:[#allocation3 + $0x82] sm:$0xff] %vm389_vm2, %v2975_v6  ;;  %1748 = vperm.xlu1 %20556, %v21539_v5   ;;  %17640 = vmatprep.mubr.msk.f32.mxu1 %vm389_vm2, %v3082_v37  ;;  %v26877_v6 = vld [vmem:[#allocation12_spill] sm:$0xff]  ;;  %v1568_v43 = vmul.f32 %v21249_v14, %v26879_v41 }
 0x179   : > { %17890 = vmatprep.mubr.msk.f32.mxu0 %vm389_vm2, %v3082_v37  ;;  %v2483_v32 = vpop.permute.xlu0 %2482  ;;  %v817_v37 = vmul.f32 %v21234_v8, %v26877_v6 }
 0x17a   : > { %2261 = vperm.xlu0 %20555, %v21705_v53  }
 0x17b   : > { %v21707_v25 = vpop.permute.xlu1 %721  ;;  %v1078_v4 = vadd.f32 %v1046_v61, %v817_v37 }
 0x17c   : > { %1241 = vperm.xlu1 %20556, %v21508_v40   ;;  %v1338_v40 = vadd.f32 %v1306_v12, %v1077_v48 }
 0x17d   : > { %v21723_v31 = vpop.permute.xlu0 %950  ;;  %v1339_v48 = vadd.f32 %v1307_v45, %v1078_v4 }
 0x17e   : > { %1753 = vperm.xlu0 %20555, %v21551_v63   ;;  %v1599_v21 = vadd.f32 %v1567_v56, %v1338_v40 }
 0x17f   : > { %v21721_v27 = vpop.permute.xlu1 %1462  ;;  %v3083_v50 = vld [vmem:[#allocation3 + $0x82] sm:$0xff]  ;;  %v1600_v40 = vadd.f32 %v1568_v43, %v1339_v48 }
 0x180   : > { %2266 = vperm.xlu1 %20556, %v21716_v46   ;;  %17641 = vmatmul.mubr.msk.f32.gmra.mrb[10].mxu1 %vm389_vm2, %v3083_v50  ;;  %v1860_v18 = vadd.f32 %v1828_v44, %v1599_v21 }
 0x181   : > { %17891 = vmatmul.mubr.msk.f32.gmra.mrb[6].mxu0 %vm389_vm2, %v3083_v50  ;;  %v21735_v13 = vpop.permute.xlu0 %1974  ;;  %v576_v50 = vld [vmem:[%s20816_s24 + $0xf0] sm:$0xff]  ;;  %v1861_v6 = vadd.f32 %v1829_v23, %v1600_v40 }
 0x182   : > { %756 = vperm.xlu0 %20555, %v21493_v62   ;;  %v2612_v62 = vmul.f32 %v21299_v19, %v2483_v32  ;;  %609 = vst.msk [vmem:[#allocation2 + $0x19a] sm:$0xff] %vm484_vm0, %v576_v50  ;;  %v2090_v32 = vmul.f32 %v21275_v24, %v21639_v47 }
 0x183   : > { %v2488_v22 = vpop.permute.xlu1 %2487 }
 0x184   : > { %985 = vperm.xlu1 %20556, %v21539_v5   ;;  %v2121_v5 = vadd.f32 %v2089_v34, %v1860_v18  ;;  %v577_v34 = vld [vmem:[%s20816_s24 + $0xf8] sm:$0xff]  ;;  %v2122_v47 = vadd.f32 %v2090_v32, %v1861_v6  ;;  %v2613_v18 = vmul.f32 %v21299_v19, %v2488_v22  ;;  %v21798_v32 = vld [vmem:[#allocation2 + $0x124] sm:$0xff] }
 0x185   : > { %v21751_v29 = vpop.permute.xlu0 %1206  ;;  %610 = vst.msk [vmem:[#allocation2 + $0x1a2] sm:$0xff] %vm484_vm0, %v577_v34 }
 0x186   : > { %1497 = vperm.xlu0 %20555, %v21705_v53   ;;  %v2383_v56 = vadd.f32 %v2351_v30, %v2121_v5  ;;  %v2384_v4 = vadd.f32 %v2352_v51, %v2122_v47  ;;  %v26883_v51 = vld [vmem:[#allocation21_spill] sm:$0xff] }
 0x187   : > { %v21749_v12 = vpop.permute.xlu1 %1718 }
 0x188   : > { %2009 = vperm.xlu1 %20556, %v21563_v17   ;;  %v2644_v61 = vadd.f32 %v2612_v62, %v2383_v56  ;;  %v2645_v5 = vadd.f32 %v2613_v18, %v2384_v4  ;;  %v26881_v56 = vld [vmem:[#allocation17_spill] sm:$0xff] }
 0x189   : > { %v21762_v16 = vpop.permute.xlu0 %2231  ;;  %v818_v40 = vmul.f32 %v21234_v8, %v26881_v56 }
 0x18a   : > { %2522 = vperm.xlu0 %20555, %v21757_v60  }
 0x18b   : > { %v2744_v44 = vpop.permute.xlu1 %2743 }
 0x18c   : > { %v2873_v21 = vmul.f32 %v21316_v59, %v2744_v44  ;;  %761 = vperm.xlu1 %20556, %v21510_v57   ;;  %v21781_v57 = vld [vmem:[#allocation2 + $0x12a] sm:$0xff] }
 0x18d   : > { %v21775_v45 = vpop.permute.xlu0 %1211 }
 0x18e   : > { %v2905_v37 = vadd.f32 %v2873_v21, %v2644_v61  ;;  %990 = vperm.xlu0 %20555, %v21551_v63   ;;  %v26880_v63 = vld [vmem:[#allocation16_spill] sm:$0xff]  ;;  %v26882_v21 = vld [vmem:[#allocation22_spill] sm:$0xff] }
 0x18f   : > { %v21773_v26 = vpop.permute.xlu1 %1723  ;;  %v1047_v23 = vmul.f32 %v21229_v7, %v26880_v63  ;;  %v21800_v61 = vld [vmem:[#allocation2 + $0x138] sm:$0xff]  ;;  %v1308_v34 = vmul.f32 %v21239_v9, %v26882_v21 }
 0x190   : > { %v2944_v30 = vadd.f32 %v21333_v15, %v2905_v37  ;;  %1502 = vperm.xlu1 %20556, %v21716_v46   ;;  %v1048_v37 = vmul.f32 %v21229_v7, %v26883_v51  ;;  %v1309_v7 = vmul.f32 %v21239_v9, %v21557_v52  ;;  %v1831_v52 = vmul.f32 %v21262_v20, %v21673_v10 }
 0x191   : > { %v2237_v49 = vpop.permute.xlu0 %2236  ;;  %v1079_v4 = vadd.f32 %v1047_v23, %v818_v40  ;;  %v21833_v40 = vld [vmem:[#allocation2 + $0x140] sm:$0xff] }
 0x192   : > { %v2976_v41 = vmax.f32 %v2944_v30, 0.0  ;;  %2014 = vperm.xlu0 %20555, %v21571_v36  }
 0x193   : > { %v2749_v43 = vpop.permute.xlu1 %2748 }
 0x194   : > { %3008 = vst.msk [vmem:[#allocation3 + $0x92] sm:$0xff] %vm389_vm2, %v2976_v41  ;;  %v2874_v62 = vmul.f32 %v21316_v59, %v2749_v43  ;;  %2527 = vperm.xlu1 %20556, %v21781_v57   ;;  %v1569_v41 = vmul.f32 %v21249_v14, %v21588_v42  ;;  %v1830_v42 = vmul.f32 %v21262_v20, %v21653_v0  ;;  %v21831_v0 = vld [vmem:[#allocation2 + $0x12c] sm:$0xff] }
 0x195   : > { %v21789_v48 = vpop.permute.xlu0 %1467 }
 0x196   : > { %v2906_v22 = vadd.f32 %v2874_v62, %v2645_v5  ;;  %1246 = vperm.xlu0 %20555, %v21563_v17   ;;  %v26884_v17 = vld [vmem:[#allocation19_spill] sm:$0xff]  ;;  %v1340_v5 = vadd.f32 %v1308_v34, %v1079_v4 }
 0x197   : > { %v21787_v50 = vpop.permute.xlu1 %1979  ;;  %v819_v43 = vmul.f32 %v21234_v8, %v26884_v17  ;;  %v2091_v8 = vmul.f32 %v21275_v24, %v21696_v11  ;;  %v2092_v11 = vmul.f32 %v21275_v24, %v21735_v13  ;;  %v21850_v24 = vld [vmem:[%s26717_s1 + $0x1] ss:$0 sm:$0xff] }
 0x198   : > { %v2945_v44 = vadd.f32 %v21333_v15, %v2906_v22  ;;  %1758 = vperm.xlu1 %20556, %v21757_v60   ;;  %v1570_v22 = vmul.f32 %v21249_v14, %v21617_v55  ;;  %v1601_v56 = vadd.f32 %v1569_v41, %v1340_v5  ;;  %v2353_v55 = vmul.f32 %v21284_v35, %v21762_v16 }
 0x199   : > { %v2493_v18 = vpop.permute.xlu0 %2492  ;;  %v1080_v62 = vadd.f32 %v1048_v37, %v819_v43  ;;  %v2354_v16 = vmul.f32 %v21284_v35, %v2237_v49  ;;  %v1049_v13 = vmul.f32 %v21850_v24, %v21573_v39  ;;  %v21857_v37 = vld [vmem:[%s26717_s1] ss:$0 sm:$0xff]  ;;  %v21870_v39 = vld [vmem:[%s26717_s1 + $0x2] ss:$0 sm:$0xff] }
 0x19a   : > { %v2977_v6 = vmax.f32 %v2945_v44, 0.0  ;;  %2271 = vperm.xlu0 %20555, %v21800_v61   ;;  %v1862_v14 = vadd.f32 %v1830_v42, %v1601_v56  ;;  %v2614_v51 = vmul.f32 %v21299_v19, %v2493_v18  ;;  %v820_v18 = vmul.f32 %v21857_v37, %v21575_v3 }
 0x19b   : > { %v21806_v47 = vpop.permute.xlu1 %1472  ;;  %v3084_v30 = vld [vmem:[#allocation3 + $0x92] sm:$0xff]  ;;  %v1341_v9 = vadd.f32 %v1309_v7, %v1080_v62  ;;  %v1310_v3 = vmul.f32 %v21870_v39, %v21655_v2  ;;  %v1311_v56 = vmul.f32 %v21870_v39, %v21675_v54 }
 0x19c   : > { %3009 = vst.msk [vmem:[#allocation3 + $0x9a] sm:$0xff] %vm389_vm2, %v2977_v6  ;;  %2783 = vperm.xlu1 %20556, %v21798_v32   ;;  %17643 = vmatprep.mubr.msk.f32.mxu1 %vm389_vm2, %v3084_v30  ;;  %v2123_v6 = vadd.f32 %v2091_v8, %v1862_v14  ;;  %v1081_v5 = vadd.f32 %v1049_v13, %v820_v18  ;;  %v21891_v8 = vld [vmem:[#allocation2 + $0x13a] sm:$0xff] }
 0x19d   : > { %17893 = vmatprep.mubr.msk.f32.mxu0 %vm389_vm2, %v3084_v30  ;;  %v21823_v23 = vpop.permute.xlu0 %1984  ;;  %v1602_v44 = vadd.f32 %v1570_v22, %v1341_v9  ;;  %v21896_v9 = vld [vmem:[%s26717_s1 + $0x4] ss:$0 sm:$0xff] }
 0x19e   : > { %1251 = vperm.xlu0 %20555, %v21571_v36   ;;  %v2385_v10 = vadd.f32 %v2353_v55, %v2123_v6 }
 0x19f   : > { %v2498_v63 = vpop.permute.xlu1 %2497  ;;  %v1863_v20 = vadd.f32 %v1831_v52, %v1602_v44 }
 0x1a0   : > { %1763 = vperm.xlu1 %20556, %v21781_v57   ;;  %v2646_v49 = vadd.f32 %v2614_v51, %v2385_v10  ;;  %v2615_v41 = vmul.f32 %v21299_v19, %v2498_v63  ;;  %v1050_v19 = vmul.f32 %v21850_v24, %v21619_v1  ;;  %v821_v1 = vmul.f32 %v21857_v37, %v21601_v28  ;;  %v21920_v10 = vld [vmem:[%s26717_s1 + $0x6] ss:$0 sm:$0xff] }
 0x1a1   : > { %v21839_v34 = vpop.permute.xlu0 %1728  ;;  %v2124_v30 = vadd.f32 %v2092_v11, %v1863_v20  ;;  %v1833_v51 = vmul.f32 %v21896_v9, %v21773_v26  ;;  %v21931_v26 = vld [vmem:[%s26717_s1 + $0x7] ss:$0 sm:$0xff] }
 0x1a2   : > { %2276 = vperm.xlu0 %20555, %v21833_v40   ;;  %v1082_v55 = vadd.f32 %v1050_v19, %v821_v1 }
 0x1a3   : > { %v2242_v21 = vpop.permute.xlu1 %2241  ;;  %v3085_v36 = vld [vmem:[#allocation3 + $0x9a] sm:$0xff]  ;;  %v2386_v43 = vadd.f32 %v2354_v16, %v2124_v30 }
 0x1a4   : > { %2788 = vperm.xlu1 %20556, %v21831_v0   ;;  %17644 = vmatmul.mubr.msk.f32.gmra.mrb[12].mxu1 %vm389_vm2, %v3085_v36 }
 0x1a5   : > { %17894 = vmatmul.mubr.msk.f32.gmra.mrb[8].mxu0 %vm389_vm2, %v3085_v36  ;;  %v2754_v35 = vpop.permute.xlu0 %2753  ;;  %v2647_v22 = vadd.f32 %v2615_v41, %v2386_v43  ;;  %v21907_v36 = vld [vmem:[%s26717_s1 + $0x5] ss:$0 sm:$0xff] }
 0x1a6   : > { %v2875_v17 = vmul.f32 %v21316_v59, %v2754_v35  ;;  %766 = vperm.xlu0 %20555, %v21705_v53   ;;  %v2093_v6 = vmul.f32 %v21907_v36, %v21787_v50  ;;  %v2355_v50 = vmul.f32 %v21920_v10, %v2242_v21 }
 0x1a7   : > { %v21861_v4 = vpop.permute.xlu1 %1733 }
 0x1a8   : > { %995 = vperm.xlu1 %20556, %v21757_v60   ;;  %v2907_v7 = vadd.f32 %v2875_v17, %v2646_v49  ;;  %v21879_v60 = vld [vmem:[%s26717_s1 + $0x3] ss:$0 sm:$0xff] }
 0x1a9   : > { %v1571_v53 = vmul.f32 %v21879_v60, %v21698_v33  ;;  %v2247_v62 = vpop.permute.xlu0 %2246  ;;  %v1342_v33 = vadd.f32 %v1310_v3, %v1081_v5  ;;  %v1572_v28 = vmul.f32 %v21879_v60, %v21721_v27  ;;  %v1343_v27 = vadd.f32 %v1311_v56, %v1082_v55  ;;  %v21936_v49 = vld [vmem:[#allocation2 + $0x142] sm:$0xff] }
 0x1aa   : > { %v2946_v63 = vadd.f32 %v21333_v15, %v2907_v7  ;;  %1507 = vperm.xlu0 %20555, %v21800_v61   ;;  %v2356_v41 = vmul.f32 %v21920_v10, %v2247_v62  ;;  %v1312_v55 = vmul.f32 %v21870_v39, %v21751_v29  ;;  %v823_v29 = vmul.f32 %v21857_v37, %v21707_v25 }
 0x1ab   : > { %v2759_v42 = vpop.permute.xlu1 %2758  ;;  %v1603_v54 = vadd.f32 %v1571_v53, %v1342_v33  ;;  %v1604_v13 = vadd.f32 %v1572_v28, %v1343_v27  ;;  %v21943_v53 = vld [vmem:[%s26717_s1 + $0x8] ss:$0 sm:$0xff]  ;;  %v1573_v27 = vmul.f32 %v21879_v60, %v21789_v48 }
 0x1ac   : > { %v2876_v2 = vmul.f32 %v21316_v59, %v2759_v42  ;;  %2019 = vperm.xlu1 %20556, %v21798_v32   ;;  %v1832_v59 = vmul.f32 %v21896_v9, %v21749_v12  ;;  %v2978_v52 = vmax.f32 %v2946_v63, 0.0  ;;  %v822_v63 = vmul.f32 %v21857_v37, %v21689_v38  ;;  %v21967_v38 = vld [vmem:[#allocation2 + $0x150] sm:$0xff] }
 0x1ad   : > { %v21902_v11 = vpop.permute.xlu0 %1989  ;;  %v1865_v21 = vadd.f32 %v1833_v51, %v1604_v13  ;;  %v1574_v13 = vmul.f32 %v21879_v60, %v21806_v47  ;;  %v22002_v47 = vld [vmem:[#allocation2 + $0x158] sm:$0xff] }
 0x1ae   : > { %v2908_v14 = vadd.f32 %v2876_v2, %v2647_v22  ;;  %3010 = vst.msk [vmem:[#allocation3 + $0xaa] sm:$0xff] %vm389_vm2, %v2978_v52  ;;  %2532 = vperm.xlu0 %20555, %v21891_v8   ;;  %v1864_v20 = vadd.f32 %v1832_v59, %v1603_v54  ;;  %v1051_v22 = vmul.f32 %v21850_v24, %v21687_v58  ;;  %v21957_v59 = vld [vmem:[%s26718_s2] ss:$0 sm:$0xff] }
 0x1af   : > { %v2503_v44 = vpop.permute.xlu1 %2502  ;;  %v21965_v58 = vld [vmem:[#allocation2 + $0x13c] sm:$0xff]  ;;  %v1052_v54 = vmul.f32 %v21850_v24, %v21723_v31  ;;  %v1313_v31 = vmul.f32 %v21870_v39, %v21775_v45  ;;  %v1835_v45 = vmul.f32 %v21896_v9, %v21861_v4 }
 0x1b0   : > { %v2947_v12 = vadd.f32 %v21333_v15, %v2908_v14  ;;  %771 = vperm.xlu1 %20556, %v21716_v46   ;;  %v2094_v15 = vmul.f32 %v21907_v36, %v21823_v23  ;;  %v2125_v30 = vadd.f32 %v2093_v6, %v1864_v20  ;;  %v2616_v35 = vmul.f32 %v21931_v26, %v2503_v44 }
 0x1b1   : > { %v21925_v18 = vpop.permute.xlu0 %1994  ;;  %v1084_v48 = vadd.f32 %v1052_v54, %v823_v29 }
 0x1b2   : > { %v2979_v16 = vmax.f32 %v2947_v12, 0.0  ;;  %1000 = vperm.xlu0 %20555, %v21781_v57   ;;  %v2387_v23 = vadd.f32 %v2355_v50, %v2125_v30  ;;  %v2126_v17 = vadd.f32 %v2094_v15, %v1865_v21  ;;  %v1834_v50 = vmul.f32 %v21896_v9, %v21839_v34  ;;  %v22000_v34 = vld [vmem:[#allocation2 + $0x144] sm:$0xff] }
 0x1b3   : > { %v2508_v46 = vpop.permute.xlu1 %2507  ;;  %v1345_v25 = vadd.f32 %v1313_v31, %v1084_v48 }
 0x1b4   : > { %3011 = vst.msk [vmem:[#allocation3 + $0xb2] sm:$0xff] %vm389_vm2, %v2979_v16  ;;  %1512 = vperm.xlu1 %20556, %v21833_v40   ;;  %v2648_v5 = vadd.f32 %v2616_v35, %v2387_v23  ;;  %v2617_v19 = vmul.f32 %v21931_v26, %v2508_v46  ;;  %v2388_v42 = vadd.f32 %v2356_v41, %v2126_v17 }
 0x1b5   : > { %v2252_v43 = vpop.permute.xlu0 %2251  ;;  %v3086_v7 = vld [vmem:[#allocation3 + $0xaa] sm:$0xff]  ;;  %v2095_v35 = vmul.f32 %v21907_v36, %v21902_v11  ;;  %v1606_v41 = vadd.f32 %v1574_v13, %v1345_v25  ;;  %v2096_v11 = vmul.f32 %v21907_v36, %v21925_v18 }
 0x1b6   : > { %2024 = vperm.xlu0 %20555, %v21831_v0   ;;  %17646 = vmatprep.mubr.msk.f32.mxu1 %vm389_vm2, %v3086_v7  ;;  %v2649_v33 = vadd.f32 %v2617_v19, %v2388_v42  ;;  %v2357_v23 = vmul.f32 %v21920_v10, %v2252_v43 }
 0x1b7   : > { %v2764_v3 = vpop.permute.xlu1 %2763  ;;  %17896 = vmatprep.mubr.msk.f32.mxu0 %vm389_vm2, %v3086_v7  ;;  %v1867_v4 = vadd.f32 %v1835_v45, %v1606_v41 }
 0x1b8   : > { %v2877_v57 = vmul.f32 %v21943_v53, %v2764_v3  ;;  %2537 = vperm.xlu1 %20556, %v21936_v49  }
 0x1b9   : > { %v2257_v1 = vpop.permute.xlu0 %2256  ;;  %v2128_v18 = vadd.f32 %v2096_v11, %v1867_v4  ;;  %v4936_v11 = vld [vmem:[#allocation3 + $0x54] sm:$0xff] }
 0x1ba   : > { %v2909_v62 = vadd.f32 %v2877_v57, %v2648_v5  ;;  %1256 = vperm.xlu0 %20555, %v21798_v32   ;;  %v1083_v32 = vadd.f32 %v1051_v22, %v822_v63  ;;  %v2358_v19 = vmul.f32 %v21920_v10, %v2257_v1 }
 0x1bb   : > { %v2769_v2 = vpop.permute.xlu1 %2768  ;;  %v3087_v56 = vld [vmem:[#allocation3 + $0xb2] sm:$0xff] }
 0x1bc   : > { %v2948_v52 = vadd.f32 %v21957_v59, %v2909_v62  ;;  %v2878_v14 = vmul.f32 %v21943_v53, %v2769_v2  ;;  %1768 = vperm.xlu1 %20556, %v21891_v8   ;;  %17647 = vmatmul.mubr.msk.f32.gmra.mrb[14].mxu1 %vm389_vm2, %v3087_v56  ;;  %v1344_v20 = vadd.f32 %v1312_v55, %v1083_v32 }
 0x1bd   : > { %17897 = vmatmul.mubr.msk.f32.gmra.mrb[10].mxu0 %vm389_vm2, %v3087_v56  ;;  %v21975_v12 = vpop.permute.xlu0 %726  ;;  %v2390_v56 = vadd.f32 %v2358_v19, %v2128_v18 }
 0x1be   : > { %v2980_v28 = vmax.f32 %v2948_v52, 0.0  ;;  %v2910_v44 = vadd.f32 %v2878_v14, %v2649_v33  ;;  %2281 = vperm.xlu0 %20555, %v21967_v38   ;;  %v1605_v30 = vadd.f32 %v1573_v27, %v1344_v20  ;;  %v22046_v20 = vld [vmem:[#allocation2 + $0x15a] sm:$0xff] }
 0x1bf   : > { %v21973_v6 = vpop.permute.xlu1 %955 }
 0x1c0   : > { %3012 = vst.msk [vmem:[#allocation3 + $0xc2] sm:$0xff] %vm389_vm2, %v2980_v28  ;;  %v2949_v51 = vadd.f32 %v21957_v59, %v2910_v44  ;;  %2793 = vperm.xlu1 %20556, %v21965_v58   ;;  %v1866_v21 = vadd.f32 %v1834_v50, %v1605_v30  ;;  %v22064_v30 = vld [vmem:[#allocation2 + $0x154] sm:$0xff] }
 0x1c1   : > { %v2513_v46 = vpop.permute.xlu0 %2512 }
 0x1c2   : > { %v2981_v16 = vmax.f32 %v2949_v51, 0.0  ;;  %1261 = vperm.xlu0 %20555, %v21831_v0   ;;  %v2127_v0 = vadd.f32 %v2095_v35, %v1866_v21  ;;  %v2618_v5 = vmul.f32 %v21931_v26, %v2513_v46  ;;  %v4933_v46 = vld [vmem:[#allocation3 + $0x34] sm:$0xff]  ;;  %v22066_v35 = vld [vmem:[#allocation2 + $0x168] sm:$0xff] }
 0x1c3   : > { %v21991_v15 = vpop.permute.xlu1 %731  ;;  %v4935_v21 = vld [vmem:[#allocation3 + $0x4c] sm:$0xff] }
 0x1c4   : > { %3013 = vst.msk [vmem:[#allocation3 + $0xca] sm:$0xff] %vm389_vm2, %v2981_v16  ;;  %1773 = vperm.xlu1 %20556, %v21936_v49   ;;  %v2389_v43 = vadd.f32 %v2357_v23, %v2127_v0  ;;  %v22086_v0 = vld [vmem:[#allocation2 + $0x170] sm:$0xff] }
 0x1c5   : > { %v22007_v3 = vpop.permute.xlu0 %960 }
 0x1c6   : > { %2286 = vperm.xlu0 %20555, %v22002_v47   ;;  %v2650_v22 = vadd.f32 %v2618_v5, %v2389_v43  ;;  %v4938_v43 = vld [vmem:[#allocation3 + $0x6c] sm:$0xff] }
 0x1c7   : > { %v2518_v17 = vpop.permute.xlu1 %2517  ;;  %v3088_v7 = vld [vmem:[#allocation3 + $0xc2] sm:$0xff] }
 0x1c8   : > { %2798 = vperm.xlu1 %20556, %v22000_v34   ;;  %17649 = vmatprep.mubr.msk.f32.mxu1 %vm389_vm2, %v3088_v7  ;;  %v2619_v63 = vmul.f32 %v21931_v26, %v2518_v17  ;;  %v4937_v17 = vld [vmem:[#allocation3 + $0x64] sm:$0xff] }
 0x1c9   : > { %17899 = vmatprep.mubr.msk.f32.mxu0 %vm389_vm2, %v3088_v7  ;;  %v22015_v42 = vpop.permute.xlu0 %1216  ;;  %v22084_v7 = vld [vmem:[#allocation2 + $0x15c] sm:$0xff] }
 0x1ca   : > { %776 = vperm.xlu0 %20555, %v21800_v61   ;;  %v2651_v14 = vadd.f32 %v2619_v63, %v2390_v56  ;;  %v4942_v56 = vld [vmem:[#allocation3 + $0x9c] sm:$0xff] }
 0x1cb   : > { %v2774_v57 = vpop.permute.xlu1 %2773  ;;  %v3089_v62 = vld [vmem:[#allocation3 + $0xca] sm:$0xff] }
 0x1cc   : > { %v2879_v2 = vmul.f32 %v21943_v53, %v2774_v57  ;;  %1005 = vperm.xlu1 %20556, %v21891_v8   ;;  %17650 = vmatmul.mubr.msk.f32.gmra.mrb[16].mxu1 %vm389_vm2, %v3089_v62  ;;  %v22029_v8 = vld [vmem:[#allocation2 + $0x152] sm:$0xff]  ;;  %v4940_v57 = vld [vmem:[#allocation3 + $0x84] sm:$0xff] }
 0x1cd   : > { %17900 = vmatmul.mubr.msk.f32.gmra.mrb[12].mxu0 %vm389_vm2, %v3089_v62  ;;  %v22023_v52 = vpop.permute.xlu0 %1221  ;;  %v4941_v62 = vld [vmem:[#allocation3 + $0x94] sm:$0xff] }
 0x1ce   : > { %v2911_v1 = vadd.f32 %v2879_v2, %v2650_v22  ;;  %1517 = vperm.xlu0 %20555, %v21967_v38   ;;  %v22104_v22 = vld [vmem:[#allocation2 + $0x16a] sm:$0xff] }
 0x1cf   : > { %v2779_v33 = vpop.permute.xlu1 %2778 }
 0x1d0   : > { %v2950_v55 = vadd.f32 %v21957_v59, %v2911_v1  ;;  %v2880_v28 = vmul.f32 %v21943_v53, %v2779_v33  ;;  %2029 = vperm.xlu1 %20556, %v21965_v58   ;;  %v4943_v1 = vld [vmem:[#allocation3 + $0xac] sm:$0xff] }
 0x1d1   : > { %v22033_v32 = vpop.permute.xlu0 %736  ;;  %v22114_v33 = vld [vmem:[#allocation2 + $0x172] sm:$0xff] }
 0x1d2   : > { %v2982_v61 = vmax.f32 %v2950_v55, 0.0  ;;  %v2912_v44 = vadd.f32 %v2880_v28, %v2651_v14  ;;  %2542 = vperm.xlu0 %20555, %v22029_v8   ;;  %v4944_v28 = vld [vmem:[#allocation3 + $0xb4] sm:$0xff] }
 0x1d3   : > { %v22031_v54 = vpop.permute.xlu1 %965 }
 0x1d4   : > { %3014 = vst.msk [vmem:[#allocation3 + $0xda] sm:$0xff] %vm389_vm2, %v2982_v61  ;;  %v2951_v27 = vadd.f32 %v21957_v59, %v2912_v44  ;;  %781 = vperm.xlu1 %20556, %v21833_v40   ;;  %v4945_v61 = vld [vmem:[#allocation3 + $0xc4] sm:$0xff] }
 0x1d5   : > { %v22041_v31 = vpop.permute.xlu0 %1477  ;;  %v22124_v44 = vld [vmem:[#allocation2 + $0x180] sm:$0xff] }
 0x1d6   : > { %v2983_v51 = vmax.f32 %v2951_v27, 0.0  ;;  %1010 = vperm.xlu0 %20555, %v21936_v49  }
 0x1d7   : > { %v22039_v29 = vpop.permute.xlu1 %741 }
 0x1d8   : > { %3015 = vst.msk [vmem:[#allocation3 + $0xe2] sm:$0xff] %vm389_vm2, %v2983_v51  ;;  %1522 = vperm.xlu1 %20556, %v22002_v47  }
 0x1d9   : > { %v22050_v16 = vpop.permute.xlu0 %970 }
 0x1da   : > { %2034 = vperm.xlu0 %20555, %v22000_v34  }
 0x1db   : > { %v22048_v50 = vpop.permute.xlu1 %1482  ;;  %v3090_v40 = vld [vmem:[#allocation3 + $0xda] sm:$0xff] }
 0x1dc   : > { %2547 = vperm.xlu1 %20556, %v22046_v20   ;;  %17652 = vmatprep.mubr.msk.f32.mxu1 %vm389_vm2, %v3090_v40 }
 0x1dd   : > { %17902 = vmatprep.mubr.msk.f32.mxu0 %vm389_vm2, %v3090_v40  ;;  %v22058_v13 = vpop.permute.xlu0 %1226  ;;  %v4946_v40 = vld [vmem:[#allocation3 + $0xcc] sm:$0xff] }
 0x1de   : > { %1266 = vperm.xlu0 %20555, %v21965_v58   ;;  %v4934_v58 = vld [vmem:[#allocation3 + $0x3c] sm:$0xff] }
 0x1df   : > { %v22056_v48 = vpop.permute.xlu1 %1738  ;;  %v3091_v49 = vld [vmem:[#allocation3 + $0xe2] sm:$0xff] }
 0x1e0   : > { %1778 = vperm.xlu1 %20556, %v22029_v8   ;;  %17653 = vmatmul.mubr.msk.f32.gmra.mrb[18].mxu1 %vm389_vm2, %v3091_v49 }
 0x1e1   : > { %17903 = vmatmul.mubr.msk.f32.gmra.mrb[14].mxu0 %vm389_vm2, %v3091_v49  ;;  %v22071_v45 = vpop.permute.xlu0 %1231  ;;  %v4947_v49 = vld [vmem:[#allocation3 + $0xdc] sm:$0xff] }
 0x1e2   : > { %17945 = vmatprep.mubr.msk.f32.mxu0 %vm389_vm2, %v4933_v46  ;;  %2291 = vperm.xlu0 %20555, %v22066_v35   ;;  %v22132_v46 = vld [vmem:[#allocation2 + $0x16c] sm:$0xff] }
 0x1e3   : > { %v22069_v25 = vpop.permute.xlu1 %1743 }
 0x1e4   : > { %2803 = vperm.xlu1 %20556, %v22064_v30  }
 0x1e5   : > { %17946 = vmatmul.mubr.msk.f32.vlgmr.msra.gmra.mrb[0].mxu0 %vm389_vm2, %v4934_v58  ;;  %v22079_v41 = vpop.permute.xlu0 %746 }
 0x1e6   : > { %17948 = vmatprep.mubr.msk.f32.mxu0 %vm389_vm2, %v4935_v21  ;;  %26886 = vst [vmem:[#allocation11_spill] sm:$0xff] %v22079_v41  ;;  %1271 = vperm.xlu0 %20555, %v22000_v34   ;;  %v4939_v34 = vld [vmem:[#allocation3 + $0x7c] sm:$0xff] }
 0x1e7   : > { %v22077_v23 = vpop.permute.xlu1 %975 }
 0x1e8   : > { %26885 = vst [vmem:[#allocation10_spill] sm:$0xff] %v22077_v23  ;;  %1783 = vperm.xlu1 %20556, %v22046_v20  }
 0x1e9   : > { %17949 = vmatmul.mubr.msk.f32.gmra.mrb[2].mxu0 %vm389_vm2, %v4936_v11  ;;  %v22091_v4 = vpop.permute.xlu0 %1487  ;;  %v4948_v11 = vld [vmem:[#allocation3 + $0xe4] sm:$0xff] }
 0x1ea   : > { %17951 = vmatprep.mubr.msk.f32.mxu0 %vm389_vm2, %v4937_v17  ;;  %2296 = vperm.xlu0 %20555, %v22086_v0   ;;  %v22142_v17 = vld [vmem:[#allocation2 + $0x174] sm:$0xff] }
 0x1eb   : > { %v22089_v5 = vpop.permute.xlu1 %1999 }
 0x1ec   : > { %2808 = vperm.xlu1 %20556, %v22084_v7  }
 0x1ed   : > { %17952 = vmatmul.mubr.msk.f32.gmra.mrb[4].mxu0 %vm389_vm2, %v4938_v43  ;;  %v22099_v18 = vpop.permute.xlu0 %751  ;;  %v22144_v43 = vld [vmem:[#allocation2 + $0x188] sm:$0xff] }
 0x1ee   : > { %17954 = vmatprep.mubr.msk.f32.mxu0 %vm389_vm2, %v4939_v34  ;;  %26888 = vst [vmem:[#allocation18_spill] sm:$0xff] %v22099_v18  ;;  %1527 = vperm.xlu0 %20555, %v22066_v35  }
 0x1ef   : > { %v22097_v19 = vpop.permute.xlu1 %980 }
 0x1f0   : > { %26887 = vst [vmem:[#allocation14_spill] sm:$0xff] %v22097_v19  ;;  %2039 = vperm.xlu1 %20556, %v22064_v30  }
 0x1f1   : > { %17955 = vmatmul.mubr.msk.f32.gmra.mrb[6].mxu0 %vm389_vm2, %v4940_v57  ;;  %v22109_v2 = vpop.permute.xlu0 %1492 }
 0x1f2   : > { %17957 = vmatprep.mubr.msk.f32.mxu0 %vm389_vm2, %v4941_v62  ;;  %2552 = vperm.xlu0 %20555, %v22104_v22   ;;  %v22152_v62 = vld [vmem:[#allocation2 + $0x182] sm:$0xff] }
 0x1f3   : > { %v22107_v63 = vpop.permute.xlu1 %2004 }
 0x1f4   : > { %1532 = vperm.xlu1 %20556, %v22086_v0  }
 0x1f5   : > { %17958 = vmatmul.mubr.msk.f32.gmra.mrb[8].mxu0 %vm389_vm2, %v4942_v56  ;;  %v22119_v55 = vpop.permute.xlu0 %1236 }
 0x1f6   : > { %17960 = vmatprep.mubr.msk.f32.mxu0 %vm389_vm2, %v4943_v1  ;;  %26889 = vst [vmem:[#allocation13_spill] sm:$0xff] %v22119_v55  ;;  %2044 = vperm.xlu0 %20555, %v22084_v7  }
 0x1f7   : > { %v22117_v14 = vpop.permute.xlu1 %1748 }
 0x1f8   : > { %2557 = vperm.xlu1 %20556, %v22114_v33  }
 0x1f9   : > { %17961 = vmatmul.mubr.msk.f32.gmra.mrb[10].mxu0 %vm389_vm2, %v4944_v28  ;;  %v2262_v51 = vpop.permute.xlu0 %2261  ;;  %v22160_v28 = vld [vmem:[#allocation2 + $0x18a] sm:$0xff] }
 0x1fa   : > { %17963 = vmatprep.mubr.msk.f32.mxu0 %vm389_vm2, %v4945_v61  ;;  %1788 = vperm.xlu0 %20555, %v22104_v22  }
 0x1fb   : > { %v22127_v27 = vpop.permute.xlu1 %1241 }
 0x1fc   : > { %26890 = vst [vmem:[#allocation12_spill] sm:$0xff] %v22127_v27  ;;  %2301 = vperm.xlu1 %20556, %v22124_v44   ;;  %v1314_v27 = vmul.f32 %v21870_v39, %v22015_v42  ;;  %v1836_v42 = vmul.f32 %v21896_v9, %v22056_v48  ;;  %v1315_v48 = vmul.f32 %v21870_v39, %v22023_v52 }
 0x1fd   : > { %17964 = vmatmul.mubr.msk.f32.gmra.mrb[12].mxu0 %vm389_vm2, %v4946_v40  ;;  %v22137_v21 = vpop.permute.xlu0 %1753 }
 0x1fe   : > { %17966 = vmatprep.mubr.msk.f32.mxu0 %vm389_vm2, %v4947_v49  ;;  %2813 = vperm.xlu0 %20555, %v22132_v46   ;;  %v1053_v49 = vmul.f32 %v21850_v24, %v21973_v6  ;;  %v1575_v6 = vmul.f32 %v21879_v60, %v22041_v31  ;;  %v2097_v31 = vmul.f32 %v21907_v36, %v22089_v5 }
 0x1ff   : > { %v22135_v58 = vpop.permute.xlu1 %2266  ;;  %v1576_v5 = vmul.f32 %v21879_v60, %v22048_v50 }
 0x200   : > { %1793 = vperm.xlu1 %20556, %v22114_v33  }
 0x201   : > { %17967 = vmatmul.mubr.msk.f32.gmra.mrb[14].mxu0 %vm389_vm2, %v4948_v11  ;;  %v22148_v57 = vpop.permute.xlu0 %756  ;;  %v824_v11 = vmul.f32 %v21857_v37, %v21975_v12  ;;  %v22184_v12 = vld [vmem:[#allocation2 + $0x18c] sm:$0xff] }
 0x202   : > { %26892 = vst [vmem:[#allocation20_spill] sm:$0xff] %v22148_v57  ;;  %2306 = vperm.xlu0 %20555, %v22144_v43   ;;  %v22170_v57 = vld [vmem:[#allocation2 + $0x184] sm:$0xff]  ;;  %26899 = vst [vmem:[#allocation24_spill] sm:$0xff] %v22184_v12 }
 0x203   : > { %v22146_v34 = vpop.permute.xlu1 %985  ;;  %26895 = vst [vmem:[#allocation22_spill] sm:$0xff] %v22170_v57  ;;  %v1085_v19 = vadd.f32 %v1053_v49, %v824_v11 }
 0x204   : > { %26891 = vst [vmem:[#allocation15_spill] sm:$0xff] %v22146_v34  ;;  %2818 = vperm.xlu1 %20556, %v22142_v17   ;;  %v22172_v34 = vld [vmem:[#allocation2 + $0x198] sm:$0xff] }
 0x205   : > { %v22156_v1 = vpop.permute.xlu0 %1497  ;;  %26896 = vst [vmem:[#allocation21_spill] sm:$0xff] %v22172_v34  ;;  %v1346_v55 = vadd.f32 %v1314_v27, %v1085_v19  ;;  %v825_v19 = vmul.f32 %v21857_v37, %v21991_v15  ;;  %v22202_v27 = vld [vmem:[#allocation2 + $0x1a2] sm:$0xff] }
 0x206   : > { %26893 = vst [vmem:[#allocation16_spill] sm:$0xff] %v22156_v1  ;;  %2049 = vperm.xlu0 %20555, %v22132_v46   ;;  %v22186_v1 = vld [vmem:[#allocation2 + $0x1a0] sm:$0xff] }
 0x207   : > { %v22154_v56 = vpop.permute.xlu1 %2009  ;;  %v1607_v11 = vadd.f32 %v1575_v6, %v1346_v55  ;;  %v2359_v55 = vmul.f32 %v21920_v10, %v2262_v51 }
 0x208   : > { %2562 = vperm.xlu1 %20556, %v22152_v62  }
 0x209   : > { %v2523_v40 = vpop.permute.xlu0 %2522  ;;  %v1868_v41 = vadd.f32 %v1836_v42, %v1607_v11  ;;  %v22218_v42 = vld [vmem:[#allocation2 + $0x19c] sm:$0xff] }
 0x20a   : > { %2054 = vperm.xlu0 %20555, %v22142_v17   ;;  %v2620_v15 = vmul.f32 %v21931_v26, %v2523_v40 }
 0x20b   : > { %v22162_v61 = vpop.permute.xlu1 %761 }
 0x20c   : > { %26894 = vst [vmem:[#allocation17_spill] sm:$0xff] %v22162_v61  ;;  %2567 = vperm.xlu1 %20556, %v22160_v28  }
 0x20d   : > { %v22178_v61 = vpop.permute.xlu0 %990 }
 0x20e   : > { %26898 = vst [vmem:[#allocation23_spill] sm:$0xff] %v22178_v61  ;;  %2311 = vperm.xlu0 %20555, %v22172_v34   ;;  %v22216_v34 = vld [vmem:[#allocation2 + $0x1a4] sm:$0xff] }
 0x20f   : > { %v22176_v18 = vpop.permute.xlu1 %1502 }
 0x210   : > { %26897 = vst [vmem:[#allocation19_spill] sm:$0xff] %v22176_v18  ;;  %2823 = vperm.xlu1 %20556, %v22170_v57   ;;  %v1054_v18 = vmul.f32 %v21850_v24, %v22007_v3  ;;  %v22204_v3 = vld [vmem:[#allocation2 + $0x19a] sm:$0xff] }
 0x211   : > { %v22192_v49 = vpop.permute.xlu0 %2014 }
 0x212   : > { %2316 = vperm.xlu0 %20555, %v22186_v1   ;;  %v1086_v6 = vadd.f32 %v1054_v18, %v825_v19  ;;  %v1837_v18 = vmul.f32 %v21896_v9, %v22069_v25  ;;  %v3065_v25 = vld [vmem:[%s26719_s3 + $0x8] sm:$0xff] }
 0x213   : > { %v2528_v61 = vpop.permute.xlu1 %2527 }
 0x214   : > { %2828 = vperm.xlu1 %20556, %v22184_v12   ;;  %v2129_v12 = vadd.f32 %v2097_v31, %v1868_v41  ;;  %v1347_v52 = vadd.f32 %v1315_v48, %v1086_v6  ;;  %v2098_v41 = vmul.f32 %v21907_v36, %v22107_v63  ;;  %v3064_v48 = vld [vmem:[%s26719_s3] sm:$0xff]  ;;  %v2360_v63 = vmul.f32 %v21920_v10, %v22135_v58 }
 0x215   : > { %v22211_v57 = vpop.permute.xlu0 %1246 }
 0x216   : > { %2572 = vperm.xlu0 %20555, %v22204_v3   ;;  %v2391_v50 = vadd.f32 %v2359_v55, %v2129_v12  ;;  %v1608_v51 = vadd.f32 %v1576_v5, %v1347_v52  ;;  %v19353_v12 = vpack.c.bf16 %v3065_v25, %v3064_v48 }
 0x217   : > { %v22209_v23 = vpop.permute.xlu1 %1758 }
 0x218   : > { %2577 = vperm.xlu1 %20556, %v22202_v27   ;;  %v2652_v40 = vadd.f32 %v2620_v15, %v2391_v50  ;;  %v1869_v55 = vadd.f32 %v1837_v18, %v1608_v51  ;;  %19354 = vmatprep.subr.bf16.mxu1 %v19353_v12  ;;  %v2621_v50 = vmul.f32 %v21931_v26, %v2528_v61  ;;  %v3067_v61 = vld [vmem:[%s26719_s3 + $0x18] sm:$0xff] }
 0x219   : > { %v22222_v19 = vpop.permute.xlu0 %2271  ;;  %19356 = vmatpush3.bf16.msra.mxu1 %v19353_v12 }
 0x21a   : > { %2833 = vperm.xlu0 %20555, %v22218_v42   ;;  %v2130_v52 = vadd.f32 %v2098_v41, %v1869_v55  ;;  %v3068_v55 = vld [vmem:[%s26719_s3 + $0x20] sm:$0xff] }
 0x21b   : > { %v2784_v11 = vpop.permute.xlu1 %2783 }
 0x21c   : > { %v2881_v31 = vmul.f32 %v21943_v53, %v2784_v11  ;;  %2838 = vperm.xlu1 %20556, %v22216_v34   ;;  %v2392_v18 = vadd.f32 %v2360_v63, %v2130_v52  ;;  %v3069_v63 = vld [vmem:[%s26719_s3 + $0x28] sm:$0xff] }
 0x21d   : > { %v22239_v15 = vpop.permute.xlu0 %1251 }
 0x21e   : > { %v2913_v6 = vadd.f32 %v2881_v31, %v2652_v40  ;;  %786 = vperm.xlu0 %20555, %v21967_v38   ;;  %v3066_v40 = vld [vmem:[%s26719_s3 + $0x10] sm:$0xff]  ;;  %v2653_v41 = vadd.f32 %v2621_v50, %v2392_v18 }
 0x21f   : > { %v22237_v5 = vpop.permute.xlu1 %1763  ;;  %v19357_v38 = vpack.c.bf16 %v3067_v61, %v3066_v40  ;;  %v3070_v18 = vld [vmem:[%s26719_s3 + $0x30] sm:$0xff]  ;;  %v1055_v40 = vmul.f32 %v21850_v24, %v22031_v54  ;;  %v826_v61 = vmul.f32 %v21857_v37, %v22033_v32  ;;  %v1577_v54 = vmul.f32 %v21879_v60, %v22091_v4 }
 0x220   : > { %v2952_v11 = vadd.f32 %v21957_v59, %v2913_v6  ;;  %791 = vperm.xlu1 %20556, %v22002_v47  }
 0x221   : > { %v22245_v58 = vpop.permute.xlu0 %2276  ;;  %19358 = vmatprep.subr.bf16.mxu1 %v19357_v38 }
 0x222   : > { %v2984_v51 = vmax.f32 %v2952_v11, 0.0  ;;  %1015 = vperm.xlu0 %20555, %v22029_v8   ;;  %19360 = vmatpush3.bf16.msra.mxu1 %v19357_v38  ;;  %v19361_v8 = vpack.c.bf16 %v3069_v63, %v3068_v55  ;;  %v1087_v55 = vadd.f32 %v1055_v40, %v826_v61 }
 0x223   : > { %v2789_v48 = vpop.permute.xlu1 %2788 }
 0x224   : > { %3016 = vst.msk [vmem:[#allocation3 + $0xf2] sm:$0xff] %vm389_vm2, %v2984_v51  ;;  %v2882_v47 = vmul.f32 %v21943_v53, %v2789_v48  ;;  %1020 = vperm.xlu1 %20556, %v22046_v20   ;;  %19362 = vmatprep.subr.bf16.mxu1 %v19361_v8  ;;  %v3071_v51 = vld [vmem:[%s26719_s3 + $0x38] sm:$0xff] }
 0x225   : > { %v22259_v12 = vpop.permute.xlu0 %766 }
 0x226   : > { %v2914_v31 = vadd.f32 %v2882_v47, %v2653_v41  ;;  %1276 = vperm.xlu0 %20555, %v22064_v30   ;;  %v19365_v30 = vpack.c.bf16 %v3071_v51, %v3070_v18  ;;  %19364 = vmatpush3.bf16.msra.mxu1 %v19361_v8  ;;  %v5359_v8 = vld [vmem:[%s26719_s3 + $0x180] sm:$0xff]  ;;  %v1839_v51 = vmul.f32 %v21896_v9, %v22137_v21 }
 0x227   : > { %v22257_v25 = vpop.permute.xlu1 %995  ;;  %v2362_v21 = vmul.f32 %v21920_v10, %v22245_v58 }
 0x228   : > { %v2953_v20 = vadd.f32 %v21957_v59, %v2914_v31  ;;  %1281 = vperm.xlu1 %20556, %v22084_v7   ;;  %19366 = vmatprep.subr.bf16.mxu1 %v19365_v30 }
 0x229   : > { %v22272_v50 = vpop.permute.xlu0 %1507 }
 0x22a   : > { %v2985_v6 = vmax.f32 %v2953_v20, 0.0  ;;  %796 = vperm.xlu0 %20555, %v22066_v35   ;;  %19368 = vmatpush3.bf16.msra.mxu1 %v19365_v30  ;;  %v1316_v35 = vmul.f32 %v21870_v39, %v22058_v13  ;;  %v1838_v13 = vmul.f32 %v21896_v9, %v22117_v14  ;;  %v1317_v14 = vmul.f32 %v21870_v39, %v22071_v45 }
 0x22b   : > { %v22270_v52 = vpop.permute.xlu1 %2019  ;;  %v3092_v11 = vld [vmem:[#allocation3 + $0xf2] sm:$0xff] }
 0x22c   : > { %3017 = vst.msk [vmem:[#allocation3 + $0xfa] sm:$0xff] %vm389_vm2, %v2985_v6  ;;  %801 = vperm.xlu1 %20556, %v22086_v0   ;;  %17655 = vmatprep.mubr.msk.f32.mxu1 %vm389_vm2, %v3092_v11  ;;  %v1348_v32 = vadd.f32 %v1316_v35, %v1087_v55  ;;  %v2100_v35 = vmul.f32 %v21907_v36, %v22192_v49 }
 0x22d   : > { %v2533_v48 = vpop.permute.xlu0 %2532 }
 0x22e   : > { %1025 = vperm.xlu0 %20555, %v22104_v22   ;;  %v1056_v22 = vmul.f32 %v21850_v24, %v22050_v16  ;;  %v1609_v4 = vadd.f32 %v1577_v54, %v1348_v32  ;;  %v2361_v16 = vmul.f32 %v21920_v10, %v22222_v19  ;;  %v2622_v19 = vmul.f32 %v21931_v26, %v2533_v48 }
 0x22f   : > { %v22284_v7 = vpop.permute.xlu1 %771 }
 0x230   : > { %1030 = vperm.xlu1 %20556, %v22114_v33   ;;  %v1870_v20 = vadd.f32 %v1838_v13, %v1609_v4  ;;  %v26901_v13 = vld [vmem:[#allocation24_spill] sm:$0xff] }
 0x231   : > { %v22296_v41 = vpop.permute.xlu0 %1000 }
 0x232   : > { %1537 = vperm.xlu0 %20555, %v22124_v44   ;;  %v2099_v44 = vmul.f32 %v21907_v36, %v22154_v56 }
 0x233   : > { %v22294_v0 = vpop.permute.xlu1 %1512  ;;  %v3093_v47 = vld [vmem:[#allocation3 + $0xfa] sm:$0xff] }
 0x234   : > { %v4949_v38 = vld [vmem:[#allocation3 + $0xf4] sm:$0xff]  ;;  %v4950_v31 = vld [vmem:[#allocation3 + $0xfc] sm:$0xff]  ;;  %1542 = vperm.xlu1 %20556, %v22144_v43   ;;  %17656 = vmatmul.mubr.msk.f32.gmra.mrb[20].mxu1 %vm389_vm2, %v3093_v47  ;;  %v827_v43 = vmul.f32 %v21857_v37, %v22039_v29  ;;  %v2131_v11 = vadd.f32 %v2099_v44, %v1870_v20 }
 0x235   : > { %17969 = vmatprep.mubr.msk.f32.mxu0 %vm389_vm2, %v4949_v38  ;;  %v22309_v63 = vpop.permute.xlu0 %2024  ;;  %v2174_v20 = vld [vmem:[#allocation2 + $0x1b0] sm:$0xff] }
 0x236   : > { %17970 = vmatmul.mubr.msk.f32.gmra.mrb[16].mxu0 %vm389_vm2, %v4950_v31  ;;  %1286 = vperm.xlu0 %20555, %v22132_v46   ;;  %v1088_v56 = vadd.f32 %v1056_v22, %v827_v43  ;;  %v1578_v46 = vmul.f32 %v21879_v60, %v22109_v2  ;;  %v2393_v30 = vadd.f32 %v2361_v16, %v2131_v11  ;;  %v26902_v22 = vld [vmem:[#allocation22_spill] sm:$0xff] }
 0x237   : > { %v2538_v33 = vpop.permute.xlu1 %2537 }
 0x238   : > { %1291 = vperm.xlu1 %20556, %v22142_v17   ;;  %v5360_v17 = vld [vmem:[%s26719_s3 + $0x188] sm:$0xff]  ;;  %v1349_v18 = vadd.f32 %v1317_v14, %v1088_v56  ;;  %v2654_v47 = vadd.f32 %v2622_v19, %v2393_v30  ;;  %v2623_v32 = vmul.f32 %v21931_v26, %v2538_v33  ;;  %v2175_v33 = vld [vmem:[#allocation2 + $0x1b8] sm:$0xff] }
 0x239   : > { %v22331_v6 = vpop.permute.xlu0 %1256  ;;  %v19433_v45 = vpack.c.bf16 %v5360_v17, %v5359_v8  ;;  %v5361_v8 = vld [vmem:[%s26719_s3 + $0x190] sm:$0xff]  ;;  %v5362_v17 = vld [vmem:[%s26719_s3 + $0x198] sm:$0xff] }
 0x23a   : > { %1798 = vperm.xlu0 %20555, %v22152_v62   ;;  %v1610_v2 = vadd.f32 %v1578_v46, %v1349_v18  ;;  %v26900_v62 = vld [vmem:[#allocation21_spill] sm:$0xff] }
 0x23b   : > { %v22329_v29 = vpop.permute.xlu1 %1768  ;;  %19434 = vmatprep.subr.bf16.mxu0 %v19433_v45  ;;  %v2435_v30 = vld [vmem:[#allocation2 + $0x1b2] sm:$0xff] }
 0x23c   : > { %1803 = vperm.xlu1 %20556, %v22160_v28   ;;  %19436 = vmatpush3.bf16.msra.mxu0 %v19433_v45  ;;  %v1871_v28 = vadd.f32 %v1839_v51, %v1610_v2  ;;  %v19437_v45 = vpack.c.bf16 %v5362_v17, %v5361_v8  ;;  %v2436_v51 = vld [vmem:[#allocation2 + $0x1ba] sm:$0xff] }
 0x23d   : > { %v22338_v61 = vpop.permute.xlu0 %2281  ;;  %v5363_v8 = vld [vmem:[%s26719_s3 + $0x1a0] sm:$0xff] }
 0x23e   : > { %1547 = vperm.xlu0 %20555, %v26900_v62   ;;  %v2132_v54 = vadd.f32 %v2100_v35, %v1871_v28  ;;  %19438 = vmatprep.subr.bf16.mxu0 %v19437_v45  ;;  %v26903_v35 = vld [vmem:[#allocation10_spill] sm:$0xff]  ;;  %v2177_v28 = vld [vmem:[#allocation2 + $0x1d0] sm:$0xff] }
 0x23f   : > { %v2794_v40 = vpop.permute.xlu1 %2793  ;;  %v26907_v17 = vld [vmem:[#allocation14_spill] sm:$0xff] }
 0x240   : > { %v2883_v48 = vmul.f32 %v21943_v53, %v2794_v40  ;;  %1552 = vperm.xlu1 %20556, %v22186_v1   ;;  %v2394_v1 = vadd.f32 %v2362_v21, %v2132_v54  ;;  %19440 = vmatpush3.bf16.msra.mxu0 %v19437_v45  ;;  %v2176_v21 = vld [vmem:[#allocation2 + $0x1c8] sm:$0xff]  ;;  %v1058_v45 = vmul.f32 %v21850_v24, %v26907_v17 }
 0x241   : > { %v22349_v55 = vpop.permute.xlu0 %1261 }
 0x242   : > { %v2915_v38 = vadd.f32 %v2883_v48, %v2654_v47  ;;  %2059 = vperm.xlu0 %20555, %v26902_v22   ;;  %v2655_v58 = vadd.f32 %v2623_v32, %v2394_v1  ;;  %v1057_v47 = vmul.f32 %v21850_v24, %v26903_v35  ;;  %v26904_v48 = vld [vmem:[#allocation11_spill] sm:$0xff]  ;;  %v26906_v1 = vld [vmem:[#allocation16_spill] sm:$0xff] }
 0x243   : > { %v22347_v31 = vpop.permute.xlu1 %1773  ;;  %v828_v62 = vmul.f32 %v21857_v37, %v26904_v48  ;;  %v26909_v24 = vld [vmem:[#allocation12_spill] sm:$0xff] }
 0x244   : > { %v2954_v49 = vadd.f32 %v21957_v59, %v2915_v38  ;;  %2064 = vperm.xlu1 %20556, %v26901_v13  }
 0x245   : > { %v22355_v43 = vpop.permute.xlu0 %2286  ;;  %v1089_v22 = vadd.f32 %v1057_v47, %v828_v62  ;;  %v2101_v47 = vmul.f32 %v21907_v36, %v22270_v52  ;;  %v1319_v62 = vmul.f32 %v21870_v39, %v26909_v24 }
 0x246   : > { %v2986_v4 = vmax.f32 %v2954_v49, 0.0  ;;  %1808 = vperm.xlu0 %20555, %v22204_v3   ;;  %v2364_v17 = vmul.f32 %v21920_v10, %v22355_v43  ;;  %v5365_v43 = vld [vmem:[%s26719_s3 + $0x1b0] sm:$0xff] }
 0x247   : > { %v2799_v44 = vpop.permute.xlu1 %2798 }
 0x248   : > { %3018 = vst.msk [vmem:[#allocation3 + $0x10a] sm:$0xff] %vm389_vm2, %v2986_v4  ;;  %v2884_v14 = vmul.f32 %v21943_v53, %v2799_v44  ;;  %1813 = vperm.xlu1 %20556, %v22202_v27   ;;  %v1579_v4 = vmul.f32 %v21879_v60, %v26906_v1  ;;  %v2697_v44 = vld [vmem:[#allocation2 + $0x1bc] sm:$0xff] }
 0x249   : > { %v22369_v46 = vpop.permute.xlu0 %776 }
 0x24a   : > { %v2916_v16 = vadd.f32 %v2884_v14, %v2655_v58  ;;  %2321 = vperm.xlu0 %20555, %v2174_v20   ;;  %v2696_v58 = vld [vmem:[#allocation2 + $0x1b4] sm:$0xff]  ;;  %v3786_v20 = vld [vmem:[%s26719_s3 + $0x80] sm:$0xff] }
 0x24b   : > { %v22367_v56 = vpop.permute.xlu1 %1005 }
 0x24c   : > { %v2955_v27 = vadd.f32 %v21957_v59, %v2916_v16  ;;  %2326 = vperm.xlu1 %20556, %v2175_v33   ;;  %v1840_v33 = vmul.f32 %v21896_v9, %v22209_v23  ;;  %v3787_v16 = vld [vmem:[%s26719_s3 + $0x88] sm:$0xff] }
 0x24d   : > { %v22374_v19 = vpop.permute.xlu0 %1517 }
 0x24e   : > { %v2987_v3 = vmax.f32 %v2955_v27, 0.0  ;;  %2069 = vperm.xlu0 %20555, %v22218_v42   ;;  %v26908_v27 = vld [vmem:[#allocation18_spill] sm:$0xff] }
 0x24f   : > { %v22372_v11 = vpop.permute.xlu1 %2029  ;;  %v3094_v18 = vld [vmem:[#allocation3 + $0x10a] sm:$0xff]  ;;  %v829_v23 = vmul.f32 %v21857_v37, %v26908_v27  ;;  %v2438_v37 = vld [vmem:[#allocation2 + $0x1d2] sm:$0xff] }
 0x250   : > { %3019 = vst.msk [vmem:[#allocation3 + $0x112] sm:$0xff] %vm389_vm2, %v2987_v3  ;;  %2074 = vperm.xlu1 %20556, %v22216_v34   ;;  %17658 = vmatprep.mubr.msk.f32.mxu1 %vm389_vm2, %v3094_v18  ;;  %v26905_v34 = vld [vmem:[#allocation13_spill] sm:$0xff] }
 0x251   : > { %v2543_v40 = vpop.permute.xlu0 %2542  ;;  %v1318_v42 = vmul.f32 %v21870_v39, %v26905_v34  ;;  %v2363_v34 = vmul.f32 %v21920_v10, %v22338_v61  ;;  %v1841_v61 = vmul.f32 %v21896_v9, %v22237_v5 }
 0x252   : > { %2582 = vperm.xlu0 %20555, %v2435_v30   ;;  %v5364_v30 = vld [vmem:[%s26719_s3 + $0x1a8] sm:$0xff]  ;;  %v2624_v39 = vmul.f32 %v21931_v26, %v2543_v40 }
 0x253   : > { %v22380_v2 = vpop.permute.xlu1 %781  ;;  %v1350_v14 = vadd.f32 %v1318_v42, %v1089_v22  ;;  %v19441_v48 = vpack.c.bf16 %v5364_v30, %v5363_v8  ;;  %v1090_v42 = vadd.f32 %v1058_v45, %v829_v23 }
 0x254   : > { %2587 = vperm.xlu1 %20556, %v2436_v51   ;;  %v22414_v51 = vpack.c.bf16 %v3787_v16, %v3786_v20  ;;  %v2102_v20 = vmul.f32 %v21907_v36, %v22309_v63 }
 0x255   : > { %v22390_v54 = vpop.permute.xlu0 %1010  ;;  %v1611_v35 = vadd.f32 %v1579_v4, %v1350_v14  ;;  %19442 = vmatprep.subr.bf16.mxu0 %v19441_v48  ;;  %v1351_v1 = vadd.f32 %v1319_v62, %v1090_v42  ;;  %v2699_v4 = vld [vmem:[#allocation2 + $0x1d4] sm:$0xff] }
 0x256   : > { %2331 = vperm.xlu0 %20555, %v2176_v21   ;;  %19370 = vmatprep.subr.bf16.mxu1 %v22414_v51  ;;  %v26912_v42 = vld [vmem:[#allocation20_spill] sm:$0xff] }
 0x257   : > { %v22388_v38 = vpop.permute.xlu1 %1522  ;;  %v3095_v32 = vld [vmem:[#allocation3 + $0x112] sm:$0xff]  ;;  %v1872_v21 = vadd.f32 %v1840_v33, %v1611_v35  ;;  %19444 = vmatpush3.bf16.msra.mxu0 %v19441_v48 }
 0x258   : > { %v4951_v49 = vld [vmem:[#allocation3 + $0x10c] sm:$0xff]  ;;  %v4952_v13 = vld [vmem:[#allocation3 + $0x114] sm:$0xff]  ;;  %2336 = vperm.xlu1 %20556, %v2177_v28   ;;  %17659 = vmatmul.mubr.msk.f32.gmra.mrb[22].mxu1 %vm389_vm2, %v3095_v32 }
 0x259   : > { %17972 = vmatprep.mubr.msk.f32.mxu0 %vm389_vm2, %v4951_v49  ;;  %v22412_v18 = vpop.permute.xlu0 %2034  ;;  %v2437_v28 = vld [vmem:[#allocation2 + $0x1ca] sm:$0xff]  ;;  %v2133_v22 = vadd.f32 %v2101_v47, %v1872_v21 }
 0x25a   : > { %17973 = vmatmul.mubr.msk.f32.gmra.mrb[18].mxu0 %vm389_vm2, %v4952_v13  ;;  %2843 = vperm.xlu0 %20555, %v2696_v58   ;;  %v26910_v32 = vld [vmem:[#allocation19_spill] sm:$0xff] }
 0x25b   : > { %v2548_v3 = vpop.permute.xlu1 %2547  ;;  %v1580_v49 = vmul.f32 %v21879_v60, %v26910_v32  ;;  %v2395_v58 = vadd.f32 %v2363_v34, %v2133_v22  ;;  %v22472_v34 = vld [vmem:[%s26717_s1] ss:$0 sm:$0xff]  ;;  %v22480_v22 = vld [vmem:[%s26717_s1 + $0x2] ss:$0 sm:$0xff] }
 0x25c   : > { %2848 = vperm.xlu1 %20556, %v2697_v44   ;;  %v2698_v44 = vld [vmem:[#allocation2 + $0x1cc] sm:$0xff]  ;;  %v2625_v23 = vmul.f32 %v21931_v26, %v2548_v3  ;;  %v5366_v26 = vld [vmem:[%s26719_s3 + $0x1b8] sm:$0xff]  ;;  %v830_v32 = vmul.f32 %v22472_v34, %v26912_v42 }
 0x25d   : > { %v22430_v13 = vpop.permute.xlu0 %1266  ;;  %v1612_v14 = vadd.f32 %v1580_v49, %v1351_v1  ;;  %v2656_v16 = vadd.f32 %v2624_v39, %v2395_v58  ;;  %v19445_v3 = vpack.c.bf16 %v5366_v26, %v5365_v43  ;;  %v1320_v39 = vmul.f32 %v22480_v22, %v22211_v57  ;;  %v26914_v57 = vld [vmem:[#allocation17_spill] sm:$0xff]  ;;  %v22533_v26 = vld [vmem:[%s26717_s1 + $0x6] ss:$0 sm:$0xff] }
 0x25e   : > { %2592 = vperm.xlu0 %20555, %v2437_v28   ;;  %v22465_v28 = vld [vmem:[%s26717_s1 + $0x1] ss:$0 sm:$0xff] }
 0x25f   : > { %v22428_v52 = vpop.permute.xlu1 %1778  ;;  %v1873_v40 = vadd.f32 %v1841_v61, %v1612_v14  ;;  %19446 = vmatprep.subr.bf16.mxu0 %v19445_v3 }
 0x260   : > { %2597 = vperm.xlu1 %20556, %v2438_v37   ;;  %19448 = vmatpush3.bf16.msra.mxu0 %v19445_v3 }
 0x261   : > { %v22435_v60 = vpop.permute.xlu0 %2291  ;;  %v2134_v5 = vadd.f32 %v2102_v20, %v1873_v40 }
 0x262   : > { %2853 = vperm.xlu0 %20555, %v2698_v44   ;;  %v2365_v3 = vmul.f32 %v22533_v26, %v22435_v60 }
 0x263   : > { %v2804_v33 = vpop.permute.xlu1 %2803  ;;  %v2396_v36 = vadd.f32 %v2364_v17, %v2134_v5  ;;  %v22504_v17 = vld [vmem:[%s26717_s1 + $0x4] ss:$0 sm:$0xff]  ;;  %v5753_v5 = vld [vmem:[%s26719_s3 + $0x1c8] sm:$0xff] }
 0x264   : > { %v2885_v8 = vmul.f32 %v21943_v53, %v2804_v33  ;;  %2858 = vperm.xlu1 %20556, %v2699_v4   ;;  %v26913_v4 = vld [vmem:[#allocation23_spill] sm:$0xff] }
 0x265   : > { %v22444_v9 = vpop.permute.xlu0 %1271  ;;  %v2657_v48 = vadd.f32 %v2625_v23, %v2396_v36  ;;  %v1060_v44 = vmul.f32 %v22465_v28, %v26913_v4 }
 0x266   : > { %v2917_v45 = vadd.f32 %v2885_v8, %v2656_v16  ;;  %v831_v16 = vmul.f32 %v22472_v34, %v26914_v57  ;;  %v1321_v8 = vmul.f32 %v22480_v22, %v22239_v15 }
 0x267   : > { %v22442_v27 = vpop.permute.xlu1 %1783 }
 0x268   : > { %v2956_v30 = vadd.f32 %v21957_v59, %v2917_v45  ;;  %v1842_v45 = vmul.f32 %v22504_v17, %v22329_v29  ;;  %v1092_v23 = vadd.f32 %v1060_v44, %v831_v16  ;;  %v22523_v29 = vld [vmem:[%s26717_s1 + $0x5] ss:$0 sm:$0xff]  ;;  %v1061_v44 = vmul.f32 %v22465_v28, %v22257_v25 }
 0x269   : > { %v22448_v47 = vpop.permute.xlu0 %2296  ;;  %v1322_v25 = vmul.f32 %v22480_v22, %v22331_v6 }
 0x26a   : > { %v2988_v63 = vmax.f32 %v2956_v30, 0.0 }
 0x26b   : > { %v2809_v35 = vpop.permute.xlu1 %2808 }
 0x26c   : > { %3020 = vst.msk [vmem:[#allocation3 + $0x122] sm:$0xff] %vm389_vm2, %v2988_v63  ;;  %v2886_v10 = vmul.f32 %v21943_v53, %v2809_v35  ;;  %v26911_v53 = vld [vmem:[#allocation15_spill] sm:$0xff] }
 0x26d   : > { %v22460_v37 = vpop.permute.xlu0 %1527  ;;  %v1059_v21 = vmul.f32 %v22465_v28, %v26911_v53 }
 0x26e   : > { %v2918_v24 = vadd.f32 %v2886_v10, %v2657_v48  ;;  %v2103_v48 = vmul.f32 %v22523_v29, %v22372_v11  ;;  %v1353_v10 = vadd.f32 %v1321_v8, %v1092_v23  ;;  %v22568_v8 = vld [vmem:[%s26717_s1 + $0x8] ss:$0 sm:$0xff] }
 0x26f   : > { %v22458_v62 = vpop.permute.xlu1 %2039  ;;  %v1091_v33 = vadd.f32 %v1059_v21, %v830_v32 }
 0x270   : > { %v2957_v49 = vadd.f32 %v21957_v59, %v2918_v24  ;;  %v22491_v59 = vld [vmem:[%s26717_s1 + $0x3] ss:$0 sm:$0xff] }
 0x271   : > { %v2553_v58 = vpop.permute.xlu0 %2552  ;;  %v1581_v20 = vmul.f32 %v22491_v59, %v22272_v50  ;;  %v1352_v40 = vadd.f32 %v1320_v39, %v1091_v33  ;;  %v5752_v50 = vld [vmem:[%s26719_s3 + $0x1c0] sm:$0xff]  ;;  %v1582_v15 = vmul.f32 %v22491_v59, %v22294_v0  ;;  %v1843_v0 = vmul.f32 %v22504_v17, %v22347_v31 }
 0x272   : > { %v2989_v1 = vmax.f32 %v2957_v49, 0.0  ;;  %v22518_v63 = vpack.c.bf16 %v5753_v5, %v5752_v50  ;;  %v2104_v31 = vmul.f32 %v22523_v29, %v22412_v18  ;;  %v22548_v39 = vld [vmem:[%s26717_s1 + $0x7] ss:$0 sm:$0xff]  ;;  %v2366_v18 = vmul.f32 %v22533_v26, %v22448_v47 }
 0x273   : > { %v22486_v61 = vpop.permute.xlu1 %1532  ;;  %v3096_v14 = vld [vmem:[#allocation3 + $0x122] sm:$0xff]  ;;  %v1613_v35 = vadd.f32 %v1581_v20, %v1352_v40  ;;  %v1614_v24 = vadd.f32 %v1582_v15, %v1353_v10  ;;  %v2626_v60 = vmul.f32 %v22548_v39, %v2553_v58  ;;  %v1062_v50 = vmul.f32 %v22465_v28, %v22296_v41 }
 0x274   : > { %3021 = vst.msk [vmem:[#allocation3 + $0x12a] sm:$0xff] %vm389_vm2, %v2989_v1  ;;  %17661 = vmatprep.mubr.msk.f32.mxu1 %vm389_vm2, %v3096_v14  ;;  %19450 = vmatprep.subr.bf16.mxu0 %v22518_v63  ;;  %v832_v14 = vmul.f32 %v22472_v34, %v22259_v12  ;;  %v1583_v15 = vmul.f32 %v22491_v59, %v22374_v19 }
 0x275   : > { %v22516_v36 = vpop.permute.xlu0 %2044  ;;  %v1874_v43 = vadd.f32 %v1842_v45, %v1613_v35  ;;  %v1875_v1 = vadd.f32 %v1843_v0, %v1614_v24  ;;  %v22580_v35 = vld [vmem:[%s26718_s2] ss:$0 sm:$0xff]  ;;  %v833_v10 = vmul.f32 %v22472_v34, %v22284_v7  ;;  %v1323_v41 = vmul.f32 %v22480_v22, %v22349_v55 }
 0x276   : > { %v1093_v12 = vadd.f32 %v1061_v44, %v832_v14  ;;  %v1844_v19 = vmul.f32 %v22504_v17, %v22428_v52  ;;  %v1845_v52 = vmul.f32 %v22504_v17, %v22442_v27  ;;  %v1063_v14 = vmul.f32 %v22465_v28, %v22367_v56 }
 0x277   : > { %v2558_v30 = vpop.permute.xlu1 %2557  ;;  %v2135_v49 = vadd.f32 %v2103_v48, %v1874_v43  ;;  %v2136_v20 = vadd.f32 %v2104_v31, %v1875_v1  ;;  %v1094_v24 = vadd.f32 %v1062_v50, %v833_v10  ;;  %v2105_v1 = vmul.f32 %v22523_v29, %v22458_v62 }
 0x278   : > { %v2627_v16 = vmul.f32 %v22548_v39, %v2558_v30  ;;  %v1354_v43 = vadd.f32 %v1322_v25, %v1093_v12  ;;  %v1064_v62 = vmul.f32 %v22465_v28, %v22390_v54  ;;  %v835_v56 = vmul.f32 %v22472_v34, %v22380_v2 }
 0x279   : > { %v22537_v21 = vpop.permute.xlu0 %1788  ;;  %v2397_v4 = vadd.f32 %v2365_v3, %v2135_v49  ;;  %v2398_v40 = vadd.f32 %v2366_v18, %v2136_v20  ;;  %v1355_v55 = vadd.f32 %v1323_v41, %v1094_v24  ;;  %v1325_v54 = vmul.f32 %v22480_v22, %v22444_v9 }
 0x27a   : > { %v1615_v31 = vadd.f32 %v1583_v15, %v1354_v43  ;;  %v1096_v12 = vadd.f32 %v1064_v62, %v835_v56  ;;  %v1586_v50 = vmul.f32 %v22491_v59, %v22486_v61  ;;  %v1846_v10 = vmul.f32 %v22504_v17, %v22537_v21 }
 0x27b   : > { %v2302_v53 = vpop.permute.xlu1 %2301  ;;  %v3097_v11 = vld [vmem:[#allocation3 + $0x12a] sm:$0xff]  ;;  %v2658_v57 = vadd.f32 %v2626_v60, %v2397_v4  ;;  %v2659_v30 = vadd.f32 %v2627_v16, %v2398_v40  ;;  %v1584_v60 = vmul.f32 %v22491_v59, %v22388_v38  ;;  %v834_v38 = vmul.f32 %v22472_v34, %v22369_v46 }
 0x27c   : > { %v22539_v42 = vld [vmem:[#allocation3 + $0x124] sm:$0xff]  ;;  %v22541_v32 = vld [vmem:[#allocation3 + $0x12c] sm:$0xff]  ;;  %17662 = vmatmul.mubr.msk.f32.gmra.mrb[24].mxu1 %vm389_vm2, %v3097_v11  ;;  %v1876_v4 = vadd.f32 %v1844_v19, %v1615_v31  ;;  %v2367_v18 = vmul.f32 %v22533_v26, %v2302_v53  ;;  %v1324_v46 = vmul.f32 %v22480_v22, %v22430_v13 }
 0x27d   : > { %17975 = vmatprep.mubr.msk.f32.mxu0 %vm389_vm2, %v22539_v42  ;;  %v2814_v33 = vpop.permute.xlu0 %2813 }
 0x27e   : > { %17976 = vmatmul.mubr.msk.f32.gmra.mrb[20].mxu0 %vm389_vm2, %v22541_v32  ;;  %v2887_v47 = vmul.f32 %v22568_v8, %v2814_v33  ;;  %v2137_v16 = vadd.f32 %v2105_v1, %v1876_v4 }
 0x27f   : > { %v22562_v58 = vpop.permute.xlu1 %1793 }
 0x280   : > { %v2919_v45 = vadd.f32 %v2887_v47, %v2658_v57  ;;  %v1616_v57 = vadd.f32 %v1584_v60, %v1355_v55  ;;  %v2106_v47 = vmul.f32 %v22523_v29, %v22516_v36  ;;  %v2399_v25 = vadd.f32 %v2367_v18, %v2137_v16 }
 0x281   : > { %v2307_v23 = vpop.permute.xlu0 %2306  ;;  %v1585_v36 = vmul.f32 %v22491_v59, %v22460_v37  ;;  %v1847_v37 = vmul.f32 %v22504_v17, %v22562_v58 }
 0x282   : > { %v2958_v48 = vadd.f32 %v22580_v35, %v2919_v45  ;;  %v1877_v53 = vadd.f32 %v1845_v52, %v1616_v57  ;;  %v2368_v40 = vmul.f32 %v22533_v26, %v2307_v23  ;;  %v1095_v45 = vadd.f32 %v1063_v14, %v834_v38 }
 0x283   : > { %v2819_v5 = vpop.permute.xlu1 %2818 }
 0x284   : > { %v2888_v6 = vmul.f32 %v22568_v8, %v2819_v5  ;;  %v2990_v0 = vmax.f32 %v2958_v48, 0.0  ;;  %v1356_v23 = vadd.f32 %v1324_v46, %v1095_v45 }
 0x285   : > { %v2050_v49 = vpop.permute.xlu0 %2049 }
 0x286   : > { %v2920_v3 = vadd.f32 %v2888_v6, %v2659_v30  ;;  %3022 = vst.msk [vmem:[#allocation3 + $0x13a] sm:$0xff] %vm389_vm2, %v2990_v0  ;;  %v2138_v30 = vadd.f32 %v2106_v47, %v1877_v53  ;;  %v1357_v6 = vadd.f32 %v1325_v54, %v1096_v12  ;;  %v1617_v43 = vadd.f32 %v1585_v36, %v1356_v23 }
 0x287   : > { %v2563_v11 = vpop.permute.xlu1 %2562  ;;  %v2107_v0 = vmul.f32 %v22523_v29, %v2050_v49 }
 0x288   : > { %v2959_v7 = vadd.f32 %v22580_v35, %v2920_v3  ;;  %v2628_v27 = vmul.f32 %v22548_v39, %v2563_v11  ;;  %v2400_v61 = vadd.f32 %v2368_v40, %v2138_v30  ;;  %v1618_v19 = vadd.f32 %v1586_v50, %v1357_v6 }
 0x289   : > { %v2055_v20 = vpop.permute.xlu0 %2054  ;;  %v1878_v49 = vadd.f32 %v1846_v10, %v1617_v43  ;;  %v3032_v43 = vld [vmem:[#allocation3] sm:$0xff] }
 0x28a   : > { %v2991_v44 = vmax.f32 %v2959_v7, 0.0  ;;  %v2660_v13 = vadd.f32 %v2628_v27, %v2399_v25  ;;  %v2108_v3 = vmul.f32 %v22523_v29, %v2055_v20  ;;  %v1879_v55 = vadd.f32 %v1847_v37, %v1618_v19 }
 0x28b   : > { %v2568_v33 = vpop.permute.xlu1 %2567  ;;  %v2139_v14 = vadd.f32 %v2107_v0, %v1878_v49 }
 0x28c   : > { %3023 = vst.msk [vmem:[#allocation3 + $0x142] sm:$0xff] %vm389_vm2, %v2991_v44  ;;  %v2629_v48 = vmul.f32 %v22548_v39, %v2568_v33  ;;  %v2140_v33 = vadd.f32 %v2108_v3, %v1879_v55 }
 0x28d   : > { %v2312_v2 = vpop.permute.xlu0 %2311  ;;  %v3098_v15 = vld [vmem:[#allocation3 + $0x13a] sm:$0xff] }
 0x28e   : > { %17664 = vmatprep.mubr.msk.f32.mxu1 %vm389_vm2, %v3098_v15  ;;  %v2661_v7 = vadd.f32 %v2629_v48, %v2400_v61  ;;  %v2369_v52 = vmul.f32 %v22533_v26, %v2312_v2 }
 0x28f   : > { %v2824_v5 = vpop.permute.xlu1 %2823 }
 0x290   : > { %v2889_v9 = vmul.f32 %v22568_v8, %v2824_v5  ;;  %v2401_v47 = vadd.f32 %v2369_v52, %v2139_v14  ;;  %v3035_v14 = vld [vmem:[#allocation3 + $0x20] sm:$0xff] }
 0x291   : > { %v2317_v11 = vpop.permute.xlu0 %2316 }
 0x292   : > { %v2921_v41 = vadd.f32 %v2889_v9, %v2660_v13  ;;  %v2370_v44 = vmul.f32 %v22533_v26, %v2317_v11 }
 0x293   : > { %v2829_v24 = vpop.permute.xlu1 %2828  ;;  %v3099_v31 = vld [vmem:[#allocation3 + $0x142] sm:$0xff] }
 0x294   : > { %v22629_v60 = vld [vmem:[#allocation3 + $0x13c] sm:$0xff]  ;;  %v22631_v1 = vld [vmem:[#allocation3 + $0x144] sm:$0xff]  ;;  %v2960_v21 = vadd.f32 %v22580_v35, %v2921_v41  ;;  %v2890_v58 = vmul.f32 %v22568_v8, %v2829_v24  ;;  %17665 = vmatmul.mubr.msk.f32.gmra.mrb[26].mxu1 %vm389_vm2, %v3099_v31  ;;  %v2402_v56 = vadd.f32 %v2370_v44, %v2140_v33 }
 0x295   : > { %17978 = vmatprep.mubr.msk.f32.mxu0 %vm389_vm2, %v22629_v60  ;;  %v2573_v62 = vpop.permute.xlu0 %2572  ;;  %v3791_v44 = vld [vmem:[%s26719_s3 + $0xa8] sm:$0xff] }
 0x296   : > { %17979 = vmatmul.mubr.msk.f32.gmra.mrb[22].mxu0 %vm389_vm2, %v22631_v1  ;;  %v2992_v4 = vmax.f32 %v2960_v21, 0.0  ;;  %v2922_v18 = vadd.f32 %v2890_v58, %v2661_v7  ;;  %v2630_v16 = vmul.f32 %v22548_v39, %v2573_v62  ;;  %v3788_v7 = vld [vmem:[%s26719_s3 + $0x90] sm:$0xff]  ;;  %v3789_v21 = vld [vmem:[%s26719_s3 + $0x98] sm:$0xff]  ;;  %v3033_v58 = vld [vmem:[#allocation3 + $0x8] sm:$0xff] }
 0x297   : > { %v2578_v38 = vpop.permute.xlu1 %2577  ;;  %v19373_v52 = vpack.c.bf16 %v3789_v21, %v3788_v7  ;;  %v22775_v7 = vld [vmem:[#allocation3 + $0x90] sm:$0xff] }
 0x298   : > { %3024 = vst.msk [vmem:[#allocation3 + $0x152] sm:$0xff] %vm389_vm2, %v2992_v4  ;;  %v2961_v20 = vadd.f32 %v22580_v35, %v2922_v18  ;;  %v2631_v57 = vmul.f32 %v22548_v39, %v2578_v38  ;;  %v2662_v25 = vadd.f32 %v2630_v16, %v2401_v47  ;;  %v3034_v4 = vld [vmem:[#allocation3 + $0x18] sm:$0xff]  ;;  %v3790_v18 = vld [vmem:[%s26719_s3 + $0xa0] sm:$0xff]  ;;  %v22726_v16 = vld [vmem:[#allocation3 + $0x30] sm:$0xff] }
 0x299   : > { %v2834_v54 = vpop.permute.xlu0 %2833  ;;  %v19377_v33 = vpack.c.bf16 %v3791_v44, %v3790_v18  ;;  %26918 = vst [vmem:[#allocation10_spill] sm:$0xff] %v22726_v16 }
 0x29a   : > { %v2993_v27 = vmax.f32 %v2961_v20, 0.0  ;;  %v2663_v53 = vadd.f32 %v2631_v57, %v2402_v56  ;;  %v2891_v45 = vmul.f32 %v22568_v8, %v2834_v54  ;;  %v3792_v20 = vld [vmem:[%s26719_s3 + $0xb0] sm:$0xff]  ;;  %v3793_v57 = vld [vmem:[%s26719_s3 + $0xb8] sm:$0xff]  ;;  %v4180_v54 = vld [vmem:[%s26719_s3 + $0xc8] sm:$0xff] }
 0x29b   : > { %v2839_v46 = vpop.permute.xlu1 %2838  ;;  %v22734_v56 = vld [vmem:[#allocation3 + $0x38] sm:$0xff] }
 0x29c   : > { %3025 = vst.msk [vmem:[#allocation3 + $0x15a] sm:$0xff] %vm389_vm2, %v2993_v27  ;;  %v2892_v40 = vmul.f32 %v22568_v8, %v2839_v46  ;;  %v2923_v36 = vadd.f32 %v2891_v45, %v2662_v25  ;;  %v19381_v27 = vpack.c.bf16 %v3793_v57, %v3792_v20  ;;  %26919 = vst [vmem:[#allocation11_spill] sm:$0xff] %v22734_v56  ;;  %v4179_v46 = vld [vmem:[%s26719_s3 + $0xc0] sm:$0xff]  ;;  %v22795_v20 = vld [vmem:[#allocation3 + $0xb0] sm:$0xff] }
 0x29d   : > { %v22651_v5 = vpop.permute.xlu0 %786  ;;  %v22748_v45 = vpack.c.bf16 %v4180_v54, %v4179_v46  ;;  %v22799_v57 = vld [vmem:[#allocation3 + $0xc0] sm:$0xff] }
 0x29e   : > { %v2924_v12 = vadd.f32 %v2892_v40, %v2663_v53  ;;  %v2962_v30 = vadd.f32 %v22580_v35, %v2923_v36  ;;  %v22744_v53 = vld [vmem:[#allocation3 + $0x48] sm:$0xff]  ;;  %v22754_v36 = vld [vmem:[#allocation3 + $0x60] sm:$0xff]  ;;  %v836_v46 = vmul.f32 %v22472_v34, %v22651_v5 }
 0x29f   : > { %v22649_v50 = vpop.permute.xlu1 %791  ;;  %v3100_v2 = vld [vmem:[#allocation3 + $0x152] sm:$0xff]  ;;  %26920 = vst [vmem:[#allocation13_spill] sm:$0xff] %v22744_v53  ;;  %v22815_v5 = vld [vmem:[#allocation3 + $0xc8] sm:$0xff] }
 0x2a0   : > { %v2963_v15 = vadd.f32 %v22580_v35, %v2924_v12  ;;  %17667 = vmatprep.mubr.msk.f32.mxu1 %vm389_vm2, %v3100_v2  ;;  %v2994_v48 = vmax.f32 %v2962_v30, 0.0  ;;  %v22750_v12 = vld [vmem:[#allocation3 + $0x50] sm:$0xff]  ;;  %v22763_v30 = vld [vmem:[#allocation3 + $0x68] sm:$0xff] }
 0x2a1   : > { %v22658_v23 = vpop.permute.xlu0 %1015  ;;  %26921 = vst [vmem:[#allocation16_spill] sm:$0xff] %v22750_v12 }
 0x2a2   : > { %v2995_v13 = vmax.f32 %v2963_v15, 0.0  ;;  %3026 = vst.msk [vmem:[#allocation3 + $0x16a] sm:$0xff] %vm389_vm2, %v2994_v48 }
 0x2a3   : > { %v22656_v9 = vpop.permute.xlu1 %1020  ;;  %v3101_v6 = vld [vmem:[#allocation3 + $0x15a] sm:$0xff] }
 0x2a4   : > { %v22660_v10 = vld [vmem:[#allocation3 + $0x154] sm:$0xff]  ;;  %v22662_v37 = vld [vmem:[#allocation3 + $0x15c] sm:$0xff]  ;;  %3027 = vst.msk [vmem:[#allocation3 + $0x172] sm:$0xff] %vm389_vm2, %v2995_v13  ;;  %17668 = vmatmul.mubr.msk.f32.gmra.mrb[28].mxu1 %vm389_vm2, %v3101_v6 }
 0x2a5   : > { %17981 = vmatprep.mubr.msk.f32.mxu0 %vm389_vm2, %v22660_v10  ;;  %v22673_v41 = vpop.permute.xlu0 %1276  ;;  %v22767_v13 = vld [vmem:[#allocation3 + $0x78] sm:$0xff] }
 0x2a6   : > { %17982 = vmatmul.mubr.msk.f32.gmra.mrb[24].mxu0 %vm389_vm2, %v22662_v37 }
 0x2a7   : > { %v22671_v61 = vpop.permute.xlu1 %1281 }
 0x2a8   : > { %v1327_v54 = vmul.f32 %v22480_v22, %v22671_v61  ;;  %v22819_v61 = vld [vmem:[#allocation3 + $0xd8] sm:$0xff] }
 0x2a9   : > { %v22677_v0 = vpop.permute.xlu0 %796  ;;  %v22679_v3 = vld [vmem:[#allocation3 + $0x16a] sm:$0xff] }
 0x2aa   : > { %26915 = vst [vmem:[#allocation21_spill] sm:$0xff] %v22679_v3  ;;  %17670 = vmatprep.mubr.msk.f32.mxu1 %vm389_vm2, %v22679_v3 }
 0x2ab   : > { %v22675_v19 = vpop.permute.xlu1 %801  ;;  %v22681_v24 = vld [vmem:[#allocation3 + $0x16c] sm:$0xff]  ;;  %v22689_v31 = vld [vmem:[#allocation3 + $0x174] sm:$0xff] }
 0x2ac   : > { %v22683_v11 = vld [vmem:[#allocation3 + $0x172] sm:$0xff]  ;;  %17984 = vmatprep.mubr.msk.f32.mxu0 %vm389_vm2, %v22681_v24  ;;  %26917 = vst [vmem:[#allocation22_spill] sm:$0xff] %v22689_v31 }
 0x2ad   : > { %26916 = vst [vmem:[#allocation24_spill] sm:$0xff] %v22683_v11  ;;  %17671 = vmatmul.mubr.msk.f32.gmra.mrb[30].mxu1 %vm389_vm2, %v22683_v11  ;;  %17985 = vmatmul.mubr.msk.f32.gmra.mrb[26].mxu0 %vm389_vm2, %v22689_v31  ;;  %v22704_v55 = vpop.permute.xlu0 %1025 }
 0x2ae   : > { %17689 = vmatprep.mubr.msk.f32.mxu1 %vm389_vm2, %v3032_v43  ;;  %v22771_v43 = vld [vmem:[#allocation3 + $0x80] sm:$0xff] }
 0x2af   : > { %v22702_v49 = vpop.permute.xlu1 %1030 }
 0x2b1   : > { %17690 = vmatmul.mubr.msk.f32.vlgmr.msra.gmra.mrb[0].mxu1 %vm389_vm2, %v3033_v58  ;;  %v22717_v62 = vpop.permute.xlu0 %1537 }
 0x2b2   : > { %17692 = vmatprep.mubr.msk.f32.mxu1 %vm389_vm2, %v3034_v4  ;;  %19372 = vmatpush3.bf16.msra.mxu1 %v22414_v51  ;;  %v22783_v4 = vld [vmem:[#allocation3 + $0x98] sm:$0xff] }
 0x2b3   : > { %v22715_v38 = vpop.permute.xlu1 %1542  ;;  %19374 = vmatprep.subr.bf16.mxu1 %v19373_v52 }
 0x2b5   : > { %17693 = vmatmul.mubr.msk.f32.gmra.mrb[2].mxu1 %vm389_vm2, %v3035_v14  ;;  %v22732_v47 = vpop.permute.xlu0 %1286  ;;  %v1066_v14 = vmul.f32 %v22465_v28, %v22656_v9  ;;  %v1326_v9 = vmul.f32 %v22480_v22, %v22673_v41 }
 0x2b6   : > { %17695 = vmatprep.mubr.msk.f32.mxu1 %vm389_vm2, %v22726_v16  ;;  %19376 = vmatpush3.bf16.msra.mxu1 %v19373_v52  ;;  %v22787_v52 = vld [vmem:[#allocation3 + $0xa8] sm:$0xff] }
 0x2b7   : > { %v22730_v51 = vpop.permute.xlu1 %1291  ;;  %19378 = vmatprep.subr.bf16.mxu1 %v19377_v33 }
 0x2b9   : > { %17696 = vmatmul.mubr.msk.f32.gmra.mrb[4].mxu1 %vm389_vm2, %v22734_v56  ;;  %v1799_v40 = vpop.permute.xlu0 %1798 }
 0x2ba   : > { %17698 = vmatprep.mubr.msk.f32.mxu1 %vm389_vm2, %v22744_v53  ;;  %19380 = vmatpush3.bf16.msra.mxu1 %v19377_v33  ;;  %v1065_v33 = vmul.f32 %v22465_v28, %v22658_v23  ;;  %v1588_v53 = vmul.f32 %v22491_v59, %v22715_v38  ;;  %v1068_v38 = vmul.f32 %v22465_v28, %v22702_v49 }
 0x2bb   : > { %v1804_v25 = vpop.permute.xlu1 %1803  ;;  %19382 = vmatprep.subr.bf16.mxu1 %v19381_v27  ;;  %v1329_v49 = vmul.f32 %v22480_v22, %v22730_v51 }
 0x2bc   : > { %v1849_v16 = vmul.f32 %v22504_v17, %v1804_v25  ;;  %v22831_v25 = vld [vmem:[#allocation3 + $0xe0] sm:$0xff] }
 0x2bd   : > { %17699 = vmatmul.mubr.msk.f32.gmra.mrb[6].mxu1 %vm389_vm2, %v22750_v12  ;;  %v22760_v15 = vpop.permute.xlu0 %1547  ;;  %v1097_v12 = vadd.f32 %v1065_v33, %v836_v46 }
 0x2be   : > { %17701 = vmatprep.mubr.msk.f32.mxu1 %vm389_vm2, %v22754_v36  ;;  %19384 = vmatpush3.bf16.msra.mxu1 %v19381_v27  ;;  %v837_v27 = vmul.f32 %v22472_v34, %v22649_v50  ;;  %v1587_v50 = vmul.f32 %v22491_v59, %v22717_v62  ;;  %v1067_v62 = vmul.f32 %v22465_v28, %v22704_v55  ;;  %v22843_v55 = vld [vmem:[#allocation3 + $0xf0] sm:$0xff] }
 0x2bf   : > { %v22758_v2 = vpop.permute.xlu1 %1552  ;;  %19386 = vmatprep.subr.bf16.mxu1 %v22748_v45  ;;  %v1358_v56 = vadd.f32 %v1326_v9, %v1097_v12  ;;  %v1328_v28 = vmul.f32 %v22480_v22, %v22732_v47  ;;  %v1589_v22 = vmul.f32 %v22491_v59, %v22760_v15 }
 0x2c0   : > { %v1098_v3 = vadd.f32 %v1066_v14, %v837_v27  ;;  %v1848_v14 = vmul.f32 %v22504_v17, %v1799_v40  ;;  %v839_v40 = vmul.f32 %v22472_v34, %v22675_v19  ;;  %v1590_v51 = vmul.f32 %v22491_v59, %v22758_v2  ;;  %v22863_v59 = vld [vmem:[#allocation3 + $0x108] sm:$0xff] }
 0x2c1   : > { %17702 = vmatmul.mubr.msk.f32.gmra.mrb[8].mxu1 %vm389_vm2, %v22763_v30  ;;  %v2060_v6 = vpop.permute.xlu0 %2059  ;;  %v1619_v31 = vadd.f32 %v1587_v50, %v1358_v56 }
 0x2c2   : > { %17704 = vmatprep.mubr.msk.f32.mxu1 %vm389_vm2, %v22767_v13  ;;  %v1359_v41 = vadd.f32 %v1327_v54, %v1098_v3  ;;  %v2109_v12 = vmul.f32 %v22523_v29, %v2060_v6  ;;  %v838_v54 = vmul.f32 %v22472_v34, %v22677_v0  ;;  %v1100_v34 = vadd.f32 %v1068_v38, %v839_v40 }
 0x2c3   : > { %v2065_v48 = vpop.permute.xlu1 %2064 }
 0x2c4   : > { %v1620_v46 = vadd.f32 %v1588_v53, %v1359_v41  ;;  %v2110_v3 = vmul.f32 %v22523_v29, %v2065_v48  ;;  %v1880_v53 = vadd.f32 %v1848_v14, %v1619_v31  ;;  %v1099_v0 = vadd.f32 %v1067_v62, %v838_v54  ;;  %v22871_v54 = vld [vmem:[#allocation3 + $0x110] sm:$0xff] }
 0x2c5   : > { %17705 = vmatmul.mubr.msk.f32.gmra.mrb[10].mxu1 %vm389_vm2, %v22771_v43  ;;  %v22781_v58 = vpop.permute.xlu0 %1808  ;;  %v1361_v50 = vadd.f32 %v1329_v49, %v1100_v34 }
 0x2c6   : > { %17707 = vmatprep.mubr.msk.f32.mxu1 %vm389_vm2, %v22775_v7  ;;  %v1881_v56 = vadd.f32 %v1849_v16, %v1620_v46  ;;  %v2141_v16 = vadd.f32 %v2109_v12, %v1880_v53  ;;  %v1360_v41 = vadd.f32 %v1328_v28, %v1099_v0  ;;  %v1850_v2 = vmul.f32 %v22504_v17, %v22781_v58 }
 0x2c7   : > { %v22779_v21 = vpop.permute.xlu1 %1813  ;;  %v1622_v62 = vadd.f32 %v1590_v51, %v1361_v50 }
 0x2c8   : > { %v2142_v9 = vadd.f32 %v2110_v3, %v1881_v56  ;;  %v1851_v14 = vmul.f32 %v22504_v17, %v22779_v21  ;;  %v22875_v56 = vld [vmem:[#allocation3 + $0x120] sm:$0xff] }
 0x2c9   : > { %17708 = vmatmul.mubr.msk.f32.gmra.mrb[12].mxu1 %vm389_vm2, %v22783_v4  ;;  %v2322_v44 = vpop.permute.xlu0 %2321 }
 0x2ca   : > { %17710 = vmatprep.mubr.msk.f32.mxu1 %vm389_vm2, %v22787_v52  ;;  %v2371_v19 = vmul.f32 %v22533_v26, %v2322_v44  ;;  %v22855_v44 = vld [vmem:[#allocation3 + $0xf8] sm:$0xff]  ;;  %v1883_v49 = vadd.f32 %v1851_v14, %v1622_v62  ;;  %v22897_v62 = vld [vmem:[#allocation3 + $0x140] sm:$0xff] }
 0x2cb   : > { %v2327_v18 = vpop.permute.xlu1 %2326 }
 0x2cc   : > { %v2372_v48 = vmul.f32 %v22533_v26, %v2327_v18  ;;  %v2403_v38 = vadd.f32 %v2371_v19, %v2141_v16 }
 0x2cd   : > { %17711 = vmatmul.mubr.msk.f32.gmra.mrb[14].mxu1 %vm389_vm2, %v22795_v20  ;;  %v2070_v11 = vpop.permute.xlu0 %2069 }
 0x2ce   : > { %17713 = vmatprep.mubr.msk.f32.mxu1 %vm389_vm2, %v22799_v57  ;;  %v2404_v15 = vadd.f32 %v2372_v48, %v2142_v9  ;;  %v2111_v46 = vmul.f32 %v22523_v29, %v2070_v11 }
 0x2cf   : > { %v2075_v23 = vpop.permute.xlu1 %2074 }
 0x2d1   : > { %17714 = vmatmul.mubr.msk.f32.gmra.mrb[16].mxu1 %vm389_vm2, %v22815_v5  ;;  %v2583_v27 = vpop.permute.xlu0 %2582 }
 0x2d2   : > { %17716 = vmatprep.mubr.msk.f32.mxu1 %vm389_vm2, %v22819_v61  ;;  %v2632_v18 = vmul.f32 %v22548_v39, %v2583_v27  ;;  %v2112_v27 = vmul.f32 %v22523_v29, %v2075_v23 }
 0x2d3   : > { %v2588_v33 = vpop.permute.xlu1 %2587 }
 0x2d4   : > { %v2633_v31 = vmul.f32 %v22548_v39, %v2588_v33  ;;  %v1621_v33 = vadd.f32 %v1589_v22, %v1360_v41  ;;  %v2664_v17 = vadd.f32 %v2632_v18, %v2403_v38  ;;  %v2144_v48 = vadd.f32 %v2112_v27, %v1883_v49 }
 0x2d5   : > { %17717 = vmatmul.mubr.msk.f32.gmra.mrb[18].mxu1 %vm389_vm2, %v22831_v25  ;;  %v2332_v6 = vpop.permute.xlu0 %2331 }
 0x2d6   : > { %17719 = vmatprep.mubr.msk.f32.mxu1 %vm389_vm2, %v22843_v55  ;;  %v2665_v12 = vadd.f32 %v2633_v31, %v2404_v15  ;;  %v1882_v28 = vadd.f32 %v1850_v2, %v1621_v33  ;;  %v2373_v29 = vmul.f32 %v22533_v26, %v2332_v6  ;;  %v22901_v33 = vld [vmem:[#allocation3 + $0x150] sm:$0xff] }
 0x2d7   : > { %v2337_v47 = vpop.permute.xlu1 %2336 }
 0x2d8   : > { %v2374_v23 = vmul.f32 %v22533_v26, %v2337_v47  ;;  %v2143_v19 = vadd.f32 %v2111_v46, %v1882_v28  ;;  %v22885_v47 = vld [vmem:[#allocation3 + $0x128] sm:$0xff]  ;;  %v22889_v26 = vld [vmem:[#allocation3 + $0x138] sm:$0xff] }
 0x2d9   : > { %17720 = vmatmul.mubr.msk.f32.gmra.mrb[20].mxu1 %vm389_vm2, %v22855_v44  ;;  %v2844_v3 = vpop.permute.xlu0 %2843  ;;  %v3754_v28 = vld [vmem:[#allocation3 + $0x4] sm:$0xff] }
 0x2da   : > { %17722 = vmatprep.mubr.msk.f32.mxu1 %vm389_vm2, %v22863_v59  ;;  %v2893_v40 = vmul.f32 %v22568_v8, %v2844_v3  ;;  %v2406_v6 = vadd.f32 %v2374_v23, %v2144_v48  ;;  %v2405_v31 = vadd.f32 %v2373_v29, %v2143_v19  ;;  %v4181_v23 = vld [vmem:[%s26719_s3 + $0xd0] sm:$0xff]  ;;  %v4182_v29 = vld [vmem:[%s26719_s3 + $0xd8] sm:$0xff]  ;;  %v4183_v19 = vld [vmem:[%s26719_s3 + $0xe0] sm:$0xff] }
 0x2db   : > { %v2849_v21 = vpop.permute.xlu1 %2848  ;;  %v19389_v48 = vpack.c.bf16 %v4182_v29, %v4181_v23  ;;  %v6146_v23 = vld [vmem:[%s26719_s3 + $0x208] sm:$0xff] }
 0x2dc   : > { %v2894_v58 = vmul.f32 %v22568_v8, %v2849_v21  ;;  %v2925_v53 = vadd.f32 %v2893_v40, %v2664_v17  ;;  %v26922_v29 = vld [vmem:[#allocation6_spill] sm:$0xff] }
 0x2dd   : > { %17723 = vmatmul.mubr.msk.f32.gmra.mrb[22].mxu1 %vm389_vm2, %v22871_v54  ;;  %v2593_v0 = vpop.permute.xlu0 %2592 }
 0x2de   : > { %v2926_v11 = vadd.f32 %v2894_v58, %v2665_v12  ;;  %17725 = vmatprep.mubr.msk.f32.mxu1 %vm389_vm2, %v22875_v56  ;;  %v2964_v22 = vadd.f32 %v22580_v35, %v2925_v53  ;;  %v2634_v16 = vmul.f32 %v22548_v39, %v2593_v0  ;;  %v22907_v12 = vld [vmem:[#allocation3 + $0x158] sm:$0xff]  ;;  %v3757_v0 = vld [vmem:[#allocation3 + $0x24] sm:$0xff] }
 0x2df   : > { %v2598_v34 = vpop.permute.xlu1 %2597  ;;  %v3756_v53 = vld [vmem:[#allocation3 + $0x1c] sm:$0xff] }
 0x2e0   : > { %v2965_v51 = vadd.f32 %v22580_v35, %v2926_v11  ;;  %v2635_v9 = vmul.f32 %v22548_v39, %v2598_v34  ;;  %v2996_v50 = vmax.f32 %v2964_v22, 0.0  ;;  %v2666_v2 = vadd.f32 %v2634_v16, %v2405_v31  ;;  %v3755_v11 = vld [vmem:[#allocation3 + $0xc] sm:$0xff]  ;;  %v5755_v16 = vld [vmem:[%s26719_s3 + $0x1d8] sm:$0xff] }
 0x2e1   : > { %17726 = vmatmul.mubr.msk.f32.gmra.mrb[24].mxu1 %vm389_vm2, %v22885_v47  ;;  %v2854_v14 = vpop.permute.xlu0 %2853  ;;  %v4184_v34 = vld [vmem:[%s26719_s3 + $0xe8] sm:$0xff] }
 0x2e2   : > { %v2997_v18 = vmax.f32 %v2965_v51, 0.0  ;;  %17728 = vmatprep.mubr.msk.f32.mxu1 %vm389_vm2, %v22889_v26  ;;  %3028 = vst.msk [vmem:[#allocation3 + $0x182] sm:$0xff] %vm389_vm2, %v2996_v50  ;;  %v2667_v39 = vadd.f32 %v2635_v9, %v2406_v6  ;;  %v2895_v38 = vmul.f32 %v22568_v8, %v2854_v14  ;;  %v5754_v9 = vld [vmem:[%s26719_s3 + $0x1d0] sm:$0xff]  ;;  %v19393_v6 = vpack.c.bf16 %v4184_v34, %v4183_v19  ;;  %v23030_v19 = vld [vmem:[#allocation3 + $0x9c] sm:$0xff] }
 0x2e3   : > { %v2859_v41 = vpop.permute.xlu1 %2858  ;;  %v19453_v31 = vpack.c.bf16 %v5755_v16, %v5754_v9  ;;  %v4185_v50 = vld [vmem:[%s26719_s3 + $0xf0] sm:$0xff]  ;;  %v23049_v9 = vld [vmem:[#allocation3 + $0xc4] sm:$0xff] }
 0x2e4   : > { %3029 = vst.msk [vmem:[#allocation3 + $0x18a] sm:$0xff] %vm389_vm2, %v2997_v18  ;;  %v2896_v15 = vmul.f32 %v22568_v8, %v2859_v41  ;;  %v2927_v46 = vadd.f32 %v2895_v38, %v2666_v2  ;;  %v22911_v8 = vld [vmem:[#allocation3 + $0x168] sm:$0xff]  ;;  %v3759_v18 = vld [vmem:[#allocation3 + $0x3c] sm:$0xff]  ;;  %v3761_v38 = vld [vmem:[#allocation3 + $0x54] sm:$0xff] }
 0x2e5   : > { %17729 = vmatmul.mubr.msk.f32.gmra.mrb[26].mxu1 %vm389_vm2, %v22897_v62  ;;  %v4186_v41 = vld [vmem:[%s26719_s3 + $0xf8] sm:$0xff]  ;;  %v3760_v14 = vld [vmem:[#allocation3 + $0x4c] sm:$0xff] }
 0x2e6   : > { %v2928_v27 = vadd.f32 %v2896_v15, %v2667_v39  ;;  %17731 = vmatprep.mubr.msk.f32.mxu1 %vm389_vm2, %v22901_v33  ;;  %v2966_v3 = vadd.f32 %v22580_v35, %v2927_v46  ;;  %v5756_v39 = vld [vmem:[%s26719_s3 + $0x1e0] sm:$0xff]  ;;  %v5757_v2 = vld [vmem:[%s26719_s3 + $0x1e8] sm:$0xff]  ;;  %v19397_v15 = vpack.c.bf16 %v4186_v41, %v4185_v50  ;;  %v23091_v41 = vld [vmem:[#allocation3 + $0x114] sm:$0xff] }
 0x2e7   : > { %v22985_v46 = vld [vmem:[#allocation3 + $0x64] sm:$0xff]  ;;  %v23037_v34 = vld [vmem:[#allocation3 + $0xac] sm:$0xff] }
 0x2e8   : > { %v2967_v21 = vadd.f32 %v22580_v35, %v2928_v27  ;;  %v2998_v58 = vmax.f32 %v2966_v3, 0.0  ;;  %v22923_v35 = vld [vmem:[#allocation3 + $0x170] sm:$0xff]  ;;  %v19457_v27 = vpack.c.bf16 %v5757_v2, %v5756_v39  ;;  %v5356_v39 = vld [vmem:[#allocation3 + $0x1b8] sm:$0xff]  ;;  %v5357_v2 = vld [vmem:[#allocation3 + $0x1c8] sm:$0xff] }
 0x2e9   : > { %17732 = vmatmul.mubr.msk.f32.gmra.mrb[28].mxu1 %vm389_vm2, %v22907_v12  ;;  %v22997_v3 = vld [vmem:[#allocation3 + $0x6c] sm:$0xff] }
 0x2ea   : > { %v2999_v17 = vmax.f32 %v2967_v21, 0.0  ;;  %17734 = vmatprep.mubr.msk.f32.mxu1 %vm389_vm2, %v22911_v8  ;;  %3030 = vst.msk [vmem:[#allocation3 + $0x19a] sm:$0xff] %vm389_vm2, %v2998_v58  ;;  %v5759_v21 = vld [vmem:[%s26719_s3 + $0x1f8] sm:$0xff]  ;;  %v23055_v16 = vld [vmem:[#allocation3 + $0xcc] sm:$0xff] }
 0x2eb   : > { %v22915_v40 = vld [vmem:[#allocation3 + $0x184] sm:$0xff]  ;;  %v22917_v49 = vld [vmem:[#allocation3 + $0x18c] sm:$0xff]  ;;  %v23003_v58 = vld [vmem:[#allocation3 + $0x7c] sm:$0xff] }
 0x2ec   : > { %3031 = vst.msk [vmem:[#allocation3 + $0x1a2] sm:$0xff] %vm389_vm2, %v2999_v17  ;;  %17987 = vmatprep.mubr.msk.f32.mxu0 %vm389_vm2, %v22915_v40  ;;  %v23085_v50 = vld [vmem:[#allocation3 + $0x10c] sm:$0xff] }
 0x2ed   : > { %17735 = vmatmul.mubr.msk.f32.gmra.mrb[30].mxu1 %vm389_vm2, %v22923_v35  ;;  %17988 = vmatmul.mubr.msk.f32.gmra.mrb[28].mxu0 %vm389_vm2, %v22917_v49 }
 0x2ee   : > { %17753 = vmatprep.mubr.msk.f32.mxu1 %vm389_vm2, %v3754_v28  ;;  %v6145_v28 = vld [vmem:[%s26719_s3 + $0x200] sm:$0xff] }
 0x2f1   : > { %17754 = vmatmul.mubr.msk.f32.vlgmr.msra.gmra.mrb[0].mxu1 %vm389_vm2, %v3755_v11  ;;  %v23016_v11 = vld [vmem:[#allocation3 + $0x84] sm:$0xff] }
 0x2f2   : > { %17756 = vmatprep.mubr.msk.f32.mxu1 %vm389_vm2, %v3756_v53  ;;  %19388 = vmatpush3.bf16.msra.mxu1 %v22748_v45  ;;  %v3758_v45 = vld [vmem:[#allocation3 + $0x34] sm:$0xff]  ;;  %v23018_v53 = vpack.c.bf16 %v6146_v23, %v6145_v28  ;;  %v5720_v28 = vld [vmem:[#allocation3 + $0x62] sm:$0xff] }
 0x2f3   : > { %v22945_v51 = vld [vmem:[#allocation3 + $0x19c] sm:$0xff]  ;;  %v22947_v22 = vld [vmem:[#allocation3 + $0x1a4] sm:$0xff]  ;;  %19390 = vmatprep.subr.bf16.mxu1 %v19389_v48 }
 0x2f4   : > { %17990 = vmatprep.mubr.msk.f32.mxu0 %vm389_vm2, %v22945_v51 }
 0x2f5   : > { %17757 = vmatmul.mubr.msk.f32.gmra.mrb[2].mxu1 %vm389_vm2, %v3757_v0  ;;  %17991 = vmatmul.mubr.msk.f32.gmra.mrb[30].mxu0 %vm389_vm2, %v22947_v22  ;;  %v23043_v0 = vld [vmem:[#allocation3 + $0xb4] sm:$0xff] }
 0x2f6   : > { %17759 = vmatprep.mubr.msk.f32.mxu1 %vm389_vm2, %v3758_v45  ;;  %18009 = vmatprep.mubr.msk.f32.mxu0 %vm389_vm2, %v22754_v36  ;;  %v23067_v45 = vld [vmem:[#allocation3 + $0xe4] sm:$0xff] }
 0x2f7   : > { %19392 = vmatpush3.bf16.msra.mxu1 %v19389_v48  ;;  %v23024_v48 = vld [vmem:[#allocation3 + $0x94] sm:$0xff] }
 0x2f8   : > { %19394 = vmatprep.subr.bf16.mxu1 %v19393_v6 }
 0x2f9   : > { %17760 = vmatmul.mubr.msk.f32.gmra.mrb[4].mxu1 %vm389_vm2, %v3759_v18  ;;  %18010 = vmatmul.mubr.msk.f32.vlgmr.msra.gmra.mrb[0].mxu0 %vm389_vm2, %v22763_v30  ;;  %v23079_v18 = vld [vmem:[#allocation3 + $0xfc] sm:$0xff] }
 0x2fa   : > { %19452 = vmatpush3.bf16.msra.mxu0 %v22518_v63  ;;  %17762 = vmatprep.mubr.msk.f32.mxu1 %vm389_vm2, %v3760_v14  ;;  %v5758_v63 = vld [vmem:[%s26719_s3 + $0x1f0] sm:$0xff]  ;;  %v26923_v14 = vld [vmem:[#allocation22_spill] sm:$0xff] }
 0x2fb   : > { %18012 = vmatprep.mubr.msk.f32.mxu0 %vm389_vm2, %v22767_v13  ;;  %19454 = vmatprep.subr.bf16.mxu0 %v19453_v31  ;;  %v19461_v17 = vpack.c.bf16 %v5759_v21, %v5758_v63  ;;  %v6148_v63 = vld [vmem:[%s26719_s3 + $0x218] sm:$0xff]  ;;  %v26927_v21 = vld [vmem:[#allocation7_spill] sm:$0xff] }
 0x2fc   : > { %19396 = vmatpush3.bf16.msra.mxu1 %v19393_v6  ;;  %v23061_v6 = vld [vmem:[#allocation3 + $0xdc] sm:$0xff] }
 0x2fd   : > { %17763 = vmatmul.mubr.msk.f32.gmra.mrb[6].mxu1 %vm389_vm2, %v3761_v38  ;;  %18013 = vmatmul.mubr.msk.f32.gmra.mrb[2].mxu0 %vm389_vm2, %v22771_v43  ;;  %v5358_v38 = vld [vmem:[#allocation3 + $0x1d0] sm:$0xff] }
 0x2fe   : > { %17765 = vmatprep.mubr.msk.f32.mxu1 %vm389_vm2, %v22985_v46  ;;  %18015 = vmatprep.mubr.msk.f32.mxu0 %vm389_vm2, %v22775_v7 }
 0x2ff   : > { %19456 = vmatpush3.bf16.msra.mxu0 %v19453_v31  ;;  %19398 = vmatprep.subr.bf16.mxu1 %v19397_v15  ;;  %v23073_v31 = vld [vmem:[#allocation3 + $0xf4] sm:$0xff] }
 0x300   : > { %19458 = vmatprep.subr.bf16.mxu0 %v19457_v27  ;;  %19400 = vmatpush3.bf16.msra.mxu1 %v19397_v15  ;;  %v26926_v15 = vld [vmem:[#allocation13_spill] sm:$0xff] }
 0x301   : > { %17766 = vmatmul.mubr.msk.f32.gmra.mrb[8].mxu1 %vm389_vm2, %v22997_v3  ;;  %18016 = vmatmul.mubr.msk.f32.gmra.mrb[4].mxu0 %vm389_vm2, %v22783_v4 }
 0x302   : > { %17768 = vmatprep.mubr.msk.f32.mxu1 %vm389_vm2, %v23003_v58  ;;  %18018 = vmatprep.mubr.msk.f32.mxu0 %vm389_vm2, %v22787_v52 }
 0x303   : > { %19460 = vmatpush3.bf16.msra.mxu0 %v19457_v27  ;;  %19769 = vmatprep.subr.bf16.mxu1 %v26922_v29  ;;  %v6147_v27 = vld [vmem:[%s26719_s3 + $0x210] sm:$0xff] }
 0x304   : > { %19462 = vmatprep.subr.bf16.mxu0 %v19461_v17  ;;  %v19469_v23 = vpack.c.bf16 %v6148_v63, %v6147_v27  ;;  %v5728_v27 = vld [vmem:[#allocation3 + $0xc2] sm:$0xff] }
 0x305   : > { %17769 = vmatmul.mubr.msk.f32.gmra.mrb[10].mxu1 %vm389_vm2, %v23016_v11  ;;  %18019 = vmatmul.mubr.msk.f32.gmra.mrb[6].mxu0 %vm389_vm2, %v22795_v20  ;;  %v5747_v63 = vld [vmem:[#allocation3 + $0x1a2] sm:$0xff] }
 0x306   : > { %17771 = vmatprep.mubr.msk.f32.mxu1 %vm389_vm2, %v23024_v48  ;;  %18021 = vmatprep.mubr.msk.f32.mxu0 %vm389_vm2, %v22799_v57 }
 0x307   : > { %19464 = vmatpush3.bf16.msra.mxu0 %v19461_v17  ;;  %v26928_v17 = vld [vmem:[#allocation16_spill] sm:$0xff] }
 0x308   : > { %19466 = vmatprep.subr.bf16.mxu0 %v23018_v53 }
 0x309   : > { %17772 = vmatmul.mubr.msk.f32.gmra.mrb[12].mxu1 %vm389_vm2, %v23030_v19  ;;  %18022 = vmatmul.mubr.msk.f32.gmra.mrb[8].mxu0 %vm389_vm2, %v22815_v5 }
 0x30a   : > { %17774 = vmatprep.mubr.msk.f32.mxu1 %vm389_vm2, %v23037_v34  ;;  %18024 = vmatprep.mubr.msk.f32.mxu0 %vm389_vm2, %v22819_v61 }
 0x30d   : > { %17775 = vmatmul.mubr.msk.f32.gmra.mrb[14].mxu1 %vm389_vm2, %v23043_v0  ;;  %18025 = vmatmul.mubr.msk.f32.gmra.mrb[10].mxu0 %vm389_vm2, %v22831_v25 }
 0x30e   : > { %17777 = vmatprep.mubr.msk.f32.mxu1 %vm389_vm2, %v23049_v9  ;;  %18027 = vmatprep.mubr.msk.f32.mxu0 %vm389_vm2, %v22843_v55 }
 0x311   : > { %17778 = vmatmul.mubr.msk.f32.gmra.mrb[16].mxu1 %vm389_vm2, %v23055_v16  ;;  %18028 = vmatmul.mubr.msk.f32.gmra.mrb[12].mxu0 %vm389_vm2, %v22855_v44 }
 0x312   : > { %17780 = vmatprep.mubr.msk.f32.mxu1 %vm389_vm2, %v23061_v6  ;;  %18030 = vmatprep.mubr.msk.f32.mxu0 %vm389_vm2, %v22863_v59 }
 0x315   : > { %17781 = vmatmul.mubr.msk.f32.gmra.mrb[18].mxu1 %vm389_vm2, %v23067_v45  ;;  %18031 = vmatmul.mubr.msk.f32.gmra.mrb[14].mxu0 %vm389_vm2, %v22871_v54 }
 0x316   : > { %17783 = vmatprep.mubr.msk.f32.mxu1 %vm389_vm2, %v23073_v31  ;;  %18033 = vmatprep.mubr.msk.f32.mxu0 %vm389_vm2, %v22875_v56 }
 0x319   : > { %17784 = vmatmul.mubr.msk.f32.gmra.mrb[20].mxu1 %vm389_vm2, %v23079_v18  ;;  %18034 = vmatmul.mubr.msk.f32.gmra.mrb[16].mxu0 %vm389_vm2, %v22885_v47 }
 0x31a   : > { %17786 = vmatprep.mubr.msk.f32.mxu1 %vm389_vm2, %v23085_v50  ;;  %18036 = vmatprep.mubr.msk.f32.mxu0 %vm389_vm2, %v22889_v26 }
 0x31d   : > { %17787 = vmatmul.mubr.msk.f32.gmra.mrb[22].mxu1 %vm389_vm2, %v23091_v41  ;;  %18037 = vmatmul.mubr.msk.f32.gmra.mrb[18].mxu0 %vm389_vm2, %v22897_v62 }
 0x31e   : > { %17789 = vmatprep.mubr.msk.f32.mxu1 %vm389_vm2, %v22539_v42  ;;  %18039 = vmatprep.mubr.msk.f32.mxu0 %vm389_vm2, %v22901_v33  ;;  %v23113_v42 = vld [vmem:[#allocation3 + $0x180] sm:$0xff] }
 0x321   : > { %17790 = vmatmul.mubr.msk.f32.gmra.mrb[24].mxu1 %vm389_vm2, %v22541_v32  ;;  %18040 = vmatmul.mubr.msk.f32.gmra.mrb[20].mxu0 %vm389_vm2, %v22907_v12  ;;  %v23119_v32 = vld [vmem:[#allocation3 + $0x188] sm:$0xff] }
 0x322   : > { %17792 = vmatprep.mubr.msk.f32.mxu1 %vm389_vm2, %v22629_v60  ;;  %18042 = vmatprep.mubr.msk.f32.mxu0 %vm389_vm2, %v22911_v8  ;;  %v23125_v60 = vld [vmem:[#allocation3 + $0x198] sm:$0xff] }
 0x325   : > { %17793 = vmatmul.mubr.msk.f32.gmra.mrb[26].mxu1 %vm389_vm2, %v22631_v1  ;;  %18043 = vmatmul.mubr.msk.f32.gmra.mrb[22].mxu0 %vm389_vm2, %v22923_v35  ;;  %v5355_v1 = vld [vmem:[#allocation3 + $0x1b0] sm:$0xff] }
 0x326   : > { %17795 = vmatprep.mubr.msk.f32.mxu1 %vm389_vm2, %v22660_v10  ;;  %18045 = vmatprep.mubr.msk.f32.mxu0 %vm389_vm2, %v23113_v42  ;;  %v23131_v10 = vld [vmem:[#allocation3 + $0x1a0] sm:$0xff] }
 0x329   : > { %17796 = vmatmul.mubr.msk.f32.gmra.mrb[28].mxu1 %vm389_vm2, %v22662_v37  ;;  %18046 = vmatmul.mubr.msk.f32.gmra.mrb[24].mxu0 %vm389_vm2, %v23119_v32  ;;  %v26924_v37 = vld [vmem:[#allocation10_spill] sm:$0xff] }
 0x32a   : > { %17798 = vmatprep.mubr.msk.f32.mxu1 %vm389_vm2, %v22681_v24  ;;  %18048 = vmatprep.mubr.msk.f32.mxu0 %vm389_vm2, %v23125_v60  ;;  %v26925_v24 = vld [vmem:[#allocation11_spill] sm:$0xff] }
 0x32d   : > { %17799 = vmatmul.mubr.msk.f32.gmra.mrb[30].mxu1 %vm389_vm2, %v26923_v14  ;;  %18049 = vmatmul.mubr.msk.f32.gmra.mrb[26].mxu0 %vm389_vm2, %v23131_v10  ;;  %v6149_v14 = vld [vmem:[%s26719_s3 + $0x220] sm:$0xff] }
 0x32e   : > { %17817 = vmatprep.mubr.msk.f32.mxu1 %vm389_vm2, %v26924_v37  ;;  %18051 = vmatprep.mubr.msk.f32.mxu0 %vm389_vm2, %v5355_v1  ;;  %v26929_v1 = vld [vmem:[#allocation8_spill] sm:$0xff]  ;;  %v5722_v37 = vld [vmem:[#allocation3 + $0x7a] sm:$0xff] }
 0x331   : > { %17818 = vmatmul.mubr.msk.f32.vlgmr.msra.gmra.mrb[0].mxu1 %vm389_vm2, %v26925_v24  ;;  %18052 = vmatmul.mubr.msk.f32.gmra.mrb[28].mxu0 %vm389_vm2, %v5356_v39  ;;  %v26930_v24 = vld [vmem:[#allocation9_spill] sm:$0xff] }
 0x332   : > { %17820 = vmatprep.mubr.msk.f32.mxu1 %vm389_vm2, %v26926_v15  ;;  %18054 = vmatprep.mubr.msk.f32.mxu0 %vm389_vm2, %v5357_v2  ;;  %v5724_v2 = vld [vmem:[#allocation3 + $0x92] sm:$0xff] }
 0x333   : > { %19773 = vmatpush3.bf16.msra.mxu1 %v26922_v29  ;;  %v5721_v29 = vld [vmem:[#allocation3 + $0x6a] sm:$0xff] }
 0x334   : > { %19770 = vmatprep.subr.bf16.mxu1 %v26927_v21 }
 0x335   : > { %17821 = vmatmul.mubr.msk.f32.gmra.mrb[2].mxu1 %vm389_vm2, %v26928_v17  ;;  %18055 = vmatmul.mubr.msk.f32.gmra.mrb[30].mxu0 %vm389_vm2, %v5358_v38  ;;  %v5726_v38 = vld [vmem:[#allocation3 + $0xaa] sm:$0xff] }
 0x336   : > { %17823 = vmatprep.mubr.msk.f32.mxu1 %vm389_vm2, %v22754_v36  ;;  %18073 = vmatprep.mubr.msk.f32.mxu0 %vm389_vm2, %v5720_v28  ;;  %v6150_v36 = vld [vmem:[%s26719_s3 + $0x228] sm:$0xff]  ;;  %v6687_v28 = vld [vmem:[%s26721_s5 + $0x70] sm:$0xff] }
 0x337   : > { %19774 = vmatpush3.bf16.msra.mxu1 %v26927_v21  ;;  %v19473_v39 = vpack.c.bf16 %v6150_v36, %v6149_v14  ;;  %v6142_v21 = vld [vmem:[#allocation3 + $0x1bc] sm:$0xff]  ;;  %v6143_v17 = vld [vmem:[#allocation3 + $0x1cc] sm:$0xff] }
 0x338   : > { %19771 = vmatprep.subr.bf16.mxu1 %v26929_v1  ;;  %v6650_v14 = vld [vmem:[#allocation4 + $0xa] sm:$0xff]  ;;  %v6641_v36 = vld [vmem:[%s26721_s5] sm:$0xff] }
 0x339   : > { %17824 = vmatmul.mubr.msk.f32.gmra.mrb[4].mxu1 %vm389_vm2, %v22763_v30  ;;  %18074 = vmatmul.mubr.msk.f32.vlgmr.msra.gmra.mrb[0].mxu0 %vm389_vm2, %v5721_v29  ;;  %v5723_v30 = vld [vmem:[#allocation3 + $0x82] sm:$0xff] }
 0x33a   : > { %19468 = vmatpush3.bf16.msra.mxu0 %v23018_v53  ;;  %17826 = vmatprep.mubr.msk.f32.mxu1 %vm389_vm2, %v22767_v13  ;;  %v6151_v53 = vld [vmem:[%s26719_s3 + $0x230] sm:$0xff]  ;;  %v6152_v13 = vld [vmem:[%s26719_s3 + $0x238] sm:$0xff] }
 0x33b   : > { %18076 = vmatprep.mubr.msk.f32.mxu0 %vm389_vm2, %v5722_v37  ;;  %19470 = vmatprep.subr.bf16.mxu0 %v19469_v23  ;;  %v19477_v15 = vpack.c.bf16 %v6152_v13, %v6151_v53  ;;  %v6642_v37 = vld [vmem:[%s26721_s5 + $0x8] sm:$0xff]  ;;  %v6643_v53 = vld [vmem:[%s26721_s5 + $0x10] sm:$0xff]  ;;  %v6644_v13 = vld [vmem:[%s26721_s5 + $0x18] sm:$0xff] }
 0x33c   : > { %19775 = vmatpush3.bf16.msra.mxu1 %v26929_v1  ;;  %v6649_v1 = vld [vmem:[#allocation4 + $0x2] sm:$0xff] }
 0x33d   : > { %17827 = vmatmul.mubr.msk.f32.gmra.mrb[6].mxu1 %vm389_vm2, %v22771_v43  ;;  %18077 = vmatmul.mubr.msk.f32.gmra.mrb[2].mxu0 %vm389_vm2, %v5723_v30  ;;  %v5725_v43 = vld [vmem:[#allocation3 + $0x9a] sm:$0xff] }
 0x33e   : > { %17829 = vmatprep.mubr.msk.f32.mxu1 %vm389_vm2, %v22775_v7  ;;  %18079 = vmatprep.mubr.msk.f32.mxu0 %vm389_vm2, %v5724_v2  ;;  %v5727_v7 = vld [vmem:[#allocation3 + $0xb2] sm:$0xff]  ;;  %v6651_v30 = vld [vmem:[#allocation4 + $0x1a] sm:$0xff]  ;;  %v6652_v2 = vld [vmem:[#allocation4 + $0x22] sm:$0xff] }
 0x33f   : > { %19472 = vmatpush3.bf16.msra.mxu0 %v19469_v23  ;;  %19772 = vmatprep.subr.bf16.mxu1 %v26930_v24  ;;  %v6688_v23 = vld [vmem:[%s26721_s5 + $0x78] sm:$0xff] }
 0x340   : > { %19474 = vmatprep.subr.bf16.mxu0 %v19473_v39  ;;  %19776 = vmatpush3.bf16.msra.mxu1 %v26930_v24  ;;  %v19493_v29 = vpack.c.bf16 %v6688_v23, %v6687_v28  ;;  %v19501_v24 = vpack.c.bf16 %v6644_v13, %v6643_v53 }
 0x341   : > { %17830 = vmatmul.mubr.msk.f32.gmra.mrb[8].mxu1 %vm389_vm2, %v22783_v4  ;;  %18080 = vmatmul.mubr.msk.f32.gmra.mrb[4].mxu0 %vm389_vm2, %v5725_v43  ;;  %v5729_v4 = vld [vmem:[#allocation3 + $0xca] sm:$0xff]  ;;  %v6645_v43 = vld [vmem:[%s26721_s5 + $0x20] sm:$0xff] }
 0x342   : > { %17832 = vmatprep.mubr.msk.f32.mxu1 %vm389_vm2, %v22787_v52  ;;  %18082 = vmatprep.mubr.msk.f32.mxu0 %vm389_vm2, %v5726_v38  ;;  %v5730_v52 = vld [vmem:[#allocation3 + $0xda] sm:$0xff] }
 0x343   : > { %19476 = vmatpush3.bf16.msra.mxu0 %v19473_v39  ;;  %v19497_v39 = vpack.c.bf16 %v6642_v37, %v6641_v36 }
 0x344   : > { %19478 = vmatprep.subr.bf16.mxu0 %v19477_v15 }
 0x345   : > { %17833 = vmatmul.mubr.msk.f32.gmra.mrb[10].mxu1 %vm389_vm2, %v22795_v20  ;;  %18083 = vmatmul.mubr.msk.f32.gmra.mrb[6].mxu0 %vm389_vm2, %v5727_v7  ;;  %v5731_v20 = vld [vmem:[#allocation3 + $0xe2] sm:$0xff] }
 0x346   : > { %17835 = vmatprep.mubr.msk.f32.mxu1 %vm389_vm2, %v22799_v57  ;;  %18085 = vmatprep.mubr.msk.f32.mxu0 %vm389_vm2, %v5728_v27  ;;  %v5732_v57 = vld [vmem:[#allocation3 + $0xf2] sm:$0xff] }
 0x347   : > { %19480 = vmatpush3.bf16.msra.mxu0 %v19477_v15  ;;  %v6646_v15 = vld [vmem:[%s26721_s5 + $0x28] sm:$0xff] }
 0x348   : > { %v19505_v38 = vpack.c.bf16 %v6646_v15, %v6645_v43 }
 0x349   : > { %17836 = vmatmul.mubr.msk.f32.gmra.mrb[12].mxu1 %vm389_vm2, %v22815_v5  ;;  %18086 = vmatmul.mubr.msk.f32.gmra.mrb[8].mxu0 %vm389_vm2, %v5729_v4  ;;  %v5733_v5 = vld [vmem:[#allocation3 + $0xfa] sm:$0xff] }
 0x34a   : > { %17838 = vmatprep.mubr.msk.f32.mxu1 %vm389_vm2, %v22819_v61  ;;  %18088 = vmatprep.mubr.msk.f32.mxu0 %vm389_vm2, %v5730_v52  ;;  %v5734_v61 = vld [vmem:[#allocation3 + $0x10a] sm:$0xff] }
 0x34d   : > { %17839 = vmatmul.mubr.msk.f32.gmra.mrb[14].mxu1 %vm389_vm2, %v22831_v25  ;;  %18089 = vmatmul.mubr.msk.f32.gmra.mrb[10].mxu0 %vm389_vm2, %v5731_v20  ;;  %v5735_v25 = vld [vmem:[#allocation3 + $0x112] sm:$0xff] }
 0x34e   : > { %17841 = vmatprep.mubr.msk.f32.mxu1 %vm389_vm2, %v22843_v55  ;;  %18091 = vmatprep.mubr.msk.f32.mxu0 %vm389_vm2, %v5732_v57  ;;  %v5736_v55 = vld [vmem:[#allocation3 + $0x122] sm:$0xff]  ;;  %v6647_v20 = vld [vmem:[%s26721_s5 + $0x30] sm:$0xff] }
 0x351   : > { %17842 = vmatmul.mubr.msk.f32.gmra.mrb[16].mxu1 %vm389_vm2, %v22855_v44  ;;  %18092 = vmatmul.mubr.msk.f32.gmra.mrb[12].mxu0 %vm389_vm2, %v5733_v5  ;;  %v5737_v44 = vld [vmem:[#allocation3 + $0x12a] sm:$0xff] }
 0x352   : > { %17844 = vmatprep.mubr.msk.f32.mxu1 %vm389_vm2, %v22863_v59  ;;  %18094 = vmatprep.mubr.msk.f32.mxu0 %vm389_vm2, %v5734_v61  ;;  %v5738_v59 = vld [vmem:[#allocation3 + $0x13a] sm:$0xff] }
 0x355   : > { %17845 = vmatmul.mubr.msk.f32.gmra.mrb[18].mxu1 %vm389_vm2, %v22871_v54  ;;  %18095 = vmatmul.mubr.msk.f32.gmra.mrb[14].mxu0 %vm389_vm2, %v5735_v25  ;;  %v5739_v54 = vld [vmem:[#allocation3 + $0x142] sm:$0xff] }
 0x356   : > { %17847 = vmatprep.mubr.msk.f32.mxu1 %vm389_vm2, %v22875_v56  ;;  %18097 = vmatprep.mubr.msk.f32.mxu0 %vm389_vm2, %v5736_v55  ;;  %v5740_v56 = vld [vmem:[#allocation3 + $0x152] sm:$0xff] }
 0x359   : > { %17848 = vmatmul.mubr.msk.f32.gmra.mrb[20].mxu1 %vm389_vm2, %v22885_v47  ;;  %18098 = vmatmul.mubr.msk.f32.gmra.mrb[16].mxu0 %vm389_vm2, %v5737_v44  ;;  %v5741_v47 = vld [vmem:[#allocation3 + $0x15a] sm:$0xff] }
 0x35a   : > { %17850 = vmatprep.mubr.msk.f32.mxu1 %vm389_vm2, %v22889_v26  ;;  %18100 = vmatprep.mubr.msk.f32.mxu0 %vm389_vm2, %v5738_v59  ;;  %v26931_v26 = vld [vmem:[#allocation21_spill] sm:$0xff] }
 0x35d   : > { %17851 = vmatmul.mubr.msk.f32.gmra.mrb[22].mxu1 %vm389_vm2, %v22897_v62  ;;  %18101 = vmatmul.mubr.msk.f32.gmra.mrb[18].mxu0 %vm389_vm2, %v5739_v54  ;;  %v26932_v62 = vld [vmem:[#allocation24_spill] sm:$0xff] }
 0x35e   : > { %17853 = vmatprep.mubr.msk.f32.mxu1 %vm389_vm2, %v22901_v33  ;;  %18103 = vmatprep.mubr.msk.f32.mxu0 %vm389_vm2, %v5740_v56  ;;  %v5744_v33 = vld [vmem:[#allocation3 + $0x182] sm:$0xff] }
 0x361   : > { %17854 = vmatmul.mubr.msk.f32.gmra.mrb[24].mxu1 %vm389_vm2, %v22907_v12  ;;  %18104 = vmatmul.mubr.msk.f32.gmra.mrb[20].mxu0 %vm389_vm2, %v5741_v47  ;;  %v5745_v12 = vld [vmem:[#allocation3 + $0x18a] sm:$0xff] }
 0x362   : > { %17856 = vmatprep.mubr.msk.f32.mxu1 %vm389_vm2, %v22911_v8  ;;  %18106 = vmatprep.mubr.msk.f32.mxu0 %vm389_vm2, %v26931_v26  ;;  %v5746_v8 = vld [vmem:[#allocation3 + $0x19a] sm:$0xff] }
 0x365   : > { %17857 = vmatmul.mubr.msk.f32.gmra.mrb[26].mxu1 %vm389_vm2, %v22923_v35  ;;  %18107 = vmatmul.mubr.msk.f32.gmra.mrb[22].mxu0 %vm389_vm2, %v26932_v62  ;;  %v5748_v35 = vld [vmem:[#allocation3 + $0x1b2] sm:$0xff] }
 0x366   : > { %17859 = vmatprep.mubr.msk.f32.mxu1 %vm389_vm2, %v23113_v42  ;;  %18109 = vmatprep.mubr.msk.f32.mxu0 %vm389_vm2, %v5744_v33  ;;  %v5749_v42 = vld [vmem:[#allocation3 + $0x1ba] sm:$0xff] }
 0x369   : > { %17860 = vmatmul.mubr.msk.f32.gmra.mrb[28].mxu1 %vm389_vm2, %v23119_v32  ;;  %18110 = vmatmul.mubr.msk.f32.gmra.mrb[24].mxu0 %vm389_vm2, %v5745_v12  ;;  %v5750_v32 = vld [vmem:[#allocation3 + $0x1ca] sm:$0xff] }
 0x36a   : > { %17862 = vmatprep.mubr.msk.f32.mxu1 %vm389_vm2, %v23125_v60  ;;  %18112 = vmatprep.mubr.msk.f32.mxu0 %vm389_vm2, %v5746_v8  ;;  %v5751_v60 = vld [vmem:[#allocation3 + $0x1d2] sm:$0xff] }
 0x36d   : > { %17863 = vmatmul.mubr.msk.f32.gmra.mrb[30].mxu1 %vm389_vm2, %v23131_v10  ;;  %18113 = vmatmul.mubr.msk.f32.gmra.mrb[26].mxu0 %vm389_vm2, %v5747_v63  ;;  %v6141_v10 = vld [vmem:[#allocation3 + $0x1b4] sm:$0xff] }
 0x36e   : > { %17905 = vmatprep.mubr.msk.f32.mxu1 %vm389_vm2, %v5732_v57  ;;  %18115 = vmatprep.mubr.msk.f32.mxu0 %vm389_vm2, %v5748_v35  ;;  %v6648_v57 = vld [vmem:[%s26721_s5 + $0x38] sm:$0xff] }
 0x371   : > { %17906 = vmatmul.mubr.msk.f32.vlgmr.msra.gmra.mrb[16].mxu1 %vm389_vm2, %v5733_v5  ;;  %18116 = vmatmul.mubr.msk.f32.gmra.mrb[28].mxu0 %vm389_vm2, %v5749_v42 }
 0x372   : > { %17908 = vmatprep.mubr.msk.f32.mxu1 %vm389_vm2, %v5734_v61  ;;  %18118 = vmatprep.mubr.msk.f32.mxu0 %vm389_vm2, %v5750_v32  ;;  %v19509_v61 = vpack.c.bf16 %v6648_v57, %v6647_v20 }
 0x375   : > { %17909 = vmatmul.mubr.msk.f32.gmra.mrb[18].mxu1 %vm389_vm2, %v5735_v25  ;;  %18119 = vmatmul.mubr.msk.f32.gmra.mrb[30].mxu0 %vm389_vm2, %v5751_v60 }
 0x376   : > { %17911 = vmatprep.mubr.msk.f32.mxu1 %vm389_vm2, %v5736_v55  ;;  %18137 = vmatprep.mubr.msk.f32.mxu0 %vm389_vm2, %v22985_v46  ;;  %v4566_v46 = vld [vmem:[#allocation3 + $0x16a] sm:$0xff] }
 0x379   : > { %17912 = vmatmul.mubr.msk.f32.gmra.mrb[20].mxu1 %vm389_vm2, %v5737_v44  ;;  %18138 = vmatmul.mubr.msk.f32.vlgmr.msra.gmra.mrb[0].mxu0 %vm389_vm2, %v22997_v3  ;;  %v4567_v3 = vld [vmem:[#allocation3 + $0x172] sm:$0xff] }
 0x37a   : > { %17914 = vmatprep.mubr.msk.f32.mxu1 %vm389_vm2, %v5738_v59  ;;  %18140 = vmatprep.mubr.msk.f32.mxu0 %vm389_vm2, %v23003_v58  ;;  %v6129_v58 = vld [vmem:[#allocation3 + $0x124] sm:$0xff] }
 0x37b   : > { %v7363_v59 = vld [vmem:[%s26721_s5 + $0x80] sm:$0xff] }
 0x37d   : > { %17915 = vmatmul.mubr.msk.f32.gmra.mrb[22].mxu1 %vm389_vm2, %v5739_v54  ;;  %18141 = vmatmul.mubr.msk.f32.gmra.mrb[2].mxu0 %vm389_vm2, %v23016_v11  ;;  %v6130_v11 = vld [vmem:[#allocation3 + $0x12c] sm:$0xff] }
 0x37e   : > { %17917 = vmatprep.mubr.msk.f32.mxu1 %vm389_vm2, %v5740_v56  ;;  %18143 = vmatprep.mubr.msk.f32.mxu0 %vm389_vm2, %v23024_v48  ;;  %v6131_v48 = vld [vmem:[#allocation3 + $0x13c] sm:$0xff]  ;;  %v7364_v54 = vld [vmem:[%s26721_s5 + $0x88] sm:$0xff] }
 0x37f   : > { %v23391_v56 = vpack.c.bf16 %v7364_v54, %v7363_v59 }
 0x381   : > { %17918 = vmatmul.mubr.msk.f32.gmra.mrb[24].mxu1 %vm389_vm2, %v5741_v47  ;;  %18144 = vmatmul.mubr.msk.f32.gmra.mrb[4].mxu0 %vm389_vm2, %v23030_v19  ;;  %v6132_v19 = vld [vmem:[#allocation3 + $0x144] sm:$0xff] }
 0x382   : > { %17920 = vmatprep.mubr.msk.f32.mxu1 %vm389_vm2, %v4566_v46  ;;  %18146 = vmatprep.mubr.msk.f32.mxu0 %vm389_vm2, %v23037_v34  ;;  %v6133_v34 = vld [vmem:[#allocation3 + $0x154] sm:$0xff] }
 0x385   : > { %17921 = vmatmul.mubr.msk.f32.gmra.mrb[26].mxu1 %vm389_vm2, %v4567_v3  ;;  %18147 = vmatmul.mubr.msk.f32.gmra.mrb[6].mxu0 %vm389_vm2, %v23043_v0  ;;  %v6134_v0 = vld [vmem:[#allocation3 + $0x15c] sm:$0xff] }
 0x386   : > { %17923 = vmatprep.mubr.msk.f32.mxu1 %vm389_vm2, %v5744_v33  ;;  %18149 = vmatprep.mubr.msk.f32.mxu0 %vm389_vm2, %v23049_v9  ;;  %v6135_v9 = vld [vmem:[#allocation3 + $0x16c] sm:$0xff] }
 0x389   : > { %17924 = vmatmul.mubr.msk.f32.gmra.mrb[28].mxu1 %vm389_vm2, %v5745_v12  ;;  %18150 = vmatmul.mubr.msk.f32.gmra.mrb[8].mxu0 %vm389_vm2, %v23055_v16  ;;  %v6681_v16 = vld [vmem:[%s26721_s5 + $0x40] sm:$0xff] }
 0x38a   : > { %17926 = vmatprep.mubr.msk.f32.mxu1 %vm389_vm2, %v5746_v8  ;;  %18152 = vmatprep.mubr.msk.f32.mxu0 %vm389_vm2, %v23061_v6  ;;  %v6682_v6 = vld [vmem:[%s26721_s5 + $0x48] sm:$0xff] }
 0x38d   : > { %17927 = vmatmul.mubr.msk.f32.gmra.mrb[30].mxu1 %vm389_vm2, %v5747_v63  ;;  %18153 = vmatmul.mubr.msk.f32.gmra.mrb[10].mxu0 %vm389_vm2, %v23067_v45  ;;  %v6683_v45 = vld [vmem:[%s26721_s5 + $0x50] sm:$0xff] }
 0x38e   : > { %18155 = vmatprep.mubr.msk.f32.mxu0 %vm389_vm2, %v23073_v31  ;;  %v19481_v31 = vpack.c.bf16 %v6682_v6, %v6681_v16  ;;  %18201 = vmatprep.mubr.msk.f32.mxu1 %vm389_vm2, %v6649_v1 }
 0x390   : > { %19482 = vmatprep.subr.bf16.mxu1 %v19481_v31 }
 0x391   : > { %18156 = vmatmul.mubr.msk.f32.gmra.mrb[12].mxu0 %vm389_vm2, %v23079_v18  ;;  %v6684_v18 = vld [vmem:[%s26721_s5 + $0x58] sm:$0xff]  ;;  %19484 = vmatpush3.bf16.msra.mxu1 %v19481_v31 }
 0x392   : > { %18158 = vmatprep.mubr.msk.f32.mxu0 %vm389_vm2, %v23085_v50  ;;  %v19485_v50 = vpack.c.bf16 %v6684_v18, %v6683_v45 }
 0x394   : > { %19486 = vmatprep.subr.bf16.mxu1 %v19485_v50 }
 0x395   : > { %18159 = vmatmul.mubr.msk.f32.gmra.mrb[14].mxu0 %vm389_vm2, %v23091_v41  ;;  %v6136_v41 = vld [vmem:[#allocation3 + $0x174] sm:$0xff]  ;;  %19488 = vmatpush3.bf16.msra.mxu1 %v19485_v50 }
 0x396   : > { %18161 = vmatprep.mubr.msk.f32.mxu0 %vm389_vm2, %v6129_v58 }
 0x399   : > { %18162 = vmatmul.mubr.msk.f32.gmra.mrb[16].mxu0 %vm389_vm2, %v6130_v11  ;;  %v23423_v11 = vld [vmem:[%s26720_s4] ss:$0 sm:$0xff] }
 0x39a   : > { %18164 = vmatprep.mubr.msk.f32.mxu0 %vm389_vm2, %v6131_v48 }
 0x39d   : > { %18165 = vmatmul.mubr.msk.f32.gmra.mrb[18].mxu0 %vm389_vm2, %v6132_v19 }
 0x39e   : > { %18167 = vmatprep.mubr.msk.f32.mxu0 %vm389_vm2, %v6133_v34 }
 0x3a1   : > { %18168 = vmatmul.mubr.msk.f32.gmra.mrb[20].mxu0 %vm389_vm2, %v6134_v0 }
 0x3a2   : > { %18170 = vmatprep.mubr.msk.f32.mxu0 %vm389_vm2, %v6135_v9 }
 0x3a5   : > { %18171 = vmatmul.mubr.msk.f32.gmra.mrb[22].mxu0 %vm389_vm2, %v6136_v41 }
 0x3a6   : > { %18173 = vmatprep.mubr.msk.f32.mxu0 %vm389_vm2, %v22915_v40  ;;  %v6144_v40 = vld [vmem:[#allocation3 + $0x1d4] sm:$0xff] }
 0x3a9   : > { %18174 = vmatmul.mubr.msk.f32.gmra.mrb[24].mxu0 %vm389_vm2, %v22917_v49  ;;  %v6685_v49 = vld [vmem:[%s26721_s5 + $0x60] sm:$0xff] }
 0x3aa   : > { %18176 = vmatprep.mubr.msk.f32.mxu0 %vm389_vm2, %v22945_v51  ;;  %v6686_v51 = vld [vmem:[%s26721_s5 + $0x68] sm:$0xff] }
 0x3ad   : > { %18177 = vmatmul.mubr.msk.f32.gmra.mrb[26].mxu0 %vm389_vm2, %v22947_v22  ;;  %v19489_v22 = vpack.c.bf16 %v6686_v51, %v6685_v49 }
 0x3ae   : > { %18179 = vmatprep.mubr.msk.f32.mxu0 %vm389_vm2, %v6141_v10 }
 0x3af   : > { %19490 = vmatprep.subr.bf16.mxu1 %v19489_v22 }
 0x3b0   : > { %19492 = vmatpush3.bf16.msra.mxu1 %v19489_v22 }
 0x3b1   : > { %18180 = vmatmul.mubr.msk.f32.gmra.mrb[28].mxu0 %vm389_vm2, %v6142_v21  ;;  %19494 = vmatprep.subr.bf16.mxu1 %v19493_v29 }
 0x3b2   : > { %18182 = vmatprep.mubr.msk.f32.mxu0 %vm389_vm2, %v6143_v17 }
 0x3b4   : > { %19496 = vmatpush3.bf16.msra.mxu1 %v19493_v29 }
 0x3b5   : > { %18183 = vmatmul.mubr.msk.f32.gmra.mrb[30].mxu0 %vm389_vm2, %v6144_v40  ;;  %19498 = vmatprep.subr.bf16.mxu1 %v19497_v39 }
 0x3b7   : > { %18202 = vmatmul.mubr.msk.f32.vlgmr.msra.gmra.mrb[32].mxu1 %vm389_vm2, %v6650_v14 }
 0x3b8   : > { %18204 = vmatprep.mubr.msk.f32.mxu1 %vm389_vm2, %v6651_v30  ;;  %19500 = vmatpush3.bf16.msra.mxu1 %v19497_v39 }
 0x3b9   : > { %19502 = vmatprep.subr.bf16.mxu1 %v19501_v24 }
 0x3bb   : > { %18205 = vmatmul.mubr.msk.f32.gmra.mrb[34].mxu1 %vm389_vm2, %v6652_v2 }
 0x3bc   : > { %19504 = vmatpush3.bf16.msra.mxu1 %v19501_v24 }
 0x3bd   : > { %19506 = vmatprep.subr.bf16.mxu1 %v19505_v38 }
 0x3c0   : > { %19508 = vmatpush3.bf16.msra.mxu1 %v19505_v38 }
 0x3c1   : > { %19510 = vmatprep.subr.bf16.mxu1 %v19509_v61 }
 0x3c4   : > { %19512 = vmatpush3.bf16.msra.mxu1 %v19509_v61 }
 0x3c5   : > { %19514 = vmatprep.subr.bf16.mxu1 %v23391_v56 }
 0x404   : > { %v17819_v7 = vpop.f32.mrb[0].mxu1 }
 0x405   : > { %v4349_v27 = vpop.f32.mrb[1].mxu1 }
 0x408   : > { %v17822_v4 = vpop.f32.mrb[2].mxu1 }
 0x409   : > { %v4359_v52 = vpop.f32.mrb[3].mxu1 }
 0x40c   : > { %v17825_v5 = vpop.f32.mrb[4].mxu1 }
 0x40d   : > { %v4369_v25 = vpop.f32.mrb[5].mxu1 }
 0x410   : > { %v17828_v55 = vpop.f32.mrb[6].mxu1 }
 0x411   : > { %v4379_v44 = vpop.f32.mrb[7].mxu1 }
 0x414   : > { %v23393_v47 = vpop.f32.mrb[8].mxu1 }
 0x415   : > { %v23395_v26 = vpop.f32.mrb[9].mxu1 }
 0x418   : > { %v23398_v62 = vpop.f32.mrb[10].mxu1 }
 0x419   : > { %v23400_v33 = vpop.f32.mrb[11].mxu1 }
 0x41c   : > { %v23402_v12 = vpop.f32.mrb[12].mxu1 }
 0x41d   : > { %v23404_v8 = vpop.f32.mrb[13].mxu1 }
 0x420   : > { %v23406_v35 = vpop.f32.mrb[14].mxu1 }
 0x421   : > { %v23408_v63 = vpop.f32.mrb[15].mxu1 }
 0x444   : > { %v23410_v42 = vpop.f32.mrb[16].mxu1 }
 0x445   : > { %v23412_v32 = vpop.f32.mrb[17].mxu1 }
 0x448   : > { %v23414_v60 = vpop.f32.mrb[18].mxu1 }
 0x449   : > { %v23416_v46 = vpop.f32.mrb[19].mxu1 }
 0x44c   : > { %v23418_v3 = vpop.f32.mrb[20].mxu1  ;;  %v18139_v58 = vpop.f32.mrb[0].mxu0 }
 0x44d   : > { %v19777_v48 = vadd.f32 %v18139_v58, %v17819_v7  ;;  %v23425_v19 = vpop.f32.mrb[21].mxu1  ;;  %v6315_v34 = vpop.f32.mrb[1].mxu0 }
 0x44e   : > { %v19778_v0 = vadd.f32 %v6315_v34, %v4349_v27 }
 0x44f   : > { %v6514_v9 = vadd.f32 %v19777_v48, %v23423_v11 }
 0x450   : > { %v6513_v16 = vadd.f32 %v19778_v0, %v23423_v11  ;;  %v23429_v6 = vpop.f32.mrb[22].mxu1  ;;  %v18142_v45 = vpop.f32.mrb[2].mxu0 }
 0x451   : > { %v6546_v31 = vmax.f32 %v6514_v9, 0.0  ;;  %v19779_v18 = vadd.f32 %v18142_v45, %v17822_v4  ;;  %v23431_v50 = vpop.f32.mrb[23].mxu1  ;;  %v6325_v41 = vpop.f32.mrb[3].mxu0 }
 0x452   : > { %v6545_v10 = vmax.f32 %v6513_v16, 0.0  ;;  %v19780_v21 = vadd.f32 %v6325_v41, %v4359_v52 }
 0x453   : > { %6578 = vst.msk [vmem:[#allocation4 + $0x3a] sm:$0xff] %vm389_vm2, %v6546_v31  ;;  %v6516_v17 = vadd.f32 %v19779_v18, %v23423_v11 }
 0x454   : > { %6577 = vst.msk [vmem:[#allocation4 + $0x32] sm:$0xff] %vm389_vm2, %v6545_v10  ;;  %v6515_v40 = vadd.f32 %v19780_v21, %v23423_v11  ;;  %v23437_v49 = vpop.f32.mrb[24].mxu1  ;;  %v18145_v51 = vpop.f32.mrb[4].mxu0 }
 0x455   : > { %v6548_v22 = vmax.f32 %v6516_v17, 0.0  ;;  %v19781_v28 = vadd.f32 %v18145_v51, %v17825_v5  ;;  %v23439_v23 = vpop.f32.mrb[25].mxu1  ;;  %v6335_v29 = vpop.f32.mrb[5].mxu0 }
 0x456   : > { %v6547_v1 = vmax.f32 %v6515_v40, 0.0  ;;  %v19782_v14 = vadd.f32 %v6335_v29, %v4369_v25 }
 0x457   : > { %6580 = vst.msk [vmem:[#allocation4 + $0x52] sm:$0xff] %vm389_vm2, %v6548_v22  ;;  %v6518_v36 = vadd.f32 %v19781_v28, %v23423_v11 }
 0x458   : > { %6579 = vst.msk [vmem:[#allocation4 + $0x4a] sm:$0xff] %vm389_vm2, %v6547_v1  ;;  %v6517_v37 = vadd.f32 %v19782_v14, %v23423_v11  ;;  %v23445_v30 = vpop.f32.mrb[26].mxu1  ;;  %v18148_v39 = vpop.f32.mrb[6].mxu0 }
 0x459   : > { %v6550_v2 = vmax.f32 %v6518_v36, 0.0  ;;  %v19783_v53 = vadd.f32 %v18148_v39, %v17828_v55  ;;  %v23447_v13 = vpop.f32.mrb[27].mxu1  ;;  %v6345_v24 = vpop.f32.mrb[7].mxu0 }
 0x45a   : > { %v6549_v43 = vmax.f32 %v6517_v37, 0.0  ;;  %v19784_v15 = vadd.f32 %v6345_v24, %v4379_v44  ;;  %v23459_v20 = vld [vmem:[#allocation4 + $0x3a] sm:$0xff] }
 0x45b   : > { %6582 = vst.msk [vmem:[#allocation4 + $0x6a] sm:$0xff] %vm389_vm2, %v6550_v2  ;;  %v6520_v38 = vadd.f32 %v19783_v53, %v23423_v11  ;;  %v23451_v7 = vld [vmem:[#allocation4 + $0x32] sm:$0xff] }
 0x45c   : > { %6581 = vst.msk [vmem:[#allocation4 + $0x62] sm:$0xff] %vm389_vm2, %v6549_v43  ;;  %v6519_v27 = vadd.f32 %v19784_v15, %v23423_v11  ;;  %v23455_v4 = vpop.f32.mrb[28].mxu1  ;;  %v18151_v52 = vpop.f32.mrb[8].mxu0  ;;  %18207 = vmatprep.mubr.msk.f32.mxu1 %vm389_vm2, %v23451_v7 }
 0x45d   : > { %v6552_v57 = vmax.f32 %v6520_v38, 0.0  ;;  %v19785_v5 = vadd.f32 %v18151_v52, %v23393_v47  ;;  %v23462_v61 = vpop.f32.mrb[29].mxu1  ;;  %v6355_v25 = vpop.f32.mrb[9].mxu0  ;;  %18208 = vmatmul.mubr.msk.f32.gmra.mrb[36].mxu1 %vm389_vm2, %v23459_v20 }
 0x45e   : > { %v6551_v55 = vmax.f32 %v6519_v27, 0.0  ;;  %v19786_v44 = vadd.f32 %v6355_v25, %v23395_v26  ;;  %v23477_v34 = vld [vmem:[#allocation4 + $0x52] sm:$0xff] }
 0x45f   : > { %6584 = vst.msk [vmem:[#allocation4 + $0x82] sm:$0xff] %vm389_vm2, %v6552_v57  ;;  %v6522_v59 = vadd.f32 %v19785_v5, %v23423_v11  ;;  %v23469_v54 = vld [vmem:[#allocation4 + $0x4a] sm:$0xff] }
 0x460   : > { %6583 = vst.msk [vmem:[#allocation4 + $0x7a] sm:$0xff] %vm389_vm2, %v6551_v55  ;;  %v6521_v58 = vadd.f32 %v19786_v44, %v23423_v11  ;;  %v23473_v47 = vpop.f32.mrb[30].mxu1  ;;  %v18154_v48 = vpop.f32.mrb[10].mxu0  ;;  %18210 = vmatprep.mubr.msk.f32.mxu1 %vm389_vm2, %v23469_v54 }
 0x461   : > { %v6554_v0 = vmax.f32 %v6522_v59, 0.0  ;;  %v19787_v26 = vadd.f32 %v18154_v48, %v23398_v62  ;;  %v23480_v9 = vpop.f32.mrb[31].mxu1  ;;  %v6365_v16 = vpop.f32.mrb[11].mxu0  ;;  %18211 = vmatmul.mubr.msk.f32.gmra.mrb[38].mxu1 %vm389_vm2, %v23477_v34 }
 0x462   : > { %v6553_v45 = vmax.f32 %v6521_v58, 0.0  ;;  %v19788_v31 = vadd.f32 %v6365_v16, %v23400_v33  ;;  %v23493_v21 = vld [vmem:[#allocation4 + $0x6a] sm:$0xff] }
 0x463   : > { %6586 = vst.msk [vmem:[#allocation4 + $0x9a] sm:$0xff] %vm389_vm2, %v6554_v0  ;;  %v6524_v18 = vadd.f32 %v19787_v26, %v23423_v11  ;;  %v23487_v41 = vld [vmem:[#allocation4 + $0x62] sm:$0xff] }
 0x464   : > { %6585 = vst.msk [vmem:[#allocation4 + $0x92] sm:$0xff] %vm389_vm2, %v6553_v45  ;;  %v6523_v10 = vadd.f32 %v19788_v31, %v23423_v11  ;;  %v18157_v62 = vpop.f32.mrb[12].mxu0  ;;  %18213 = vmatprep.mubr.msk.f32.mxu1 %vm389_vm2, %v23487_v41 }
 0x465   : > { %v6556_v17 = vmax.f32 %v6524_v18, 0.0  ;;  %v19789_v40 = vadd.f32 %v18157_v62, %v23402_v12  ;;  %v6375_v33 = vpop.f32.mrb[13].mxu0  ;;  %18214 = vmatmul.mubr.msk.f32.gmra.mrb[40].mxu1 %vm389_vm2, %v23493_v21 }
 0x466   : > { %v6555_v51 = vmax.f32 %v6523_v10, 0.0  ;;  %v19790_v22 = vadd.f32 %v6375_v33, %v23404_v8  ;;  %v23507_v12 = vld [vmem:[#allocation4 + $0x82] sm:$0xff] }
 0x467   : > { %6588 = vst.msk [vmem:[#allocation4 + $0xb2] sm:$0xff] %vm389_vm2, %v6556_v17  ;;  %v6526_v28 = vadd.f32 %v19789_v40, %v23423_v11  ;;  %v23501_v29 = vld [vmem:[#allocation4 + $0x7a] sm:$0xff] }
 0x468   : > { %6587 = vst.msk [vmem:[#allocation4 + $0xaa] sm:$0xff] %vm389_vm2, %v6555_v51  ;;  %v6525_v1 = vadd.f32 %v19790_v22, %v23423_v11  ;;  %v18160_v14 = vpop.f32.mrb[14].mxu0  ;;  %18216 = vmatprep.mubr.msk.f32.mxu1 %vm389_vm2, %v23501_v29 }
 0x469   : > { %v6558_v36 = vmax.f32 %v6526_v28, 0.0  ;;  %v19791_v37 = vadd.f32 %v18160_v14, %v23406_v35  ;;  %v6385_v8 = vpop.f32.mrb[15].mxu0  ;;  %18217 = vmatmul.mubr.msk.f32.gmra.mrb[42].mxu1 %vm389_vm2, %v23507_v12 }
 0x46a   : > { %v6557_v39 = vmax.f32 %v6525_v1, 0.0  ;;  %v19792_v2 = vadd.f32 %v6385_v8, %v23408_v63  ;;  %v23521_v35 = vld [vmem:[#allocation4 + $0x9a] sm:$0xff] }
 0x46b   : > { %6590 = vst.msk [vmem:[#allocation4 + $0xca] sm:$0xff] %vm389_vm2, %v6558_v36  ;;  %v6528_v53 = vadd.f32 %v19791_v37, %v23423_v11  ;;  %v23515_v24 = vld [vmem:[#allocation4 + $0x92] sm:$0xff] }
 0x46c   : > { %6589 = vst.msk [vmem:[#allocation4 + $0xc2] sm:$0xff] %vm389_vm2, %v6557_v39  ;;  %v6527_v43 = vadd.f32 %v19792_v2, %v23423_v11  ;;  %v18163_v15 = vpop.f32.mrb[16].mxu0  ;;  %18219 = vmatprep.mubr.msk.f32.mxu1 %vm389_vm2, %v23515_v24 }
 0x46d   : > { %v6560_v38 = vmax.f32 %v6528_v53, 0.0  ;;  %v19793_v27 = vadd.f32 %v18163_v15, %v23410_v42  ;;  %v6395_v63 = vpop.f32.mrb[17].mxu0  ;;  %18220 = vmatmul.mubr.msk.f32.gmra.mrb[44].mxu1 %vm389_vm2, %v23521_v35 }
 0x46e   : > { %v6559_v52 = vmax.f32 %v6527_v43, 0.0  ;;  %v19794_v57 = vadd.f32 %v6395_v63, %v23412_v32  ;;  %v23535_v42 = vld [vmem:[#allocation4 + $0xb2] sm:$0xff] }
 0x46f   : > { %6592 = vst.msk [vmem:[#allocation4 + $0xe2] sm:$0xff] %vm389_vm2, %v6560_v38  ;;  %v6530_v5 = vadd.f32 %v19793_v27, %v23423_v11  ;;  %v23529_v25 = vld [vmem:[#allocation4 + $0xaa] sm:$0xff] }
 0x470   : > { %6591 = vst.msk [vmem:[#allocation4 + $0xda] sm:$0xff] %vm389_vm2, %v6559_v52  ;;  %v6529_v55 = vadd.f32 %v19794_v57, %v23423_v11  ;;  %v18166_v44 = vpop.f32.mrb[18].mxu0  ;;  %18222 = vmatprep.mubr.msk.f32.mxu1 %vm389_vm2, %v23529_v25 }
 0x471   : > { %v6562_v59 = vmax.f32 %v6530_v5, 0.0  ;;  %v19795_v58 = vadd.f32 %v18166_v44, %v23414_v60  ;;  %v6405_v32 = vpop.f32.mrb[19].mxu0  ;;  %18223 = vmatmul.mubr.msk.f32.gmra.mrb[46].mxu1 %vm389_vm2, %v23535_v42 }
 0x472   : > { %v6561_v48 = vmax.f32 %v6529_v55, 0.0  ;;  %v19796_v0 = vadd.f32 %v6405_v32, %v23416_v46  ;;  %v23549_v60 = vld [vmem:[#allocation4 + $0xca] sm:$0xff] }
 0x473   : > { %6594 = vst.msk [vmem:[#allocation4 + $0xfa] sm:$0xff] %vm389_vm2, %v6562_v59  ;;  %v6532_v26 = vadd.f32 %v19795_v58, %v23423_v11  ;;  %v23543_v16 = vld [vmem:[#allocation4 + $0xc2] sm:$0xff] }
 0x474   : > { %6593 = vst.msk [vmem:[#allocation4 + $0xf2] sm:$0xff] %vm389_vm2, %v6561_v48  ;;  %v6531_v45 = vadd.f32 %v19796_v0, %v23423_v11  ;;  %v18169_v31 = vpop.f32.mrb[20].mxu0  ;;  %18225 = vmatprep.mubr.msk.f32.mxu1 %vm389_vm2, %v23543_v16 }
 0x475   : > { %v6564_v18 = vmax.f32 %v6532_v26, 0.0  ;;  %v19797_v10 = vadd.f32 %v18169_v31, %v23418_v3  ;;  %v6415_v46 = vpop.f32.mrb[21].mxu0  ;;  %18226 = vmatmul.mubr.msk.f32.gmra.mrb[48].mxu1 %vm389_vm2, %v23549_v60 }
 0x476   : > { %v6563_v62 = vmax.f32 %v6531_v45, 0.0  ;;  %v19798_v17 = vadd.f32 %v6415_v46, %v23425_v19  ;;  %v23563_v3 = vld [vmem:[#allocation4 + $0xe2] sm:$0xff] }
 0x477   : > { %6596 = vst.msk [vmem:[#allocation4 + $0x112] sm:$0xff] %vm389_vm2, %v6564_v18  ;;  %v6534_v40 = vadd.f32 %v19797_v10, %v23423_v11  ;;  %v23557_v33 = vld [vmem:[#allocation4 + $0xda] sm:$0xff] }
 0x478   : > { %6595 = vst.msk [vmem:[#allocation4 + $0x10a] sm:$0xff] %vm389_vm2, %v6563_v62  ;;  %v6533_v51 = vadd.f32 %v19798_v17, %v23423_v11  ;;  %v18172_v22 = vpop.f32.mrb[22].mxu0  ;;  %18228 = vmatprep.mubr.msk.f32.mxu1 %vm389_vm2, %v23557_v33 }
 0x479   : > { %v6566_v28 = vmax.f32 %v6534_v40, 0.0  ;;  %v19799_v1 = vadd.f32 %v18172_v22, %v23429_v6  ;;  %v6425_v19 = vpop.f32.mrb[23].mxu0  ;;  %18229 = vmatmul.mubr.msk.f32.gmra.mrb[50].mxu1 %vm389_vm2, %v23563_v3 }
 0x47a   : > { %v6565_v14 = vmax.f32 %v6533_v51, 0.0  ;;  %v19800_v36 = vadd.f32 %v6425_v19, %v23431_v50  ;;  %v23577_v6 = vld [vmem:[#allocation4 + $0xfa] sm:$0xff] }
 0x47b   : > { %6598 = vst.msk [vmem:[#allocation4 + $0x12a] sm:$0xff] %vm389_vm2, %v6566_v28  ;;  %v6536_v37 = vadd.f32 %v19799_v1, %v23423_v11  ;;  %v23571_v8 = vld [vmem:[#allocation4 + $0xf2] sm:$0xff] }
 0x47c   : > { %6597 = vst.msk [vmem:[#allocation4 + $0x122] sm:$0xff] %vm389_vm2, %v6565_v14  ;;  %v6535_v39 = vadd.f32 %v19800_v36, %v23423_v11  ;;  %v18175_v2 = vpop.f32.mrb[24].mxu0  ;;  %18231 = vmatprep.mubr.msk.f32.mxu1 %vm389_vm2, %v23571_v8 }
 0x47d   : > { %v6568_v53 = vmax.f32 %v6536_v37, 0.0  ;;  %v19801_v43 = vadd.f32 %v18175_v2, %v23437_v49  ;;  %v6435_v50 = vpop.f32.mrb[25].mxu0  ;;  %18232 = vmatmul.mubr.msk.f32.gmra.mrb[52].mxu1 %vm389_vm2, %v23577_v6  ;;  %v7365_v2 = vld [vmem:[%s26721_s5 + $0x90] sm:$0xff] }
 0x47e   : > { %v6567_v15 = vmax.f32 %v6535_v39, 0.0  ;;  %v19802_v38 = vadd.f32 %v6435_v50, %v23439_v23  ;;  %v23591_v49 = vld [vmem:[#allocation4 + $0x112] sm:$0xff]  ;;  %v6609_v39 = vld [vmem:[#allocation4] sm:$0xff] }
 0x47f   : > { %6600 = vst.msk [vmem:[#allocation4 + $0x142] sm:$0xff] %vm389_vm2, %v6568_v53  ;;  %v6538_v27 = vadd.f32 %v19801_v43, %v23423_v11  ;;  %v23585_v63 = vld [vmem:[#allocation4 + $0x10a] sm:$0xff]  ;;  %v7366_v53 = vld [vmem:[%s26721_s5 + $0x98] sm:$0xff] }
 0x480   : > { %6599 = vst.msk [vmem:[#allocation4 + $0x13a] sm:$0xff] %vm389_vm2, %v6567_v15  ;;  %v6537_v52 = vadd.f32 %v19802_v38, %v23423_v11  ;;  %v18178_v57 = vpop.f32.mrb[26].mxu0  ;;  %18234 = vmatprep.mubr.msk.f32.mxu1 %vm389_vm2, %v23585_v63  ;;  %v6610_v43 = vld [vmem:[#allocation4 + $0x8] sm:$0xff]  ;;  %v6611_v50 = vld [vmem:[#allocation4 + $0x18] sm:$0xff]  ;;  %v19517_v15 = vpack.c.bf16 %v7366_v53, %v7365_v2  ;;  %v7367_v38 = vld [vmem:[%s26721_s5 + $0xa0] sm:$0xff] }
 0x481   : > { %v6570_v5 = vmax.f32 %v6538_v27, 0.0  ;;  %v19803_v55 = vadd.f32 %v18178_v57, %v23445_v30  ;;  %v6445_v23 = vpop.f32.mrb[27].mxu0  ;;  %18235 = vmatmul.mubr.msk.f32.gmra.mrb[54].mxu1 %vm389_vm2, %v23591_v49  ;;  %v7368_v27 = vld [vmem:[%s26721_s5 + $0xa8] sm:$0xff] }
 0x482   : > { %v6569_v44 = vmax.f32 %v6537_v52, 0.0  ;;  %v19804_v59 = vadd.f32 %v6445_v23, %v23447_v13  ;;  %v23605_v30 = vld [vmem:[#allocation4 + $0x12a] sm:$0xff]  ;;  %v6612_v52 = vld [vmem:[#allocation4 + $0x20] sm:$0xff]  ;;  %v19521_v57 = vpack.c.bf16 %v7368_v27, %v7367_v38 }
 0x483   : > { %6602 = vst.msk [vmem:[#allocation4 + $0x15a] sm:$0xff] %vm389_vm2, %v6570_v5  ;;  %v6540_v58 = vadd.f32 %v19803_v55, %v23423_v11  ;;  %v23599_v32 = vld [vmem:[#allocation4 + $0x122] sm:$0xff]  ;;  %v7369_v5 = vld [vmem:[%s26721_s5 + $0xb0] sm:$0xff]  ;;  %v7370_v55 = vld [vmem:[%s26721_s5 + $0xb8] sm:$0xff] }
 0x484   : > { %6601 = vst.msk [vmem:[#allocation4 + $0x152] sm:$0xff] %vm389_vm2, %v6569_v44  ;;  %v6539_v48 = vadd.f32 %v19804_v59, %v23423_v11  ;;  %v18181_v0 = vpop.f32.mrb[28].mxu0  ;;  %18237 = vmatprep.mubr.msk.f32.mxu1 %vm389_vm2, %v23599_v32  ;;  %v23670_v23 = vld [vmem:[#allocation4 + $0x30] sm:$0xff]  ;;  %v23674_v44 = vld [vmem:[#allocation4 + $0x38] sm:$0xff]  ;;  %v7756_v59 = vld [vmem:[%s26721_s5 + $0xc0] sm:$0xff] }
 0x485   : > { %v6572_v26 = vmax.f32 %v6540_v58, 0.0  ;;  %v19805_v45 = vadd.f32 %v18181_v0, %v23455_v4  ;;  %v6455_v13 = vpop.f32.mrb[29].mxu0  ;;  %18238 = vmatmul.mubr.msk.f32.gmra.mrb[56].mxu1 %vm389_vm2, %v23605_v30  ;;  %v7757_v58 = vld [vmem:[%s26721_s5 + $0xc8] sm:$0xff] }
 0x486   : > { %v6571_v31 = vmax.f32 %v6539_v48, 0.0  ;;  %v19806_v18 = vadd.f32 %v6455_v13, %v23462_v61  ;;  %v23619_v4 = vld [vmem:[#allocation4 + $0x142] sm:$0xff]  ;;  %v23688_v0 = vpack.c.bf16 %v7757_v58, %v7756_v59 }
 0x487   : > { %6604 = vst.msk [vmem:[#allocation4 + $0x172] sm:$0xff] %vm389_vm2, %v6572_v26  ;;  %v6542_v10 = vadd.f32 %v19805_v45, %v23423_v11  ;;  %v23613_v46 = vld [vmem:[#allocation4 + $0x13a] sm:$0xff]  ;;  %v23684_v48 = vld [vmem:[#allocation4 + $0x48] sm:$0xff]  ;;  %v23690_v26 = vld [vmem:[#allocation4 + $0x50] sm:$0xff] }
 0x488   : > { %6603 = vst.msk [vmem:[#allocation4 + $0x16a] sm:$0xff] %vm389_vm2, %v6571_v31  ;;  %v6541_v62 = vadd.f32 %v19806_v18, %v23423_v11  ;;  %v18184_v17 = vpop.f32.mrb[30].mxu0  ;;  %18240 = vmatprep.mubr.msk.f32.mxu1 %vm389_vm2, %v23613_v46  ;;  %v23694_v45 = vld [vmem:[#allocation4 + $0x60] sm:$0xff]  ;;  %v23699_v13 = vld [vmem:[#allocation4 + $0x68] sm:$0xff]  ;;  %v23703_v31 = vld [vmem:[#allocation4 + $0x78] sm:$0xff] }
 0x489   : > { %v6574_v40 = vmax.f32 %v6542_v10, 0.0  ;;  %v19807_v51 = vadd.f32 %v18184_v17, %v23473_v47  ;;  %v6465_v61 = vpop.f32.mrb[31].mxu0  ;;  %18241 = vmatmul.mubr.msk.f32.gmra.mrb[58].mxu1 %vm389_vm2, %v23619_v4  ;;  %v23707_v18 = vld [vmem:[#allocation4 + $0x80] sm:$0xff]  ;;  %v23711_v10 = vld [vmem:[#allocation4 + $0x90] sm:$0xff]  ;;  %v23719_v17 = vld [vmem:[#allocation4 + $0xa8] sm:$0xff] }
 0x48a   : > { %v6573_v22 = vmax.f32 %v6541_v62, 0.0  ;;  %v19808_v28 = vadd.f32 %v6465_v61, %v23480_v9  ;;  %v23633_v47 = vld [vmem:[#allocation4 + $0x15a] sm:$0xff]  ;;  %v23731_v61 = vld [vmem:[#allocation4 + $0xc8] sm:$0xff] }
 0x48b   : > { %6606 = vst.msk [vmem:[#allocation4 + $0x18a] sm:$0xff] %vm389_vm2, %v6574_v40  ;;  %v6544_v1 = vadd.f32 %v19807_v51, %v23423_v11  ;;  %v23627_v19 = vld [vmem:[#allocation4 + $0x152] sm:$0xff]  ;;  %26933 = vst [vmem:[#allocation14_spill] sm:$0xff] %v23633_v47  ;;  %v23727_v51 = vld [vmem:[#allocation4 + $0xc0] sm:$0xff] }
 0x48c   : > { %6605 = vst.msk [vmem:[#allocation4 + $0x182] sm:$0xff] %vm389_vm2, %v6573_v22  ;;  %v6543_v14 = vadd.f32 %v19808_v28, %v23423_v11  ;;  %18243 = vmatprep.mubr.msk.f32.mxu1 %vm389_vm2, %v23627_v19  ;;  %v23715_v62 = vld [vmem:[#allocation4 + $0x98] sm:$0xff]  ;;  %v23723_v40 = vld [vmem:[#allocation4 + $0xb0] sm:$0xff]  ;;  %v23739_v28 = vld [vmem:[#allocation4 + $0xe0] sm:$0xff] }
 0x48d   : > { %v6576_v36 = vmax.f32 %v6544_v1, 0.0  ;;  %18244 = vmatmul.mubr.msk.f32.gmra.mrb[60].mxu1 %vm389_vm2, %v23633_v47  ;;  %v23735_v22 = vld [vmem:[#allocation4 + $0xd8] sm:$0xff]  ;;  %v23743_v1 = vld [vmem:[#allocation4 + $0xf0] sm:$0xff]  ;;  %v23763_v2 = vld [vmem:[#allocation4 + $0x128] sm:$0xff] }
 0x48e   : > { %v6575_v9 = vmax.f32 %v6543_v14, 0.0  ;;  %v23643_v11 = vld [vmem:[#allocation4 + $0x172] sm:$0xff]  ;;  %v7331_v27 = vld [vmem:[#allocation4 + $0x4] sm:$0xff] }
 0x48f   : > { %6608 = vst.msk [vmem:[#allocation4 + $0x1a2] sm:$0xff] %vm389_vm2, %v6576_v36  ;;  %v23638_v37 = vld [vmem:[#allocation4 + $0x16a] sm:$0xff]  ;;  %26935 = vst [vmem:[#allocation12_spill] sm:$0xff] %v23643_v11  ;;  %v23747_v14 = vld [vmem:[#allocation4 + $0xf8] sm:$0xff] }
 0x490   : > { %26934 = vst [vmem:[#allocation18_spill] sm:$0xff] %v23638_v37  ;;  %6607 = vst.msk [vmem:[#allocation4 + $0x19a] sm:$0xff] %vm389_vm2, %v6575_v9  ;;  %18246 = vmatprep.mubr.msk.f32.mxu1 %vm389_vm2, %v23638_v37  ;;  %v23751_v36 = vld [vmem:[#allocation4 + $0x108] sm:$0xff]  ;;  %v23755_v9 = vld [vmem:[#allocation4 + $0x110] sm:$0xff] }
 0x491   : > { %18247 = vmatmul.mubr.msk.f32.gmra.mrb[62].mxu1 %vm389_vm2, %v23643_v11  ;;  %v23767_v53 = vld [vmem:[#allocation4 + $0x138] sm:$0xff]  ;;  %v23783_v38 = vld [vmem:[#allocation4 + $0x168] sm:$0xff]  ;;  %v7760_v58 = vld [vmem:[%s26721_s5 + $0xe0] sm:$0xff] }
 0x492   : > { %18265 = vmatprep.mubr.msk.f32.mxu1 %vm389_vm2, %v6609_v39  ;;  %v23759_v39 = vld [vmem:[#allocation4 + $0x120] sm:$0xff]  ;;  %v7761_v11 = vld [vmem:[%s26721_s5 + $0xe8] sm:$0xff]  ;;  %v23814_v47 = vld [vmem:[#allocation4 + $0x34] sm:$0xff] }
 0x493   : > { %v7334_v37 = vld [vmem:[#allocation4 + $0x24] sm:$0xff] }
 0x495   : > { %18266 = vmatmul.mubr.msk.f32.vlgmr.msra.gmra.mrb[32].mxu1 %vm389_vm2, %v6610_v43  ;;  %v23771_v43 = vld [vmem:[#allocation4 + $0x140] sm:$0xff] }
 0x496   : > { %19516 = vmatpush3.bf16.msra.mxu1 %v23391_v56  ;;  %18268 = vmatprep.mubr.msk.f32.mxu1 %vm389_vm2, %v6611_v50  ;;  %v19525_v56 = vpack.c.bf16 %v7370_v55, %v7369_v5  ;;  %v23775_v50 = vld [vmem:[#allocation4 + $0x150] sm:$0xff]  ;;  %v7759_v5 = vld [vmem:[%s26721_s5 + $0xd8] sm:$0xff] }
 0x497   : > { %19518 = vmatprep.subr.bf16.mxu1 %v19517_v15  ;;  %v7332_v55 = vld [vmem:[#allocation4 + $0xc] sm:$0xff] }
 0x499   : > { %18269 = vmatmul.mubr.msk.f32.gmra.mrb[34].mxu1 %vm389_vm2, %v6612_v52  ;;  %v23787_v52 = vld [vmem:[#allocation4 + $0x170] sm:$0xff] }
 0x49a   : > { %18271 = vmatprep.mubr.msk.f32.mxu1 %vm389_vm2, %v23670_v23  ;;  %19520 = vmatpush3.bf16.msra.mxu1 %v19517_v15  ;;  %v23779_v15 = vld [vmem:[#allocation4 + $0x158] sm:$0xff] }
 0x49b   : > { %19522 = vmatprep.subr.bf16.mxu1 %v19521_v57 }
 0x49d   : > { %18272 = vmatmul.mubr.msk.f32.gmra.mrb[36].mxu1 %vm389_vm2, %v23674_v44 }
 0x49e   : > { %18274 = vmatprep.mubr.msk.f32.mxu1 %vm389_vm2, %v23684_v48  ;;  %19524 = vmatpush3.bf16.msra.mxu1 %v19521_v57  ;;  %v7758_v57 = vld [vmem:[%s26721_s5 + $0xd0] sm:$0xff] }
 0x49f   : > { %19526 = vmatprep.subr.bf16.mxu1 %v19525_v56  ;;  %v19533_v59 = vpack.c.bf16 %v7759_v5, %v7758_v57  ;;  %v7762_v57 = vld [vmem:[%s26721_s5 + $0xf0] sm:$0xff]  ;;  %v7763_v5 = vld [vmem:[%s26721_s5 + $0xf8] sm:$0xff] }
 0x4a1   : > { %18275 = vmatmul.mubr.msk.f32.gmra.mrb[38].mxu1 %vm389_vm2, %v23690_v26 }
 0x4a2   : > { %18277 = vmatprep.mubr.msk.f32.mxu1 %vm389_vm2, %v23694_v45  ;;  %19528 = vmatpush3.bf16.msra.mxu1 %v19525_v56  ;;  %v7333_v56 = vld [vmem:[#allocation4 + $0x1c] sm:$0xff] }
 0x4a3   : > { %19530 = vmatprep.subr.bf16.mxu1 %v23688_v0 }
 0x4a5   : > { %18278 = vmatmul.mubr.msk.f32.gmra.mrb[40].mxu1 %vm389_vm2, %v23699_v13 }
 0x4a6   : > { %18280 = vmatprep.mubr.msk.f32.mxu1 %vm389_vm2, %v23703_v31 }
 0x4a9   : > { %18281 = vmatmul.mubr.msk.f32.gmra.mrb[42].mxu1 %vm389_vm2, %v23707_v18 }
 0x4aa   : > { %18283 = vmatprep.mubr.msk.f32.mxu1 %vm389_vm2, %v23711_v10 }
 0x4ad   : > { %18284 = vmatmul.mubr.msk.f32.gmra.mrb[44].mxu1 %vm389_vm2, %v23715_v62 }
 0x4ae   : > { %18286 = vmatprep.mubr.msk.f32.mxu1 %vm389_vm2, %v23719_v17 }
 0x4b1   : > { %18287 = vmatmul.mubr.msk.f32.gmra.mrb[46].mxu1 %vm389_vm2, %v23723_v40 }
 0x4b2   : > { %18289 = vmatprep.mubr.msk.f32.mxu1 %vm389_vm2, %v23727_v51 }
 0x4b5   : > { %18290 = vmatmul.mubr.msk.f32.gmra.mrb[48].mxu1 %vm389_vm2, %v23731_v61 }
 0x4b6   : > { %18292 = vmatprep.mubr.msk.f32.mxu1 %vm389_vm2, %v23735_v22 }
 0x4b9   : > { %18293 = vmatmul.mubr.msk.f32.gmra.mrb[50].mxu1 %vm389_vm2, %v23739_v28 }
 0x4ba   : > { %18295 = vmatprep.mubr.msk.f32.mxu1 %vm389_vm2, %v23743_v1 }
 0x4bd   : > { %18296 = vmatmul.mubr.msk.f32.gmra.mrb[52].mxu1 %vm389_vm2, %v23747_v14 }
 0x4be   : > { %18298 = vmatprep.mubr.msk.f32.mxu1 %vm389_vm2, %v23751_v36 }
 0x4c1   : > { %18299 = vmatmul.mubr.msk.f32.gmra.mrb[54].mxu1 %vm389_vm2, %v23755_v9 }
 0x4c2   : > { %18301 = vmatprep.mubr.msk.f32.mxu1 %vm389_vm2, %v23759_v39 }
 0x4c5   : > { %18302 = vmatmul.mubr.msk.f32.gmra.mrb[56].mxu1 %vm389_vm2, %v23763_v2 }
 0x4c6   : > { %18304 = vmatprep.mubr.msk.f32.mxu1 %vm389_vm2, %v23767_v53 }
 0x4c9   : > { %18305 = vmatmul.mubr.msk.f32.gmra.mrb[58].mxu1 %vm389_vm2, %v23771_v43 }
 0x4ca   : > { %18307 = vmatprep.mubr.msk.f32.mxu1 %vm389_vm2, %v23775_v50 }
 0x4cd   : > { %18308 = vmatmul.mubr.msk.f32.gmra.mrb[60].mxu1 %vm389_vm2, %v23779_v15 }
 0x4ce   : > { %18310 = vmatprep.mubr.msk.f32.mxu1 %vm389_vm2, %v23783_v38 }
 0x4d1   : > { %18311 = vmatmul.mubr.msk.f32.gmra.mrb[62].mxu1 %vm389_vm2, %v23787_v52 }
 0x4d2   : > { %18329 = vmatprep.mubr.msk.f32.mxu1 %vm389_vm2, %v7331_v27  ;;  %v19537_v27 = vpack.c.bf16 %v7761_v11, %v7760_v58  ;;  %v8149_v11 = vld [vmem:[%s26721_s5 + $0x100] sm:$0xff]  ;;  %v23832_v58 = vld [vmem:[#allocation4 + $0x54] sm:$0xff] }
 0x4d5   : > { %18330 = vmatmul.mubr.msk.f32.vlgmr.msra.gmra.mrb[32].mxu1 %vm389_vm2, %v7332_v55  ;;  %v23818_v55 = vld [vmem:[#allocation4 + $0x3c] sm:$0xff] }
 0x4d6   : > { %19532 = vmatpush3.bf16.msra.mxu1 %v23688_v0  ;;  %18332 = vmatprep.mubr.msk.f32.mxu1 %vm389_vm2, %v7333_v56  ;;  %v19541_v0 = vpack.c.bf16 %v7763_v5, %v7762_v57  ;;  %v8150_v56 = vld [vmem:[%s26721_s5 + $0x108] sm:$0xff] }
 0x4d7   : > { %19534 = vmatprep.subr.bf16.mxu1 %v19533_v59  ;;  %v23836_v57 = vld [vmem:[#allocation4 + $0x64] sm:$0xff]  ;;  %v23840_v5 = vld [vmem:[#allocation4 + $0x6c] sm:$0xff] }
 0x4d8   : > { %26936 = vst [vmem:[#allocation19_spill] sm:$0xff] %v23836_v57  ;;  %26937 = vst [vmem:[#allocation15_spill] sm:$0xff] %v23840_v5 }
 0x4d9   : > { %18333 = vmatmul.mubr.msk.f32.gmra.mrb[34].mxu1 %vm389_vm2, %v7334_v37  ;;  %v23828_v37 = vld [vmem:[#allocation4 + $0x4c] sm:$0xff] }
 0x4da   : > { %18335 = vmatprep.mubr.msk.f32.mxu1 %vm389_vm2, %v23814_v47  ;;  %19536 = vmatpush3.bf16.msra.mxu1 %v19533_v59  ;;  %v19545_v59 = vpack.c.bf16 %v8150_v56, %v8149_v11  ;;  %v23848_v11 = vld [vmem:[#allocation4 + $0x84] sm:$0xff]  ;;  %v23852_v56 = vld [vmem:[#allocation4 + $0x94] sm:$0xff] }
 0x4db   : > { %19538 = vmatprep.subr.bf16.mxu1 %v19537_v27  ;;  %26939 = vst [vmem:[#allocation23_spill] sm:$0xff] %v23848_v11  ;;  %26940 = vst [vmem:[#allocation17_spill] sm:$0xff] %v23852_v56 }
 0x4dd   : > { %18336 = vmatmul.mubr.msk.f32.gmra.mrb[36].mxu1 %vm389_vm2, %v23818_v55 }
 0x4de   : > { %18338 = vmatprep.mubr.msk.f32.mxu1 %vm389_vm2, %v23828_v37  ;;  %19540 = vmatpush3.bf16.msra.mxu1 %v19537_v27  ;;  %v23844_v27 = vld [vmem:[#allocation4 + $0x7c] sm:$0xff] }
 0x4df   : > { %19542 = vmatprep.subr.bf16.mxu1 %v19541_v0  ;;  %26938 = vst [vmem:[#allocation20_spill] sm:$0xff] %v23844_v27 }
 0x4e1   : > { %18339 = vmatmul.mubr.msk.f32.gmra.mrb[38].mxu1 %vm389_vm2, %v23832_v58 }
 0x4e2   : > { %18341 = vmatprep.mubr.msk.f32.mxu1 %vm389_vm2, %v23836_v57  ;;  %19544 = vmatpush3.bf16.msra.mxu1 %v19541_v0  ;;  %v23856_v0 = vld [vmem:[#allocation4 + $0x9c] sm:$0xff]  ;;  %v8154_v57 = vld [vmem:[%s26721_s5 + $0x128] sm:$0xff] }
 0x4e3   : > { %19546 = vmatprep.subr.bf16.mxu1 %v19545_v59  ;;  %26941 = vst [vmem:[#allocation6_spill] sm:$0xff] %v23856_v0 }
 0x4e5   : > { %18342 = vmatmul.mubr.msk.f32.gmra.mrb[40].mxu1 %vm389_vm2, %v23840_v5  ;;  %v23860_v5 = vld [vmem:[#allocation4 + $0xac] sm:$0xff] }
 0x4e6   : > { %18344 = vmatprep.mubr.msk.f32.mxu1 %vm389_vm2, %v23844_v27  ;;  %26942 = vst [vmem:[#allocation22_spill] sm:$0xff] %v23860_v5  ;;  %v23864_v27 = vld [vmem:[#allocation4 + $0xb4] sm:$0xff] }
 0x4e7   : > { %26943 = vst [vmem:[#allocation10_spill] sm:$0xff] %v23864_v27 }
 0x4e9   : > { %18345 = vmatmul.mubr.msk.f32.gmra.mrb[42].mxu1 %vm389_vm2, %v23848_v11  ;;  %v23868_v11 = vld [vmem:[#allocation4 + $0xc4] sm:$0xff] }
 0x4ea   : > { %18347 = vmatprep.mubr.msk.f32.mxu1 %vm389_vm2, %v23852_v56  ;;  %26944 = vst [vmem:[#allocation11_spill] sm:$0xff] %v23868_v11  ;;  %v23872_v56 = vld [vmem:[#allocation4 + $0xcc] sm:$0xff] }
 0x4eb   : > { %26945 = vst [vmem:[#allocation13_spill] sm:$0xff] %v23872_v56 }
 0x4ed   : > { %18348 = vmatmul.mubr.msk.f32.gmra.mrb[44].mxu1 %vm389_vm2, %v23856_v0  ;;  %v23876_v0 = vld [vmem:[#allocation4 + $0xdc] sm:$0xff] }
 0x4ee   : > { %18350 = vmatprep.mubr.msk.f32.mxu1 %vm389_vm2, %v23860_v5  ;;  %26946 = vst [vmem:[#allocation7_spill] sm:$0xff] %v23876_v0  ;;  %v23880_v5 = vld [vmem:[#allocation4 + $0xe4] sm:$0xff] }
 0x4ef   : > { %26947 = vst [vmem:[#allocation16_spill] sm:$0xff] %v23880_v5 }
 0x4f1   : > { %18351 = vmatmul.mubr.msk.f32.gmra.mrb[46].mxu1 %vm389_vm2, %v23864_v27  ;;  %v23884_v27 = vld [vmem:[#allocation4 + $0xf4] sm:$0xff] }
 0x4f2   : > { %18353 = vmatprep.mubr.msk.f32.mxu1 %vm389_vm2, %v23868_v11  ;;  %26948 = vst [vmem:[#allocation8_spill] sm:$0xff] %v23884_v27  ;;  %v23888_v11 = vld [vmem:[#allocation4 + $0xfc] sm:$0xff] }
 0x4f3   : > { %26949 = vst [vmem:[#allocation9_spill] sm:$0xff] %v23888_v11 }
 0x4f5   : > { %18354 = vmatmul.mubr.msk.f32.gmra.mrb[48].mxu1 %vm389_vm2, %v23872_v56  ;;  %v23892_v56 = vld [vmem:[#allocation4 + $0x10c] sm:$0xff] }
 0x4f6   : > { %18356 = vmatprep.mubr.msk.f32.mxu1 %vm389_vm2, %v23876_v0  ;;  %26950 = vst [vmem:[#allocation21_spill] sm:$0xff] %v23892_v56  ;;  %v23896_v0 = vld [vmem:[#allocation4 + $0x114] sm:$0xff] }
 0x4f7   : > { %26951 = vst [vmem:[#allocation24_spill] sm:$0xff] %v23896_v0 }
 0x4f9   : > { %18357 = vmatmul.mubr.msk.f32.gmra.mrb[50].mxu1 %vm389_vm2, %v23880_v5  ;;  %v23900_v5 = vld [vmem:[#allocation4 + $0x124] sm:$0xff] }
 0x4fa   : > { %18359 = vmatprep.mubr.msk.f32.mxu1 %vm389_vm2, %v23884_v27  ;;  %26952 = vst [vmem:[#allocation25_spill] sm:$0xff] %v23900_v5  ;;  %v23904_v27 = vld [vmem:[#allocation4 + $0x12c] sm:$0xff] }
 0x4fb   : > { %26953 = vst [vmem:[#allocation26_spill] sm:$0xff] %v23904_v27 }
 0x4fd   : > { %18360 = vmatmul.mubr.msk.f32.gmra.mrb[52].mxu1 %vm389_vm2, %v23888_v11  ;;  %v23908_v11 = vld [vmem:[#allocation4 + $0x13c] sm:$0xff] }
 0x4fe   : > { %18362 = vmatprep.mubr.msk.f32.mxu1 %vm389_vm2, %v23892_v56  ;;  %26954 = vst [vmem:[#allocation27_spill] sm:$0xff] %v23908_v11  ;;  %v23912_v56 = vld [vmem:[#allocation4 + $0x144] sm:$0xff] }
 0x4ff   : > { %26955 = vst [vmem:[#allocation28_spill] sm:$0xff] %v23912_v56 }
 0x501   : > { %18363 = vmatmul.mubr.msk.f32.gmra.mrb[54].mxu1 %vm389_vm2, %v23896_v0  ;;  %v23916_v0 = vld [vmem:[#allocation4 + $0x154] sm:$0xff] }
 0x502   : > { %18365 = vmatprep.mubr.msk.f32.mxu1 %vm389_vm2, %v23900_v5  ;;  %26956 = vst [vmem:[#allocation29_spill] sm:$0xff] %v23916_v0  ;;  %v23920_v5 = vld [vmem:[#allocation4 + $0x15c] sm:$0xff] }
 0x503   : > { %26957 = vst [vmem:[#allocation30_spill] sm:$0xff] %v23920_v5 }
 0x505   : > { %18366 = vmatmul.mubr.msk.f32.gmra.mrb[56].mxu1 %vm389_vm2, %v23904_v27  ;;  %v23924_v27 = vld [vmem:[#allocation4 + $0x16c] sm:$0xff] }
 0x506   : > { %18368 = vmatprep.mubr.msk.f32.mxu1 %vm389_vm2, %v23908_v11  ;;  %26958 = vst [vmem:[#allocation31_spill] sm:$0xff] %v23924_v27  ;;  %v23928_v11 = vld [vmem:[#allocation4 + $0x174] sm:$0xff] }
 0x507   : > { %26959 = vst [vmem:[#allocation32_spill] sm:$0xff] %v23928_v11 }
 0x509   : > { %18369 = vmatmul.mubr.msk.f32.gmra.mrb[58].mxu1 %vm389_vm2, %v23912_v56  ;;  %v8151_v56 = vld [vmem:[%s26721_s5 + $0x110] sm:$0xff] }
 0x50a   : > { %18371 = vmatprep.mubr.msk.f32.mxu1 %vm389_vm2, %v23916_v0  ;;  %v8152_v0 = vld [vmem:[%s26721_s5 + $0x118] sm:$0xff] }
 0x50d   : > { %18372 = vmatmul.mubr.msk.f32.gmra.mrb[60].mxu1 %vm389_vm2, %v23920_v5  ;;  %v19549_v5 = vpack.c.bf16 %v8152_v0, %v8151_v56  ;;  %v8156_v56 = vld [vmem:[%s26721_s5 + $0x138] sm:$0xff]  ;;  %v8544_v0 = vld [vmem:[%s26721_s5 + $0x150] sm:$0xff] }
 0x50e   : > { %18374 = vmatprep.mubr.msk.f32.mxu1 %vm389_vm2, %v23924_v27  ;;  %v8153_v27 = vld [vmem:[%s26721_s5 + $0x120] sm:$0xff] }
 0x511   : > { %18375 = vmatmul.mubr.msk.f32.gmra.mrb[62].mxu1 %vm389_vm2, %v23928_v11  ;;  %v19553_v11 = vpack.c.bf16 %v8154_v57, %v8153_v27  ;;  %v24012_v57 = vld [vmem:[#allocation4 + $0x180] sm:$0xff]  ;;  %v24020_v27 = vld [vmem:[#allocation4 + $0x198] sm:$0xff] }
 0x512   : > { %18393 = vmatprep.mubr.msk.f32.mxu1 %vm389_vm2, %v23670_v23  ;;  %v8155_v23 = vld [vmem:[%s26721_s5 + $0x130] sm:$0xff] }
 0x515   : > { %18394 = vmatmul.mubr.msk.f32.vlgmr.msra.gmra.mrb[32].mxu1 %vm389_vm2, %v23674_v44  ;;  %v19557_v44 = vpack.c.bf16 %v8156_v56, %v8155_v23  ;;  %v8545_v23 = vld [vmem:[%s26721_s5 + $0x158] sm:$0xff] }
 0x516   : > { %19548 = vmatpush3.bf16.msra.mxu1 %v19545_v59  ;;  %18396 = vmatprep.mubr.msk.f32.mxu1 %vm389_vm2, %v23684_v48  ;;  %v8542_v48 = vld [vmem:[%s26721_s5 + $0x140] sm:$0xff]  ;;  %v8543_v59 = vld [vmem:[%s26721_s5 + $0x148] sm:$0xff]  ;;  %v19565_v56 = vpack.c.bf16 %v8545_v23, %v8544_v0  ;;  %v8549_v0 = vld [vmem:[%s26721_s5 + $0x178] sm:$0xff] }
 0x517   : > { %19550 = vmatprep.subr.bf16.mxu1 %v19549_v5  ;;  %v26969_v23 = vld [vmem:[#allocation22_spill] sm:$0xff] }
 0x519   : > { %18397 = vmatmul.mubr.msk.f32.gmra.mrb[34].mxu1 %vm389_vm2, %v23690_v26  ;;  %v19561_v26 = vpack.c.bf16 %v8543_v59, %v8542_v48  ;;  %v8547_v48 = vld [vmem:[%s26721_s5 + $0x168] sm:$0xff] }
 0x51a   : > { %18399 = vmatprep.mubr.msk.f32.mxu1 %vm389_vm2, %v23694_v45  ;;  %19552 = vmatpush3.bf16.msra.mxu1 %v19549_v5  ;;  %v24016_v5 = vld [vmem:[#allocation4 + $0x188] sm:$0xff] }
 0x51b   : > { %19554 = vmatprep.subr.bf16.mxu1 %v19553_v11 }
 0x51d   : > { %18400 = vmatmul.mubr.msk.f32.gmra.mrb[36].mxu1 %vm389_vm2, %v23699_v13 }
 0x51e   : > { %18402 = vmatprep.mubr.msk.f32.mxu1 %vm389_vm2, %v23703_v31  ;;  %19556 = vmatpush3.bf16.msra.mxu1 %v19553_v11  ;;  %v24024_v11 = vld [vmem:[#allocation4 + $0x1a0] sm:$0xff] }
 0x51f   : > { %19558 = vmatprep.subr.bf16.mxu1 %v19557_v44 }
 0x521   : > { %18403 = vmatmul.mubr.msk.f32.gmra.mrb[38].mxu1 %vm389_vm2, %v23707_v18 }
 0x522   : > { %18405 = vmatprep.mubr.msk.f32.mxu1 %vm389_vm2, %v23711_v10  ;;  %19560 = vmatpush3.bf16.msra.mxu1 %v19557_v44  ;;  %v8546_v44 = vld [vmem:[%s26721_s5 + $0x160] sm:$0xff] }
 0x523   : > { %19562 = vmatprep.subr.bf16.mxu1 %v19561_v26  ;;  %v19569_v59 = vpack.c.bf16 %v8547_v48, %v8546_v44  ;;  %v26971_v44 = vld [vmem:[#allocation11_spill] sm:$0xff]  ;;  %v26972_v48 = vld [vmem:[#allocation13_spill] sm:$0xff] }
 0x525   : > { %18406 = vmatmul.mubr.msk.f32.gmra.mrb[40].mxu1 %vm389_vm2, %v23715_v62 }
 0x526   : > { %18408 = vmatprep.mubr.msk.f32.mxu1 %vm389_vm2, %v23719_v17 }
 0x529   : > { %18409 = vmatmul.mubr.msk.f32.gmra.mrb[42].mxu1 %vm389_vm2, %v23723_v40 }
 0x52a   : > { %18411 = vmatprep.mubr.msk.f32.mxu1 %vm389_vm2, %v23727_v51 }
 0x52d   : > { %18412 = vmatmul.mubr.msk.f32.gmra.mrb[44].mxu1 %vm389_vm2, %v23731_v61 }
 0x52e   : > { %18414 = vmatprep.mubr.msk.f32.mxu1 %vm389_vm2, %v23735_v22 }
 0x531   : > { %18415 = vmatmul.mubr.msk.f32.gmra.mrb[46].mxu1 %vm389_vm2, %v23739_v28 }
 0x532   : > { %18417 = vmatprep.mubr.msk.f32.mxu1 %vm389_vm2, %v23743_v1 }
 0x535   : > { %18418 = vmatmul.mubr.msk.f32.gmra.mrb[48].mxu1 %vm389_vm2, %v23747_v14 }
 0x536   : > { %18420 = vmatprep.mubr.msk.f32.mxu1 %vm389_vm2, %v23751_v36 }
 0x539   : > { %18421 = vmatmul.mubr.msk.f32.gmra.mrb[50].mxu1 %vm389_vm2, %v23755_v9 }
 0x53a   : > { %18423 = vmatprep.mubr.msk.f32.mxu1 %vm389_vm2, %v23759_v39 }
 0x53d   : > { %18424 = vmatmul.mubr.msk.f32.gmra.mrb[52].mxu1 %vm389_vm2, %v23763_v2 }
 0x53e   : > { %18426 = vmatprep.mubr.msk.f32.mxu1 %vm389_vm2, %v23767_v53 }
 0x541   : > { %18427 = vmatmul.mubr.msk.f32.gmra.mrb[54].mxu1 %vm389_vm2, %v23771_v43 }
 0x542   : > { %18429 = vmatprep.mubr.msk.f32.mxu1 %vm389_vm2, %v23775_v50 }
 0x545   : > { %18430 = vmatmul.mubr.msk.f32.gmra.mrb[56].mxu1 %vm389_vm2, %v23779_v15 }
 0x546   : > { %18432 = vmatprep.mubr.msk.f32.mxu1 %vm389_vm2, %v23783_v38 }
 0x549   : > { %18433 = vmatmul.mubr.msk.f32.gmra.mrb[58].mxu1 %vm389_vm2, %v23787_v52 }
 0x54a   : > { %18435 = vmatprep.mubr.msk.f32.mxu1 %vm389_vm2, %v24012_v57 }
 0x54d   : > { %18436 = vmatmul.mubr.msk.f32.gmra.mrb[60].mxu1 %vm389_vm2, %v24016_v5 }
 0x54e   : > { %18438 = vmatprep.mubr.msk.f32.mxu1 %vm389_vm2, %v24020_v27 }
 0x551   : > { %18439 = vmatmul.mubr.msk.f32.gmra.mrb[62].mxu1 %vm389_vm2, %v24024_v11 }
 0x552   : > { %18457 = vmatprep.mubr.msk.f32.mxu1 %vm389_vm2, %v23451_v7  ;;  %v8548_v7 = vld [vmem:[%s26721_s5 + $0x170] sm:$0xff] }
 0x555   : > { %18458 = vmatmul.mubr.msk.f32.vlgmr.msra.gmra.mrb[32].mxu1 %vm389_vm2, %v23459_v20  ;;  %v19573_v20 = vpack.c.bf16 %v8549_v0, %v8548_v7  ;;  %v26974_v7 = vld [vmem:[#allocation16_spill] sm:$0xff] }
 0x556   : > { %19564 = vmatpush3.bf16.msra.mxu1 %v19561_v26  ;;  %18460 = vmatprep.mubr.msk.f32.mxu1 %vm389_vm2, %v23469_v54  ;;  %v8936_v54 = vld [vmem:[%s26721_s5 + $0x180] sm:$0xff]  ;;  %v8937_v26 = vld [vmem:[%s26721_s5 + $0x188] sm:$0xff]  ;;  %v26975_v0 = vld [vmem:[#allocation8_spill] sm:$0xff] }
 0x557   : > { %19566 = vmatprep.subr.bf16.mxu1 %v19565_v56 }
 0x559   : > { %18461 = vmatmul.mubr.msk.f32.gmra.mrb[34].mxu1 %vm389_vm2, %v23477_v34  ;;  %v19577_v34 = vpack.c.bf16 %v8937_v26, %v8936_v54  ;;  %v26977_v54 = vld [vmem:[#allocation21_spill] sm:$0xff]  ;;  %v26978_v26 = vld [vmem:[#allocation24_spill] sm:$0xff] }
 0x55a   : > { %18463 = vmatprep.mubr.msk.f32.mxu1 %vm389_vm2, %v23487_v41  ;;  %19568 = vmatpush3.bf16.msra.mxu1 %v19565_v56  ;;  %v26960_v41 = vld [vmem:[#allocation14_spill] sm:$0xff] }
 0x55b   : > { %19570 = vmatprep.subr.bf16.mxu1 %v19569_v59  ;;  %v26970_v56 = vld [vmem:[#allocation10_spill] sm:$0xff] }
 0x55d   : > { %18464 = vmatmul.mubr.msk.f32.gmra.mrb[36].mxu1 %vm389_vm2, %v23493_v21  ;;  %v26961_v21 = vld [vmem:[#allocation18_spill] sm:$0xff] }
 0x55e   : > { %18466 = vmatprep.mubr.msk.f32.mxu1 %vm389_vm2, %v23501_v29  ;;  %19572 = vmatpush3.bf16.msra.mxu1 %v19569_v59  ;;  %v26962_v29 = vld [vmem:[#allocation12_spill] sm:$0xff]  ;;  %v26973_v59 = vld [vmem:[#allocation7_spill] sm:$0xff] }
 0x55f   : > { %19574 = vmatprep.subr.bf16.mxu1 %v19573_v20 }
 0x561   : > { %18467 = vmatmul.mubr.msk.f32.gmra.mrb[38].mxu1 %vm389_vm2, %v23507_v12  ;;  %v24108_v12 = vld [vmem:[#allocation4 + $0x182] sm:$0xff] }
 0x562   : > { %18469 = vmatprep.mubr.msk.f32.mxu1 %vm389_vm2, %v23515_v24  ;;  %19576 = vmatpush3.bf16.msra.mxu1 %v19573_v20  ;;  %v24112_v24 = vld [vmem:[#allocation4 + $0x18a] sm:$0xff]  ;;  %v26976_v20 = vld [vmem:[#allocation9_spill] sm:$0xff] }
 0x563   : > { %19578 = vmatprep.subr.bf16.mxu1 %v19577_v34 }
 0x565   : > { %18470 = vmatmul.mubr.msk.f32.gmra.mrb[40].mxu1 %vm389_vm2, %v23521_v35  ;;  %v24116_v35 = vld [vmem:[#allocation4 + $0x19a] sm:$0xff] }
 0x566   : > { %18472 = vmatprep.mubr.msk.f32.mxu1 %vm389_vm2, %v23529_v25  ;;  %v24120_v25 = vld [vmem:[#allocation4 + $0x1a2] sm:$0xff] }
 0x569   : > { %18473 = vmatmul.mubr.msk.f32.gmra.mrb[42].mxu1 %vm389_vm2, %v23535_v42  ;;  %v8938_v42 = vld [vmem:[%s26721_s5 + $0x190] sm:$0xff] }
 0x56a   : > { %18475 = vmatprep.mubr.msk.f32.mxu1 %vm389_vm2, %v23543_v16  ;;  %v8939_v16 = vld [vmem:[%s26721_s5 + $0x198] sm:$0xff] }
 0x56d   : > { %18476 = vmatmul.mubr.msk.f32.gmra.mrb[44].mxu1 %vm389_vm2, %v23549_v60  ;;  %v19581_v60 = vpack.c.bf16 %v8939_v16, %v8938_v42  ;;  %v26983_v42 = vld [vmem:[#allocation29_spill] sm:$0xff]  ;;  %v26984_v16 = vld [vmem:[#allocation30_spill] sm:$0xff] }
 0x56e   : > { %18478 = vmatprep.mubr.msk.f32.mxu1 %vm389_vm2, %v23557_v33  ;;  %v8940_v33 = vld [vmem:[%s26721_s5 + $0x1a0] sm:$0xff] }
 0x571   : > { %18479 = vmatmul.mubr.msk.f32.gmra.mrb[46].mxu1 %vm389_vm2, %v23563_v3  ;;  %v8941_v3 = vld [vmem:[%s26721_s5 + $0x1a8] sm:$0xff] }
 0x572   : > { %18481 = vmatprep.mubr.msk.f32.mxu1 %vm389_vm2, %v23571_v8  ;;  %v19585_v8 = vpack.c.bf16 %v8941_v3, %v8940_v33  ;;  %v26986_v33 = vld [vmem:[#allocation32_spill] sm:$0xff]  ;;  %v24204_v3 = vld [vmem:[#allocation4 + $0x184] sm:$0xff] }
 0x575   : > { %18482 = vmatmul.mubr.msk.f32.gmra.mrb[48].mxu1 %vm389_vm2, %v23577_v6  ;;  %v8942_v6 = vld [vmem:[%s26721_s5 + $0x1b0] sm:$0xff] }
 0x576   : > { %18484 = vmatprep.mubr.msk.f32.mxu1 %vm389_vm2, %v23585_v63  ;;  %v8943_v63 = vld [vmem:[%s26721_s5 + $0x1b8] sm:$0xff] }
 0x579   : > { %18485 = vmatmul.mubr.msk.f32.gmra.mrb[50].mxu1 %vm389_vm2, %v23591_v49  ;;  %v26963_v49 = vld [vmem:[#allocation19_spill] sm:$0xff] }
 0x57a   : > { %18487 = vmatprep.mubr.msk.f32.mxu1 %vm389_vm2, %v23599_v32  ;;  %v19589_v32 = vpack.c.bf16 %v8943_v63, %v8942_v6  ;;  %v24212_v6 = vld [vmem:[#allocation4 + $0x19c] sm:$0xff]  ;;  %v24216_v63 = vld [vmem:[#allocation4 + $0x1a4] sm:$0xff] }
 0x57b   : > { %26988 = vst [vmem:[#allocation18_spill] sm:$0xff] %v24212_v6  ;;  %26989 = vst [vmem:[#allocation12_spill] sm:$0xff] %v24216_v63 }
 0x57d   : > { %18488 = vmatmul.mubr.msk.f32.gmra.mrb[52].mxu1 %vm389_vm2, %v23605_v30  ;;  %v9329_v30 = vld [vmem:[%s26721_s5 + $0x1c0] sm:$0xff] }
 0x57e   : > { %18490 = vmatprep.mubr.msk.f32.mxu1 %vm389_vm2, %v23613_v46  ;;  %v9330_v46 = vld [vmem:[%s26721_s5 + $0x1c8] sm:$0xff] }
 0x581   : > { %18491 = vmatmul.mubr.msk.f32.gmra.mrb[54].mxu1 %vm389_vm2, %v23619_v4  ;;  %v26964_v4 = vld [vmem:[#allocation15_spill] sm:$0xff] }
 0x582   : > { %18493 = vmatprep.mubr.msk.f32.mxu1 %vm389_vm2, %v23627_v19  ;;  %v26965_v19 = vld [vmem:[#allocation20_spill] sm:$0xff] }
 0x585   : > { %18494 = vmatmul.mubr.msk.f32.gmra.mrb[56].mxu1 %vm389_vm2, %v26960_v41  ;;  %v26980_v41 = vld [vmem:[#allocation26_spill] sm:$0xff] }
 0x586   : > { %18496 = vmatprep.mubr.msk.f32.mxu1 %vm389_vm2, %v26961_v21  ;;  %v26981_v21 = vld [vmem:[#allocation27_spill] sm:$0xff] }
 0x589   : > { %18497 = vmatmul.mubr.msk.f32.gmra.mrb[58].mxu1 %vm389_vm2, %v26962_v29  ;;  %v26982_v29 = vld [vmem:[#allocation28_spill] sm:$0xff] }
 0x58a   : > { %18499 = vmatprep.mubr.msk.f32.mxu1 %vm389_vm2, %v24108_v12 }
 0x58d   : > { %18500 = vmatmul.mubr.msk.f32.gmra.mrb[60].mxu1 %vm389_vm2, %v24112_v24 }
 0x58e   : > { %18502 = vmatprep.mubr.msk.f32.mxu1 %vm389_vm2, %v24116_v35 }
 0x591   : > { %18503 = vmatmul.mubr.msk.f32.gmra.mrb[62].mxu1 %vm389_vm2, %v24120_v25 }
 0x592   : > { %18521 = vmatprep.mubr.msk.f32.mxu1 %vm389_vm2, %v23814_v47  ;;  %v19593_v47 = vpack.c.bf16 %v9330_v46, %v9329_v30  ;;  %v9332_v30 = vld [vmem:[%s26721_s5 + $0x1d8] sm:$0xff] }
 0x595   : > { %18522 = vmatmul.mubr.msk.f32.vlgmr.msra.gmra.mrb[32].mxu1 %vm389_vm2, %v23818_v55  ;;  %v26966_v55 = vld [vmem:[#allocation23_spill] sm:$0xff] }
 0x596   : > { %19580 = vmatpush3.bf16.msra.mxu1 %v19577_v34  ;;  %18524 = vmatprep.mubr.msk.f32.mxu1 %vm389_vm2, %v23828_v37  ;;  %v26967_v37 = vld [vmem:[#allocation17_spill] sm:$0xff] }
 0x597   : > { %19582 = vmatprep.subr.bf16.mxu1 %v19581_v60  ;;  %v26979_v34 = vld [vmem:[#allocation25_spill] sm:$0xff] }
 0x599   : > { %18525 = vmatmul.mubr.msk.f32.gmra.mrb[34].mxu1 %vm389_vm2, %v23832_v58  ;;  %v26968_v58 = vld [vmem:[#allocation6_spill] sm:$0xff] }
 0x59a   : > { %18527 = vmatprep.mubr.msk.f32.mxu1 %vm389_vm2, %v26963_v49  ;;  %19584 = vmatpush3.bf16.msra.mxu1 %v19581_v60  ;;  %v26985_v60 = vld [vmem:[#allocation31_spill] sm:$0xff] }
 0x59b   : > { %19586 = vmatprep.subr.bf16.mxu1 %v19585_v8 }
 0x59d   : > { %18528 = vmatmul.mubr.msk.f32.gmra.mrb[36].mxu1 %vm389_vm2, %v26964_v4 }
 0x59e   : > { %18530 = vmatprep.mubr.msk.f32.mxu1 %vm389_vm2, %v26965_v19  ;;  %19588 = vmatpush3.bf16.msra.mxu1 %v19585_v8  ;;  %v24208_v8 = vld [vmem:[#allocation4 + $0x18c] sm:$0xff] }
 0x59f   : > { %19590 = vmatprep.subr.bf16.mxu1 %v19589_v32  ;;  %26987 = vst [vmem:[#allocation14_spill] sm:$0xff] %v24208_v8 }
 0x5a1   : > { %18531 = vmatmul.mubr.msk.f32.gmra.mrb[38].mxu1 %vm389_vm2, %v26966_v55 }
 0x5a2   : > { %18533 = vmatprep.mubr.msk.f32.mxu1 %vm389_vm2, %v26967_v37  ;;  %19592 = vmatpush3.bf16.msra.mxu1 %v19589_v32  ;;  %v9331_v32 = vld [vmem:[%s26721_s5 + $0x1d0] sm:$0xff] }
 0x5a3   : > { %19594 = vmatprep.subr.bf16.mxu1 %v19593_v47  ;;  %v19597_v46 = vpack.c.bf16 %v9332_v30, %v9331_v32  ;;  %v9336_v32 = vld [vmem:[%s26721_s5 + $0x1f8] sm:$0xff] }
 0x5a4   : > { %v9301_v30 = vld [vmem:[#allocation4 + $0x92] sm:$0xff] }
 0x5a5   : > { %18534 = vmatmul.mubr.msk.f32.gmra.mrb[40].mxu1 %vm389_vm2, %v26968_v58 }
 0x5a6   : > { %18536 = vmatprep.mubr.msk.f32.mxu1 %vm389_vm2, %v26969_v23 }
 0x5a9   : > { %18537 = vmatmul.mubr.msk.f32.gmra.mrb[42].mxu1 %vm389_vm2, %v26970_v56 }
 0x5aa   : > { %18539 = vmatprep.mubr.msk.f32.mxu1 %vm389_vm2, %v26971_v44 }
 0x5ad   : > { %18540 = vmatmul.mubr.msk.f32.gmra.mrb[44].mxu1 %vm389_vm2, %v26972_v48 }
 0x5ae   : > { %18542 = vmatprep.mubr.msk.f32.mxu1 %vm389_vm2, %v26973_v59 }
 0x5b1   : > { %18543 = vmatmul.mubr.msk.f32.gmra.mrb[46].mxu1 %vm389_vm2, %v26974_v7 }
 0x5b2   : > { %18545 = vmatprep.mubr.msk.f32.mxu1 %vm389_vm2, %v26975_v0 }
 0x5b5   : > { %18546 = vmatmul.mubr.msk.f32.gmra.mrb[48].mxu1 %vm389_vm2, %v26976_v20 }
 0x5b6   : > { %18548 = vmatprep.mubr.msk.f32.mxu1 %vm389_vm2, %v26977_v54 }
 0x5b9   : > { %18549 = vmatmul.mubr.msk.f32.gmra.mrb[50].mxu1 %vm389_vm2, %v26978_v26 }
 0x5ba   : > { %18551 = vmatprep.mubr.msk.f32.mxu1 %vm389_vm2, %v26979_v34 }
 0x5bd   : > { %18552 = vmatmul.mubr.msk.f32.gmra.mrb[52].mxu1 %vm389_vm2, %v26980_v41 }
 0x5be   : > { %18554 = vmatprep.mubr.msk.f32.mxu1 %vm389_vm2, %v26981_v21 }
 0x5c1   : > { %18555 = vmatmul.mubr.msk.f32.gmra.mrb[54].mxu1 %vm389_vm2, %v26982_v29 }
 0x5c2   : > { %18557 = vmatprep.mubr.msk.f32.mxu1 %vm389_vm2, %v26983_v42 }
 0x5c5   : > { %18558 = vmatmul.mubr.msk.f32.gmra.mrb[56].mxu1 %vm389_vm2, %v26984_v16 }
 0x5c6   : > { %18560 = vmatprep.mubr.msk.f32.mxu1 %vm389_vm2, %v26985_v60 }
 0x5c9   : > { %18561 = vmatmul.mubr.msk.f32.gmra.mrb[58].mxu1 %vm389_vm2, %v26986_v33 }
 0x5ca   : > { %18563 = vmatprep.mubr.msk.f32.mxu1 %vm389_vm2, %v24204_v3 }
 0x5cd   : > { %18564 = vmatmul.mubr.msk.f32.gmra.mrb[60].mxu1 %vm389_vm2, %v24208_v8  ;;  %v9334_v8 = vld [vmem:[%s26721_s5 + $0x1e8] sm:$0xff] }
 0x5ce   : > { %18566 = vmatprep.mubr.msk.f32.mxu1 %vm389_vm2, %v24212_v6  ;;  %v9333_v6 = vld [vmem:[%s26721_s5 + $0x1e0] sm:$0xff] }
 0x5d1   : > { %18567 = vmatmul.mubr.msk.f32.gmra.mrb[62].mxu1 %vm389_vm2, %v24216_v63  ;;  %v19601_v63 = vpack.c.bf16 %v9334_v8, %v9333_v6  ;;  %v9729_v8 = vld [vmem:[%s26721_s5 + $0x238] sm:$0xff]  ;;  %v10264_v6 = vld [vmem:[%s26723_s7 + $0x70] sm:$0xff] }
 0x5d2   : > { %18585 = vmatprep.mubr.msk.f32.mxu1 %vm389_vm2, %v23694_v45  ;;  %v9335_v45 = vld [vmem:[%s26721_s5 + $0x1f0] sm:$0xff] }
 0x5d5   : > { %18586 = vmatmul.mubr.msk.f32.vlgmr.msra.gmra.mrb[32].mxu1 %vm389_vm2, %v23699_v13  ;;  %v19605_v13 = vpack.c.bf16 %v9336_v32, %v9335_v45  ;;  %v9302_v32 = vld [vmem:[#allocation4 + $0x9a] sm:$0xff] }
 0x5d6   : > { %19596 = vmatpush3.bf16.msra.mxu1 %v19593_v47  ;;  %18588 = vmatprep.mubr.msk.f32.mxu1 %vm389_vm2, %v23703_v31  ;;  %v9722_v31 = vld [vmem:[%s26721_s5 + $0x200] sm:$0xff]  ;;  %v9723_v47 = vld [vmem:[%s26721_s5 + $0x208] sm:$0xff] }
 0x5d7   : > { %19598 = vmatprep.subr.bf16.mxu1 %v19597_v46 }
 0x5d9   : > { %18589 = vmatmul.mubr.msk.f32.gmra.mrb[34].mxu1 %vm389_vm2, %v23707_v18  ;;  %v19609_v18 = vpack.c.bf16 %v9723_v47, %v9722_v31  ;;  %v9304_v31 = vld [vmem:[#allocation4 + $0xb2] sm:$0xff]  ;;  %v9305_v47 = vld [vmem:[#allocation4 + $0xc2] sm:$0xff] }
 0x5da   : > { %18591 = vmatprep.mubr.msk.f32.mxu1 %vm389_vm2, %v23711_v10  ;;  %19600 = vmatpush3.bf16.msra.mxu1 %v19597_v46  ;;  %v8932_v10 = vld [vmem:[#allocation4 + $0x1b0] sm:$0xff] }
 0x5db   : > { %19602 = vmatprep.subr.bf16.mxu1 %v19601_v63 }
 0x5dd   : > { %18592 = vmatmul.mubr.msk.f32.gmra.mrb[36].mxu1 %vm389_vm2, %v23715_v62  ;;  %v8933_v62 = vld [vmem:[#allocation4 + $0x1b8] sm:$0xff] }
 0x5de   : > { %18594 = vmatprep.mubr.msk.f32.mxu1 %vm389_vm2, %v23719_v17  ;;  %19604 = vmatpush3.bf16.msra.mxu1 %v19601_v63  ;;  %v8934_v17 = vld [vmem:[#allocation4 + $0x1c8] sm:$0xff]  ;;  %v10265_v63 = vld [vmem:[%s26723_s7 + $0x78] sm:$0xff] }
 0x5df   : > { %19606 = vmatprep.subr.bf16.mxu1 %v19605_v13  ;;  %v19637_v45 = vpack.c.bf16 %v10265_v63, %v10264_v6 }
 0x5e1   : > { %18595 = vmatmul.mubr.msk.f32.gmra.mrb[38].mxu1 %vm389_vm2, %v23723_v40  ;;  %v8935_v40 = vld [vmem:[#allocation4 + $0x1d0] sm:$0xff] }
 0x5e2   : > { %18597 = vmatprep.mubr.msk.f32.mxu1 %vm389_vm2, %v23727_v51  ;;  %19608 = vmatpush3.bf16.msra.mxu1 %v19605_v13  ;;  %v9297_v51 = vld [vmem:[#allocation4 + $0x62] sm:$0xff]  ;;  %v9303_v13 = vld [vmem:[#allocation4 + $0xaa] sm:$0xff] }
 0x5e3   : > { %19610 = vmatprep.subr.bf16.mxu1 %v19609_v18 }
 0x5e5   : > { %18598 = vmatmul.mubr.msk.f32.gmra.mrb[40].mxu1 %vm389_vm2, %v23731_v61  ;;  %v9724_v61 = vld [vmem:[%s26721_s5 + $0x210] sm:$0xff] }
 0x5e6   : > { %18600 = vmatprep.mubr.msk.f32.mxu1 %vm389_vm2, %v23735_v22  ;;  %v9725_v22 = vld [vmem:[%s26721_s5 + $0x218] sm:$0xff] }
 0x5e9   : > { %18601 = vmatmul.mubr.msk.f32.gmra.mrb[42].mxu1 %vm389_vm2, %v23739_v28  ;;  %v10258_v28 = vld [vmem:[%s26723_s7 + $0x40] sm:$0xff] }
 0x5ea   : > { %18603 = vmatprep.mubr.msk.f32.mxu1 %vm389_vm2, %v23743_v1  ;;  %v10259_v1 = vld [vmem:[%s26723_s7 + $0x48] sm:$0xff] }
 0x5ed   : > { %18604 = vmatmul.mubr.msk.f32.gmra.mrb[44].mxu1 %vm389_vm2, %v23747_v14  ;;  %v10260_v14 = vld [vmem:[%s26723_s7 + $0x50] sm:$0xff] }
 0x5ee   : > { %18606 = vmatprep.mubr.msk.f32.mxu1 %vm389_vm2, %v23751_v36  ;;  %v19625_v36 = vpack.c.bf16 %v10259_v1, %v10258_v28  ;;  %v9314_v28 = vld [vmem:[#allocation4 + $0x12a] sm:$0xff]  ;;  %v9315_v1 = vld [vmem:[#allocation4 + $0x13a] sm:$0xff] }
 0x5f0   : > { %19626 = vmatprep.subr.bf16.mxu0 %v19625_v36 }
 0x5f1   : > { %18607 = vmatmul.mubr.msk.f32.gmra.mrb[46].mxu1 %vm389_vm2, %v23755_v9  ;;  %v10261_v9 = vld [vmem:[%s26723_s7 + $0x58] sm:$0xff]  ;;  %19628 = vmatpush3.bf16.msra.mxu0 %v19625_v36 }
 0x5f2   : > { %18609 = vmatprep.mubr.msk.f32.mxu1 %vm389_vm2, %v23759_v39  ;;  %v9298_v39 = vld [vmem:[#allocation4 + $0x6a] sm:$0xff]  ;;  %v9317_v36 = vld [vmem:[#allocation4 + $0x152] sm:$0xff] }
 0x5f5   : > { %18610 = vmatmul.mubr.msk.f32.gmra.mrb[48].mxu1 %vm389_vm2, %v23763_v2  ;;  %v19613_v2 = vpack.c.bf16 %v9725_v22, %v9724_v61  ;;  %v9312_v61 = vld [vmem:[#allocation4 + $0x112] sm:$0xff]  ;;  %v9313_v22 = vld [vmem:[#allocation4 + $0x122] sm:$0xff] }
 0x5f6   : > { %18612 = vmatprep.mubr.msk.f32.mxu1 %vm389_vm2, %v23767_v53  ;;  %v9726_v53 = vld [vmem:[%s26721_s5 + $0x220] sm:$0xff] }
 0x5f9   : > { %18613 = vmatmul.mubr.msk.f32.gmra.mrb[50].mxu1 %vm389_vm2, %v23771_v43  ;;  %v19629_v43 = vpack.c.bf16 %v10261_v9, %v10260_v14  ;;  %v9316_v14 = vld [vmem:[#allocation4 + $0x142] sm:$0xff]  ;;  %v9318_v9 = vld [vmem:[#allocation4 + $0x15a] sm:$0xff] }
 0x5fa   : > { %18615 = vmatprep.mubr.msk.f32.mxu1 %vm389_vm2, %v23775_v50  ;;  %v9727_v50 = vld [vmem:[%s26721_s5 + $0x228] sm:$0xff] }
 0x5fb   : > { %19630 = vmatprep.subr.bf16.mxu0 %v19629_v43 }
 0x5fc   : > { %19632 = vmatpush3.bf16.msra.mxu0 %v19629_v43  ;;  %v9326_v43 = vld [vmem:[#allocation4 + $0x1ba] sm:$0xff] }
 0x5fd   : > { %18616 = vmatmul.mubr.msk.f32.gmra.mrb[52].mxu1 %vm389_vm2, %v23779_v15  ;;  %v10262_v15 = vld [vmem:[%s26723_s7 + $0x60] sm:$0xff] }
 0x5fe   : > { %18618 = vmatprep.mubr.msk.f32.mxu1 %vm389_vm2, %v23783_v38  ;;  %v10263_v38 = vld [vmem:[%s26723_s7 + $0x68] sm:$0xff] }
 0x601   : > { %18619 = vmatmul.mubr.msk.f32.gmra.mrb[54].mxu1 %vm389_vm2, %v23787_v52  ;;  %v9299_v52 = vld [vmem:[#allocation4 + $0x7a] sm:$0xff] }
 0x602   : > { %18621 = vmatprep.mubr.msk.f32.mxu1 %vm389_vm2, %v24012_v57  ;;  %v9300_v57 = vld [vmem:[#allocation4 + $0x82] sm:$0xff] }
 0x605   : > { %18622 = vmatmul.mubr.msk.f32.gmra.mrb[56].mxu1 %vm389_vm2, %v24016_v5  ;;  %v19617_v5 = vpack.c.bf16 %v9727_v50, %v9726_v53  ;;  %v9325_v53 = vld [vmem:[#allocation4 + $0x1b2] sm:$0xff]  ;;  %v9327_v50 = vld [vmem:[#allocation4 + $0x1ca] sm:$0xff] }
 0x606   : > { %18624 = vmatprep.mubr.msk.f32.mxu1 %vm389_vm2, %v24020_v27  ;;  %v9728_v27 = vld [vmem:[%s26721_s5 + $0x230] sm:$0xff] }
 0x607   : > { %v19621_v46 = vpack.c.bf16 %v9729_v8, %v9728_v27 }
 0x609   : > { %18625 = vmatmul.mubr.msk.f32.gmra.mrb[58].mxu1 %vm389_vm2, %v24024_v11  ;;  %v19633_v11 = vpack.c.bf16 %v10263_v38, %v10262_v15  ;;  %v9328_v15 = vld [vmem:[#allocation4 + $0x1d2] sm:$0xff] }
 0x60a   : > { %18627 = vmatprep.mubr.msk.f32.mxu1 %vm389_vm2, %v8932_v10  ;;  %v9307_v10 = vld [vmem:[#allocation4 + $0xda] sm:$0xff] }
 0x60b   : > { %19634 = vmatprep.subr.bf16.mxu0 %v19633_v11 }
 0x60c   : > { %19636 = vmatpush3.bf16.msra.mxu0 %v19633_v11 }
 0x60d   : > { %18628 = vmatmul.mubr.msk.f32.gmra.mrb[60].mxu1 %vm389_vm2, %v8933_v62  ;;  %19638 = vmatprep.subr.bf16.mxu0 %v19637_v45  ;;  %v9308_v62 = vld [vmem:[#allocation4 + $0xe2] sm:$0xff] }
 0x60e   : > { %18630 = vmatprep.mubr.msk.f32.mxu1 %vm389_vm2, %v8934_v17  ;;  %v9309_v17 = vld [vmem:[#allocation4 + $0xf2] sm:$0xff] }
 0x610   : > { %19640 = vmatpush3.bf16.msra.mxu0 %v19637_v45 }
 0x611   : > { %18631 = vmatmul.mubr.msk.f32.gmra.mrb[62].mxu1 %vm389_vm2, %v8935_v40  ;;  %v9310_v40 = vld [vmem:[#allocation4 + $0xfa] sm:$0xff] }
 0x612   : > { %18649 = vmatprep.mubr.msk.f32.mxu1 %vm389_vm2, %v9297_v51  ;;  %v9311_v51 = vld [vmem:[#allocation4 + $0x10a] sm:$0xff] }
 0x615   : > { %18650 = vmatmul.mubr.msk.f32.vlgmr.msra.gmra.mrb[32].mxu1 %vm389_vm2, %v9298_v39  ;;  %v9319_v39 = vld [vmem:[#allocation4 + $0x16a] sm:$0xff] }
 0x616   : > { %19612 = vmatpush3.bf16.msra.mxu1 %v19609_v18  ;;  %18652 = vmatprep.mubr.msk.f32.mxu1 %vm389_vm2, %v9299_v52  ;;  %v9306_v18 = vld [vmem:[#allocation4 + $0xca] sm:$0xff] }
 0x617   : > { %19614 = vmatprep.subr.bf16.mxu1 %v19613_v2 }
 0x619   : > { %18653 = vmatmul.mubr.msk.f32.gmra.mrb[34].mxu1 %vm389_vm2, %v9300_v57 }
 0x61a   : > { %18655 = vmatprep.mubr.msk.f32.mxu1 %vm389_vm2, %v9301_v30  ;;  %19616 = vmatpush3.bf16.msra.mxu1 %v19613_v2  ;;  %v9320_v2 = vld [vmem:[#allocation4 + $0x172] sm:$0xff] }
 0x61b   : > { %19618 = vmatprep.subr.bf16.mxu1 %v19617_v5 }
 0x61d   : > { %18656 = vmatmul.mubr.msk.f32.gmra.mrb[36].mxu1 %vm389_vm2, %v9302_v32 }
 0x61e   : > { %18658 = vmatprep.mubr.msk.f32.mxu1 %vm389_vm2, %v9303_v13  ;;  %19620 = vmatpush3.bf16.msra.mxu1 %v19617_v5 }
 0x61f   : > { %19622 = vmatprep.subr.bf16.mxu1 %v19621_v46 }
 0x621   : > { %18659 = vmatmul.mubr.msk.f32.gmra.mrb[38].mxu1 %vm389_vm2, %v9304_v31 }
 0x622   : > { %18661 = vmatprep.mubr.msk.f32.mxu1 %vm389_vm2, %v9305_v47  ;;  %19624 = vmatpush3.bf16.msra.mxu1 %v19621_v46 }
 0x625   : > { %18662 = vmatmul.mubr.msk.f32.gmra.mrb[40].mxu1 %vm389_vm2, %v9306_v18 }
 0x626   : > { %18664 = vmatprep.mubr.msk.f32.mxu1 %vm389_vm2, %v9307_v10 }
 0x629   : > { %18665 = vmatmul.mubr.msk.f32.gmra.mrb[42].mxu1 %vm389_vm2, %v9308_v62 }
 0x62a   : > { %18667 = vmatprep.mubr.msk.f32.mxu1 %vm389_vm2, %v9309_v17 }
 0x62d   : > { %18668 = vmatmul.mubr.msk.f32.gmra.mrb[44].mxu1 %vm389_vm2, %v9310_v40 }
 0x62e   : > { %18670 = vmatprep.mubr.msk.f32.mxu1 %vm389_vm2, %v9311_v51 }
 0x631   : > { %18671 = vmatmul.mubr.msk.f32.gmra.mrb[46].mxu1 %vm389_vm2, %v9312_v61 }
 0x632   : > { %18673 = vmatprep.mubr.msk.f32.mxu1 %vm389_vm2, %v9313_v22 }
 0x635   : > { %18674 = vmatmul.mubr.msk.f32.gmra.mrb[48].mxu1 %vm389_vm2, %v9314_v28 }
 0x636   : > { %18676 = vmatprep.mubr.msk.f32.mxu1 %vm389_vm2, %v9315_v1 }
 0x639   : > { %18677 = vmatmul.mubr.msk.f32.gmra.mrb[50].mxu1 %vm389_vm2, %v9316_v14 }
 0x63a   : > { %18679 = vmatprep.mubr.msk.f32.mxu1 %vm389_vm2, %v9317_v36 }
 0x63d   : > { %18680 = vmatmul.mubr.msk.f32.gmra.mrb[52].mxu1 %vm389_vm2, %v9318_v9 }
 0x63e   : > { %18682 = vmatprep.mubr.msk.f32.mxu1 %vm389_vm2, %v9319_v39 }
 0x641   : > { %18683 = vmatmul.mubr.msk.f32.gmra.mrb[54].mxu1 %vm389_vm2, %v9320_v2 }
 0x642   : > { %18685 = vmatprep.mubr.msk.f32.mxu1 %vm389_vm2, %v24108_v12  ;;  %v26990_v12 = vld [vmem:[#allocation14_spill] sm:$0xff] }
 0x645   : > { %18686 = vmatmul.mubr.msk.f32.gmra.mrb[56].mxu1 %vm389_vm2, %v24112_v24  ;;  %v26991_v24 = vld [vmem:[#allocation18_spill] sm:$0xff] }
 0x646   : > { %18688 = vmatprep.mubr.msk.f32.mxu1 %vm389_vm2, %v24116_v35  ;;  %v9718_v35 = vld [vmem:[#allocation4 + $0x1b4] sm:$0xff] }
 0x649   : > { %18689 = vmatmul.mubr.msk.f32.gmra.mrb[58].mxu1 %vm389_vm2, %v24120_v25  ;;  %v26992_v25 = vld [vmem:[#allocation12_spill] sm:$0xff] }
 0x64a   : > { %18691 = vmatprep.mubr.msk.f32.mxu1 %vm389_vm2, %v9325_v53 }
 0x64d   : > { %18692 = vmatmul.mubr.msk.f32.gmra.mrb[60].mxu1 %vm389_vm2, %v9326_v43 }
 0x64e   : > { %18694 = vmatprep.mubr.msk.f32.mxu1 %vm389_vm2, %v9327_v50 }
 0x651   : > { %18695 = vmatmul.mubr.msk.f32.gmra.mrb[62].mxu1 %vm389_vm2, %v9328_v15 }
 0x652   : > { %18713 = vmatprep.mubr.msk.f32.mxu1 %vm389_vm2, %v26963_v49  ;;  %v9719_v49 = vld [vmem:[#allocation4 + $0x1bc] sm:$0xff] }
 0x655   : > { %18714 = vmatmul.mubr.msk.f32.vlgmr.msra.gmra.mrb[32].mxu1 %vm389_vm2, %v26964_v4  ;;  %v9720_v4 = vld [vmem:[#allocation4 + $0x1cc] sm:$0xff] }
 0x656   : > { %18716 = vmatprep.mubr.msk.f32.mxu1 %vm389_vm2, %v26965_v19  ;;  %v9721_v19 = vld [vmem:[#allocation4 + $0x1d4] sm:$0xff] }
 0x659   : > { %18717 = vmatmul.mubr.msk.f32.gmra.mrb[34].mxu1 %vm389_vm2, %v26966_v55  ;;  %v10226_v55 = vld [vmem:[#allocation3 + $0x2] sm:$0xff] }
 0x65a   : > { %18719 = vmatprep.mubr.msk.f32.mxu1 %vm389_vm2, %v26967_v37  ;;  %18777 = vmatprep.mubr.msk.f32.mxu0 %vm389_vm2, %v10226_v55  ;;  %v10218_v37 = vld [vmem:[%s26723_s7] sm:$0xff] }
 0x65d   : > { %18720 = vmatmul.mubr.msk.f32.gmra.mrb[36].mxu1 %vm389_vm2, %v26968_v58  ;;  %v10219_v58 = vld [vmem:[%s26723_s7 + $0x8] sm:$0xff] }
 0x65e   : > { %18722 = vmatprep.mubr.msk.f32.mxu1 %vm389_vm2, %v26969_v23  ;;  %v10227_v23 = vld [vmem:[#allocation3 + $0xa] sm:$0xff] }
 0x65f   : > { %18778 = vmatmul.mubr.msk.f32.vlgmr.msra.gmra.mrb[32].mxu0 %vm389_vm2, %v10227_v23 }
 0x661   : > { %18723 = vmatmul.mubr.msk.f32.gmra.mrb[38].mxu1 %vm389_vm2, %v26970_v56  ;;  %v19641_v56 = vpack.c.bf16 %v10219_v58, %v10218_v37 }
 0x662   : > { %18725 = vmatprep.mubr.msk.f32.mxu1 %vm389_vm2, %v26971_v44  ;;  %v10228_v44 = vld [vmem:[#allocation3 + $0x1a] sm:$0xff] }
 0x663   : > { %19642 = vmatprep.subr.bf16.mxu0 %v19641_v56  ;;  %18780 = vmatprep.mubr.msk.f32.mxu0 %vm389_vm2, %v10228_v44 }
 0x664   : > { %19644 = vmatpush3.bf16.msra.mxu0 %v19641_v56 }
 0x665   : > { %18726 = vmatmul.mubr.msk.f32.gmra.mrb[40].mxu1 %vm389_vm2, %v26972_v48  ;;  %v10229_v48 = vld [vmem:[#allocation3 + $0x22] sm:$0xff] }
 0x666   : > { %18728 = vmatprep.mubr.msk.f32.mxu1 %vm389_vm2, %v26973_v59  ;;  %18781 = vmatmul.mubr.msk.f32.gmra.mrb[34].mxu0 %vm389_vm2, %v10229_v48  ;;  %v10220_v59 = vld [vmem:[%s26723_s7 + $0x10] sm:$0xff] }
 0x669   : > { %18729 = vmatmul.mubr.msk.f32.gmra.mrb[42].mxu1 %vm389_vm2, %v26974_v7  ;;  %v10221_v7 = vld [vmem:[%s26723_s7 + $0x18] sm:$0xff] }
 0x66a   : > { %18731 = vmatprep.mubr.msk.f32.mxu1 %vm389_vm2, %v26975_v0  ;;  %v19645_v0 = vpack.c.bf16 %v10221_v7, %v10220_v59 }
 0x66c   : > { %19646 = vmatprep.subr.bf16.mxu0 %v19645_v0 }
 0x66d   : > { %18732 = vmatmul.mubr.msk.f32.gmra.mrb[44].mxu1 %vm389_vm2, %v26976_v20  ;;  %19648 = vmatpush3.bf16.msra.mxu0 %v19645_v0  ;;  %v10222_v20 = vld [vmem:[%s26723_s7 + $0x20] sm:$0xff] }
 0x66e   : > { %18734 = vmatprep.mubr.msk.f32.mxu1 %vm389_vm2, %v26977_v54  ;;  %v10223_v54 = vld [vmem:[%s26723_s7 + $0x28] sm:$0xff] }
 0x671   : > { %18735 = vmatmul.mubr.msk.f32.gmra.mrb[46].mxu1 %vm389_vm2, %v26978_v26  ;;  %v19649_v26 = vpack.c.bf16 %v10223_v54, %v10222_v20 }
 0x672   : > { %18737 = vmatprep.mubr.msk.f32.mxu1 %vm389_vm2, %v26979_v34  ;;  %v10224_v34 = vld [vmem:[%s26723_s7 + $0x30] sm:$0xff] }
 0x673   : > { %19650 = vmatprep.subr.bf16.mxu0 %v19649_v26 }
 0x674   : > { %19652 = vmatpush3.bf16.msra.mxu0 %v19649_v26 }
 0x675   : > { %18738 = vmatmul.mubr.msk.f32.gmra.mrb[48].mxu1 %vm389_vm2, %v26980_v41  ;;  %v10225_v41 = vld [vmem:[%s26723_s7 + $0x38] sm:$0xff] }
 0x676   : > { %18740 = vmatprep.mubr.msk.f32.mxu1 %vm389_vm2, %v26981_v21  ;;  %v19653_v21 = vpack.c.bf16 %v10225_v41, %v10224_v34 }
 0x678   : > { %19654 = vmatprep.subr.bf16.mxu0 %v19653_v21 }
 0x679   : > { %18741 = vmatmul.mubr.msk.f32.gmra.mrb[50].mxu1 %vm389_vm2, %v26982_v29  ;;  %19656 = vmatpush3.bf16.msra.mxu0 %v19653_v21  ;;  %v10940_v29 = vld [vmem:[%s26723_s7 + $0x80] sm:$0xff] }
 0x67a   : > { %18743 = vmatprep.mubr.msk.f32.mxu1 %vm389_vm2, %v26983_v42  ;;  %v10941_v42 = vld [vmem:[%s26723_s7 + $0x88] sm:$0xff] }
 0x67d   : > { %18744 = vmatmul.mubr.msk.f32.gmra.mrb[52].mxu1 %vm389_vm2, %v26984_v16  ;;  %v24476_v16 = vpack.c.bf16 %v10941_v42, %v10940_v29 }
 0x67e   : > { %18746 = vmatprep.mubr.msk.f32.mxu1 %vm389_vm2, %v26985_v60  ;;  %v24482_v60 = vld [vmem:[%s26722_s6] ss:$0 sm:$0xff] }
 0x67f   : > { %19658 = vmatprep.subr.bf16.mxu0 %v24476_v16 }
 0x681   : > { %18747 = vmatmul.mubr.msk.f32.gmra.mrb[54].mxu1 %vm389_vm2, %v26986_v33 }
 0x682   : > { %18749 = vmatprep.mubr.msk.f32.mxu1 %vm389_vm2, %v24204_v3 }
 0x685   : > { %18750 = vmatmul.mubr.msk.f32.gmra.mrb[56].mxu1 %vm389_vm2, %v26990_v12 }
 0x686   : > { %18752 = vmatprep.mubr.msk.f32.mxu1 %vm389_vm2, %v26991_v24 }
 0x689   : > { %18753 = vmatmul.mubr.msk.f32.gmra.mrb[58].mxu1 %vm389_vm2, %v26992_v25 }
 0x68a   : > { %18755 = vmatprep.mubr.msk.f32.mxu1 %vm389_vm2, %v9718_v35 }
 0x68d   : > { %18756 = vmatmul.mubr.msk.f32.gmra.mrb[60].mxu1 %vm389_vm2, %v9719_v49 }
 0x68e   : > { %18758 = vmatprep.mubr.msk.f32.mxu1 %vm389_vm2, %v9720_v4 }
 0x691   : > { %18759 = vmatmul.mubr.msk.f32.gmra.mrb[62].mxu1 %vm389_vm2, %v9721_v19 }
 0x728   : > { %v18715_v33 = vpop.f32.mrb[32].mxu1 }
 0x729   : > { %v10091_v3 = vadd.f32 %v18715_v33, %v24482_v60  ;;  %v9892_v38 = vpop.f32.mrb[33].mxu1 }
 0x72a   : > { %v10090_v52 = vadd.f32 %v24482_v60, %v9892_v38 }
 0x72b   : > { %v10123_v57 = vmax.f32 %v10091_v3, 0.0 }
 0x72c   : > { %v10122_v5 = vmax.f32 %v10090_v52, 0.0  ;;  %v18718_v27 = vpop.f32.mrb[34].mxu1 }
 0x72d   : > { %10155 = vst.msk [vmem:[#allocation3 + $0x3a] sm:$0xff] %vm389_vm2, %v10123_v57  ;;  %v10093_v11 = vadd.f32 %v18718_v27, %v24482_v60  ;;  %v9902_v8 = vpop.f32.mrb[35].mxu1 }
 0x72e   : > { %10154 = vst.msk [vmem:[#allocation3 + $0x32] sm:$0xff] %vm389_vm2, %v10122_v5  ;;  %v10092_v6 = vadd.f32 %v24482_v60, %v9902_v8 }
 0x72f   : > { %v10125_v63 = vmax.f32 %v10093_v11, 0.0 }
 0x730   : > { %v10124_v30 = vmax.f32 %v10092_v6, 0.0  ;;  %v18721_v46 = vpop.f32.mrb[36].mxu1 }
 0x731   : > { %10157 = vst.msk [vmem:[#allocation3 + $0x52] sm:$0xff] %vm389_vm2, %v10125_v63  ;;  %v10095_v45 = vadd.f32 %v18721_v46, %v24482_v60  ;;  %v9912_v32 = vpop.f32.mrb[37].mxu1 }
 0x732   : > { %10156 = vst.msk [vmem:[#allocation3 + $0x4a] sm:$0xff] %vm389_vm2, %v10124_v30  ;;  %v10094_v13 = vadd.f32 %v24482_v60, %v9912_v32 }
 0x733   : > { %v10127_v31 = vmax.f32 %v10095_v45, 0.0 }
 0x734   : > { %v10126_v47 = vmax.f32 %v10094_v13, 0.0  ;;  %v18724_v18 = vpop.f32.mrb[38].mxu1  ;;  %v24502_v51 = vld [vmem:[#allocation3 + $0x3a] sm:$0xff] }
 0x735   : > { %10159 = vst.msk [vmem:[#allocation3 + $0x6a] sm:$0xff] %vm389_vm2, %v10127_v31  ;;  %v10097_v10 = vadd.f32 %v18724_v18, %v24482_v60  ;;  %v9922_v62 = vpop.f32.mrb[39].mxu1  ;;  %v24496_v17 = vld [vmem:[#allocation3 + $0x32] sm:$0xff] }
 0x736   : > { %10158 = vst.msk [vmem:[#allocation3 + $0x62] sm:$0xff] %vm389_vm2, %v10126_v47  ;;  %v10096_v40 = vadd.f32 %v24482_v60, %v9922_v62  ;;  %18783 = vmatprep.mubr.msk.f32.mxu0 %vm389_vm2, %v24496_v17 }
 0x737   : > { %v10129_v61 = vmax.f32 %v10097_v10, 0.0  ;;  %18784 = vmatmul.mubr.msk.f32.gmra.mrb[36].mxu0 %vm389_vm2, %v24502_v51 }
 0x738   : > { %v10128_v22 = vmax.f32 %v10096_v40, 0.0  ;;  %v18727_v28 = vpop.f32.mrb[40].mxu1  ;;  %v24514_v39 = vld [vmem:[#allocation3 + $0x52] sm:$0xff] }
 0x739   : > { %10161 = vst.msk [vmem:[#allocation3 + $0x82] sm:$0xff] %vm389_vm2, %v10129_v61  ;;  %v10099_v1 = vadd.f32 %v18727_v28, %v24482_v60  ;;  %v9932_v14 = vpop.f32.mrb[41].mxu1  ;;  %v24508_v36 = vld [vmem:[#allocation3 + $0x4a] sm:$0xff] }
 0x73a   : > { %10160 = vst.msk [vmem:[#allocation3 + $0x7a] sm:$0xff] %vm389_vm2, %v10128_v22  ;;  %v10098_v9 = vadd.f32 %v24482_v60, %v9932_v14  ;;  %18786 = vmatprep.mubr.msk.f32.mxu0 %vm389_vm2, %v24508_v36 }
 0x73b   : > { %v10131_v2 = vmax.f32 %v10099_v1, 0.0  ;;  %18787 = vmatmul.mubr.msk.f32.gmra.mrb[38].mxu0 %vm389_vm2, %v24514_v39 }
 0x73c   : > { %v10130_v53 = vmax.f32 %v10098_v9, 0.0  ;;  %v18730_v43 = vpop.f32.mrb[42].mxu1  ;;  %v24526_v35 = vld [vmem:[#allocation3 + $0x6a] sm:$0xff] }
 0x73d   : > { %10163 = vst.msk [vmem:[#allocation3 + $0x9a] sm:$0xff] %vm389_vm2, %v10131_v2  ;;  %v10101_v50 = vadd.f32 %v18730_v43, %v24482_v60  ;;  %v9942_v15 = vpop.f32.mrb[43].mxu1  ;;  %v24520_v12 = vld [vmem:[#allocation3 + $0x62] sm:$0xff] }
 0x73e   : > { %10162 = vst.msk [vmem:[#allocation3 + $0x92] sm:$0xff] %vm389_vm2, %v10130_v53  ;;  %v10100_v24 = vadd.f32 %v24482_v60, %v9942_v15  ;;  %18789 = vmatprep.mubr.msk.f32.mxu0 %vm389_vm2, %v24520_v12 }
 0x73f   : > { %v10133_v25 = vmax.f32 %v10101_v50, 0.0  ;;  %18790 = vmatmul.mubr.msk.f32.gmra.mrb[40].mxu0 %vm389_vm2, %v24526_v35 }
 0x740   : > { %v10132_v49 = vmax.f32 %v10100_v24, 0.0  ;;  %v18733_v4 = vpop.f32.mrb[44].mxu1  ;;  %v24538_v23 = vld [vmem:[#allocation3 + $0x82] sm:$0xff] }
 0x741   : > { %10165 = vst.msk [vmem:[#allocation3 + $0xb2] sm:$0xff] %vm389_vm2, %v10133_v25  ;;  %v10103_v19 = vadd.f32 %v18733_v4, %v24482_v60  ;;  %v9952_v55 = vpop.f32.mrb[45].mxu1  ;;  %v24532_v37 = vld [vmem:[#allocation3 + $0x7a] sm:$0xff] }
 0x742   : > { %10164 = vst.msk [vmem:[#allocation3 + $0xaa] sm:$0xff] %vm389_vm2, %v10132_v49  ;;  %v10102_v58 = vadd.f32 %v24482_v60, %v9952_v55  ;;  %18792 = vmatprep.mubr.msk.f32.mxu0 %vm389_vm2, %v24532_v37 }
 0x743   : > { %v10135_v56 = vmax.f32 %v10103_v19, 0.0  ;;  %18793 = vmatmul.mubr.msk.f32.gmra.mrb[42].mxu0 %vm389_vm2, %v24538_v23 }
 0x744   : > { %v10134_v44 = vmax.f32 %v10102_v58, 0.0  ;;  %v18736_v48 = vpop.f32.mrb[46].mxu1  ;;  %v24550_v54 = vld [vmem:[#allocation3 + $0x9a] sm:$0xff] }
 0x745   : > { %10167 = vst.msk [vmem:[#allocation3 + $0xca] sm:$0xff] %vm389_vm2, %v10135_v56  ;;  %v10105_v59 = vadd.f32 %v18736_v48, %v24482_v60  ;;  %v9962_v7 = vpop.f32.mrb[47].mxu1  ;;  %v24544_v0 = vld [vmem:[#allocation3 + $0x92] sm:$0xff] }
 0x746   : > { %10166 = vst.msk [vmem:[#allocation3 + $0xc2] sm:$0xff] %vm389_vm2, %v10134_v44  ;;  %v10104_v20 = vadd.f32 %v24482_v60, %v9962_v7  ;;  %18795 = vmatprep.mubr.msk.f32.mxu0 %vm389_vm2, %v24544_v0 }
 0x747   : > { %v10137_v26 = vmax.f32 %v10105_v59, 0.0  ;;  %18796 = vmatmul.mubr.msk.f32.gmra.mrb[44].mxu0 %vm389_vm2, %v24550_v54 }
 0x748   : > { %v10136_v34 = vmax.f32 %v10104_v20, 0.0  ;;  %v18739_v41 = vpop.f32.mrb[48].mxu1  ;;  %v24562_v3 = vld [vmem:[#allocation3 + $0xb2] sm:$0xff] }
 0x749   : > { %10169 = vst.msk [vmem:[#allocation3 + $0xe2] sm:$0xff] %vm389_vm2, %v10137_v26  ;;  %v10107_v21 = vadd.f32 %v18739_v41, %v24482_v60  ;;  %v9972_v29 = vpop.f32.mrb[49].mxu1  ;;  %v24556_v42 = vld [vmem:[#allocation3 + $0xaa] sm:$0xff] }
 0x74a   : > { %10168 = vst.msk [vmem:[#allocation3 + $0xda] sm:$0xff] %vm389_vm2, %v10136_v34  ;;  %v10106_v33 = vadd.f32 %v24482_v60, %v9972_v29  ;;  %18798 = vmatprep.mubr.msk.f32.mxu0 %vm389_vm2, %v24556_v42 }
 0x74b   : > { %v10139_v38 = vmax.f32 %v10107_v21, 0.0  ;;  %18799 = vmatmul.mubr.msk.f32.gmra.mrb[46].mxu0 %vm389_vm2, %v24562_v3 }
 0x74c   : > { %v10138_v52 = vmax.f32 %v10106_v33, 0.0  ;;  %v18742_v57 = vpop.f32.mrb[50].mxu1  ;;  %v24574_v6 = vld [vmem:[#allocation3 + $0xca] sm:$0xff] }
 0x74d   : > { %10171 = vst.msk [vmem:[#allocation3 + $0xfa] sm:$0xff] %vm389_vm2, %v10139_v38  ;;  %v10109_v5 = vadd.f32 %v18742_v57, %v24482_v60  ;;  %v9982_v27 = vpop.f32.mrb[51].mxu1  ;;  %v24568_v11 = vld [vmem:[#allocation3 + $0xc2] sm:$0xff] }
 0x74e   : > { %10170 = vst.msk [vmem:[#allocation3 + $0xf2] sm:$0xff] %vm389_vm2, %v10138_v52  ;;  %v10108_v8 = vadd.f32 %v24482_v60, %v9982_v27  ;;  %18801 = vmatprep.mubr.msk.f32.mxu0 %vm389_vm2, %v24568_v11 }
 0x74f   : > { %v10141_v63 = vmax.f32 %v10109_v5, 0.0  ;;  %18802 = vmatmul.mubr.msk.f32.gmra.mrb[48].mxu0 %vm389_vm2, %v24574_v6 }
 0x750   : > { %v10140_v30 = vmax.f32 %v10108_v8, 0.0  ;;  %v18745_v46 = vpop.f32.mrb[52].mxu1  ;;  %v24586_v47 = vld [vmem:[#allocation3 + $0xe2] sm:$0xff] }
 0x751   : > { %10173 = vst.msk [vmem:[#allocation3 + $0x112] sm:$0xff] %vm389_vm2, %v10141_v63  ;;  %v10111_v45 = vadd.f32 %v18745_v46, %v24482_v60  ;;  %v9992_v32 = vpop.f32.mrb[53].mxu1  ;;  %v24580_v13 = vld [vmem:[#allocation3 + $0xda] sm:$0xff] }
 0x752   : > { %10172 = vst.msk [vmem:[#allocation3 + $0x10a] sm:$0xff] %vm389_vm2, %v10140_v30  ;;  %v10110_v31 = vadd.f32 %v24482_v60, %v9992_v32  ;;  %18804 = vmatprep.mubr.msk.f32.mxu0 %vm389_vm2, %v24580_v13  ;;  %v10942_v32 = vld [vmem:[%s26723_s7 + $0x90] sm:$0xff] }
 0x753   : > { %v10143_v18 = vmax.f32 %v10111_v45, 0.0  ;;  %18805 = vmatmul.mubr.msk.f32.gmra.mrb[50].mxu0 %vm389_vm2, %v24586_v47  ;;  %v10186_v45 = vld [vmem:[#allocation3] sm:$0xff] }
 0x754   : > { %v10142_v10 = vmax.f32 %v10110_v31, 0.0  ;;  %v18748_v62 = vpop.f32.mrb[54].mxu1  ;;  %v24598_v1 = vld [vmem:[#allocation3 + $0xfa] sm:$0xff] }
 0x755   : > { %10175 = vst.msk [vmem:[#allocation3 + $0x12a] sm:$0xff] %vm389_vm2, %v10143_v18  ;;  %v10113_v40 = vadd.f32 %v18748_v62, %v24482_v60  ;;  %v10002_v61 = vpop.f32.mrb[55].mxu1  ;;  %v24592_v22 = vld [vmem:[#allocation3 + $0xf2] sm:$0xff]  ;;  %v10187_v18 = vld [vmem:[#allocation3 + $0x8] sm:$0xff] }
 0x756   : > { %10174 = vst.msk [vmem:[#allocation3 + $0x122] sm:$0xff] %vm389_vm2, %v10142_v10  ;;  %v10112_v28 = vadd.f32 %v24482_v60, %v10002_v61  ;;  %18807 = vmatprep.mubr.msk.f32.mxu0 %vm389_vm2, %v24592_v22  ;;  %v10943_v31 = vld [vmem:[%s26723_s7 + $0x98] sm:$0xff]  ;;  %v10945_v61 = vld [vmem:[%s26723_s7 + $0xa8] sm:$0xff] }
 0x757   : > { %v10145_v14 = vmax.f32 %v10113_v40, 0.0  ;;  %18808 = vmatmul.mubr.msk.f32.gmra.mrb[52].mxu0 %vm389_vm2, %v24598_v1  ;;  %v10188_v10 = vld [vmem:[#allocation3 + $0x18] sm:$0xff]  ;;  %v19661_v62 = vpack.c.bf16 %v10943_v31, %v10942_v32  ;;  %v10944_v40 = vld [vmem:[%s26723_s7 + $0xa0] sm:$0xff] }
 0x758   : > { %v10144_v9 = vmax.f32 %v10112_v28, 0.0  ;;  %v18751_v2 = vpop.f32.mrb[56].mxu1  ;;  %v24610_v24 = vld [vmem:[#allocation3 + $0x112] sm:$0xff]  ;;  %v10189_v28 = vld [vmem:[#allocation3 + $0x20] sm:$0xff] }
 0x759   : > { %10177 = vst.msk [vmem:[#allocation3 + $0x142] sm:$0xff] %vm389_vm2, %v10145_v14  ;;  %v10115_v53 = vadd.f32 %v18751_v2, %v24482_v60  ;;  %v10012_v43 = vpop.f32.mrb[57].mxu1  ;;  %v24604_v50 = vld [vmem:[#allocation3 + $0x10a] sm:$0xff]  ;;  %v19665_v14 = vpack.c.bf16 %v10945_v61, %v10944_v40  ;;  %v10947_v2 = vld [vmem:[%s26723_s7 + $0xb8] sm:$0xff] }
 0x75a   : > { %10176 = vst.msk [vmem:[#allocation3 + $0x13a] sm:$0xff] %vm389_vm2, %v10144_v9  ;;  %v10114_v15 = vadd.f32 %v24482_v60, %v10012_v43  ;;  %18810 = vmatprep.mubr.msk.f32.mxu0 %vm389_vm2, %v24604_v50  ;;  %v10946_v9 = vld [vmem:[%s26723_s7 + $0xb0] sm:$0xff]  ;;  %v24687_v43 = vld [vmem:[#allocation3 + $0x38] sm:$0xff]  ;;  %v10908_v61 = vld [vmem:[#allocation3 + $0x4] sm:$0xff] }
 0x75b   : > { %v10147_v25 = vmax.f32 %v10115_v53, 0.0  ;;  %18811 = vmatmul.mubr.msk.f32.gmra.mrb[54].mxu0 %vm389_vm2, %v24610_v24  ;;  %v24683_v53 = vld [vmem:[#allocation3 + $0x30] sm:$0xff] }
 0x75c   : > { %v10146_v49 = vmax.f32 %v10114_v15, 0.0  ;;  %v18754_v4 = vpop.f32.mrb[58].mxu1  ;;  %v24622_v44 = vld [vmem:[#allocation3 + $0x12a] sm:$0xff]  ;;  %v11333_v15 = vld [vmem:[%s26723_s7 + $0xc0] sm:$0xff] }
 0x75d   : > { %10179 = vst.msk [vmem:[#allocation3 + $0x15a] sm:$0xff] %vm389_vm2, %v10147_v25  ;;  %v10117_v19 = vadd.f32 %v18754_v4, %v24482_v60  ;;  %v10022_v55 = vpop.f32.mrb[59].mxu1  ;;  %v24616_v58 = vld [vmem:[#allocation3 + $0x122] sm:$0xff] }
 0x75e   : > { %10178 = vst.msk [vmem:[#allocation3 + $0x152] sm:$0xff] %vm389_vm2, %v10146_v49  ;;  %v10116_v56 = vadd.f32 %v24482_v60, %v10022_v55  ;;  %18813 = vmatprep.mubr.msk.f32.mxu0 %vm389_vm2, %v24616_v58  ;;  %v11334_v25 = vld [vmem:[%s26723_s7 + $0xc8] sm:$0xff]  ;;  %v24707_v55 = vld [vmem:[#allocation3 + $0x60] sm:$0xff] }
 0x75f   : > { %v10149_v48 = vmax.f32 %v10117_v19, 0.0  ;;  %18814 = vmatmul.mubr.msk.f32.gmra.mrb[56].mxu0 %vm389_vm2, %v24622_v44  ;;  %v24697_v49 = vld [vmem:[#allocation3 + $0x48] sm:$0xff]  ;;  %v24701_v4 = vpack.c.bf16 %v11334_v25, %v11333_v15  ;;  %v24703_v19 = vld [vmem:[#allocation3 + $0x50] sm:$0xff]  ;;  %v11337_v25 = vld [vmem:[%s26723_s7 + $0xe0] sm:$0xff] }
 0x760   : > { %v10148_v59 = vmax.f32 %v10116_v56, 0.0  ;;  %v18757_v7 = vpop.f32.mrb[60].mxu1  ;;  %v24634_v21 = vld [vmem:[#allocation3 + $0x142] sm:$0xff] }
 0x761   : > { %10181 = vst.msk [vmem:[#allocation3 + $0x172] sm:$0xff] %vm389_vm2, %v10149_v48  ;;  %v10119_v20 = vadd.f32 %v18757_v7, %v24482_v60  ;;  %v10032_v26 = vpop.f32.mrb[61].mxu1  ;;  %v24628_v34 = vld [vmem:[#allocation3 + $0x13a] sm:$0xff]  ;;  %v24712_v56 = vld [vmem:[#allocation3 + $0x68] sm:$0xff]  ;;  %v24724_v7 = vld [vmem:[#allocation3 + $0x90] sm:$0xff] }
 0x762   : > { %10180 = vst.msk [vmem:[#allocation3 + $0x16a] sm:$0xff] %vm389_vm2, %v10148_v59  ;;  %v10118_v41 = vadd.f32 %v24482_v60, %v10032_v26  ;;  %18816 = vmatprep.mubr.msk.f32.mxu0 %vm389_vm2, %v24628_v34  ;;  %v24716_v48 = vld [vmem:[#allocation3 + $0x78] sm:$0xff]  ;;  %v24720_v59 = vld [vmem:[#allocation3 + $0x80] sm:$0xff]  ;;  %v24732_v26 = vld [vmem:[#allocation3 + $0xa8] sm:$0xff] }
 0x763   : > { %v10151_v29 = vmax.f32 %v10119_v20, 0.0  ;;  %18817 = vmatmul.mubr.msk.f32.gmra.mrb[58].mxu0 %vm389_vm2, %v24634_v21  ;;  %v24728_v20 = vld [vmem:[#allocation3 + $0x98] sm:$0xff]  ;;  %v24776_v32 = vld [vmem:[#allocation3 + $0x128] sm:$0xff] }
 0x764   : > { %v10150_v33 = vmax.f32 %v10118_v41, 0.0  ;;  %v18760_v38 = vpop.f32.mrb[62].mxu1  ;;  %v24646_v8 = vld [vmem:[#allocation3 + $0x15a] sm:$0xff]  ;;  %v24736_v41 = vld [vmem:[#allocation3 + $0xb0] sm:$0xff] }
 0x765   : > { %10183 = vst.msk [vmem:[#allocation3 + $0x18a] sm:$0xff] %vm389_vm2, %v10151_v29  ;;  %v10121_v52 = vadd.f32 %v18760_v38, %v24482_v60  ;;  %v10042_v57 = vpop.f32.mrb[63].mxu1  ;;  %v24640_v5 = vld [vmem:[#allocation3 + $0x152] sm:$0xff]  ;;  %26993 = vst [vmem:[#allocation19_spill] sm:$0xff] %v24646_v8  ;;  %v24740_v29 = vld [vmem:[#allocation3 + $0xc0] sm:$0xff] }
 0x766   : > { %10182 = vst.msk [vmem:[#allocation3 + $0x182] sm:$0xff] %vm389_vm2, %v10150_v33  ;;  %v10120_v27 = vadd.f32 %v24482_v60, %v10042_v57  ;;  %18819 = vmatprep.mubr.msk.f32.mxu0 %vm389_vm2, %v24640_v5  ;;  %v24744_v33 = vld [vmem:[#allocation3 + $0xc8] sm:$0xff]  ;;  %v24748_v38 = vld [vmem:[#allocation3 + $0xd8] sm:$0xff]  ;;  %v24756_v57 = vld [vmem:[#allocation3 + $0xf0] sm:$0xff] }
 0x767   : > { %v10153_v63 = vmax.f32 %v10121_v52, 0.0  ;;  %18820 = vmatmul.mubr.msk.f32.gmra.mrb[60].mxu0 %vm389_vm2, %v24646_v8  ;;  %v24752_v52 = vld [vmem:[#allocation3 + $0xe0] sm:$0xff]  ;;  %v24780_v31 = vld [vmem:[#allocation3 + $0x138] sm:$0xff] }
 0x768   : > { %v10152_v30 = vmax.f32 %v10120_v27, 0.0  ;;  %v24656_v60 = vld [vmem:[#allocation3 + $0x172] sm:$0xff] }
 0x769   : > { %10185 = vst.msk [vmem:[#allocation3 + $0x1a2] sm:$0xff] %vm389_vm2, %v10153_v63  ;;  %v24651_v46 = vld [vmem:[#allocation3 + $0x16a] sm:$0xff]  ;;  %26995 = vst [vmem:[#allocation20_spill] sm:$0xff] %v24656_v60  ;;  %v24760_v27 = vld [vmem:[#allocation3 + $0xf8] sm:$0xff] }
 0x76a   : > { %26994 = vst [vmem:[#allocation15_spill] sm:$0xff] %v24651_v46  ;;  %10184 = vst.msk [vmem:[#allocation3 + $0x19a] sm:$0xff] %vm389_vm2, %v10152_v30  ;;  %18822 = vmatprep.mubr.msk.f32.mxu0 %vm389_vm2, %v24651_v46  ;;  %v24764_v63 = vld [vmem:[#allocation3 + $0x108] sm:$0xff]  ;;  %v24768_v30 = vld [vmem:[#allocation3 + $0x110] sm:$0xff] }
 0x76b   : > { %18823 = vmatmul.mubr.msk.f32.gmra.mrb[62].mxu0 %vm389_vm2, %v24656_v60  ;;  %v24796_v40 = vld [vmem:[#allocation3 + $0x168] sm:$0xff]  ;;  %v24827_v8 = vld [vmem:[#allocation3 + $0x34] sm:$0xff] }
 0x76c   : > { %18841 = vmatprep.mubr.msk.f32.mxu0 %vm389_vm2, %v10186_v45  ;;  %v24772_v45 = vld [vmem:[#allocation3 + $0x120] sm:$0xff]  ;;  %v11338_v60 = vld [vmem:[%s26723_s7 + $0xe8] sm:$0xff] }
 0x76d   : > { %v10911_v46 = vld [vmem:[#allocation3 + $0x24] sm:$0xff] }
 0x76f   : > { %18842 = vmatmul.mubr.msk.f32.vlgmr.msra.gmra.mrb[32].mxu0 %vm389_vm2, %v10187_v18  ;;  %v24784_v18 = vld [vmem:[#allocation3 + $0x140] sm:$0xff] }
 0x770   : > { %19660 = vmatpush3.bf16.msra.mxu0 %v24476_v16  ;;  %18844 = vmatprep.mubr.msk.f32.mxu0 %vm389_vm2, %v10188_v10  ;;  %v19669_v16 = vpack.c.bf16 %v10947_v2, %v10946_v9  ;;  %v24788_v10 = vld [vmem:[#allocation3 + $0x150] sm:$0xff]  ;;  %v11336_v9 = vld [vmem:[%s26723_s7 + $0xd8] sm:$0xff] }
 0x771   : > { %19662 = vmatprep.subr.bf16.mxu0 %v19661_v62  ;;  %v10909_v2 = vld [vmem:[#allocation3 + $0xc] sm:$0xff] }
 0x773   : > { %18845 = vmatmul.mubr.msk.f32.gmra.mrb[34].mxu0 %vm389_vm2, %v10189_v28  ;;  %v24800_v28 = vld [vmem:[#allocation3 + $0x170] sm:$0xff] }
 0x774   : > { %18847 = vmatprep.mubr.msk.f32.mxu0 %vm389_vm2, %v24683_v53  ;;  %19664 = vmatpush3.bf16.msra.mxu0 %v19661_v62  ;;  %v24792_v62 = vld [vmem:[#allocation3 + $0x158] sm:$0xff] }
 0x775   : > { %19666 = vmatprep.subr.bf16.mxu0 %v19665_v14 }
 0x777   : > { %18848 = vmatmul.mubr.msk.f32.gmra.mrb[36].mxu0 %vm389_vm2, %v24687_v43 }
 0x778   : > { %18850 = vmatprep.mubr.msk.f32.mxu0 %vm389_vm2, %v24697_v49  ;;  %19668 = vmatpush3.bf16.msra.mxu0 %v19665_v14  ;;  %v11335_v14 = vld [vmem:[%s26723_s7 + $0xd0] sm:$0xff] }
 0x779   : > { %19670 = vmatprep.subr.bf16.mxu0 %v19669_v16  ;;  %v19677_v15 = vpack.c.bf16 %v11336_v9, %v11335_v14  ;;  %v11339_v14 = vld [vmem:[%s26723_s7 + $0xf0] sm:$0xff]  ;;  %v11340_v9 = vld [vmem:[%s26723_s7 + $0xf8] sm:$0xff] }
 0x77b   : > { %18851 = vmatmul.mubr.msk.f32.gmra.mrb[38].mxu0 %vm389_vm2, %v24703_v19 }
 0x77c   : > { %18853 = vmatprep.mubr.msk.f32.mxu0 %vm389_vm2, %v24707_v55  ;;  %19672 = vmatpush3.bf16.msra.mxu0 %v19669_v16  ;;  %v10910_v16 = vld [vmem:[#allocation3 + $0x1c] sm:$0xff] }
 0x77d   : > { %19674 = vmatprep.subr.bf16.mxu0 %v24701_v4 }
 0x77f   : > { %18854 = vmatmul.mubr.msk.f32.gmra.mrb[40].mxu0 %vm389_vm2, %v24712_v56 }
 0x780   : > { %18856 = vmatprep.mubr.msk.f32.mxu0 %vm389_vm2, %v24716_v48 }
 0x783   : > { %18857 = vmatmul.mubr.msk.f32.gmra.mrb[42].mxu0 %vm389_vm2, %v24720_v59 }
 0x784   : > { %18859 = vmatprep.mubr.msk.f32.mxu0 %vm389_vm2, %v24724_v7 }
 0x787   : > { %18860 = vmatmul.mubr.msk.f32.gmra.mrb[44].mxu0 %vm389_vm2, %v24728_v20 }
 0x788   : > { %18862 = vmatprep.mubr.msk.f32.mxu0 %vm389_vm2, %v24732_v26 }
 0x78b   : > { %18863 = vmatmul.mubr.msk.f32.gmra.mrb[46].mxu0 %vm389_vm2, %v24736_v41 }
 0x78c   : > { %18865 = vmatprep.mubr.msk.f32.mxu0 %vm389_vm2, %v24740_v29 }
 0x78f   : > { %18866 = vmatmul.mubr.msk.f32.gmra.mrb[48].mxu0 %vm389_vm2, %v24744_v33 }
 0x790   : > { %18868 = vmatprep.mubr.msk.f32.mxu0 %vm389_vm2, %v24748_v38 }
 0x793   : > { %18869 = vmatmul.mubr.msk.f32.gmra.mrb[50].mxu0 %vm389_vm2, %v24752_v52 }
 0x794   : > { %18871 = vmatprep.mubr.msk.f32.mxu0 %vm389_vm2, %v24756_v57 }
 0x797   : > { %18872 = vmatmul.mubr.msk.f32.gmra.mrb[52].mxu0 %vm389_vm2, %v24760_v27 }
 0x798   : > { %18874 = vmatprep.mubr.msk.f32.mxu0 %vm389_vm2, %v24764_v63 }
 0x79b   : > { %18875 = vmatmul.mubr.msk.f32.gmra.mrb[54].mxu0 %vm389_vm2, %v24768_v30 }
 0x79c   : > { %18877 = vmatprep.mubr.msk.f32.mxu0 %vm389_vm2, %v24772_v45 }
 0x79f   : > { %18878 = vmatmul.mubr.msk.f32.gmra.mrb[56].mxu0 %vm389_vm2, %v24776_v32 }
 0x7a0   : > { %18880 = vmatprep.mubr.msk.f32.mxu0 %vm389_vm2, %v24780_v31 }
 0x7a3   : > { %18881 = vmatmul.mubr.msk.f32.gmra.mrb[58].mxu0 %vm389_vm2, %v24784_v18 }
 0x7a4   : > { %18883 = vmatprep.mubr.msk.f32.mxu0 %vm389_vm2, %v24788_v10 }
 0x7a7   : > { %18884 = vmatmul.mubr.msk.f32.gmra.mrb[60].mxu0 %vm389_vm2, %v24792_v62 }
 0x7a8   : > { %18886 = vmatprep.mubr.msk.f32.mxu0 %vm389_vm2, %v24796_v40 }
 0x7ab   : > { %18887 = vmatmul.mubr.msk.f32.gmra.mrb[62].mxu0 %vm389_vm2, %v24800_v28 }
 0x7ac   : > { %18905 = vmatprep.mubr.msk.f32.mxu0 %vm389_vm2, %v10908_v61  ;;  %v19681_v61 = vpack.c.bf16 %v11338_v60, %v11337_v25  ;;  %v11726_v60 = vld [vmem:[%s26723_s7 + $0x100] sm:$0xff]  ;;  %v24845_v25 = vld [vmem:[#allocation3 + $0x54] sm:$0xff] }
 0x7af   : > { %18906 = vmatmul.mubr.msk.f32.vlgmr.msra.gmra.mrb[32].mxu0 %vm389_vm2, %v10909_v2  ;;  %v24831_v2 = vld [vmem:[#allocation3 + $0x3c] sm:$0xff] }
 0x7b0   : > { %19676 = vmatpush3.bf16.msra.mxu0 %v24701_v4  ;;  %18908 = vmatprep.mubr.msk.f32.mxu0 %vm389_vm2, %v10910_v16  ;;  %v19685_v4 = vpack.c.bf16 %v11340_v9, %v11339_v14  ;;  %v11727_v16 = vld [vmem:[%s26723_s7 + $0x108] sm:$0xff] }
 0x7b1   : > { %19678 = vmatprep.subr.bf16.mxu0 %v19677_v15  ;;  %v24849_v14 = vld [vmem:[#allocation3 + $0x64] sm:$0xff]  ;;  %v24853_v9 = vld [vmem:[#allocation3 + $0x6c] sm:$0xff] }
 0x7b2   : > { %26996 = vst [vmem:[#allocation23_spill] sm:$0xff] %v24849_v14  ;;  %26997 = vst [vmem:[#allocation17_spill] sm:$0xff] %v24853_v9 }
 0x7b3   : > { %18909 = vmatmul.mubr.msk.f32.gmra.mrb[34].mxu0 %vm389_vm2, %v10911_v46  ;;  %v24841_v46 = vld [vmem:[#allocation3 + $0x4c] sm:$0xff] }
 0x7b4   : > { %18911 = vmatprep.mubr.msk.f32.mxu0 %vm389_vm2, %v24827_v8  ;;  %19680 = vmatpush3.bf16.msra.mxu0 %v19677_v15  ;;  %v19689_v15 = vpack.c.bf16 %v11727_v16, %v11726_v60  ;;  %v24861_v60 = vld [vmem:[#allocation3 + $0x84] sm:$0xff]  ;;  %v24865_v16 = vld [vmem:[#allocation3 + $0x94] sm:$0xff] }
 0x7b5   : > { %19682 = vmatprep.subr.bf16.mxu0 %v19681_v61  ;;  %26999 = vst [vmem:[#allocation22_spill] sm:$0xff] %v24861_v60  ;;  %27000 = vst [vmem:[#allocation10_spill] sm:$0xff] %v24865_v16 }
 0x7b7   : > { %18912 = vmatmul.mubr.msk.f32.gmra.mrb[36].mxu0 %vm389_vm2, %v24831_v2 }
 0x7b8   : > { %18914 = vmatprep.mubr.msk.f32.mxu0 %vm389_vm2, %v24841_v46  ;;  %19684 = vmatpush3.bf16.msra.mxu0 %v19681_v61  ;;  %v24857_v61 = vld [vmem:[#allocation3 + $0x7c] sm:$0xff] }
 0x7b9   : > { %19686 = vmatprep.subr.bf16.mxu0 %v19685_v4  ;;  %26998 = vst [vmem:[#allocation6_spill] sm:$0xff] %v24857_v61 }
 0x7bb   : > { %18915 = vmatmul.mubr.msk.f32.gmra.mrb[38].mxu0 %vm389_vm2, %v24845_v25 }
 0x7bc   : > { %18917 = vmatprep.mubr.msk.f32.mxu0 %vm389_vm2, %v24849_v14  ;;  %19688 = vmatpush3.bf16.msra.mxu0 %v19685_v4  ;;  %v24869_v4 = vld [vmem:[#allocation3 + $0x9c] sm:$0xff]  ;;  %v11731_v14 = vld [vmem:[%s26723_s7 + $0x128] sm:$0xff] }
 0x7bd   : > { %19690 = vmatprep.subr.bf16.mxu0 %v19689_v15  ;;  %27001 = vst [vmem:[#allocation11_spill] sm:$0xff] %v24869_v4 }
 0x7bf   : > { %18918 = vmatmul.mubr.msk.f32.gmra.mrb[40].mxu0 %vm389_vm2, %v24853_v9  ;;  %v24873_v9 = vld [vmem:[#allocation3 + $0xac] sm:$0xff] }
 0x7c0   : > { %18920 = vmatprep.mubr.msk.f32.mxu0 %vm389_vm2, %v24857_v61  ;;  %27002 = vst [vmem:[#allocation13_spill] sm:$0xff] %v24873_v9  ;;  %v24877_v61 = vld [vmem:[#allocation3 + $0xb4] sm:$0xff] }
 0x7c1   : > { %27003 = vst [vmem:[#allocation7_spill] sm:$0xff] %v24877_v61 }
 0x7c3   : > { %18921 = vmatmul.mubr.msk.f32.gmra.mrb[42].mxu0 %vm389_vm2, %v24861_v60  ;;  %v24881_v60 = vld [vmem:[#allocation3 + $0xc4] sm:$0xff] }
 0x7c4   : > { %18923 = vmatprep.mubr.msk.f32.mxu0 %vm389_vm2, %v24865_v16  ;;  %27004 = vst [vmem:[#allocation16_spill] sm:$0xff] %v24881_v60  ;;  %v24885_v16 = vld [vmem:[#allocation3 + $0xcc] sm:$0xff] }
 0x7c5   : > { %27005 = vst [vmem:[#allocation8_spill] sm:$0xff] %v24885_v16 }
 0x7c7   : > { %18924 = vmatmul.mubr.msk.f32.gmra.mrb[44].mxu0 %vm389_vm2, %v24869_v4  ;;  %v24889_v4 = vld [vmem:[#allocation3 + $0xdc] sm:$0xff] }
 0x7c8   : > { %18926 = vmatprep.mubr.msk.f32.mxu0 %vm389_vm2, %v24873_v9  ;;  %27006 = vst [vmem:[#allocation9_spill] sm:$0xff] %v24889_v4  ;;  %v24893_v9 = vld [vmem:[#allocation3 + $0xe4] sm:$0xff] }
 0x7c9   : > { %27007 = vst [vmem:[#allocation21_spill] sm:$0xff] %v24893_v9 }
 0x7cb   : > { %18927 = vmatmul.mubr.msk.f32.gmra.mrb[46].mxu0 %vm389_vm2, %v24877_v61  ;;  %v24897_v61 = vld [vmem:[#allocation3 + $0xf4] sm:$0xff] }
 0x7cc   : > { %18929 = vmatprep.mubr.msk.f32.mxu0 %vm389_vm2, %v24881_v60  ;;  %27008 = vst [vmem:[#allocation24_spill] sm:$0xff] %v24897_v61  ;;  %v24901_v60 = vld [vmem:[#allocation3 + $0xfc] sm:$0xff] }
 0x7cd   : > { %27009 = vst [vmem:[#allocation25_spill] sm:$0xff] %v24901_v60 }
 0x7cf   : > { %18930 = vmatmul.mubr.msk.f32.gmra.mrb[48].mxu0 %vm389_vm2, %v24885_v16  ;;  %v24905_v16 = vld [vmem:[#allocation3 + $0x10c] sm:$0xff] }
 0x7d0   : > { %18932 = vmatprep.mubr.msk.f32.mxu0 %vm389_vm2, %v24889_v4  ;;  %27010 = vst [vmem:[#allocation26_spill] sm:$0xff] %v24905_v16  ;;  %v24909_v4 = vld [vmem:[#allocation3 + $0x114] sm:$0xff] }
 0x7d1   : > { %27011 = vst [vmem:[#allocation27_spill] sm:$0xff] %v24909_v4 }
 0x7d3   : > { %18933 = vmatmul.mubr.msk.f32.gmra.mrb[50].mxu0 %vm389_vm2, %v24893_v9  ;;  %v24913_v9 = vld [vmem:[#allocation3 + $0x124] sm:$0xff] }
 0x7d4   : > { %18935 = vmatprep.mubr.msk.f32.mxu0 %vm389_vm2, %v24897_v61  ;;  %27012 = vst [vmem:[#allocation28_spill] sm:$0xff] %v24913_v9  ;;  %v24917_v61 = vld [vmem:[#allocation3 + $0x12c] sm:$0xff] }
 0x7d5   : > { %27013 = vst [vmem:[#allocation29_spill] sm:$0xff] %v24917_v61 }
 0x7d7   : > { %18936 = vmatmul.mubr.msk.f32.gmra.mrb[52].mxu0 %vm389_vm2, %v24901_v60  ;;  %v24921_v60 = vld [vmem:[#allocation3 + $0x13c] sm:$0xff] }
 0x7d8   : > { %18938 = vmatprep.mubr.msk.f32.mxu0 %vm389_vm2, %v24905_v16  ;;  %27014 = vst [vmem:[#allocation30_spill] sm:$0xff] %v24921_v60  ;;  %v24925_v16 = vld [vmem:[#allocation3 + $0x144] sm:$0xff] }
 0x7d9   : > { %27015 = vst [vmem:[#allocation31_spill] sm:$0xff] %v24925_v16 }
 0x7db   : > { %18939 = vmatmul.mubr.msk.f32.gmra.mrb[54].mxu0 %vm389_vm2, %v24909_v4  ;;  %v24929_v4 = vld [vmem:[#allocation3 + $0x154] sm:$0xff] }
 0x7dc   : > { %18941 = vmatprep.mubr.msk.f32.mxu0 %vm389_vm2, %v24913_v9  ;;  %27016 = vst [vmem:[#allocation32_spill] sm:$0xff] %v24929_v4  ;;  %v24933_v9 = vld [vmem:[#allocation3 + $0x15c] sm:$0xff] }
 0x7dd   : > { %27017 = vst [vmem:[#allocation14_spill] sm:$0xff] %v24933_v9 }
 0x7df   : > { %18942 = vmatmul.mubr.msk.f32.gmra.mrb[56].mxu0 %vm389_vm2, %v24917_v61  ;;  %v24937_v61 = vld [vmem:[#allocation3 + $0x16c] sm:$0xff] }
 0x7e0   : > { %18944 = vmatprep.mubr.msk.f32.mxu0 %vm389_vm2, %v24921_v60  ;;  %27018 = vst [vmem:[#allocation18_spill] sm:$0xff] %v24937_v61  ;;  %v24941_v60 = vld [vmem:[#allocation3 + $0x174] sm:$0xff] }
 0x7e1   : > { %27019 = vst [vmem:[#allocation12_spill] sm:$0xff] %v24941_v60 }
 0x7e3   : > { %18945 = vmatmul.mubr.msk.f32.gmra.mrb[58].mxu0 %vm389_vm2, %v24925_v16  ;;  %v11728_v16 = vld [vmem:[%s26723_s7 + $0x110] sm:$0xff] }
 0x7e4   : > { %18947 = vmatprep.mubr.msk.f32.mxu0 %vm389_vm2, %v24929_v4  ;;  %v11729_v4 = vld [vmem:[%s26723_s7 + $0x118] sm:$0xff] }
 0x7e7   : > { %18948 = vmatmul.mubr.msk.f32.gmra.mrb[60].mxu0 %vm389_vm2, %v24933_v9  ;;  %v19693_v9 = vpack.c.bf16 %v11729_v4, %v11728_v16  ;;  %v11733_v16 = vld [vmem:[%s26723_s7 + $0x138] sm:$0xff]  ;;  %v12121_v4 = vld [vmem:[%s26723_s7 + $0x150] sm:$0xff] }
 0x7e8   : > { %18950 = vmatprep.mubr.msk.f32.mxu0 %vm389_vm2, %v24937_v61  ;;  %v11730_v61 = vld [vmem:[%s26723_s7 + $0x120] sm:$0xff] }
 0x7eb   : > { %18951 = vmatmul.mubr.msk.f32.gmra.mrb[62].mxu0 %vm389_vm2, %v24941_v60  ;;  %v19697_v60 = vpack.c.bf16 %v11731_v14, %v11730_v61  ;;  %v25025_v14 = vld [vmem:[#allocation3 + $0x180] sm:$0xff]  ;;  %v25033_v61 = vld [vmem:[#allocation3 + $0x198] sm:$0xff] }
 0x7ec   : > { %18969 = vmatprep.mubr.msk.f32.mxu0 %vm389_vm2, %v24683_v53  ;;  %v11732_v53 = vld [vmem:[%s26723_s7 + $0x130] sm:$0xff] }
 0x7ef   : > { %18970 = vmatmul.mubr.msk.f32.vlgmr.msra.gmra.mrb[32].mxu0 %vm389_vm2, %v24687_v43  ;;  %v19701_v43 = vpack.c.bf16 %v11733_v16, %v11732_v53  ;;  %v12122_v53 = vld [vmem:[%s26723_s7 + $0x158] sm:$0xff] }
 0x7f0   : > { %19692 = vmatpush3.bf16.msra.mxu0 %v19689_v15  ;;  %18972 = vmatprep.mubr.msk.f32.mxu0 %vm389_vm2, %v24697_v49  ;;  %v12119_v49 = vld [vmem:[%s26723_s7 + $0x140] sm:$0xff]  ;;  %v12120_v15 = vld [vmem:[%s26723_s7 + $0x148] sm:$0xff]  ;;  %v19709_v16 = vpack.c.bf16 %v12122_v53, %v12121_v4  ;;  %v12126_v4 = vld [vmem:[%s26723_s7 + $0x178] sm:$0xff] }
 0x7f1   : > { %19694 = vmatprep.subr.bf16.mxu0 %v19693_v9  ;;  %v27029_v53 = vld [vmem:[#allocation13_spill] sm:$0xff] }
 0x7f3   : > { %18973 = vmatmul.mubr.msk.f32.gmra.mrb[34].mxu0 %vm389_vm2, %v24703_v19  ;;  %v19705_v19 = vpack.c.bf16 %v12120_v15, %v12119_v49  ;;  %v12124_v49 = vld [vmem:[%s26723_s7 + $0x168] sm:$0xff] }
 0x7f4   : > { %18975 = vmatprep.mubr.msk.f32.mxu0 %vm389_vm2, %v24707_v55  ;;  %19696 = vmatpush3.bf16.msra.mxu0 %v19693_v9  ;;  %v25029_v9 = vld [vmem:[#allocation3 + $0x188] sm:$0xff] }
 0x7f5   : > { %19698 = vmatprep.subr.bf16.mxu0 %v19697_v60 }
 0x7f7   : > { %18976 = vmatmul.mubr.msk.f32.gmra.mrb[36].mxu0 %vm389_vm2, %v24712_v56 }
 0x7f8   : > { %18978 = vmatprep.mubr.msk.f32.mxu0 %vm389_vm2, %v24716_v48  ;;  %19700 = vmatpush3.bf16.msra.mxu0 %v19697_v60  ;;  %v25037_v60 = vld [vmem:[#allocation3 + $0x1a0] sm:$0xff] }
 0x7f9   : > { %19702 = vmatprep.subr.bf16.mxu0 %v19701_v43 }
 0x7fb   : > { %18979 = vmatmul.mubr.msk.f32.gmra.mrb[38].mxu0 %vm389_vm2, %v24720_v59 }
 0x7fc   : > { %18981 = vmatprep.mubr.msk.f32.mxu0 %vm389_vm2, %v24724_v7  ;;  %19704 = vmatpush3.bf16.msra.mxu0 %v19701_v43  ;;  %v12123_v43 = vld [vmem:[%s26723_s7 + $0x160] sm:$0xff] }
 0x7fd   : > { %19706 = vmatprep.subr.bf16.mxu0 %v19705_v19  ;;  %v19713_v15 = vpack.c.bf16 %v12124_v49, %v12123_v43  ;;  %v27031_v43 = vld [vmem:[#allocation16_spill] sm:$0xff] }
 0x7fe   : > { %v27032_v49 = vld [vmem:[#allocation8_spill] sm:$0xff] }
 0x7ff   : > { %18982 = vmatmul.mubr.msk.f32.gmra.mrb[40].mxu0 %vm389_vm2, %v24728_v20 }
 0x800   : > { %18984 = vmatprep.mubr.msk.f32.mxu0 %vm389_vm2, %v24732_v26 }
 0x803   : > { %18985 = vmatmul.mubr.msk.f32.gmra.mrb[42].mxu0 %vm389_vm2, %v24736_v41 }
 0x804   : > { %18987 = vmatprep.mubr.msk.f32.mxu0 %vm389_vm2, %v24740_v29 }
 0x807   : > { %18988 = vmatmul.mubr.msk.f32.gmra.mrb[44].mxu0 %vm389_vm2, %v24744_v33 }
 0x808   : > { %18990 = vmatprep.mubr.msk.f32.mxu0 %vm389_vm2, %v24748_v38 }
 0x80b   : > { %18991 = vmatmul.mubr.msk.f32.gmra.mrb[46].mxu0 %vm389_vm2, %v24752_v52 }
 0x80c   : > { %18993 = vmatprep.mubr.msk.f32.mxu0 %vm389_vm2, %v24756_v57 }
 0x80f   : > { %18994 = vmatmul.mubr.msk.f32.gmra.mrb[48].mxu0 %vm389_vm2, %v24760_v27 }
 0x810   : > { %18996 = vmatprep.mubr.msk.f32.mxu0 %vm389_vm2, %v24764_v63 }
 0x813   : > { %18997 = vmatmul.mubr.msk.f32.gmra.mrb[50].mxu0 %vm389_vm2, %v24768_v30 }
 0x814   : > { %18999 = vmatprep.mubr.msk.f32.mxu0 %vm389_vm2, %v24772_v45 }
 0x817   : > { %19000 = vmatmul.mubr.msk.f32.gmra.mrb[52].mxu0 %vm389_vm2, %v24776_v32 }
 0x818   : > { %19002 = vmatprep.mubr.msk.f32.mxu0 %vm389_vm2, %v24780_v31 }
 0x81b   : > { %19003 = vmatmul.mubr.msk.f32.gmra.mrb[54].mxu0 %vm389_vm2, %v24784_v18 }
 0x81c   : > { %19005 = vmatprep.mubr.msk.f32.mxu0 %vm389_vm2, %v24788_v10 }
 0x81f   : > { %19006 = vmatmul.mubr.msk.f32.gmra.mrb[56].mxu0 %vm389_vm2, %v24792_v62 }
 0x820   : > { %19008 = vmatprep.mubr.msk.f32.mxu0 %vm389_vm2, %v24796_v40 }
 0x823   : > { %19009 = vmatmul.mubr.msk.f32.gmra.mrb[58].mxu0 %vm389_vm2, %v24800_v28 }
 0x824   : > { %19011 = vmatprep.mubr.msk.f32.mxu0 %vm389_vm2, %v25025_v14 }
 0x827   : > { %19012 = vmatmul.mubr.msk.f32.gmra.mrb[60].mxu0 %vm389_vm2, %v25029_v9 }
 0x828   : > { %19014 = vmatprep.mubr.msk.f32.mxu0 %vm389_vm2, %v25033_v61 }
 0x82b   : > { %19015 = vmatmul.mubr.msk.f32.gmra.mrb[62].mxu0 %vm389_vm2, %v25037_v60 }
 0x82c   : > { %19033 = vmatprep.mubr.msk.f32.mxu0 %vm389_vm2, %v24496_v17  ;;  %v12125_v17 = vld [vmem:[%s26723_s7 + $0x170] sm:$0xff] }
 0x82f   : > { %19034 = vmatmul.mubr.msk.f32.vlgmr.msra.gmra.mrb[32].mxu0 %vm389_vm2, %v24502_v51  ;;  %v19717_v51 = vpack.c.bf16 %v12126_v4, %v12125_v17  ;;  %v27034_v17 = vld [vmem:[#allocation21_spill] sm:$0xff]  ;;  %v27035_v4 = vld [vmem:[#allocation24_spill] sm:$0xff] }
 0x830   : > { %19708 = vmatpush3.bf16.msra.mxu0 %v19705_v19  ;;  %19036 = vmatprep.mubr.msk.f32.mxu0 %vm389_vm2, %v24508_v36  ;;  %v12512_v36 = vld [vmem:[%s26723_s7 + $0x180] sm:$0xff]  ;;  %v12513_v19 = vld [vmem:[%s26723_s7 + $0x188] sm:$0xff] }
 0x831   : > { %19710 = vmatprep.subr.bf16.mxu0 %v19709_v16 }
 0x833   : > { %19037 = vmatmul.mubr.msk.f32.gmra.mrb[34].mxu0 %vm389_vm2, %v24514_v39  ;;  %v19721_v39 = vpack.c.bf16 %v12513_v19, %v12512_v36  ;;  %v27037_v36 = vld [vmem:[#allocation26_spill] sm:$0xff]  ;;  %v27038_v19 = vld [vmem:[#allocation27_spill] sm:$0xff] }
 0x834   : > { %19039 = vmatprep.mubr.msk.f32.mxu0 %vm389_vm2, %v24520_v12  ;;  %19712 = vmatpush3.bf16.msra.mxu0 %v19709_v16  ;;  %v27020_v12 = vld [vmem:[#allocation19_spill] sm:$0xff] }
 0x835   : > { %19714 = vmatprep.subr.bf16.mxu0 %v19713_v15  ;;  %v27030_v16 = vld [vmem:[#allocation7_spill] sm:$0xff] }
 0x837   : > { %19040 = vmatmul.mubr.msk.f32.gmra.mrb[36].mxu0 %vm389_vm2, %v24526_v35  ;;  %v27021_v35 = vld [vmem:[#allocation15_spill] sm:$0xff] }
 0x838   : > { %19042 = vmatprep.mubr.msk.f32.mxu0 %vm389_vm2, %v24532_v37  ;;  %19716 = vmatpush3.bf16.msra.mxu0 %v19713_v15  ;;  %v27022_v37 = vld [vmem:[#allocation20_spill] sm:$0xff]  ;;  %v27033_v15 = vld [vmem:[#allocation9_spill] sm:$0xff] }
 0x839   : > { %19718 = vmatprep.subr.bf16.mxu0 %v19717_v51 }
 0x83b   : > { %19043 = vmatmul.mubr.msk.f32.gmra.mrb[38].mxu0 %vm389_vm2, %v24538_v23  ;;  %v25121_v23 = vld [vmem:[#allocation3 + $0x182] sm:$0xff] }
 0x83c   : > { %19045 = vmatprep.mubr.msk.f32.mxu0 %vm389_vm2, %v24544_v0  ;;  %19720 = vmatpush3.bf16.msra.mxu0 %v19717_v51  ;;  %v25125_v0 = vld [vmem:[#allocation3 + $0x18a] sm:$0xff]  ;;  %v27036_v51 = vld [vmem:[#allocation25_spill] sm:$0xff] }
 0x83d   : > { %19722 = vmatprep.subr.bf16.mxu0 %v19721_v39 }
 0x83f   : > { %19046 = vmatmul.mubr.msk.f32.gmra.mrb[40].mxu0 %vm389_vm2, %v24550_v54  ;;  %v25129_v54 = vld [vmem:[#allocation3 + $0x19a] sm:$0xff] }
 0x840   : > { %19048 = vmatprep.mubr.msk.f32.mxu0 %vm389_vm2, %v24556_v42  ;;  %v25133_v42 = vld [vmem:[#allocation3 + $0x1a2] sm:$0xff] }
 0x843   : > { %19049 = vmatmul.mubr.msk.f32.gmra.mrb[42].mxu0 %vm389_vm2, %v24562_v3  ;;  %v12514_v3 = vld [vmem:[%s26723_s7 + $0x190] sm:$0xff] }
 0x844   : > { %19051 = vmatprep.mubr.msk.f32.mxu0 %vm389_vm2, %v24568_v11  ;;  %v12515_v11 = vld [vmem:[%s26723_s7 + $0x198] sm:$0xff] }
 0x847   : > { %19052 = vmatmul.mubr.msk.f32.gmra.mrb[44].mxu0 %vm389_vm2, %v24574_v6  ;;  %v19725_v6 = vpack.c.bf16 %v12515_v11, %v12514_v3  ;;  %v27043_v3 = vld [vmem:[#allocation32_spill] sm:$0xff]  ;;  %v27044_v11 = vld [vmem:[#allocation14_spill] sm:$0xff] }
 0x848   : > { %19054 = vmatprep.mubr.msk.f32.mxu0 %vm389_vm2, %v24580_v13  ;;  %v12516_v13 = vld [vmem:[%s26723_s7 + $0x1a0] sm:$0xff] }
 0x84b   : > { %19055 = vmatmul.mubr.msk.f32.gmra.mrb[46].mxu0 %vm389_vm2, %v24586_v47  ;;  %v12517_v47 = vld [vmem:[%s26723_s7 + $0x1a8] sm:$0xff] }
 0x84c   : > { %19057 = vmatprep.mubr.msk.f32.mxu0 %vm389_vm2, %v24592_v22  ;;  %v19729_v22 = vpack.c.bf16 %v12517_v47, %v12516_v13  ;;  %v27046_v13 = vld [vmem:[#allocation12_spill] sm:$0xff]  ;;  %v25217_v47 = vld [vmem:[#allocation3 + $0x184] sm:$0xff] }
 0x84f   : > { %19058 = vmatmul.mubr.msk.f32.gmra.mrb[48].mxu0 %vm389_vm2, %v24598_v1  ;;  %v12518_v1 = vld [vmem:[%s26723_s7 + $0x1b0] sm:$0xff] }
 0x850   : > { %19060 = vmatprep.mubr.msk.f32.mxu0 %vm389_vm2, %v24604_v50  ;;  %v12519_v50 = vld [vmem:[%s26723_s7 + $0x1b8] sm:$0xff] }
 0x853   : > { %19061 = vmatmul.mubr.msk.f32.gmra.mrb[50].mxu0 %vm389_vm2, %v24610_v24  ;;  %v27023_v24 = vld [vmem:[#allocation23_spill] sm:$0xff] }
 0x854   : > { %19063 = vmatprep.mubr.msk.f32.mxu0 %vm389_vm2, %v24616_v58  ;;  %v19733_v58 = vpack.c.bf16 %v12519_v50, %v12518_v1  ;;  %v25225_v1 = vld [vmem:[#allocation3 + $0x19c] sm:$0xff]  ;;  %v25229_v50 = vld [vmem:[#allocation3 + $0x1a4] sm:$0xff] }
 0x855   : > { %27048 = vst [vmem:[#allocation15_spill] sm:$0xff] %v25225_v1  ;;  %27049 = vst [vmem:[#allocation20_spill] sm:$0xff] %v25229_v50 }
 0x857   : > { %19064 = vmatmul.mubr.msk.f32.gmra.mrb[52].mxu0 %vm389_vm2, %v24622_v44  ;;  %v12905_v44 = vld [vmem:[%s26723_s7 + $0x1c0] sm:$0xff] }
 0x858   : > { %19066 = vmatprep.mubr.msk.f32.mxu0 %vm389_vm2, %v24628_v34  ;;  %v12906_v34 = vld [vmem:[%s26723_s7 + $0x1c8] sm:$0xff] }
 0x85b   : > { %19067 = vmatmul.mubr.msk.f32.gmra.mrb[54].mxu0 %vm389_vm2, %v24634_v21  ;;  %v27024_v21 = vld [vmem:[#allocation17_spill] sm:$0xff] }
 0x85c   : > { %19069 = vmatprep.mubr.msk.f32.mxu0 %vm389_vm2, %v24640_v5  ;;  %v27025_v5 = vld [vmem:[#allocation6_spill] sm:$0xff] }
 0x85f   : > { %19070 = vmatmul.mubr.msk.f32.gmra.mrb[56].mxu0 %vm389_vm2, %v27020_v12  ;;  %v27040_v12 = vld [vmem:[#allocation29_spill] sm:$0xff] }
 0x860   : > { %19072 = vmatprep.mubr.msk.f32.mxu0 %vm389_vm2, %v27021_v35  ;;  %v27041_v35 = vld [vmem:[#allocation30_spill] sm:$0xff] }
 0x863   : > { %19073 = vmatmul.mubr.msk.f32.gmra.mrb[58].mxu0 %vm389_vm2, %v27022_v37  ;;  %v27042_v37 = vld [vmem:[#allocation31_spill] sm:$0xff] }
 0x864   : > { %19075 = vmatprep.mubr.msk.f32.mxu0 %vm389_vm2, %v25121_v23 }
 0x867   : > { %19076 = vmatmul.mubr.msk.f32.gmra.mrb[60].mxu0 %vm389_vm2, %v25125_v0 }
 0x868   : > { %19078 = vmatprep.mubr.msk.f32.mxu0 %vm389_vm2, %v25129_v54 }
 0x86b   : > { %19079 = vmatmul.mubr.msk.f32.gmra.mrb[62].mxu0 %vm389_vm2, %v25133_v42 }
 0x86c   : > { %19097 = vmatprep.mubr.msk.f32.mxu0 %vm389_vm2, %v24827_v8  ;;  %v19737_v8 = vpack.c.bf16 %v12906_v34, %v12905_v44  ;;  %v12908_v44 = vld [vmem:[%s26723_s7 + $0x1d8] sm:$0xff] }
 0x86f   : > { %19098 = vmatmul.mubr.msk.f32.vlgmr.msra.gmra.mrb[32].mxu0 %vm389_vm2, %v24831_v2  ;;  %v27026_v2 = vld [vmem:[#allocation22_spill] sm:$0xff] }
 0x870   : > { %19724 = vmatpush3.bf16.msra.mxu0 %v19721_v39  ;;  %19100 = vmatprep.mubr.msk.f32.mxu0 %vm389_vm2, %v24841_v46  ;;  %v27027_v46 = vld [vmem:[#allocation10_spill] sm:$0xff]  ;;  %v27039_v39 = vld [vmem:[#allocation28_spill] sm:$0xff] }
 0x871   : > { %19726 = vmatprep.subr.bf16.mxu0 %v19725_v6 }
 0x873   : > { %19101 = vmatmul.mubr.msk.f32.gmra.mrb[34].mxu0 %vm389_vm2, %v24845_v25  ;;  %v27028_v25 = vld [vmem:[#allocation11_spill] sm:$0xff] }
 0x874   : > { %19103 = vmatprep.mubr.msk.f32.mxu0 %vm389_vm2, %v27023_v24  ;;  %19728 = vmatpush3.bf16.msra.mxu0 %v19725_v6  ;;  %v27045_v6 = vld [vmem:[#allocation18_spill] sm:$0xff] }
 0x875   : > { %19730 = vmatprep.subr.bf16.mxu0 %v19729_v22 }
 0x877   : > { %19104 = vmatmul.mubr.msk.f32.gmra.mrb[36].mxu0 %vm389_vm2, %v27024_v21 }
 0x878   : > { %19106 = vmatprep.mubr.msk.f32.mxu0 %vm389_vm2, %v27025_v5  ;;  %19732 = vmatpush3.bf16.msra.mxu0 %v19729_v22  ;;  %v25221_v22 = vld [vmem:[#allocation3 + $0x18c] sm:$0xff] }
 0x879   : > { %19734 = vmatprep.subr.bf16.mxu0 %v19733_v58  ;;  %27047 = vst [vmem:[#allocation19_spill] sm:$0xff] %v25221_v22 }
 0x87b   : > { %19107 = vmatmul.mubr.msk.f32.gmra.mrb[38].mxu0 %vm389_vm2, %v27026_v2 }
 0x87c   : > { %19109 = vmatprep.mubr.msk.f32.mxu0 %vm389_vm2, %v27027_v46  ;;  %19736 = vmatpush3.bf16.msra.mxu0 %v19733_v58  ;;  %v12907_v58 = vld [vmem:[%s26723_s7 + $0x1d0] sm:$0xff] }
 0x87d   : > { %19738 = vmatprep.subr.bf16.mxu0 %v19737_v8  ;;  %v19741_v34 = vpack.c.bf16 %v12908_v44, %v12907_v58  ;;  %v12912_v58 = vld [vmem:[%s26723_s7 + $0x1f8] sm:$0xff] }
 0x87f   : > { %19110 = vmatmul.mubr.msk.f32.gmra.mrb[40].mxu0 %vm389_vm2, %v27028_v25 }
 0x880   : > { %19112 = vmatprep.mubr.msk.f32.mxu0 %vm389_vm2, %v27029_v53 }
 0x883   : > { %19113 = vmatmul.mubr.msk.f32.gmra.mrb[42].mxu0 %vm389_vm2, %v27030_v16 }
 0x884   : > { %19115 = vmatprep.mubr.msk.f32.mxu0 %vm389_vm2, %v27031_v43 }
 0x887   : > { %19116 = vmatmul.mubr.msk.f32.gmra.mrb[44].mxu0 %vm389_vm2, %v27032_v49 }
 0x888   : > { %19118 = vmatprep.mubr.msk.f32.mxu0 %vm389_vm2, %v27033_v15 }
 0x88b   : > { %19119 = vmatmul.mubr.msk.f32.gmra.mrb[46].mxu0 %vm389_vm2, %v27034_v17 }
 0x88c   : > { %19121 = vmatprep.mubr.msk.f32.mxu0 %vm389_vm2, %v27035_v4 }
 0x88f   : > { %19122 = vmatmul.mubr.msk.f32.gmra.mrb[48].mxu0 %vm389_vm2, %v27036_v51 }
 0x890   : > { %19124 = vmatprep.mubr.msk.f32.mxu0 %vm389_vm2, %v27037_v36 }
 0x893   : > { %19125 = vmatmul.mubr.msk.f32.gmra.mrb[50].mxu0 %vm389_vm2, %v27038_v19 }
 0x894   : > { %19127 = vmatprep.mubr.msk.f32.mxu0 %vm389_vm2, %v27039_v39 }
 0x897   : > { %19128 = vmatmul.mubr.msk.f32.gmra.mrb[52].mxu0 %vm389_vm2, %v27040_v12 }
 0x898   : > { %19130 = vmatprep.mubr.msk.f32.mxu0 %vm389_vm2, %v27041_v35 }
 0x89b   : > { %19131 = vmatmul.mubr.msk.f32.gmra.mrb[54].mxu0 %vm389_vm2, %v27042_v37 }
 0x89c   : > { %19133 = vmatprep.mubr.msk.f32.mxu0 %vm389_vm2, %v27043_v3 }
 0x89f   : > { %19134 = vmatmul.mubr.msk.f32.gmra.mrb[56].mxu0 %vm389_vm2, %v27044_v11 }
 0x8a0   : > { %19136 = vmatprep.mubr.msk.f32.mxu0 %vm389_vm2, %v27045_v6 }
 0x8a3   : > { %19137 = vmatmul.mubr.msk.f32.gmra.mrb[58].mxu0 %vm389_vm2, %v27046_v13 }
 0x8a4   : > { %19139 = vmatprep.mubr.msk.f32.mxu0 %vm389_vm2, %v25217_v47 }
 0x8a7   : > { %19140 = vmatmul.mubr.msk.f32.gmra.mrb[60].mxu0 %vm389_vm2, %v25221_v22  ;;  %v12910_v22 = vld [vmem:[%s26723_s7 + $0x1e8] sm:$0xff] }
 0x8a8   : > { %19142 = vmatprep.mubr.msk.f32.mxu0 %vm389_vm2, %v25225_v1  ;;  %v12909_v1 = vld [vmem:[%s26723_s7 + $0x1e0] sm:$0xff] }
 0x8ab   : > { %19143 = vmatmul.mubr.msk.f32.gmra.mrb[62].mxu0 %vm389_vm2, %v25229_v50  ;;  %v19745_v50 = vpack.c.bf16 %v12910_v22, %v12909_v1  ;;  %v12875_v22 = vld [vmem:[#allocation3 + $0x7a] sm:$0xff] }
 0x8ac   : > { %19161 = vmatprep.mubr.msk.f32.mxu0 %vm389_vm2, %v24707_v55  ;;  %v12911_v55 = vld [vmem:[%s26723_s7 + $0x1f0] sm:$0xff]  ;;  %v13929_v1 = vld [vmem:[#allocation4 + $0x1a] sm:$0xff] }
 0x8af   : > { %19162 = vmatmul.mubr.msk.f32.vlgmr.msra.gmra.mrb[32].mxu0 %vm389_vm2, %v24712_v56  ;;  %v19749_v56 = vpack.c.bf16 %v12912_v58, %v12911_v55  ;;  %v13928_v55 = vld [vmem:[#allocation4 + $0xa] sm:$0xff]  ;;  %v12876_v58 = vld [vmem:[#allocation3 + $0x82] sm:$0xff] }
 0x8b0   : > { %19740 = vmatpush3.bf16.msra.mxu0 %v19737_v8  ;;  %19164 = vmatprep.mubr.msk.f32.mxu0 %vm389_vm2, %v24716_v48  ;;  %v13298_v48 = vld [vmem:[%s26723_s7 + $0x200] sm:$0xff]  ;;  %v13299_v8 = vld [vmem:[%s26723_s7 + $0x208] sm:$0xff] }
 0x8b1   : > { %19742 = vmatprep.subr.bf16.mxu0 %v19741_v34 }
 0x8b3   : > { %19165 = vmatmul.mubr.msk.f32.gmra.mrb[34].mxu0 %vm389_vm2, %v24720_v59  ;;  %v19753_v59 = vpack.c.bf16 %v13299_v8, %v13298_v48  ;;  %v13305_v48 = vld [vmem:[%s26723_s7 + $0x238] sm:$0xff] }
 0x8b4   : > { %19167 = vmatprep.mubr.msk.f32.mxu0 %vm389_vm2, %v24724_v7  ;;  %19744 = vmatpush3.bf16.msra.mxu0 %v19741_v34  ;;  %v12508_v7 = vld [vmem:[#allocation3 + $0x1b0] sm:$0xff] }
 0x8b5   : > { %19746 = vmatprep.subr.bf16.mxu0 %v19745_v50 }
 0x8b7   : > { %19168 = vmatmul.mubr.msk.f32.gmra.mrb[36].mxu0 %vm389_vm2, %v24728_v20  ;;  %v12509_v20 = vld [vmem:[#allocation3 + $0x1b8] sm:$0xff] }
 0x8b8   : > { %19170 = vmatprep.mubr.msk.f32.mxu0 %vm389_vm2, %v24732_v26  ;;  %19748 = vmatpush3.bf16.msra.mxu0 %v19745_v50  ;;  %v12510_v26 = vld [vmem:[#allocation3 + $0x1c8] sm:$0xff] }
 0x8b9   : > { %19750 = vmatprep.subr.bf16.mxu0 %v19749_v56 }
 0x8bb   : > { %19171 = vmatmul.mubr.msk.f32.gmra.mrb[38].mxu0 %vm389_vm2, %v24736_v41  ;;  %v12511_v41 = vld [vmem:[#allocation3 + $0x1d0] sm:$0xff] }
 0x8bc   : > { %19173 = vmatprep.mubr.msk.f32.mxu0 %vm389_vm2, %v24740_v29  ;;  %19752 = vmatpush3.bf16.msra.mxu0 %v19749_v56  ;;  %v12873_v29 = vld [vmem:[#allocation3 + $0x62] sm:$0xff]  ;;  %v13304_v56 = vld [vmem:[%s26723_s7 + $0x230] sm:$0xff] }
 0x8bd   : > { %19754 = vmatprep.subr.bf16.mxu0 %v19753_v59 }
 0x8bf   : > { %19174 = vmatmul.mubr.msk.f32.gmra.mrb[40].mxu0 %vm389_vm2, %v24744_v33  ;;  %v13300_v33 = vld [vmem:[%s26723_s7 + $0x210] sm:$0xff] }
 0x8c0   : > { %19176 = vmatprep.mubr.msk.f32.mxu0 %vm389_vm2, %v24748_v38  ;;  %v13301_v38 = vld [vmem:[%s26723_s7 + $0x218] sm:$0xff] }
 0x8c3   : > { %19177 = vmatmul.mubr.msk.f32.gmra.mrb[42].mxu0 %vm389_vm2, %v24752_v52  ;;  %v13762_v52 = vld [vmem:[#allocation4] sm:$0xff] }
 0x8c4   : > { %19179 = vmatprep.mubr.msk.f32.mxu0 %vm389_vm2, %v24756_v57  ;;  %v25326_v57 = vld [vmem:[%s26725_s9] ss:$0 sm:$0xff] }
 0x8c7   : > { %19180 = vmatmul.mubr.msk.f32.gmra.mrb[44].mxu0 %vm389_vm2, %v24760_v27  ;;  %v13763_v27 = vld [vmem:[#allocation4 + $0x8] sm:$0xff] }
 0x8c8   : > { %19182 = vmatprep.mubr.msk.f32.mxu0 %vm389_vm2, %v24764_v63  ;;  %v13799_v63 = vmul.f32 %v25326_v57, %v13762_v52  ;;  %v12878_v52 = vld [vmem:[#allocation3 + $0x9a] sm:$0xff] }
 0x8cb   : > { %19183 = vmatmul.mubr.msk.f32.gmra.mrb[46].mxu0 %vm389_vm2, %v24768_v30  ;;  %v13800_v30 = vmul.f32 %v25326_v57, %v13763_v27 }
 0x8cc   : > { %19185 = vmatprep.mubr.msk.f32.mxu0 %vm389_vm2, %v24772_v45  ;;  %v13764_v45 = vld [vmem:[#allocation4 + $0x18] sm:$0xff] }
 0x8cf   : > { %19186 = vmatmul.mubr.msk.f32.gmra.mrb[48].mxu0 %vm389_vm2, %v24776_v32  ;;  %v13927_v32 = vld [vmem:[#allocation4 + $0x2] sm:$0xff] }
 0x8d0   : > { %19188 = vmatprep.mubr.msk.f32.mxu0 %vm389_vm2, %v24780_v31  ;;  %v25334_v31 = vld [vmem:[%s26725_s9 + $0x1] ss:$0 sm:$0xff] }
 0x8d3   : > { %19189 = vmatmul.mubr.msk.f32.gmra.mrb[50].mxu0 %vm389_vm2, %v24784_v18  ;;  %v19757_v18 = vpack.c.bf16 %v13301_v38, %v13300_v33  ;;  %v19765_v33 = vpack.c.bf16 %v13305_v48, %v13304_v56  ;;  %v13930_v38 = vld [vmem:[#allocation4 + $0x22] sm:$0xff]  ;;  %v14941_v48 = vld [vmem:[#allocation4 + $0x1b8] sm:$0xff] }
 0x8d4   : > { %19191 = vmatprep.mubr.msk.f32.mxu0 %vm389_vm2, %v24788_v10  ;;  %v13801_v10 = vmul.f32 %v25326_v57, %v13764_v45  ;;  %v14126_v45 = vld [vmem:[#allocation4 + $0x1c] sm:$0xff] }
 0x8d6   : > { %v13837_v50 = vsel %vm389_vm2, %v13801_v10, 0.0  ;;  %v14125_v10 = vld [vmem:[#allocation4 + $0xc] sm:$0xff] }
 0x8d7   : > { %19192 = vmatmul.mubr.msk.f32.gmra.mrb[52].mxu0 %vm389_vm2, %v24792_v62  ;;  %v13765_v62 = vld [vmem:[#allocation4 + $0x20] sm:$0xff] }
 0x8d8   : > { %19194 = vmatprep.mubr.msk.f32.mxu0 %vm389_vm2, %v24796_v40  ;;  %v12874_v40 = vld [vmem:[#allocation3 + $0x6a] sm:$0xff]  ;;  %v13802_v44 = vmul.f32 %v25326_v57, %v13765_v62  ;;  %v12880_v62 = vld [vmem:[#allocation3 + $0xb2] sm:$0xff] }
 0x8db   : > { %19195 = vmatmul.mubr.msk.f32.gmra.mrb[54].mxu0 %vm389_vm2, %v24800_v28  ;;  %v13302_v28 = vld [vmem:[%s26723_s7 + $0x220] sm:$0xff] }
 0x8dc   : > { %19197 = vmatprep.mubr.msk.f32.mxu0 %vm389_vm2, %v25025_v14  ;;  %v13303_v14 = vld [vmem:[%s26723_s7 + $0x228] sm:$0xff] }
 0x8dd   : > { %v19761_v34 = vpack.c.bf16 %v13303_v14, %v13302_v28  ;;  %v12881_v14 = vld [vmem:[#allocation3 + $0xc2] sm:$0xff] }
 0x8df   : > { %19198 = vmatmul.mubr.msk.f32.gmra.mrb[56].mxu0 %vm389_vm2, %v25029_v9  ;;  %v13831_v9 = vsel %vm389_vm2, %v13799_v63, 0.0 }
 0x8e0   : > { %19200 = vmatprep.mubr.msk.f32.mxu0 %vm389_vm2, %v25033_v61  ;;  %v13834_v61 = vsel %vm389_vm2, %v13800_v30, 0.0  ;;  %13832 = vadd.xlane.f32.xlu0 %v13831_v9  ;;  %v12879_v30 = vld [vmem:[#allocation3 + $0xaa] sm:$0xff] }
 0x8e1   : > { %13835 = vadd.xlane.f32.xlu1 %v13834_v61  ;;  %v14940_v9 = vld [vmem:[#allocation4 + $0x1b0] sm:$0xff]  ;;  %v25379_v61 = vld [vmem:[%s26725_s9 + $0x6] ss:$0 sm:$0xff] }
 0x8e3   : > { %19201 = vmatmul.mubr.msk.f32.gmra.mrb[58].mxu0 %vm389_vm2, %v25037_v60  ;;  %v13964_v60 = vmul.f32 %v25334_v31, %v13927_v32 }
 0x8e4   : > { %19203 = vmatprep.mubr.msk.f32.mxu0 %vm389_vm2, %v12508_v7  ;;  %v12877_v7 = vld [vmem:[#allocation3 + $0x92] sm:$0xff]  ;;  %13838 = vadd.xlane.f32.xlu0 %v13837_v50  ;;  %v12882_v50 = vld [vmem:[#allocation3 + $0xca] sm:$0xff] }
 0x8e5   : > { %v13996_v8 = vsel %vm389_vm2, %v13964_v60, 0.0 }
 0x8e6   : > { %13997 = vadd.xlane.f32.xlu1 %v13996_v8  ;;  %v12884_v8 = vld [vmem:[#allocation3 + $0xe2] sm:$0xff] }
 0x8e7   : > { %19204 = vmatmul.mubr.msk.f32.gmra.mrb[60].mxu0 %vm389_vm2, %v12509_v20  ;;  %v14124_v20 = vld [vmem:[#allocation4 + $0x4] sm:$0xff] }
 0x8e8   : > { %19206 = vmatprep.mubr.msk.f32.mxu0 %vm389_vm2, %v12510_v26  ;;  %v25362_v26 = vld [vmem:[%s26725_s9 + $0x2] ss:$0 sm:$0xff] }
 0x8e9   : > { %v14161_v63 = vmul.f32 %v25362_v26, %v14124_v20  ;;  %v14163_v28 = vmul.f32 %v25362_v26, %v14126_v45  ;;  %v12892_v45 = vld [vmem:[#allocation3 + $0x142] sm:$0xff] }
 0x8eb   : > { %19207 = vmatmul.mubr.msk.f32.gmra.mrb[62].mxu0 %vm389_vm2, %v12511_v41  ;;  %v13840_v41 = vsel %vm389_vm2, %v13802_v44, 0.0  ;;  %v14199_v44 = vsel %vm389_vm2, %v14163_v28, 0.0  ;;  %v12902_v28 = vld [vmem:[#allocation3 + $0x1ba] sm:$0xff] }
 0x8ec   : > { %19225 = vmatprep.mubr.msk.f32.mxu0 %vm389_vm2, %v12873_v29  ;;  %v13965_v29 = vmul.f32 %v25334_v31, %v13928_v55  ;;  %13841 = vadd.xlane.f32.xlu0 %v13840_v41  ;;  %v12883_v55 = vld [vmem:[#allocation3 + $0xda] sm:$0xff]  ;;  %v14978_v41 = vmul.f32 %v25379_v61, %v14941_v48 }
 0x8ee   : > { %v13999_v32 = vsel %vm389_vm2, %v13965_v29, 0.0  ;;  %v12886_v29 = vld [vmem:[#allocation3 + $0xfa] sm:$0xff] }
 0x8ef   : > { %19226 = vmatmul.mubr.msk.f32.vlgmr.msra.gmra.mrb[32].mxu0 %vm389_vm2, %v12874_v40  ;;  %v14193_v40 = vsel %vm389_vm2, %v14161_v63, 0.0  ;;  %v12890_v63 = vld [vmem:[#allocation3 + $0x12a] sm:$0xff] }
 0x8f0   : > { %19756 = vmatpush3.bf16.msra.mxu0 %v19753_v59  ;;  %19228 = vmatprep.mubr.msk.f32.mxu0 %vm389_vm2, %v12875_v22  ;;  %v13966_v59 = vmul.f32 %v25334_v31, %v13929_v1  ;;  %v14162_v22 = vmul.f32 %v25362_v26, %v14125_v10  ;;  %v14127_v1 = vld [vmem:[#allocation4 + $0x24] sm:$0xff] }
 0x8f1   : > { %19758 = vmatprep.subr.bf16.mxu0 %v19757_v18  ;;  %14000 = vadd.xlane.f32.xlu0 %v13999_v32  ;;  %v14164_v56 = vmul.f32 %v25362_v26, %v14127_v1  ;;  %v12893_v32 = vld [vmem:[#allocation3 + $0x152] sm:$0xff]  ;;  %v12895_v10 = vld [vmem:[#allocation3 + $0x16a] sm:$0xff] }
 0x8f2   : > { %v14002_v27 = vsel %vm389_vm2, %v13966_v59, 0.0 }
 0x8f3   : > { %19229 = vmatmul.mubr.msk.f32.gmra.mrb[34].mxu0 %vm389_vm2, %v12876_v58  ;;  %14003 = vadd.xlane.f32.xlu1 %v14002_v27  ;;  %v14196_v58 = vsel %vm389_vm2, %v14162_v22, 0.0  ;;  %v14202_v20 = vsel %vm389_vm2, %v14164_v56, 0.0  ;;  %v12889_v27 = vld [vmem:[#allocation3 + $0x122] sm:$0xff]  ;;  %v25506_v22 = vld [vmem:[%s26724_s8] ss:$0 sm:$0xff] }
 0x8f4   : > { %19231 = vmatprep.mubr.msk.f32.mxu0 %vm389_vm2, %v12877_v7  ;;  %19760 = vmatpush3.bf16.msra.mxu0 %v19757_v18  ;;  %v13967_v18 = vmul.f32 %v25334_v31, %v13930_v38  ;;  %v12885_v7 = vld [vmem:[#allocation3 + $0xf2] sm:$0xff]  ;;  %v15068_v38 = vsel %vm389_vm2, %v14978_v41, 0.0 }
 0x8f5   : > { %19762 = vmatprep.subr.bf16.mxu0 %v19761_v34 }
 0x8f6   : > { %v14005_v60 = vsel %vm389_vm2, %v13967_v18, 0.0  ;;  %v12894_v18 = vld [vmem:[#allocation3 + $0x15a] sm:$0xff] }
 0x8f7   : > { %19232 = vmatmul.mubr.msk.f32.gmra.mrb[36].mxu0 %vm389_vm2, %v12878_v52  ;;  %14194 = vadd.xlane.f32.xlu1 %v14193_v40  ;;  %v12888_v52 = vld [vmem:[#allocation3 + $0x112] sm:$0xff] }
 0x8f8   : > { %19234 = vmatprep.mubr.msk.f32.mxu0 %vm389_vm2, %v12879_v30  ;;  %19764 = vmatpush3.bf16.msra.mxu0 %v19761_v34  ;;  %v14977_v34 = vmul.f32 %v25379_v61, %v14940_v9  ;;  %v12891_v30 = vld [vmem:[#allocation3 + $0x13a] sm:$0xff]  ;;  %v12901_v40 = vld [vmem:[#allocation3 + $0x1b2] sm:$0xff] }
 0x8f9   : > { %19766 = vmatprep.subr.bf16.mxu0 %v19765_v33  ;;  %14006 = vadd.xlane.f32.xlu0 %v14005_v60  ;;  %v12904_v9 = vld [vmem:[#allocation3 + $0x1d2] sm:$0xff] }
 0x8fa   : > { %v15065_v59 = vsel %vm389_vm2, %v14977_v34, 0.0 }
 0x8fb   : > { %19235 = vmatmul.mubr.msk.f32.gmra.mrb[38].mxu0 %vm389_vm2, %v12880_v62  ;;  %14200 = vadd.xlane.f32.xlu1 %v14199_v44  ;;  %v12896_v62 = vld [vmem:[#allocation3 + $0x172] sm:$0xff] }
 0x8fc   : > { %19237 = vmatprep.mubr.msk.f32.mxu0 %vm389_vm2, %v12881_v14  ;;  %19768 = vmatpush3.bf16.msra.mxu0 %v19765_v33  ;;  %v12887_v33 = vld [vmem:[#allocation3 + $0x10a] sm:$0xff] }
 0x8fd   : > { %14197 = vadd.xlane.f32.xlu0 %v14196_v58  ;;  %v12903_v14 = vld [vmem:[#allocation3 + $0x1ca] sm:$0xff] }
 0x8ff   : > { %19238 = vmatmul.mubr.msk.f32.gmra.mrb[40].mxu0 %vm389_vm2, %v12882_v50  ;;  %15066 = vadd.xlane.f32.xlu1 %v15065_v59 }
 0x900   : > { %19240 = vmatprep.mubr.msk.f32.mxu0 %vm389_vm2, %v12883_v55 }
 0x901   : > { %14203 = vadd.xlane.f32.xlu0 %v14202_v20 }
 0x903   : > { %19241 = vmatmul.mubr.msk.f32.gmra.mrb[42].mxu0 %vm389_vm2, %v12884_v8 }
 0x904   : > { %19243 = vmatprep.mubr.msk.f32.mxu0 %vm389_vm2, %v12885_v7 }
 0x905   : > { %15069 = vadd.xlane.f32.xlu0 %v15068_v38 }
 0x907   : > { %19244 = vmatmul.mubr.msk.f32.gmra.mrb[44].mxu0 %vm389_vm2, %v12886_v29 }
 0x908   : > { %19246 = vmatprep.mubr.msk.f32.mxu0 %vm389_vm2, %v12887_v33 }
 0x90b   : > { %19247 = vmatmul.mubr.msk.f32.gmra.mrb[46].mxu0 %vm389_vm2, %v12888_v52 }
 0x90c   : > { %19249 = vmatprep.mubr.msk.f32.mxu0 %vm389_vm2, %v12889_v27 }
 0x90f   : > { %19250 = vmatmul.mubr.msk.f32.gmra.mrb[48].mxu0 %vm389_vm2, %v12890_v63 }
 0x910   : > { %19252 = vmatprep.mubr.msk.f32.mxu0 %vm389_vm2, %v12891_v30 }
 0x913   : > { %19253 = vmatmul.mubr.msk.f32.gmra.mrb[50].mxu0 %vm389_vm2, %v12892_v45 }
 0x914   : > { %19255 = vmatprep.mubr.msk.f32.mxu0 %vm389_vm2, %v12893_v32 }
 0x917   : > { %19256 = vmatmul.mubr.msk.f32.gmra.mrb[52].mxu0 %vm389_vm2, %v12894_v18 }
 0x918   : > { %19258 = vmatprep.mubr.msk.f32.mxu0 %vm389_vm2, %v12895_v10 }
 0x91b   : > { %19259 = vmatmul.mubr.msk.f32.gmra.mrb[54].mxu0 %vm389_vm2, %v12896_v62 }
 0x91c   : > { %19261 = vmatprep.mubr.msk.f32.mxu0 %vm389_vm2, %v25121_v23  ;;  %v27050_v23 = vld [vmem:[#allocation19_spill] sm:$0xff] }
 0x91f   : > { %19262 = vmatmul.mubr.msk.f32.gmra.mrb[56].mxu0 %vm389_vm2, %v25125_v0  ;;  %v27051_v0 = vld [vmem:[#allocation15_spill] sm:$0xff] }
 0x920   : > { %19264 = vmatprep.mubr.msk.f32.mxu0 %vm389_vm2, %v25129_v54  ;;  %v13294_v54 = vld [vmem:[#allocation3 + $0x1b4] sm:$0xff] }
 0x923   : > { %19265 = vmatmul.mubr.msk.f32.gmra.mrb[58].mxu0 %vm389_vm2, %v25133_v42  ;;  %v27052_v42 = vld [vmem:[#allocation20_spill] sm:$0xff] }
 0x924   : > { %19267 = vmatprep.mubr.msk.f32.mxu0 %vm389_vm2, %v12901_v40 }
 0x927   : > { %19268 = vmatmul.mubr.msk.f32.gmra.mrb[60].mxu0 %vm389_vm2, %v12902_v28 }
 0x928   : > { %19270 = vmatprep.mubr.msk.f32.mxu0 %vm389_vm2, %v12903_v14 }
 0x92b   : > { %19271 = vmatmul.mubr.msk.f32.gmra.mrb[62].mxu0 %vm389_vm2, %v12904_v9 }
 0x92c   : > { %19289 = vmatprep.mubr.msk.f32.mxu0 %vm389_vm2, %v27023_v24  ;;  %v13295_v24 = vld [vmem:[#allocation3 + $0x1bc] sm:$0xff] }
 0x92f   : > { %19290 = vmatmul.mubr.msk.f32.vlgmr.msra.gmra.mrb[32].mxu0 %vm389_vm2, %v27024_v21  ;;  %v13296_v21 = vld [vmem:[#allocation3 + $0x1cc] sm:$0xff] }
 0x930   : > { %19292 = vmatprep.mubr.msk.f32.mxu0 %vm389_vm2, %v27025_v5  ;;  %v13297_v5 = vld [vmem:[#allocation3 + $0x1d4] sm:$0xff] }
 0x933   : > { %19293 = vmatmul.mubr.msk.f32.gmra.mrb[34].mxu0 %vm389_vm2, %v27026_v2  ;;  %v14942_v2 = vld [vmem:[#allocation4 + $0x1c8] sm:$0xff] }
 0x934   : > { %19295 = vmatprep.mubr.msk.f32.mxu0 %vm389_vm2, %v27027_v46  ;;  %v14979_v46 = vmul.f32 %v25379_v61, %v14942_v2 }
 0x937   : > { %19296 = vmatmul.mubr.msk.f32.gmra.mrb[36].mxu0 %vm389_vm2, %v27028_v25  ;;  %v15071_v25 = vsel %vm389_vm2, %v14979_v46, 0.0 }
 0x938   : > { %19298 = vmatprep.mubr.msk.f32.mxu0 %vm389_vm2, %v27029_v53  ;;  %v14943_v53 = vld [vmem:[#allocation4 + $0x1d0] sm:$0xff]  ;;  %15072 = vadd.xlane.f32.xlu1 %v15071_v25 }
 0x93b   : > { %19299 = vmatmul.mubr.msk.f32.gmra.mrb[38].mxu0 %vm389_vm2, %v27030_v16  ;;  %v14980_v16 = vmul.f32 %v25379_v61, %v14943_v53 }
 0x93c   : > { %19301 = vmatprep.mubr.msk.f32.mxu0 %vm389_vm2, %v27031_v43  ;;  %v15137_v43 = vld [vmem:[#allocation4 + $0x1b2] sm:$0xff] }
 0x93f   : > { %19302 = vmatmul.mubr.msk.f32.gmra.mrb[40].mxu0 %vm389_vm2, %v27032_v49  ;;  %v25485_v49 = vld [vmem:[%s26725_s9 + $0x7] ss:$0 sm:$0xff] }
 0x940   : > { %19304 = vmatprep.mubr.msk.f32.mxu0 %vm389_vm2, %v27033_v15  ;;  %v15174_v15 = vmul.f32 %v25485_v49, %v15137_v43 }
 0x943   : > { %19305 = vmatmul.mubr.msk.f32.gmra.mrb[42].mxu0 %vm389_vm2, %v27034_v17  ;;  %v15074_v17 = vsel %vm389_vm2, %v14980_v16, 0.0 }
 0x944   : > { %19307 = vmatprep.mubr.msk.f32.mxu0 %vm389_vm2, %v27035_v4  ;;  %15075 = vadd.xlane.f32.xlu0 %v15074_v17  ;;  %v15262_v4 = vsel %vm389_vm2, %v15174_v15, 0.0 }
 0x945   : > { %15263 = vadd.xlane.f32.xlu1 %v15262_v4 }
 0x947   : > { %19308 = vmatmul.mubr.msk.f32.gmra.mrb[44].mxu0 %vm389_vm2, %v27036_v51  ;;  %v15138_v51 = vld [vmem:[#allocation4 + $0x1ba] sm:$0xff] }
 0x948   : > { %19310 = vmatprep.mubr.msk.f32.mxu0 %vm389_vm2, %v27037_v36  ;;  %v15175_v36 = vmul.f32 %v25485_v49, %v15138_v51 }
 0x94b   : > { %19311 = vmatmul.mubr.msk.f32.gmra.mrb[46].mxu0 %vm389_vm2, %v27038_v19  ;;  %v15139_v19 = vld [vmem:[#allocation4 + $0x1ca] sm:$0xff] }
 0x94c   : > { %19313 = vmatprep.mubr.msk.f32.mxu0 %vm389_vm2, %v27039_v39  ;;  %v15176_v39 = vmul.f32 %v25485_v49, %v15139_v19  ;;  %v25544_v19 = vld [vmem:[%s26725_s9 + $0x5] ss:$0 sm:$0xff] }
 0x94f   : > { %19314 = vmatmul.mubr.msk.f32.gmra.mrb[48].mxu0 %vm389_vm2, %v27040_v12  ;;  %v15265_v12 = vsel %vm389_vm2, %v15175_v36, 0.0 }
 0x950   : > { %19316 = vmatprep.mubr.msk.f32.mxu0 %vm389_vm2, %v27041_v35  ;;  %15266 = vadd.xlane.f32.xlu0 %v15265_v12  ;;  %v15268_v35 = vsel %vm389_vm2, %v15176_v39, 0.0 }
 0x951   : > { %15269 = vadd.xlane.f32.xlu1 %v15268_v35  ;;  %v25551_v35 = vld [vmem:[%s26725_s9 + $0x3] ss:$0 sm:$0xff] }
 0x953   : > { %19317 = vmatmul.mubr.msk.f32.gmra.mrb[50].mxu0 %vm389_vm2, %v27042_v37  ;;  %v15140_v37 = vld [vmem:[#allocation4 + $0x1d2] sm:$0xff] }
 0x954   : > { %19319 = vmatprep.mubr.msk.f32.mxu0 %vm389_vm2, %v27043_v3  ;;  %v15177_v3 = vmul.f32 %v25485_v49, %v15140_v37 }
 0x957   : > { %19320 = vmatmul.mubr.msk.f32.gmra.mrb[52].mxu0 %vm389_vm2, %v27044_v11  ;;  %v15334_v11 = vld [vmem:[#allocation4 + $0x1b4] sm:$0xff] }
 0x958   : > { %19322 = vmatprep.mubr.msk.f32.mxu0 %vm389_vm2, %v27045_v6  ;;  %v25498_v6 = vld [vmem:[%s26725_s9 + $0x8] ss:$0 sm:$0xff] }
 0x95b   : > { %19323 = vmatmul.mubr.msk.f32.gmra.mrb[54].mxu0 %vm389_vm2, %v27046_v13  ;;  %v15371_v13 = vmul.f32 %v25498_v6, %v15334_v11 }
 0x95c   : > { %19325 = vmatprep.mubr.msk.f32.mxu0 %vm389_vm2, %v25217_v47  ;;  %v15271_v47 = vsel %vm389_vm2, %v15177_v3, 0.0 }
 0x95d   : > { %15272 = vadd.xlane.f32.xlu0 %v15271_v47  ;;  %v15459_v60 = vsel %vm389_vm2, %v15371_v13, 0.0 }
 0x95e   : > { %15460 = vadd.xlane.f32.xlu1 %v15459_v60 }
 0x95f   : > { %19326 = vmatmul.mubr.msk.f32.gmra.mrb[56].mxu0 %vm389_vm2, %v27050_v23 }
 0x960   : > { %19328 = vmatprep.mubr.msk.f32.mxu0 %vm389_vm2, %v27051_v0 }
 0x963   : > { %19329 = vmatmul.mubr.msk.f32.gmra.mrb[58].mxu0 %vm389_vm2, %v27052_v42 }
 0x964   : > { %19331 = vmatprep.mubr.msk.f32.mxu0 %vm389_vm2, %v13294_v54 }
 0x967   : > { %19332 = vmatmul.mubr.msk.f32.gmra.mrb[60].mxu0 %vm389_vm2, %v13295_v24 }
 0x968   : > { %19334 = vmatprep.mubr.msk.f32.mxu0 %vm389_vm2, %v13296_v21 }
 0x96b   : > { %19335 = vmatmul.mubr.msk.f32.gmra.mrb[62].mxu0 %vm389_vm2, %v13297_v5  ;;  %v25531_v5 = vld [vmem:[%s26725_s9 + $0x4] ss:$0 sm:$0xff] }
 0xa02   : > { %v19291_v1 = vpop.f32.mrb[32].mxu0 }
 0xa03   : > { %v13667_v50 = vadd.f32 %v19291_v1, %v25506_v22  ;;  %v13468_v44 = vpop.f32.mrb[33].mxu0 }
 0xa04   : > { %v13666_v34 = vadd.f32 %v25506_v22, %v13468_v44 }
 0xa05   : > { %v13699_v55 = vmax.f32 %v13667_v50, 0.0 }
 0xa06   : > { %v13698_v58 = vmax.f32 %v13666_v34, 0.0  ;;  %v19294_v56 = vpop.f32.mrb[34].mxu0 }
 0xa07   : > { %13731 = vst.msk [vmem:[#allocation4 + $0x3a] sm:$0xff] %vm389_vm2, %v13699_v55  ;;  %v13669_v48 = vadd.f32 %v19294_v56, %v25506_v22  ;;  %v13478_v8 = vpop.f32.mrb[35].mxu0 }
 0xa08   : > { %13730 = vst.msk [vmem:[#allocation4 + $0x32] sm:$0xff] %vm389_vm2, %v13698_v58  ;;  %v13668_v59 = vadd.f32 %v25506_v22, %v13478_v8 }
 0xa09   : > { %v13701_v7 = vmax.f32 %v13669_v48, 0.0 }
 0xa0a   : > { %v13700_v20 = vmax.f32 %v13668_v59, 0.0  ;;  %v19297_v41 = vpop.f32.mrb[36].mxu0 }
 0xa0b   : > { %13733 = vst.msk [vmem:[#allocation4 + $0x52] sm:$0xff] %vm389_vm2, %v13701_v7  ;;  %v13671_v29 = vadd.f32 %v19297_v41, %v25506_v22  ;;  %v13488_v33 = vpop.f32.mrb[37].mxu0 }
 0xa0c   : > { %13732 = vst.msk [vmem:[#allocation4 + $0x4a] sm:$0xff] %vm389_vm2, %v13700_v20  ;;  %v13670_v38 = vadd.f32 %v25506_v22, %v13488_v33 }
 0xa0d   : > { %v13703_v52 = vmax.f32 %v13671_v29, 0.0 }
 0xa0e   : > { %v13702_v27 = vmax.f32 %v13670_v38, 0.0  ;;  %v19300_v63 = vpop.f32.mrb[38].mxu0  ;;  %v13932_v30 = vld [vmem:[#allocation4 + $0x3a] sm:$0xff] }
 0xa0f   : > { %v14129_v45 = vld [vmem:[#allocation4 + $0x3c] sm:$0xff]  ;;  %13735 = vst.msk [vmem:[#allocation4 + $0x6a] sm:$0xff] %vm389_vm2, %v13703_v52  ;;  %v13673_v32 = vadd.f32 %v19300_v63, %v25506_v22  ;;  %v13498_v18 = vpop.f32.mrb[39].mxu0  ;;  %v13969_v10 = vmul.f32 %v25334_v31, %v13932_v30  ;;  %v13766_v62 = vld [vmem:[#allocation4 + $0x30] sm:$0xff]  ;;  %v14556_v15 = vmul.f32 %v25531_v5, %v13932_v30 }
 0xa10   : > { %v13931_v40 = vld [vmem:[#allocation4 + $0x32] sm:$0xff]  ;;  %13734 = vst.msk [vmem:[#allocation4 + $0x62] sm:$0xff] %vm389_vm2, %v13702_v27  ;;  %v13672_v28 = vadd.f32 %v25506_v22, %v13498_v18  ;;  %v13803_v14 = vmul.f32 %v25326_v57, %v13766_v62  ;;  %v14166_v0 = vmul.f32 %v25362_v26, %v14129_v45  ;;  %v14753_v13 = vmul.f32 %v25544_v19, %v14129_v45 }
 0xa11   : > { %v13705_v9 = vmax.f32 %v13673_v32, 0.0  ;;  %v14011_v23 = vsel %vm389_vm2, %v13969_v10, 0.0  ;;  %v13968_v21 = vmul.f32 %v25334_v31, %v13931_v40  ;;  %v14128_v25 = vld [vmem:[#allocation4 + $0x34] sm:$0xff]  ;;  %v14590_v11 = vsel %vm389_vm2, %v14556_v15, 0.0 }
 0xa12   : > { %v13704_v54 = vmax.f32 %v13672_v28, 0.0  ;;  %14012 = vadd.xlane.f32.xlu0 %v14011_v23  ;;  %v19303_v42 = vpop.f32.mrb[40].mxu0  ;;  %v13843_v24 = vsel %vm389_vm2, %v13803_v14, 0.0  ;;  %v14208_v43 = vsel %vm389_vm2, %v14166_v0, 0.0  ;;  %v14165_v36 = vmul.f32 %v25362_v26, %v14128_v25  ;;  %v13767_v44 = vld [vmem:[#allocation4 + $0x38] sm:$0xff] }
 0xa13   : > { %13737 = vst.msk [vmem:[#allocation4 + $0x82] sm:$0xff] %vm389_vm2, %v13705_v9  ;;  %v13675_v2 = vadd.f32 %v19303_v42, %v25506_v22  ;;  %13844 = vadd.xlane.f32.xlu1 %v13843_v24  ;;  %v13508_v46 = vpop.f32.mrb[41].mxu0  ;;  %v14008_v51 = vsel %vm389_vm2, %v13968_v21, 0.0  ;;  %v14358_v50 = vmul.f32 %v25551_v35, %v13766_v62  ;;  %v14787_v48 = vsel %vm389_vm2, %v14753_v13, 0.0  ;;  %v13934_v10 = vld [vmem:[#allocation4 + $0x52] sm:$0xff]  ;;  %v13768_v28 = vld [vmem:[#allocation4 + $0x48] sm:$0xff] }
 0xa14   : > { %13736 = vst.msk [vmem:[#allocation4 + $0x7a] sm:$0xff] %vm389_vm2, %v13704_v54  ;;  %v13674_v53 = vadd.f32 %v25506_v22, %v13508_v46  ;;  %v14205_v1 = vsel %vm389_vm2, %v14165_v36, 0.0  ;;  %v13804_v8 = vmul.f32 %v25326_v57, %v13767_v44  ;;  %v14555_v41 = vmul.f32 %v25531_v5, %v13931_v40 }
 0xa15   : > { %v13707_v16 = vmax.f32 %v13675_v2, 0.0  ;;  %v14390_v20 = vsel %vm389_vm2, %v14358_v50, 0.0  ;;  %v14359_v63 = vmul.f32 %v25551_v35, %v13767_v44  ;;  %v14752_v18 = vmul.f32 %v25544_v19, %v14128_v25  ;;  %v14131_v2 = vld [vmem:[#allocation4 + $0x54] sm:$0xff] }
 0xa16   : > { %v13706_v17 = vmax.f32 %v13674_v53, 0.0  ;;  %14209 = vadd.xlane.f32.xlu0 %v14208_v43  ;;  %v19306_v4 = vpop.f32.mrb[42].mxu0  ;;  %v13846_v27 = vsel %vm389_vm2, %v13804_v8, 0.0  ;;  %v14587_v32 = vsel %vm389_vm2, %v14555_v41, 0.0  ;;  %v13971_v0 = vmul.f32 %v25334_v31, %v13934_v10  ;;  %v13933_v53 = vld [vmem:[#allocation4 + $0x4a] sm:$0xff] }
 0xa17   : > { %13739 = vst.msk [vmem:[#allocation4 + $0x9a] sm:$0xff] %vm389_vm2, %v13707_v16  ;;  %v13677_v39 = vadd.f32 %v19306_v4, %v25506_v22  ;;  %14009 = vadd.xlane.f32.xlu1 %v14008_v51  ;;  %v13518_v12 = vpop.f32.mrb[43].mxu0  ;;  %v14393_v23 = vsel %vm389_vm2, %v14359_v63, 0.0  ;;  %v14784_v24 = vsel %vm389_vm2, %v14752_v18, 0.0  ;;  %v13805_v21 = vmul.f32 %v25326_v57, %v13768_v28 }
 0xa18   : > { %13738 = vst.msk [vmem:[#allocation4 + $0x92] sm:$0xff] %vm389_vm2, %v13706_v17  ;;  %v13676_v37 = vadd.f32 %v25506_v22, %v13518_v12  ;;  %v14017_v15 = vsel %vm389_vm2, %v13971_v0, 0.0  ;;  %v14168_v17 = vmul.f32 %v25362_v26, %v14131_v2 }
 0xa19   : > { %v13709_v3 = vmax.f32 %v13677_v39, 0.0  ;;  %v13849_v36 = vsel %vm389_vm2, %v13805_v21, 0.0  ;;  %v13970_v39 = vmul.f32 %v25334_v31, %v13933_v53 }
 0xa1a   : > { %v13708_v47 = vmax.f32 %v13676_v37, 0.0  ;;  %14591 = vadd.xlane.f32.xlu0 %v14590_v11  ;;  %v19309_v60 = vpop.f32.mrb[44].mxu0 }
 0xa1b   : > { %13741 = vst.msk [vmem:[#allocation4 + $0xb2] sm:$0xff] %vm389_vm2, %v13709_v3  ;;  %v13679_v34 = vadd.f32 %v19309_v60, %v25506_v22  ;;  %14206 = vadd.xlane.f32.xlu1 %v14205_v1  ;;  %v13528_v55 = vpop.f32.mrb[45].mxu0  ;;  %v14130_v3 = vld [vmem:[#allocation4 + $0x4c] sm:$0xff]  ;;  %v14558_v60 = vmul.f32 %v25531_v5, %v13934_v10  ;;  %v14014_v44 = vsel %vm389_vm2, %v13970_v39, 0.0 }
 0xa1c   : > { %13740 = vst.msk [vmem:[#allocation4 + $0xaa] sm:$0xff] %vm389_vm2, %v13708_v47  ;;  %v13678_v58 = vadd.f32 %v25506_v22, %v13528_v55  ;;  %v14214_v47 = vsel %vm389_vm2, %v14168_v17, 0.0  ;;  %v14754_v21 = vmul.f32 %v25544_v19, %v14130_v3 }
 0xa1d   : > { %v13711_v56 = vmax.f32 %v13679_v34, 0.0  ;;  %v14167_v34 = vmul.f32 %v25362_v26, %v14130_v3  ;;  %v14596_v8 = vsel %vm389_vm2, %v14558_v60, 0.0 }
 0xa1e   : > { %v13710_v59 = vmax.f32 %v13678_v58, 0.0  ;;  %14788 = vadd.xlane.f32.xlu0 %v14787_v48  ;;  %v19312_v7 = vpop.f32.mrb[46].mxu0 }
 0xa1f   : > { %13743 = vst.msk [vmem:[#allocation4 + $0xca] sm:$0xff] %vm389_vm2, %v13711_v56  ;;  %v13681_v29 = vadd.f32 %v19312_v7, %v25506_v22  ;;  %14391 = vadd.xlane.f32.xlu1 %v14390_v20  ;;  %v13538_v33 = vpop.f32.mrb[47].mxu0  ;;  %v14211_v41 = vsel %vm389_vm2, %v14167_v34, 0.0 }
 0xa20   : > { %13742 = vst.msk [vmem:[#allocation4 + $0xc2] sm:$0xff] %vm389_vm2, %v13710_v59  ;;  %v13680_v38 = vadd.f32 %v25506_v22, %v13538_v33  ;;  %v14755_v59 = vmul.f32 %v25544_v19, %v14131_v2  ;;  %v13769_v33 = vld [vmem:[#allocation4 + $0x50] sm:$0xff] }
 0xa21   : > { %v13713_v52 = vmax.f32 %v13681_v29, 0.0  ;;  %v14360_v29 = vmul.f32 %v25551_v35, %v13768_v28  ;;  %v14361_v0 = vmul.f32 %v25551_v35, %v13769_v33  ;;  %v13936_v2 = vld [vmem:[#allocation4 + $0x6a] sm:$0xff] }
 0xa22   : > { %v13712_v30 = vmax.f32 %v13680_v38, 0.0  ;;  %13847 = vadd.xlane.f32.xlu0 %v13846_v27  ;;  %v19315_v45 = vpop.f32.mrb[48].mxu0  ;;  %v13973_v17 = vmul.f32 %v25334_v31, %v13936_v2 }
 0xa23   : > { %13745 = vst.msk [vmem:[#allocation4 + $0xe2] sm:$0xff] %vm389_vm2, %v13713_v52  ;;  %v13683_v62 = vadd.f32 %v19315_v45, %v25506_v22  ;;  %14588 = vadd.xlane.f32.xlu1 %v14587_v32  ;;  %v13548_v40 = vpop.f32.mrb[49].mxu0  ;;  %v13806_v45 = vmul.f32 %v25326_v57, %v13769_v33  ;;  %v14396_v10 = vsel %vm389_vm2, %v14360_v29, 0.0  ;;  %v15147_v29 = vmul.f32 %v25485_v49, %v13936_v2 }
 0xa24   : > { %13744 = vst.msk [vmem:[#allocation4 + $0xda] sm:$0xff] %vm389_vm2, %v13712_v30  ;;  %v13682_v14 = vadd.f32 %v25506_v22, %v13548_v40  ;;  %v14793_v30 = vsel %vm389_vm2, %v14755_v59, 0.0  ;;  %v14023_v60 = vsel %vm389_vm2, %v13973_v17, 0.0 }
 0xa25   : > { %v13715_v9 = vmax.f32 %v13683_v62, 0.0  ;;  %v14557_v62 = vmul.f32 %v25531_v5, %v13933_v53  ;;  %v13770_v53 = vld [vmem:[#allocation4 + $0x60] sm:$0xff] }
 0xa26   : > { %v13714_v54 = vmax.f32 %v13682_v14, 0.0  ;;  %14394 = vadd.xlane.f32.xlu0 %v14393_v23  ;;  %v19318_v42 = vpop.f32.mrb[50].mxu0  ;;  %v13852_v23 = vsel %vm389_vm2, %v13806_v45, 0.0  ;;  %v13807_v39 = vmul.f32 %v25326_v57, %v13770_v53  ;;  %v13771_v45 = vld [vmem:[#allocation4 + $0x68] sm:$0xff] }
 0xa27   : > { %13747 = vst.msk [vmem:[#allocation4 + $0xfa] sm:$0xff] %vm389_vm2, %v13715_v9  ;;  %v13685_v46 = vadd.f32 %v19318_v42, %v25506_v22  ;;  %14785 = vadd.xlane.f32.xlu1 %v14784_v24  ;;  %v13558_v25 = vpop.f32.mrb[51].mxu0  ;;  %v14593_v24 = vsel %vm389_vm2, %v14557_v62, 0.0  ;;  %v14949_v62 = vmul.f32 %v25379_v61, %v13770_v53 }
 0xa28   : > { %13746 = vst.msk [vmem:[#allocation4 + $0xf2] sm:$0xff] %vm389_vm2, %v13714_v54  ;;  %v13684_v16 = vadd.f32 %v25506_v22, %v13558_v25 }
 0xa29   : > { %v13717_v43 = vmax.f32 %v13685_v46, 0.0 }
 0xa2a   : > { %v13716_v4 = vmax.f32 %v13684_v16, 0.0  ;;  %14018 = vadd.xlane.f32.xlu0 %v14017_v15  ;;  %v19321_v51 = vpop.f32.mrb[52].mxu0  ;;  %v14399_v15 = vsel %vm389_vm2, %v14361_v0, 0.0  ;;  %v14950_v0 = vmul.f32 %v25379_v61, %v13771_v45 }
 0xa2b   : > { %13749 = vst.msk [vmem:[#allocation4 + $0x112] sm:$0xff] %vm389_vm2, %v13717_v43  ;;  %v13687_v12 = vadd.f32 %v19321_v51, %v25506_v22  ;;  %13850 = vadd.xlane.f32.xlu1 %v13849_v36  ;;  %v13568_v37 = vpop.f32.mrb[53].mxu0  ;;  %v14790_v36 = vsel %vm389_vm2, %v14754_v21, 0.0  ;;  %v25669_v21 = vpop.xlane.xlu0 %13832 }
 0xa2c   : > { %13748 = vst.msk [vmem:[#allocation4 + $0x10a] sm:$0xff] %vm389_vm2, %v13716_v4  ;;  %v13686_v11 = vadd.f32 %v25506_v22, %v13568_v37 }
 0xa2d   : > { %v13719_v13 = vmax.f32 %v13687_v12, 0.0  ;;  %v14133_v12 = vld [vmem:[#allocation4 + $0x6c] sm:$0xff] }
 0xa2e   : > { %v13718_v1 = vmax.f32 %v13686_v11, 0.0  ;;  %14215 = vadd.xlane.f32.xlu0 %v14214_v47  ;;  %v19324_v50 = vpop.f32.mrb[54].mxu0  ;;  %v13935_v11 = vld [vmem:[#allocation4 + $0x62] sm:$0xff]  ;;  %v14757_v59 = vmul.f32 %v25544_v19, %v14133_v12 }
 0xa2f   : > { %13751 = vst.msk [vmem:[#allocation4 + $0x12a] sm:$0xff] %vm389_vm2, %v13719_v13  ;;  %v13689_v55 = vadd.f32 %v19324_v50, %v25506_v22  ;;  %14015 = vadd.xlane.f32.xlu1 %v14014_v44  ;;  %v13578_v58 = vpop.f32.mrb[55].mxu0  ;;  %v13855_v44 = vsel %vm389_vm2, %v13807_v39, 0.0  ;;  %v13972_v34 = vmul.f32 %v25334_v31, %v13935_v11  ;;  %v25680_v39 = vpop.xlane.xlu1 %13835 }
 0xa30   : > { %13750 = vst.msk [vmem:[#allocation4 + $0x122] sm:$0xff] %vm389_vm2, %v13718_v1  ;;  %v13688_v56 = vadd.f32 %v25506_v22, %v13578_v58  ;;  %v14170_v1 = vmul.f32 %v25362_v26, %v14133_v12 }
 0xa31   : > { %v13721_v48 = vmax.f32 %v13689_v55, 0.0  ;;  %v14132_v55 = vld [vmem:[#allocation4 + $0x64] sm:$0xff] }
 0xa32   : > { %v13720_v7 = vmax.f32 %v13688_v56, 0.0  ;;  %14597 = vadd.xlane.f32.xlu0 %v14596_v8  ;;  %v19327_v20 = vpop.f32.mrb[56].mxu0  ;;  %v14220_v58 = vsel %vm389_vm2, %v14170_v1, 0.0  ;;  %v14020_v56 = vsel %vm389_vm2, %v13972_v34, 0.0 }
 0xa33   : > { %13753 = vst.msk [vmem:[#allocation4 + $0x142] sm:$0xff] %vm389_vm2, %v13721_v48  ;;  %v13691_v38 = vadd.f32 %v19327_v20, %v25506_v22  ;;  %14212 = vadd.xlane.f32.xlu1 %v14211_v41  ;;  %v13588_v52 = vpop.f32.mrb[57].mxu0  ;;  %v14169_v48 = vmul.f32 %v25362_v26, %v14132_v55  ;;  %v14362_v20 = vmul.f32 %v25551_v35, %v13770_v53  ;;  %v14799_v41 = vsel %vm389_vm2, %v14757_v59, 0.0 }
 0xa34   : > { %13752 = vst.msk [vmem:[#allocation4 + $0x13a] sm:$0xff] %vm389_vm2, %v13720_v7  ;;  %v13690_v27 = vadd.f32 %v25506_v22, %v13588_v52  ;;  %v15181_v52 = vsel %vm389_vm2, %v15147_v29, 0.0 }
 0xa35   : > { %v13723_v63 = vmax.f32 %v13691_v38, 0.0  ;;  %v14217_v7 = vsel %vm389_vm2, %v14169_v48, 0.0  ;;  %v14402_v33 = vsel %vm389_vm2, %v14362_v20, 0.0  ;;  %v14559_v38 = vmul.f32 %v25531_v5, %v13935_v11  ;;  %v13773_v20 = vld [vmem:[#allocation4 + $0x80] sm:$0xff] }
 0xa36   : > { %v13722_v32 = vmax.f32 %v13690_v27, 0.0  ;;  %14794 = vadd.xlane.f32.xlu0 %v14793_v30  ;;  %v19330_v18 = vpop.f32.mrb[58].mxu0  ;;  %v15344_v27 = vmul.f32 %v25498_v6, %v14133_v12  ;;  %v14756_v30 = vmul.f32 %v25544_v19, %v14132_v55 }
 0xa37   : > { %13755 = vst.msk [vmem:[#allocation4 + $0x15a] sm:$0xff] %vm389_vm2, %v13723_v63  ;;  %v13693_v40 = vadd.f32 %v19330_v18, %v25506_v22  ;;  %14397 = vadd.xlane.f32.xlu1 %v14396_v10  ;;  %v13598_v28 = vpop.f32.mrb[59].mxu0  ;;  %v14599_v63 = vsel %vm389_vm2, %v14559_v38, 0.0  ;;  %v13808_v18 = vmul.f32 %v25326_v57, %v13771_v45  ;;  %v25715_v38 = vld [vmem:[%s26725_s9] ss:$0 sm:$0xff] }
 0xa38   : > { %13754 = vst.msk [vmem:[#allocation4 + $0x152] sm:$0xff] %vm389_vm2, %v13722_v32  ;;  %v13692_v14 = vadd.f32 %v25506_v22, %v13598_v28  ;;  %v15378_v32 = vsel %vm389_vm2, %v15344_v27, 0.0  ;;  %v14796_v10 = vsel %vm389_vm2, %v14756_v30, 0.0  ;;  %v14363_v28 = vmul.f32 %v25551_v35, %v13771_v45 }
 0xa39   : > { %v13725_v9 = vmax.f32 %v13693_v40, 0.0  ;;  %v13858_v40 = vsel %vm389_vm2, %v13808_v18, 0.0 }
 0xa3a   : > { %v13724_v54 = vmax.f32 %v13692_v14, 0.0  ;;  %13853 = vadd.xlane.f32.xlu0 %v13852_v23  ;;  %v19333_v42 = vpop.f32.mrb[60].mxu0  ;;  %v14981_v14 = vsel %vm389_vm2, %v14949_v62, 0.0  ;;  %v14405_v23 = vsel %vm389_vm2, %v14363_v28, 0.0  ;;  %v14952_v28 = vmul.f32 %v25379_v61, %v13773_v20 }
 0xa3b   : > { %13757 = vst.msk [vmem:[#allocation4 + $0x172] sm:$0xff] %vm389_vm2, %v13725_v9  ;;  %v13695_v46 = vadd.f32 %v19333_v42, %v25506_v22  ;;  %14594 = vadd.xlane.f32.xlu1 %v14593_v24  ;;  %v13608_v25 = vpop.f32.mrb[61].mxu0  ;;  %v15146_v9 = vmul.f32 %v25485_v49, %v13935_v11  ;;  %v15343_v42 = vmul.f32 %v25498_v6, %v14132_v55  ;;  %v13938_v24 = vld [vmem:[#allocation4 + $0x82] sm:$0xff] }
 0xa3c   : > { %13756 = vst.msk [vmem:[#allocation4 + $0x16a] sm:$0xff] %vm389_vm2, %v13724_v54  ;;  %v13694_v16 = vadd.f32 %v25506_v22, %v13608_v25  ;;  %v13975_v25 = vmul.f32 %v25334_v31, %v13938_v24 }
 0xa3d   : > { %v13727_v43 = vmax.f32 %v13695_v46, 0.0  ;;  %v15178_v54 = vsel %vm389_vm2, %v15146_v9, 0.0  ;;  %v14984_v46 = vsel %vm389_vm2, %v14950_v0, 0.0  ;;  %v15375_v53 = vsel %vm389_vm2, %v15343_v42, 0.0  ;;  %v13774_v42 = vld [vmem:[#allocation4 + $0x90] sm:$0xff] }
 0xa3e   : > { %v13726_v4 = vmax.f32 %v13694_v16, 0.0  ;;  %14400 = vadd.xlane.f32.xlu0 %v14399_v15  ;;  %v19336_v51 = vpop.f32.mrb[62].mxu0  ;;  %v13937_v15 = vld [vmem:[#allocation4 + $0x7a] sm:$0xff]  ;;  %v14029_v17 = vsel %vm389_vm2, %v13975_v25, 0.0  ;;  %v13811_v25 = vmul.f32 %v25715_v38, %v13774_v42 }
 0xa3f   : > { %13759 = vst.msk [vmem:[#allocation4 + $0x18a] sm:$0xff] %vm389_vm2, %v13727_v43  ;;  %v13697_v37 = vadd.f32 %v19336_v51, %v25506_v22  ;;  %14791 = vadd.xlane.f32.xlu1 %v14790_v36  ;;  %v13618_v3 = vpop.f32.mrb[63].mxu0  ;;  %v14135_v43 = vld [vmem:[#allocation4 + $0x84] sm:$0xff]  ;;  %v13974_v12 = vmul.f32 %v25334_v31, %v13937_v15  ;;  %v15148_v62 = vmul.f32 %v25485_v49, %v13937_v15 }
 0xa40   : > { %13758 = vst.msk [vmem:[#allocation4 + $0x182] sm:$0xff] %vm389_vm2, %v13726_v4  ;;  %v13696_v13 = vadd.f32 %v25506_v22, %v13618_v3  ;;  %v14560_v22 = vmul.f32 %v25531_v5, %v13936_v2  ;;  %v13772_v2 = vld [vmem:[#allocation4 + $0x78] sm:$0xff]  ;;  %v25676_v4 = vpop.xlane.xlu0 %13838  ;;  %v14172_v51 = vmul.f32 %v25362_v26, %v14135_v43  ;;  %v14562_v3 = vmul.f32 %v25531_v5, %v13938_v24 }
 0xa41   : > { %v13729_v47 = vmax.f32 %v13697_v37, 0.0  ;;  %v13809_v16 = vmul.f32 %v25326_v57, %v13772_v2  ;;  %v14134_v37 = vld [vmem:[#allocation4 + $0x7c] sm:$0xff]  ;;  %v14026_v11 = vsel %vm389_vm2, %v13974_v12, 0.0  ;;  %v14759_v31 = vmul.f32 %v25544_v19, %v14135_v43 }
 0xa42   : > { %v13728_v50 = vmax.f32 %v13696_v13, 0.0  ;;  %14024 = vadd.xlane.f32.xlu0 %v14023_v60  ;;  %v14602_v8 = vsel %vm389_vm2, %v14560_v22, 0.0  ;;  %v14226_v57 = vsel %vm389_vm2, %v14172_v51, 0.0  ;;  %v14171_v13 = vmul.f32 %v25362_v26, %v14134_v37  ;;  %v25689_v60 = vpop.xlane.xlu1 %13997  ;;  %v25753_v51 = vld [vmem:[%s26725_s9 + $0x2] ss:$0 sm:$0xff] }
 0xa43   : > { %13761 = vst.msk [vmem:[#allocation4 + $0x1a2] sm:$0xff] %vm389_vm2, %v13729_v47  ;;  %13856 = vadd.xlane.f32.xlu1 %v13855_v44  ;;  %v13861_v36 = vsel %vm389_vm2, %v13809_v16, 0.0  ;;  %v14608_v1 = vsel %vm389_vm2, %v14562_v3, 0.0  ;;  %v14364_v44 = vmul.f32 %v25551_v35, %v13772_v2  ;;  %v14805_v55 = vsel %vm389_vm2, %v14759_v31, 0.0  ;;  %v13939_v16 = vld [vmem:[#allocation4 + $0x92] sm:$0xff] }
 0xa44   : > { %13760 = vst.msk [vmem:[#allocation4 + $0x19a] sm:$0xff] %vm389_vm2, %v13728_v50  ;;  %v25687_v47 = vpop.xlane.xlu0 %13841  ;;  %v14223_v50 = vsel %vm389_vm2, %v14171_v13, 0.0  ;;  %v15149_v26 = vmul.f32 %v25485_v49, %v13938_v24  ;;  %v15345_v9 = vmul.f32 %v25498_v6, %v14134_v37  ;;  %v14990_v24 = vsel %vm389_vm2, %v14952_v28, 0.0 }
 0xa45   : > { %v14408_v22 = vsel %vm389_vm2, %v14364_v44, 0.0  ;;  %v13867_v12 = vsel %vm389_vm2, %v13811_v25, 0.0 }
 0xa46   : > { %14221 = vadd.xlane.f32.xlu0 %v14220_v58  ;;  %v25699_v58 = vpop.xlane.xlu1 %14003  ;;  %v15187_v48 = vsel %vm389_vm2, %v15149_v26, 0.0 }
 0xa47   : > { %14021 = vadd.xlane.f32.xlu1 %v14020_v56  ;;  %v14561_v56 = vmul.f32 %v25531_v5, %v13937_v15 }
 0xa48   : > { %v25695_v34 = vpop.xlane.xlu0 %14000 }
 0xa49   : > { %v14605_v59 = vsel %vm389_vm2, %v14561_v56, 0.0 }
 0xa4a   : > { %14603 = vadd.xlane.f32.xlu0 %v14602_v8  ;;  %v15346_v8 = vmul.f32 %v25498_v6, %v14135_v43  ;;  %v25709_v29 = vpop.xlane.xlu1 %14194 }
 0xa4b   : > { %14218 = vadd.xlane.f32.xlu1 %v14217_v7  ;;  %v14758_v7 = vmul.f32 %v25544_v19, %v14134_v37 }
 0xa4d   : > { %v14802_v27 = vsel %vm389_vm2, %v14758_v7, 0.0 }
 0xa4e   : > { %14800 = vadd.xlane.f32.xlu0 %v14799_v41  ;;  %v25707_v41 = vpop.xlane.xlu0 %14006  ;;  %v25724_v18 = vpop.xlane.xlu1 %14200 }
 0xa4f   : > { %14403 = vadd.xlane.f32.xlu1 %v14402_v33  ;;  %v15384_v33 = vsel %vm389_vm2, %v15346_v8, 0.0 }
 0xa52   : > { %15182 = vadd.xlane.f32.xlu0 %v15181_v52  ;;  %v13810_v52 = vmul.f32 %v25715_v38, %v13773_v20  ;;  %v25720_v30 = vpop.xlane.xlu0 %14197  ;;  %v25732_v0 = vpop.xlane.xlu1 %15066 }
 0xa53   : > { %14600 = vadd.xlane.f32.xlu1 %v14599_v63  ;;  %v14951_v63 = vmul.f32 %v25379_v61, %v13772_v2  ;;  %v25740_v2 = vld [vmem:[%s26725_s9 + $0x1] ss:$0 sm:$0xff] }
 0xa54   : > { %v13864_v45 = vsel %vm389_vm2, %v13810_v52, 0.0  ;;  %v13976_v37 = vmul.f32 %v25740_v2, %v13939_v16 }
 0xa56   : > { %15379 = vadd.xlane.f32.xlu0 %v15378_v32  ;;  %v14365_v32 = vmul.f32 %v25551_v35, %v13773_v20  ;;  %v25747_v15 = vpop.xlane.xlu1 %15072  ;;  %v14563_v20 = vmul.f32 %v25531_v5, %v13939_v16 }
 0xa57   : > { %14797 = vadd.xlane.f32.xlu1 %v14796_v10  ;;  %v14987_v10 = vsel %vm389_vm2, %v14951_v63, 0.0 }
 0xa58   : > { %v14611_v63 = vsel %vm389_vm2, %v14563_v20, 0.0  ;;  %v25812_v20 = vld [vmem:[#allocation4 + $0xaa] sm:$0xff] }
 0xa5a   : > { %13859 = vadd.xlane.f32.xlu0 %v13858_v40  ;;  %v14411_v40 = vsel %vm389_vm2, %v14365_v32, 0.0 }
 0xa5b   : > { %14982 = vadd.xlane.f32.xlu1 %v14981_v14  ;;  %v15184_v14 = vsel %vm389_vm2, %v15148_v62, 0.0 }
 0xa5e   : > { %14406 = vadd.xlane.f32.xlu0 %v14405_v23  ;;  %v13940_v23 = vld [vmem:[#allocation4 + $0x9a] sm:$0xff] }
 0xa5f   : > { %15179 = vadd.xlane.f32.xlu1 %v15178_v54  ;;  %v25734_v54 = vpop.xlane.xlu0 %14203  ;;  %v13977_v61 = vmul.f32 %v25740_v2, %v13940_v23 }
 0xa62   : > { %14985 = vadd.xlane.f32.xlu0 %v14984_v46  ;;  %v15381_v46 = vsel %vm389_vm2, %v15345_v9, 0.0 }
 0xa63   : > { %15376 = vadd.xlane.f32.xlu1 %v15375_v53  ;;  %v14137_v53 = vld [vmem:[#allocation4 + $0x9c] sm:$0xff]  ;;  %v25745_v43 = vpop.xlane.xlu0 %15069 }
 0xa66   : > { %14030 = vadd.xlane.f32.xlu0 %v14029_v17  ;;  %v14035_v17 = vsel %vm389_vm2, %v13977_v61, 0.0 }
 0xa67   : > { %13862 = vadd.xlane.f32.xlu1 %v13861_v36  ;;  %v14174_v36 = vmul.f32 %v25753_v51, %v14137_v53  ;;  %v25760_v13 = vpop.xlane.xlu0 %15075 }
 0xa69   : > { %v14232_v3 = vsel %vm389_vm2, %v14174_v36, 0.0 }
 0xa6a   : > { %14227 = vadd.xlane.f32.xlu0 %v14226_v57  ;;  %v14136_v57 = vld [vmem:[#allocation4 + $0x94] sm:$0xff] }
 0xa6b   : > { %14027 = vadd.xlane.f32.xlu1 %v14026_v11  ;;  %v14564_v11 = vmul.f32 %v25531_v5, %v13940_v23  ;;  %v14173_v31 = vmul.f32 %v25753_v51, %v14136_v57  ;;  %v25770_v56 = vpop.xlane.xlu0 %15266  ;;  %v14760_v32 = vmul.f32 %v25544_v19, %v14136_v57 }
 0xa6d   : > { %v14614_v44 = vsel %vm389_vm2, %v14564_v11, 0.0  ;;  %v14229_v26 = vsel %vm389_vm2, %v14173_v31, 0.0  ;;  %v14808_v28 = vsel %vm389_vm2, %v14760_v32, 0.0  ;;  %v15347_v11 = vmul.f32 %v25498_v6, %v14136_v57 }
 0xa6e   : > { %14609 = vadd.xlane.f32.xlu0 %v14608_v1  ;;  %v14032_v1 = vsel %vm389_vm2, %v13976_v37, 0.0  ;;  %v14093_v32 = vadd.f32 %v25695_v34, %v25680_v39 }
 0xa6f   : > { %14224 = vadd.xlane.f32.xlu1 %v14223_v50  ;;  %v25764_v50 = vpop.xlane.xlu1 %15263  ;;  %v25779_v52 = vpop.xlane.xlu0 %15272 }
 0xa72   : > { %14806 = vadd.xlane.f32.xlu0 %v14805_v55  ;;  %v14761_v55 = vmul.f32 %v25544_v19, %v14137_v53 }
 0xa73   : > { %14409 = vadd.xlane.f32.xlu1 %v14408_v22  ;;  %v14366_v22 = vmul.f32 %v25551_v35, %v13774_v42 }
 0xa74   : > { %v14811_v8 = vsel %vm389_vm2, %v14761_v55, 0.0 }
 0xa75   : > { %v14414_v7 = vsel %vm389_vm2, %v14366_v22, 0.0 }
 0xa76   : > { %15188 = vadd.xlane.f32.xlu0 %v15187_v48  ;;  %v25772_v48 = vpop.xlane.xlu1 %15269 }
 0xa77   : > { %14606 = vadd.xlane.f32.xlu1 %v14605_v59  ;;  %v15151_v59 = vmul.f32 %v25485_v49, %v13940_v23 }
 0xa7a   : > { %15385 = vadd.xlane.f32.xlu0 %v15384_v33  ;;  %v15193_v33 = vsel %vm389_vm2, %v15151_v59, 0.0 }
 0xa7b   : > { %14803 = vadd.xlane.f32.xlu1 %v14802_v27  ;;  %v15348_v27 = vmul.f32 %v25498_v6, %v14137_v53  ;;  %v15150_v53 = vmul.f32 %v25485_v49, %v13939_v16 }
 0xa7d   : > { %v15390_v62 = vsel %vm389_vm2, %v15348_v27, 0.0 }
 0xa7e   : > { %13865 = vadd.xlane.f32.xlu0 %v13864_v45  ;;  %v25783_v45 = vpop.xlane.xlu1 %15460 }
 0xa7f   : > { %14988 = vadd.xlane.f32.xlu1 %v14987_v10  ;;  %v13775_v10 = vld [vmem:[#allocation4 + $0x98] sm:$0xff] }
 0xa82   : > { %14412 = vadd.xlane.f32.xlu0 %v14411_v40  ;;  %v13812_v40 = vmul.f32 %v25715_v38, %v13775_v10 }
 0xa83   : > { %15185 = vadd.xlane.f32.xlu1 %v15184_v14  ;;  %v25792_v14 = vld [vmem:[%s26725_s9 + $0x6] ss:$0 sm:$0xff] }
 0xa84   : > { %v14953_v9 = vmul.f32 %v25792_v14, %v13774_v42  ;;  %v13870_v61 = vsel %vm389_vm2, %v13812_v40, 0.0  ;;  %v14954_v42 = vmul.f32 %v25792_v14, %v13775_v10 }
 0xa86   : > { %14991 = vadd.xlane.f32.xlu0 %v14990_v24  ;;  %v14993_v25 = vsel %vm389_vm2, %v14953_v9, 0.0 }
 0xa87   : > { %15382 = vadd.xlane.f32.xlu1 %v15381_v46  ;;  %v14367_v46 = vmul.f32 %v25551_v35, %v13775_v10 }
 0xa89   : > { %v14417_v37 = vsel %vm389_vm2, %v14367_v46, 0.0 }
 0xa8a   : > { %14036 = vadd.xlane.f32.xlu0 %v14035_v17 }
 0xa8b   : > { %13868 = vadd.xlane.f32.xlu1 %v13867_v12 }
 0xa8e   : > { %14233 = vadd.xlane.f32.xlu0 %v14232_v3  ;;  %v15190_v3 = vsel %vm389_vm2, %v15150_v53, 0.0 }
 0xa8f   : > { %14033 = vadd.xlane.f32.xlu1 %v14032_v1  ;;  %v13942_v1 = vld [vmem:[#allocation4 + $0xb2] sm:$0xff] }
 0xa90   : > { %v13979_v22 = vmul.f32 %v25740_v2, %v13942_v1  ;;  %v14566_v46 = vmul.f32 %v25531_v5, %v13942_v1 }
 0xa92   : > { %14615 = vadd.xlane.f32.xlu0 %v14614_v44  ;;  %v25803_v44 = vld [vmem:[#allocation4 + $0xa8] sm:$0xff]  ;;  %v14041_v27 = vsel %vm389_vm2, %v13979_v22, 0.0 }
 0xa93   : > { %14230 = vadd.xlane.f32.xlu1 %v14229_v26  ;;  %v14996_v26 = vsel %vm389_vm2, %v14954_v42, 0.0  ;;  %v13813_v59 = vmul.f32 %v25715_v38, %v25803_v44 }
 0xa95   : > { %v13873_v10 = vsel %vm389_vm2, %v13813_v59, 0.0 }
 0xa96   : > { %14812 = vadd.xlane.f32.xlu0 %v14811_v8  ;;  %v15387_v8 = vsel %vm389_vm2, %v15347_v11, 0.0  ;;  %v14368_v11 = vmul.f32 %v25551_v35, %v25803_v44 }
 0xa97   : > { %14415 = vadd.xlane.f32.xlu1 %v14414_v7  ;;  %v14139_v7 = vld [vmem:[#allocation4 + $0xb4] sm:$0xff] }
 0xa98   : > { %v14763_v42 = vmul.f32 %v25544_v19, %v14139_v7  ;;  %v14420_v59 = vsel %vm389_vm2, %v14368_v11, 0.0 }
 0xa9a   : > { %15194 = vadd.xlane.f32.xlu0 %v15193_v33  ;;  %v14817_v22 = vsel %vm389_vm2, %v14763_v42, 0.0 }
 0xa9b   : > { %14612 = vadd.xlane.f32.xlu1 %v14611_v63  ;;  %v14176_v63 = vmul.f32 %v25753_v51, %v14139_v7 }
 0xa9e   : > { %15391 = vadd.xlane.f32.xlu0 %v15390_v62  ;;  %v13978_v62 = vmul.f32 %v25740_v2, %v25812_v20 }
 0xa9f   : > { %14809 = vadd.xlane.f32.xlu1 %v14808_v28  ;;  %v14013_v23 = vpop.xlane.xlu0 %14012  ;;  %v25823_v28 = vld [vmem:[#allocation4 + $0xac] sm:$0xff] }
 0xaa0   : > { %v13845_v24 = vpop.xlane.xlu1 %13844  ;;  %v14038_v39 = vsel %vm389_vm2, %v13978_v62, 0.0  ;;  %v14175_v34 = vmul.f32 %v25753_v51, %v25823_v28  ;;  %v15350_v62 = vmul.f32 %v25498_v6, %v14139_v7  ;;  %v14955_v7 = vmul.f32 %v25792_v14, %v25803_v44 }
 0xaa2   : > { %13871 = vadd.xlane.f32.xlu0 %v13870_v61  ;;  %v14238_v61 = vsel %vm389_vm2, %v14176_v63, 0.0  ;;  %v14999_v42 = vsel %vm389_vm2, %v14955_v7, 0.0 }
 0xaa3   : > { %14994 = vadd.xlane.f32.xlu1 %v14993_v25  ;;  %v14210_v17 = vpop.xlane.xlu0 %14209  ;;  %v14290_v25 = vadd.f32 %v25720_v30, %v14093_v32  ;;  %v14235_v30 = vsel %vm389_vm2, %v14175_v34, 0.0 }
 0xaa4   : > { %v14010_v36 = vpop.xlane.xlu1 %14009 }
 0xaa5   : > { %v14096_v12 = vadd.f32 %v14010_v36, %v13845_v24 }
 0xaa6   : > { %14418 = vadd.xlane.f32.xlu0 %v14417_v37  ;;  %v14620_v37 = vsel %vm389_vm2, %v14566_v46, 0.0 }
 0xaa7   : > { %15191 = vadd.xlane.f32.xlu1 %v15190_v3  ;;  %v14592_v31 = vpop.xlane.xlu0 %14591 }
 0xaa8   : > { %v14207_v55 = vpop.xlane.xlu1 %14206 }
 0xaa9   : > { %v25805_v16 = vadd.f32 %v14207_v55, %v14096_v12 }
 0xaaa   : > { %14997 = vadd.xlane.f32.xlu0 %v14996_v26 }
 0xaab   : > { %15388 = vadd.xlane.f32.xlu1 %v15387_v8  ;;  %v14789_v57 = vpop.xlane.xlu0 %14788  ;;  %v15153_v8 = vmul.f32 %v25485_v49, %v13942_v1  ;;  %v14762_v49 = vmul.f32 %v25544_v19, %v25823_v28  ;;  %v13777_v1 = vld [vmem:[#allocation4 + $0xb0] sm:$0xff] }
 0xaac   : > { %v25814_v33 = vpop.xlane.xlu1 %14391 }
 0xaad   : > { %v14814_v6 = vsel %vm389_vm2, %v14762_v49, 0.0 }
 0xaae   : > { %14042 = vadd.xlane.f32.xlu0 %v14041_v27 }
 0xaaf   : > { %13874 = vadd.xlane.f32.xlu1 %v13873_v10  ;;  %v13848_v40 = vpop.xlane.xlu0 %13847  ;;  %v15199_v10 = vsel %vm389_vm2, %v15153_v8, 0.0 }
 0xab0   : > { %v14097_v9 = vadd.f32 %v14013_v23, %v13848_v40  ;;  %v25825_v24 = vpop.xlane.xlu1 %14588 }
 0xab2   : > { %14239 = vadd.xlane.f32.xlu0 %v14238_v61  ;;  %v25833_v53 = vadd.f32 %v14210_v17, %v14097_v9  ;;  %v14094_v61 = vadd.f32 %v25699_v58, %v25676_v4  ;;  %v14369_v4 = vmul.f32 %v25551_v35, %v13777_v1  ;;  %v14095_v58 = vadd.f32 %v25707_v41, %v25687_v47 }
 0xab3   : > { %14039 = vadd.xlane.f32.xlu1 %v14038_v39  ;;  %v14395_v36 = vpop.xlane.xlu0 %14394  ;;  %v13814_v39 = vmul.f32 %v25715_v38, %v13777_v1  ;;  %v14956_v47 = vmul.f32 %v25792_v14, %v13777_v1 }
 0xab4   : > { %v14487_v12 = vadd.f32 %v14395_v36, %v14290_v25  ;;  %v25835_v23 = vpop.xlane.xlu1 %14785  ;;  %v15396_v25 = vsel %vm389_vm2, %v15350_v62, 0.0  ;;  %v14423_v8 = vsel %vm389_vm2, %v14369_v4, 0.0  ;;  %v14292_v41 = vadd.f32 %v25734_v54, %v14095_v58  ;;  %v25909_v58 = vld [vmem:[#allocation4 + $0xc4] sm:$0xff] }
 0xab5   : > { %v15002_v49 = vsel %vm389_vm2, %v14956_v47, 0.0 }
 0xab6   : > { %v14684_v3 = vadd.f32 %v14592_v31, %v14487_v12  ;;  %14621 = vadd.xlane.f32.xlu0 %v14620_v37  ;;  %v14565_v31 = vmul.f32 %v25531_v5, %v25812_v20  ;;  %v14291_v12 = vadd.f32 %v25724_v18, %v14094_v61  ;;  %v13876_v37 = vsel %vm389_vm2, %v13814_v39, 0.0  ;;  %v25900_v39 = vld [vmem:[#allocation4 + $0xc2] sm:$0xff] }
 0xab7   : > { %14236 = vadd.xlane.f32.xlu1 %v14235_v30  ;;  %v14019_v55 = vpop.xlane.xlu0 %14018 }
 0xab8   : > { %v13851_v17 = vpop.xlane.xlu1 %13850  ;;  %v25842_v26 = vadd.f32 %v14789_v57, %v14684_v3  ;;  %v14617_v57 = vsel %vm389_vm2, %v14565_v31, 0.0  ;;  %v25872_v3 = vld [vmem:[%s26725_s9 + $0x7] ss:$0 sm:$0xff]  ;;  %v25883_v31 = vld [vmem:[%s26725_s9 + $0x8] ss:$0 sm:$0xff] }
 0xab9   : > { %v15152_v44 = vmul.f32 %v25872_v3, %v25812_v20  ;;  %v15349_v20 = vmul.f32 %v25883_v31, %v25823_v28 }
 0xaba   : > { %14818 = vadd.xlane.f32.xlu0 %v14817_v22 }
 0xabb   : > { %14421 = vadd.xlane.f32.xlu1 %v14420_v59  ;;  %v14216_v27 = vpop.xlane.xlu0 %14215  ;;  %v15196_v59 = vsel %vm389_vm2, %v15152_v44, 0.0  ;;  %v15393_v61 = vsel %vm389_vm2, %v15349_v20, 0.0 }
 0xabc   : > { %v14016_v63 = vpop.xlane.xlu1 %14015 }
 0xabd   : > { %v14098_v32 = vadd.f32 %v14016_v63, %v13851_v17 }
 0xabe   : > { %15200 = vadd.xlane.f32.xlu0 %v15199_v10  ;;  %v25889_v10 = vld [vmem:[#allocation4 + $0xc0] sm:$0xff] }
 0xabf   : > { %14618 = vadd.xlane.f32.xlu1 %v14617_v57  ;;  %v14598_v40 = vpop.xlane.xlu0 %14597  ;;  %v13815_v28 = vmul.f32 %v25715_v38, %v25889_v10 }
 0xac0   : > { %v14213_v9 = vpop.xlane.xlu1 %14212 }
 0xac1   : > { %v25856_v46 = vadd.f32 %v14213_v9, %v14098_v32 }
 0xac2   : > { %15397 = vadd.xlane.f32.xlu0 %v15396_v25 }
 0xac3   : > { %14815 = vadd.xlane.f32.xlu1 %v14814_v6  ;;  %v14795_v34 = vpop.xlane.xlu0 %14794 }
 0xac4   : > { %v14398_v36 = vpop.xlane.xlu1 %14397 }
 0xac5   : > { %v14488_v30 = vadd.f32 %v14398_v36, %v14291_v12 }
 0xac6   : > { %13877 = vadd.xlane.f32.xlu0 %v13876_v37  ;;  %v13980_v37 = vmul.f32 %v25740_v2, %v25900_v39 }
 0xac7   : > { %15000 = vadd.xlane.f32.xlu1 %v14999_v42  ;;  %v13854_v18 = vpop.xlane.xlu0 %13853 }
 0xac8   : > { %v14099_v11 = vadd.f32 %v14019_v55, %v13854_v18  ;;  %v14595_v17 = vpop.xlane.xlu1 %14594  ;;  %v13944_v55 = vld [vmem:[#allocation4 + $0xca] sm:$0xff]  ;;  %v14044_v18 = vsel %vm389_vm2, %v13980_v37, 0.0 }
 0xac9   : > { %v14685_v22 = vadd.f32 %v14595_v17, %v14488_v30  ;;  %v13981_v1 = vmul.f32 %v25740_v2, %v13944_v55  ;;  %v13779_v37 = vld [vmem:[#allocation4 + $0xc8] sm:$0xff] }
 0xaca   : > { %14424 = vadd.xlane.f32.xlu0 %v14423_v8  ;;  %v25887_v63 = vadd.f32 %v14216_v27, %v14099_v11  ;;  %v14141_v27 = vld [vmem:[#allocation4 + $0xcc] sm:$0xff]  ;;  %v14177_v11 = vmul.f32 %v25753_v51, %v25909_v58 }
 0xacb   : > { %15197 = vadd.xlane.f32.xlu1 %v15196_v59  ;;  %v14401_v32 = vpop.xlane.xlu0 %14400  ;;  %v14047_v36 = vsel %vm389_vm2, %v13981_v1, 0.0  ;;  %v14178_v12 = vmul.f32 %v25753_v51, %v14141_v27 }
 0xacc   : > { %v14489_v62 = vadd.f32 %v14401_v32, %v14292_v41  ;;  %v14792_v54 = vpop.xlane.xlu1 %14791  ;;  %v14765_v41 = vmul.f32 %v25544_v19, %v14141_v27  ;;  %v14241_v59 = vsel %vm389_vm2, %v14177_v11, 0.0  ;;  %v25932_v19 = vld [vmem:[%s26725_s9 + $0x4] ss:$0 sm:$0xff] }
 0xacd   : > { %v25891_v57 = vadd.f32 %v14792_v54, %v14685_v22  ;;  %v14244_v30 = vsel %vm389_vm2, %v14178_v12, 0.0  ;;  %v25944_v12 = vld [vmem:[%s26725_s9 + $0x5] ss:$0 sm:$0xff] }
 0xace   : > { %v14686_v9 = vadd.f32 %v14598_v40, %v14489_v62  ;;  %15003 = vadd.xlane.f32.xlu0 %v15002_v49  ;;  %v13879_v40 = vsel %vm389_vm2, %v13815_v28, 0.0  ;;  %v14823_v54 = vsel %vm389_vm2, %v14765_v41, 0.0  ;;  %v15155_v49 = vmul.f32 %v25872_v3, %v13944_v55 }
 0xacf   : > { %15394 = vadd.xlane.f32.xlu1 %v15393_v61  ;;  %v25898_v25 = vpop.xlane.xlu0 %14024 }
 0xad0   : > { %v13857_v6 = vpop.xlane.xlu1 %13856  ;;  %v25902_v7 = vadd.f32 %v14795_v34, %v14686_v9  ;;  %v14568_v34 = vmul.f32 %v25531_v5, %v13944_v55  ;;  %v14370_v5 = vmul.f32 %v25551_v35, %v25889_v10  ;;  %v14567_v35 = vmul.f32 %v25932_v19, %v25900_v39 }
 0xad1   : > { %v15205_v55 = vsel %vm389_vm2, %v15155_v49, 0.0 }
 0xad2   : > { %14048 = vadd.xlane.f32.xlu0 %v14047_v36  ;;  %v14626_v47 = vsel %vm389_vm2, %v14568_v34, 0.0  ;;  %v14426_v1 = vsel %vm389_vm2, %v14370_v5, 0.0  ;;  %v14623_v36 = vsel %vm389_vm2, %v14567_v35, 0.0  ;;  %v25963_v5 = vld [vmem:[%s26725_s9 + $0x3] ss:$0 sm:$0xff] }
 0xad3   : > { %13880 = vadd.xlane.f32.xlu1 %v13879_v40  ;;  %v14222_v4 = vpop.xlane.xlu0 %14221  ;;  %v14764_v40 = vmul.f32 %v25944_v12, %v25909_v58 }
 0xad4   : > { %v14022_v42 = vpop.xlane.xlu1 %14021 }
 0xad5   : > { %v14100_v44 = vadd.f32 %v14022_v42, %v13857_v6  ;;  %v15352_v6 = vmul.f32 %v25883_v31, %v14141_v27  ;;  %v14820_v34 = vsel %vm389_vm2, %v14764_v40, 0.0 }
 0xad6   : > { %14245 = vadd.xlane.f32.xlu0 %v14244_v30  ;;  %v13816_v30 = vmul.f32 %v25715_v38, %v13779_v37 }
 0xad7   : > { %14045 = vadd.xlane.f32.xlu1 %v14044_v18  ;;  %v14604_v17 = vpop.xlane.xlu0 %14603  ;;  %v15402_v27 = vsel %vm389_vm2, %v15352_v6, 0.0  ;;  %v14957_v18 = vmul.f32 %v25792_v14, %v25889_v10  ;;  %v25978_v6 = vld [vmem:[#allocation4 + $0xd8] sm:$0xff] }
 0xad8   : > { %v14219_v22 = vpop.xlane.xlu1 %14218 }
 0xad9   : > { %v25916_v8 = vadd.f32 %v14219_v22, %v14100_v44  ;;  %v15005_v10 = vsel %vm389_vm2, %v14957_v18, 0.0  ;;  %v25999_v18 = vld [vmem:[#allocation4 + $0xda] sm:$0xff] }
 0xada   : > { %14627 = vadd.xlane.f32.xlu0 %v14626_v47 }
 0xadb   : > { %14242 = vadd.xlane.f32.xlu1 %v14241_v59  ;;  %v25923_v20 = vpop.xlane.xlu0 %14800  ;;  %v13882_v59 = vsel %vm389_vm2, %v13816_v30, 0.0 }
 0xadc   : > { %v14404_v32 = vpop.xlane.xlu1 %14403 }
 0xadd   : > { %v14490_v62 = vadd.f32 %v14404_v32, %v25805_v16  ;;  %v14092_v16 = vadd.f32 %v25689_v60, %v25669_v21  ;;  %v14371_v32 = vmul.f32 %v25963_v5, %v13779_v37 }
 0xade   : > { %14824 = vadd.xlane.f32.xlu0 %v14823_v54 }
 0xadf   : > { %14427 = vadd.xlane.f32.xlu1 %v14426_v1  ;;  %v15183_v9 = vpop.xlane.xlu0 %15182  ;;  %v14289_v60 = vadd.f32 %v25709_v29, %v14092_v16  ;;  %v14429_v35 = vsel %vm389_vm2, %v14371_v32, 0.0 }
 0xae0   : > { %v14601_v61 = vpop.xlane.xlu1 %14600 }
 0xae1   : > { %v14687_v28 = vadd.f32 %v14601_v61, %v14490_v62  ;;  %v14486_v11 = vadd.f32 %v25814_v33, %v14289_v60  ;;  %v15154_v33 = vmul.f32 %v25872_v3, %v25900_v39  ;;  %v14958_v61 = vmul.f32 %v25792_v14, %v13779_v37 }
 0xae2   : > { %15206 = vadd.xlane.f32.xlu0 %v15205_v55  ;;  %v15351_v39 = vmul.f32 %v25883_v31, %v25909_v58 }
 0xae3   : > { %14624 = vadd.xlane.f32.xlu1 %v14623_v36  ;;  %v15380_v42 = vpop.xlane.xlu0 %15379  ;;  %v14683_v29 = vadd.f32 %v25825_v24, %v14486_v11 }
 0xae4   : > { %v14798_v21 = vpop.xlane.xlu1 %14797 }
 0xae5   : > { %v25949_v44 = vadd.f32 %v14798_v21, %v14687_v28  ;;  %v15202_v28 = vsel %vm389_vm2, %v15154_v33, 0.0  ;;  %v15008_v21 = vsel %vm389_vm2, %v14958_v61, 0.0 }
 0xae6   : > { %15403 = vadd.xlane.f32.xlu0 %v15402_v27  ;;  %v14143_v27 = vld [vmem:[#allocation4 + $0xe4] sm:$0xff] }
 0xae7   : > { %14821 = vadd.xlane.f32.xlu1 %v14820_v34  ;;  %v13860_v22 = vpop.xlane.xlu0 %13859 }
 0xae8   : > { %v14101_v47 = vadd.f32 %v25898_v25, %v13860_v22  ;;  %v14983_v41 = vpop.xlane.xlu1 %14982  ;;  %v14880_v25 = vadd.f32 %v25835_v23, %v14683_v29 }
 0xaea   : > { %13883 = vadd.xlane.f32.xlu0 %v13882_v59  ;;  %v25969_v62 = vadd.f32 %v14222_v4, %v14101_v47  ;;  %v15077_v1 = vadd.f32 %v14983_v41, %v14880_v25  ;;  %v13946_v4 = vld [vmem:[#allocation4 + $0xe2] sm:$0xff]  ;;  %v14180_v47 = vmul.f32 %v25753_v51, %v14143_v27  ;;  %v13982_v59 = vmul.f32 %v25740_v2, %v25999_v18 }
 0xaeb   : > { %15006 = vadd.xlane.f32.xlu1 %v15005_v10  ;;  %v14407_v24 = vpop.xlane.xlu0 %14406  ;;  %v13983_v60 = vmul.f32 %v25740_v2, %v13946_v4  ;;  %v26009_v10 = vld [vmem:[#allocation4 + $0xdc] sm:$0xff] }
 0xaec   : > { %v14491_v54 = vadd.f32 %v14407_v24, %v25833_v53  ;;  %v15180_v49 = vpop.xlane.xlu1 %15179  ;;  %v25980_v53 = vld [vmem:[#allocation5] ss:$0 sm:$0xff]  ;;  %v14250_v25 = vsel %vm389_vm2, %v14180_v47, 0.0  ;;  %v14570_v24 = vmul.f32 %v25932_v19, %v13946_v4 }
 0xaed   : > { %v15274_v23 = vadd.f32 %v15180_v49, %v15077_v1  ;;  %v14179_v49 = vmul.f32 %v25753_v51, %v26009_v10 }
 0xaee   : > { %v14688_v16 = vadd.f32 %v14604_v17, %v14491_v54  ;;  %14430 = vadd.xlane.f32.xlu0 %v14429_v35  ;;  %v14050_v54 = vsel %vm389_vm2, %v13982_v59, 0.0 }
 0xaef   : > { %15203 = vadd.xlane.f32.xlu1 %v15202_v28  ;;  %v14986_v55 = vpop.xlane.xlu0 %14985  ;;  %v14767_v28 = vmul.f32 %v25944_v12, %v14143_v27 }
 0xaf0   : > { %v15078_v36 = vadd.f32 %v14986_v55, %v25842_v26  ;;  %v15377_v40 = vpop.xlane.xlu1 %15376  ;;  %v25984_v17 = vadd.f32 %v25923_v20, %v14688_v16  ;;  %v15399_v26 = vsel %vm389_vm2, %v15351_v39, 0.0  ;;  %v13817_v20 = vmul.f32 %v25715_v38, %v25978_v6 }
 0xaf1   : > { %v15471_v37 = vadd.f32 %v15377_v40, %v15274_v23  ;;  %v14632_v16 = vsel %vm389_vm2, %v14570_v24, 0.0  ;;  %v14247_v39 = vsel %vm389_vm2, %v14179_v49, 0.0  ;;  %v14372_v23 = vmul.f32 %v25963_v5, %v25978_v6 }
 0xaf2   : > { %v15275_v58 = vadd.f32 %v15183_v9, %v15078_v36  ;;  %15009 = vadd.xlane.f32.xlu0 %v15008_v21  ;;  %v14053_v9 = vsel %vm389_vm2, %v13983_v60, 0.0  ;;  %v13885_v29 = vsel %vm389_vm2, %v13817_v20, 0.0  ;;  %v15157_v21 = vmul.f32 %v25872_v3, %v13946_v4 }
 0xaf3   : > { %v15510_v30 = vadd.f32 %v25980_v53, %v15471_v37  ;;  %15400 = vadd.xlane.f32.xlu1 %v15399_v26  ;;  %v14031_v34 = vpop.xlane.xlu0 %14030  ;;  %v14829_v37 = vsel %vm389_vm2, %v14767_v28, 0.0  ;;  %v14432_v60 = vsel %vm389_vm2, %v14372_v23, 0.0  ;;  %v14766_v4 = vmul.f32 %v25944_v12, %v26009_v10 }
 0xaf4   : > { %v15472_v11 = vadd.f32 %v15380_v42, %v15275_v58  ;;  %v13863_v22 = vpop.xlane.xlu1 %13862  ;;  %v14569_v58 = vmul.f32 %v25932_v19, %v25999_v18  ;;  %v15156_v28 = vmul.f32 %v25872_v3, %v25999_v18  ;;  %v15353_v18 = vmul.f32 %v25883_v31, %v26009_v10 }
 0xaf5   : > { %15542 = vst.msk [vmem:[%s25993_s18] sm:$0xff] %vm484_vm0, %v15510_v30 }
 0xaf6   : > { %v15511_v41 = vadd.f32 %v25980_v53, %v15472_v11  ;;  %14054 = vadd.xlane.f32.xlu0 %v14053_v9  ;;  %v15211_v11 = vsel %vm389_vm2, %v15157_v21, 0.0  ;;  %v13781_v9 = vld [vmem:[#allocation4 + $0xe0] sm:$0xff]  ;;  %v15405_v10 = vsel %vm389_vm2, %v15353_v18, 0.0 }
 0xaf7   : > { %13886 = vadd.xlane.f32.xlu1 %v13885_v29  ;;  %v14228_v32 = vpop.xlane.xlu0 %14227 }
 0xaf8   : > { %15543 = vst.msk [vmem:[%s25993_s18 + $0x8] sm:$0xff] %vm484_vm0, %v15511_v41  ;;  %v14028_v42 = vpop.xlane.xlu1 %14027 }
 0xaf9   : > { %v14102_v33 = vadd.f32 %v14028_v42, %v13863_v22  ;;  %v15354_v22 = vmul.f32 %v25883_v31, %v14143_v27  ;;  %v13818_v42 = vmul.f32 %v25715_v38, %v13781_v9  ;;  %v14959_v27 = vmul.f32 %v25792_v14, %v25978_v6 }
 0xafa   : > { %14251 = vadd.xlane.f32.xlu0 %v14250_v25 }
 0xafb   : > { %14051 = vadd.xlane.f32.xlu1 %v14050_v54  ;;  %v14610_v1 = vpop.xlane.xlu0 %14609  ;;  %v15408_v59 = vsel %vm389_vm2, %v15354_v22, 0.0  ;;  %v13888_v49 = vsel %vm389_vm2, %v13818_v42, 0.0 }
 0xafc   : > { %v14225_v35 = vpop.xlane.xlu1 %14224 }
 0xafd   : > { %v26018_v61 = vadd.f32 %v14225_v35, %v14102_v33  ;;  %v14826_v33 = vsel %vm389_vm2, %v14766_v4, 0.0  ;;  %v14373_v35 = vmul.f32 %v25963_v5, %v13781_v9 }
 0xafe   : > { %14633 = vadd.xlane.f32.xlu0 %v14632_v16  ;;  %v15011_v16 = vsel %vm389_vm2, %v14959_v27, 0.0 }
 0xaff   : > { %14248 = vadd.xlane.f32.xlu1 %v14247_v39  ;;  %v14807_v55 = vpop.xlane.xlu0 %14806 }
 0xb00   : > { %v14410_v36 = vpop.xlane.xlu1 %14409 }
 0xb01   : > { %v14492_v40 = vadd.f32 %v14410_v36, %v25856_v46  ;;  %v14629_v46 = vsel %vm389_vm2, %v14569_v58, 0.0 }
 0xb02   : > { %14830 = vadd.xlane.f32.xlu0 %v14829_v37  ;;  %v14960_v37 = vmul.f32 %v25792_v14, %v13781_v9 }
 0xb03   : > { %14433 = vadd.xlane.f32.xlu1 %v14432_v60  ;;  %v15189_v26 = vpop.xlane.xlu0 %15188  ;;  %v15208_v60 = vsel %vm389_vm2, %v15156_v28, 0.0 }
 0xb04   : > { %v14607_v20 = vpop.xlane.xlu1 %14606 }
 0xb05   : > { %v14689_v30 = vadd.f32 %v14607_v20, %v14492_v40  ;;  %v14435_v40 = vsel %vm389_vm2, %v14373_v35, 0.0  ;;  %v26078_v35 = vld [vmem:[#allocation4 + $0xf4] sm:$0xff] }
 0xb06   : > { %15212 = vadd.xlane.f32.xlu0 %v15211_v11 }
 0xb07   : > { %14630 = vadd.xlane.f32.xlu1 %v14629_v46  ;;  %v15386_v47 = vpop.xlane.xlu0 %15385 }
 0xb08   : > { %v14804_v41 = vpop.xlane.xlu1 %14803 }
 0xb09   : > { %v26036_v29 = vadd.f32 %v14804_v41, %v14689_v30  ;;  %v26057_v30 = vld [vmem:[#allocation4 + $0xf0] sm:$0xff]  ;;  %v14145_v41 = vld [vmem:[#allocation4 + $0xfc] sm:$0xff] }
 0xb0a   : > { %15409 = vadd.xlane.f32.xlu0 %v15408_v59  ;;  %v13819_v9 = vmul.f32 %v25715_v38, %v26057_v30  ;;  %v14182_v27 = vmul.f32 %v25753_v51, %v14145_v41 }
 0xb0b   : > { %14827 = vadd.xlane.f32.xlu1 %v14826_v33  ;;  %v13866_v25 = vpop.xlane.xlu0 %13865 }
 0xb0c   : > { %v14103_v24 = vadd.f32 %v14031_v34, %v13866_v25  ;;  %v14989_v54 = vpop.xlane.xlu1 %14988  ;;  %v14256_v28 = vsel %vm389_vm2, %v14182_v27, 0.0 }
 0xb0d   : > { %v15079_v34 = vadd.f32 %v14989_v54, %v25891_v57 }
 0xb0e   : > { %13889 = vadd.xlane.f32.xlu0 %v13888_v49  ;;  %v26048_v39 = vadd.f32 %v14228_v32, %v14103_v24  ;;  %v13948_v32 = vld [vmem:[#allocation4 + $0xfa] sm:$0xff]  ;;  %v13891_v24 = vsel %vm389_vm2, %v13819_v9, 0.0 }
 0xb0f   : > { %15012 = vadd.xlane.f32.xlu1 %v15011_v16  ;;  %v14413_v23 = vpop.xlane.xlu0 %14412  ;;  %v13985_v46 = vmul.f32 %v25740_v2, %v13948_v32 }
 0xb10   : > { %v14493_v6 = vadd.f32 %v14413_v23, %v25887_v63  ;;  %v15186_v36 = vpop.xlane.xlu1 %15185  ;;  %v14572_v23 = vmul.f32 %v25932_v19, %v13948_v32 }
 0xb11   : > { %v15276_v58 = vadd.f32 %v15186_v36, %v15079_v34  ;;  %v14181_v36 = vmul.f32 %v25753_v51, %v26078_v35 }
 0xb12   : > { %v14690_v21 = vadd.f32 %v14610_v1, %v14493_v6  ;;  %14436 = vadd.xlane.f32.xlu0 %v14435_v40  ;;  %v15014_v1 = vsel %vm389_vm2, %v14960_v37, 0.0 }
 0xb13   : > { %15209 = vadd.xlane.f32.xlu1 %v15208_v60  ;;  %v14992_v20 = vpop.xlane.xlu0 %14991  ;;  %v14769_v60 = vmul.f32 %v25944_v12, %v14145_v41  ;;  %v14253_v18 = vsel %vm389_vm2, %v14181_v36, 0.0 }
 0xb14   : > { %v15080_v63 = vadd.f32 %v14992_v20, %v25902_v7  ;;  %v15383_v57 = vpop.xlane.xlu1 %15382  ;;  %v26060_v11 = vadd.f32 %v14807_v55, %v14690_v21  ;;  %v26068_v55 = vld [vmem:[#allocation4 + $0xf2] sm:$0xff]  ;;  %v14638_v21 = vsel %vm389_vm2, %v14572_v23, 0.0 }
 0xb15   : > { %v15473_v22 = vadd.f32 %v15383_v57, %v15276_v58  ;;  %v13984_v54 = vmul.f32 %v25740_v2, %v26068_v55  ;;  %v14374_v58 = vmul.f32 %v25963_v5, %v26057_v30 }
 0xb16   : > { %v15277_v4 = vadd.f32 %v15189_v26, %v15080_v63  ;;  %15015 = vadd.xlane.f32.xlu0 %v15014_v1  ;;  %v14059_v26 = vsel %vm389_vm2, %v13985_v46, 0.0  ;;  %v15159_v1 = vmul.f32 %v25872_v3, %v13948_v32  ;;  %v14768_v32 = vmul.f32 %v25944_v12, %v26078_v35 }
 0xb17   : > { %v15512_v59 = vadd.f32 %v25980_v53, %v15473_v22  ;;  %15406 = vadd.xlane.f32.xlu1 %v15405_v10  ;;  %v14037_v7 = vpop.xlane.xlu0 %14036  ;;  %v14056_v6 = vsel %vm389_vm2, %v13984_v54, 0.0  ;;  %v14835_v22 = vsel %vm389_vm2, %v14769_v60, 0.0  ;;  %v14438_v46 = vsel %vm389_vm2, %v14374_v58, 0.0 }
 0xb18   : > { %v15474_v42 = vadd.f32 %v15386_v47, %v15277_v4  ;;  %v13869_v33 = vpop.xlane.xlu1 %13868  ;;  %v14571_v4 = vmul.f32 %v25932_v19, %v26068_v55  ;;  %v15158_v60 = vmul.f32 %v25872_v3, %v26068_v55  ;;  %v15355_v55 = vmul.f32 %v25883_v31, %v26078_v35 }
 0xb19   : > { %15544 = vst.msk [vmem:[%s25993_s18 + $0x10] sm:$0xff] %vm484_vm0, %v15512_v59 }
 0xb1a   : > { %v15513_v25 = vadd.f32 %v25980_v53, %v15474_v42  ;;  %14060 = vadd.xlane.f32.xlu0 %v14059_v26  ;;  %v15217_v42 = vsel %vm389_vm2, %v15159_v1, 0.0  ;;  %v13783_v26 = vld [vmem:[#allocation4 + $0xf8] sm:$0xff]  ;;  %v15411_v35 = vsel %vm389_vm2, %v15355_v55, 0.0 }
 0xb1b   : > { %13892 = vadd.xlane.f32.xlu1 %v13891_v24  ;;  %v14234_v49 = vpop.xlane.xlu0 %14233 }
 0xb1c   : > { %15545 = vst.msk [vmem:[%s25993_s18 + $0x18] sm:$0xff] %vm484_vm0, %v15513_v25  ;;  %v14034_v47 = vpop.xlane.xlu1 %14033 }
 0xb1d   : > { %v14104_v16 = vadd.f32 %v14034_v47, %v13869_v33  ;;  %v15356_v33 = vmul.f32 %v25883_v31, %v14145_v41  ;;  %v13820_v47 = vmul.f32 %v25715_v38, %v13783_v26  ;;  %v14961_v41 = vmul.f32 %v25792_v14, %v26057_v30 }
 0xb1e   : > { %14257 = vadd.xlane.f32.xlu0 %v14256_v28 }
 0xb1f   : > { %14057 = vadd.xlane.f32.xlu1 %v14056_v6  ;;  %v14616_v34 = vpop.xlane.xlu0 %14615  ;;  %v15414_v54 = vsel %vm389_vm2, %v15356_v33, 0.0  ;;  %v13894_v36 = vsel %vm389_vm2, %v13820_v47, 0.0 }
 0xb20   : > { %v14231_v40 = vpop.xlane.xlu1 %14230 }
 0xb21   : > { %v26087_v37 = vadd.f32 %v14231_v40, %v14104_v16  ;;  %v14832_v16 = vsel %vm389_vm2, %v14768_v32, 0.0  ;;  %v14375_v40 = vmul.f32 %v25963_v5, %v13783_v26 }
 0xb22   : > { %14639 = vadd.xlane.f32.xlu0 %v14638_v21  ;;  %v15017_v21 = vsel %vm389_vm2, %v14961_v41, 0.0 }
 0xb23   : > { %14254 = vadd.xlane.f32.xlu1 %v14253_v18  ;;  %v14813_v20 = vpop.xlane.xlu0 %14812 }
 0xb24   : > { %v14416_v63 = vpop.xlane.xlu1 %14415 }
 0xb25   : > { %v14494_v57 = vadd.f32 %v14416_v63, %v25916_v8  ;;  %v14635_v8 = vsel %vm389_vm2, %v14571_v4, 0.0 }
 0xb26   : > { %14836 = vadd.xlane.f32.xlu0 %v14835_v22  ;;  %v14962_v22 = vmul.f32 %v25792_v14, %v13783_v26 }
 0xb27   : > { %14439 = vadd.xlane.f32.xlu1 %v14438_v46  ;;  %v15195_v10 = vpop.xlane.xlu0 %15194  ;;  %v15214_v46 = vsel %vm389_vm2, %v15158_v60, 0.0 }
 0xb28   : > { %v14613_v9 = vpop.xlane.xlu1 %14612 }
 0xb29   : > { %v14691_v59 = vadd.f32 %v14613_v9, %v14494_v57  ;;  %v14441_v57 = vsel %vm389_vm2, %v14375_v40, 0.0 }
 0xb2a   : > { %15218 = vadd.xlane.f32.xlu0 %v15217_v42 }
 0xb2b   : > { %14636 = vadd.xlane.f32.xlu1 %v14635_v8  ;;  %v15392_v27 = vpop.xlane.xlu0 %15391 }
 0xb2c   : > { %v14810_v25 = vpop.xlane.xlu1 %14809 }
 0xb2d   : > { %v26105_v24 = vadd.f32 %v14810_v25, %v14691_v59  ;;  %v26126_v59 = vld [vmem:[#allocation4 + $0x108] sm:$0xff]  ;;  %v14147_v25 = vld [vmem:[#allocation4 + $0x114] sm:$0xff] }
 0xb2e   : > { %15415 = vadd.xlane.f32.xlu0 %v15414_v54  ;;  %v13821_v26 = vmul.f32 %v25715_v38, %v26126_v59  ;;  %v14184_v41 = vmul.f32 %v25753_v51, %v14147_v25 }
 0xb2f   : > { %14833 = vadd.xlane.f32.xlu1 %v14832_v16  ;;  %v13872_v28 = vpop.xlane.xlu0 %13871 }
 0xb30   : > { %v14105_v23 = vadd.f32 %v14037_v7, %v13872_v28  ;;  %v14995_v6 = vpop.xlane.xlu1 %14994  ;;  %v13897_v38 = vsel %vm389_vm2, %v13821_v26, 0.0  ;;  %v15358_v26 = vmul.f32 %v25883_v31, %v14147_v25 }
 0xb31   : > { %v15081_v7 = vadd.f32 %v14995_v6, %v25949_v44 }
 0xb32   : > { %13895 = vadd.xlane.f32.xlu0 %v13894_v36  ;;  %v26117_v18 = vadd.f32 %v14234_v49, %v14105_v23  ;;  %v13950_v49 = vld [vmem:[#allocation4 + $0x112] sm:$0xff] }
 0xb33   : > { %15018 = vadd.xlane.f32.xlu1 %v15017_v21  ;;  %v14419_v58 = vpop.xlane.xlu0 %14418  ;;  %v13987_v8 = vmul.f32 %v25740_v2, %v13950_v49  ;;  %v26147_v36 = vld [vmem:[#allocation4 + $0x10c] sm:$0xff]  ;;  %v14262_v21 = vsel %vm389_vm2, %v14184_v41, 0.0  ;;  %v14574_v60 = vmul.f32 %v25932_v19, %v13950_v49  ;;  %v15420_v41 = vsel %vm389_vm2, %v15358_v26, 0.0 }
 0xb34   : > { %v14495_v30 = vadd.f32 %v14419_v58, %v25969_v62  ;;  %v15192_v63 = vpop.xlane.xlu1 %15191 }
 0xb35   : > { %v15278_v4 = vadd.f32 %v15192_v63, %v15081_v7 }
 0xb36   : > { %v14692_v1 = vadd.f32 %v14616_v34, %v14495_v30  ;;  %14442 = vadd.xlane.f32.xlu0 %v14441_v57  ;;  %v15020_v34 = vsel %vm389_vm2, %v14962_v22, 0.0  ;;  %v14183_v30 = vmul.f32 %v25753_v51, %v26147_v36  ;;  %v14644_v57 = vsel %vm389_vm2, %v14574_v60, 0.0 }
 0xb37   : > { %15215 = vadd.xlane.f32.xlu1 %v15214_v46  ;;  %v14998_v9 = vpop.xlane.xlu0 %14997  ;;  %v14771_v22 = vmul.f32 %v25944_v12, %v14147_v25  ;;  %v14376_v46 = vmul.f32 %v25963_v5, %v26126_v59 }
 0xb38   : > { %v15082_v62 = vadd.f32 %v14998_v9, %v25984_v17  ;;  %v15389_v44 = vpop.xlane.xlu1 %15388  ;;  %v26129_v42 = vadd.f32 %v14813_v20, %v14692_v1  ;;  %v26137_v20 = vld [vmem:[#allocation4 + $0x10a] sm:$0xff]  ;;  %v14259_v1 = vsel %vm389_vm2, %v14183_v30, 0.0 }
 0xb39   : > { %v15475_v33 = vadd.f32 %v15389_v44, %v15278_v4  ;;  %v13986_v23 = vmul.f32 %v25740_v2, %v26137_v20  ;;  %v14841_v9 = vsel %vm389_vm2, %v14771_v22, 0.0  ;;  %v14444_v44 = vsel %vm389_vm2, %v14376_v46, 0.0 }
 0xb3a   : > { %v15279_v32 = vadd.f32 %v15195_v10, %v15082_v62  ;;  %15021 = vadd.xlane.f32.xlu0 %v15020_v34  ;;  %v14065_v10 = vsel %vm389_vm2, %v13987_v8, 0.0  ;;  %v15161_v62 = vmul.f32 %v25872_v3, %v13950_v49  ;;  %v14770_v49 = vmul.f32 %v25944_v12, %v26147_v36 }
 0xb3b   : > { %v15514_v54 = vadd.f32 %v25980_v53, %v15475_v33  ;;  %15412 = vadd.xlane.f32.xlu1 %v15411_v35  ;;  %v14043_v17 = vpop.xlane.xlu0 %14042  ;;  %v14062_v58 = vsel %vm389_vm2, %v13986_v23, 0.0  ;;  %v14573_v33 = vmul.f32 %v25932_v19, %v26137_v20  ;;  %v14963_v23 = vmul.f32 %v25792_v14, %v26126_v59 }
 0xb3c   : > { %v15476_v47 = vadd.f32 %v15392_v27, %v15279_v32  ;;  %v13875_v16 = vpop.xlane.xlu1 %13874  ;;  %v15223_v35 = vsel %vm389_vm2, %v15161_v62, 0.0 }
 0xb3d   : > { %15546 = vst.msk [vmem:[%s25993_s18 + $0x20] sm:$0xff] %vm484_vm0, %v15514_v54  ;;  %v13785_v54 = vld [vmem:[#allocation4 + $0x110] sm:$0xff]  ;;  %v15023_v30 = vsel %vm389_vm2, %v14963_v23, 0.0 }
 0xb3e   : > { %v15515_v28 = vadd.f32 %v25980_v53, %v15476_v47  ;;  %14066 = vadd.xlane.f32.xlu0 %v14065_v10 }
 0xb3f   : > { %13898 = vadd.xlane.f32.xlu1 %v13897_v38  ;;  %v14240_v6 = vpop.xlane.xlu0 %14239  ;;  %v14838_v38 = vsel %vm389_vm2, %v14770_v49, 0.0 }
 0xb40   : > { %15547 = vst.msk [vmem:[%s25993_s18 + $0x28] sm:$0xff] %vm484_vm0, %v15515_v28  ;;  %v14040_v27 = vpop.xlane.xlu1 %14039  ;;  %v26180_v28 = vld [vmem:[%s26725_s9] ss:$0 sm:$0xff] }
 0xb41   : > { %v14106_v40 = vadd.f32 %v14040_v27, %v13875_v16  ;;  %v13822_v25 = vmul.f32 %v26180_v28, %v13785_v54 }
 0xb42   : > { %14263 = vadd.xlane.f32.xlu0 %v14262_v21 }
 0xb43   : > { %14063 = vadd.xlane.f32.xlu1 %v14062_v58  ;;  %v14622_v2 = vpop.xlane.xlu0 %14621  ;;  %v13900_v60 = vsel %vm389_vm2, %v13822_v25, 0.0  ;;  %v14377_v58 = vmul.f32 %v25963_v5, %v13785_v54  ;;  %v26226_v25 = vld [vmem:[%s26725_s9 + $0x2] ss:$0 sm:$0xff] }
 0xb44   : > { %v14237_v63 = vpop.xlane.xlu1 %14236 }
 0xb45   : > { %v26156_v7 = vadd.f32 %v14237_v63, %v14106_v40  ;;  %v15160_v63 = vmul.f32 %v25872_v3, %v26137_v20  ;;  %v14447_v46 = vsel %vm389_vm2, %v14377_v58, 0.0  ;;  %v15357_v20 = vmul.f32 %v25883_v31, %v26147_v36 }
 0xb46   : > { %14645 = vadd.xlane.f32.xlu0 %v14644_v57 }
 0xb47   : > { %14260 = vadd.xlane.f32.xlu1 %v14259_v1  ;;  %v14819_v55 = vpop.xlane.xlu0 %14818  ;;  %v15417_v26 = vsel %vm389_vm2, %v15357_v20, 0.0 }
 0xb48   : > { %v14422_v4 = vpop.xlane.xlu1 %14421 }
 0xb49   : > { %v14496_v51 = vadd.f32 %v14422_v4, %v26018_v61  ;;  %v14641_v61 = vsel %vm389_vm2, %v14573_v33, 0.0  ;;  %v14964_v4 = vmul.f32 %v25792_v14, %v13785_v54  ;;  %v26200_v33 = vld [vmem:[#allocation4 + $0x120] sm:$0xff] }
 0xb4a   : > { %14842 = vadd.xlane.f32.xlu0 %v14841_v9  ;;  %v15220_v9 = vsel %vm389_vm2, %v15160_v63, 0.0  ;;  %v26218_v54 = vld [vmem:[#allocation4 + $0x122] sm:$0xff]  ;;  %v14378_v20 = vmul.f32 %v25963_v5, %v26200_v33 }
 0xb4b   : > { %14445 = vadd.xlane.f32.xlu1 %v14444_v44  ;;  %v15201_v34 = vpop.xlane.xlu0 %15200 }
 0xb4c   : > { %v14619_v8 = vpop.xlane.xlu1 %14618 }
 0xb4d   : > { %v14693_v32 = vadd.f32 %v14619_v8, %v14496_v51 }
 0xb4e   : > { %15224 = vadd.xlane.f32.xlu0 %v15223_v35 }
 0xb4f   : > { %14642 = vadd.xlane.f32.xlu1 %v14641_v61  ;;  %v15398_v47 = vpop.xlane.xlu0 %15397 }
 0xb50   : > { %v14816_v16 = vpop.xlane.xlu1 %14815 }
 0xb51   : > { %v26174_v10 = vadd.f32 %v14816_v16, %v14693_v32  ;;  %v26209_v32 = vld [vmem:[%s26725_s9 + $0x1] ss:$0 sm:$0xff] }
 0xb52   : > { %15421 = vadd.xlane.f32.xlu0 %v15420_v41 }
 0xb53   : > { %14839 = vadd.xlane.f32.xlu1 %v14838_v38  ;;  %v13878_v27 = vpop.xlane.xlu0 %13877 }
 0xb54   : > { %v14107_v40 = vadd.f32 %v14043_v17, %v13878_v27  ;;  %v15001_v21 = vpop.xlane.xlu1 %15000 }
 0xb55   : > { %v15083_v17 = vadd.f32 %v15001_v21, %v26036_v29  ;;  %v26233_v21 = vld [vmem:[#allocation4 + $0x124] sm:$0xff] }
 0xb56   : > { %13901 = vadd.xlane.f32.xlu0 %v13900_v60  ;;  %v26191_v57 = vadd.f32 %v14240_v6, %v14107_v40  ;;  %v13952_v6 = vld [vmem:[#allocation4 + $0x12a] sm:$0xff] }
 0xb57   : > { %15024 = vadd.xlane.f32.xlu1 %v15023_v30  ;;  %v14425_v22 = vpop.xlane.xlu0 %14424  ;;  %v13989_v36 = vmul.f32 %v26209_v32, %v13952_v6  ;;  %v14576_v63 = vmul.f32 %v25932_v19, %v13952_v6 }
 0xb58   : > { %v14497_v59 = vadd.f32 %v14425_v22, %v26048_v39  ;;  %v15198_v1 = vpop.xlane.xlu1 %15197 }
 0xb59   : > { %v15280_v62 = vadd.f32 %v15198_v1, %v15083_v17 }
 0xb5a   : > { %v14694_v51 = vadd.f32 %v14622_v2, %v14497_v59  ;;  %14448 = vadd.xlane.f32.xlu0 %v14447_v46  ;;  %v15026_v2 = vsel %vm389_vm2, %v14964_v4, 0.0  ;;  %v14185_v59 = vmul.f32 %v26226_v25, %v26233_v21  ;;  %v14650_v4 = vsel %vm389_vm2, %v14576_v63, 0.0 }
 0xb5b   : > { %15221 = vadd.xlane.f32.xlu1 %v15220_v9  ;;  %v15004_v44 = vpop.xlane.xlu0 %15003 }
 0xb5c   : > { %v15084_v39 = vadd.f32 %v15004_v44, %v26060_v11  ;;  %v15395_v29 = vpop.xlane.xlu1 %15394  ;;  %v26203_v8 = vadd.f32 %v14819_v55, %v14694_v51  ;;  %v13823_v11 = vmul.f32 %v26180_v28, %v26200_v33  ;;  %v14149_v55 = vld [vmem:[#allocation4 + $0x12c] sm:$0xff]  ;;  %v14265_v9 = vsel %vm389_vm2, %v14185_v59, 0.0 }
 0xb5d   : > { %v15477_v14 = vadd.f32 %v15395_v29, %v15280_v62  ;;  %v14186_v38 = vmul.f32 %v26226_v25, %v14149_v55  ;;  %v14773_v51 = vmul.f32 %v25944_v12, %v14149_v55 }
 0xb5e   : > { %v15281_v35 = vadd.f32 %v15201_v34, %v15084_v39  ;;  %15027 = vadd.xlane.f32.xlu0 %v15026_v2  ;;  %v14071_v34 = vsel %vm389_vm2, %v13989_v36, 0.0  ;;  %v13903_v27 = vsel %vm389_vm2, %v13823_v11, 0.0  ;;  %v14450_v2 = vsel %vm389_vm2, %v14378_v20, 0.0 }
 0xb5f   : > { %v15516_v61 = vadd.f32 %v25980_v53, %v15477_v14  ;;  %15418 = vadd.xlane.f32.xlu1 %v15417_v26  ;;  %v26216_v49 = vpop.xlane.xlu0 %14048  ;;  %v14268_v30 = vsel %vm389_vm2, %v14186_v38, 0.0  ;;  %v14847_v29 = vsel %vm389_vm2, %v14773_v51, 0.0  ;;  %v15163_v14 = vmul.f32 %v25872_v3, %v13952_v6 }
 0xb60   : > { %v15478_v16 = vadd.f32 %v15398_v47, %v15281_v35  ;;  %v13881_v41 = vpop.xlane.xlu1 %13880  ;;  %v13988_v47 = vmul.f32 %v26209_v32, %v26218_v54  ;;  %v14575_v36 = vmul.f32 %v25932_v19, %v26218_v54  ;;  %v14772_v6 = vmul.f32 %v25944_v12, %v26233_v21 }
 0xb61   : > { %15548 = vst.msk [vmem:[%s25993_s18 + $0x30] sm:$0xff] %vm484_vm0, %v15516_v61  ;;  %v15229_v61 = vsel %vm389_vm2, %v15163_v14, 0.0  ;;  %v15162_v51 = vmul.f32 %v25872_v3, %v26218_v54  ;;  %v15359_v3 = vmul.f32 %v25883_v31, %v26233_v21  ;;  %v13954_v54 = vld [vmem:[#allocation4 + $0x142] sm:$0xff] }
 0xb62   : > { %v15517_v23 = vadd.f32 %v25980_v53, %v15478_v16  ;;  %14072 = vadd.xlane.f32.xlu0 %v14071_v34  ;;  %v14068_v22 = vsel %vm389_vm2, %v13988_v47, 0.0  ;;  %v15360_v16 = vmul.f32 %v25883_v31, %v14149_v55  ;;  %v26268_v55 = vld [vmem:[%s26725_s9 + $0x6] ss:$0 sm:$0xff] }
 0xb63   : > { %13904 = vadd.xlane.f32.xlu1 %v13903_v27  ;;  %v14246_v40 = vpop.xlane.xlu0 %14245  ;;  %v15423_v31 = vsel %vm389_vm2, %v15359_v3, 0.0 }
 0xb64   : > { %15549 = vst.msk [vmem:[%s25993_s18 + $0x38] sm:$0xff] %vm484_vm0, %v15517_v23  ;;  %v14046_v60 = vpop.xlane.xlu1 %14045  ;;  %v15426_v27 = vsel %vm389_vm2, %v15360_v16, 0.0  ;;  %v13991_v16 = vmul.f32 %v26209_v32, %v13954_v54 }
 0xb65   : > { %v14108_v58 = vadd.f32 %v14046_v60, %v13881_v41  ;;  %v13787_v41 = vld [vmem:[#allocation4 + $0x128] sm:$0xff]  ;;  %v14844_v60 = vsel %vm389_vm2, %v14772_v6, 0.0 }
 0xb66   : > { %14269 = vadd.xlane.f32.xlu0 %v14268_v30  ;;  %v13824_v47 = vmul.f32 %v26180_v28, %v13787_v41  ;;  %v14151_v6 = vld [vmem:[#allocation4 + $0x144] sm:$0xff] }
 0xb67   : > { %14069 = vadd.xlane.f32.xlu1 %v14068_v22  ;;  %v14628_v1 = vpop.xlane.xlu0 %14627 }
 0xb68   : > { %v14243_v17 = vpop.xlane.xlu1 %14242  ;;  %v13906_v59 = vsel %vm389_vm2, %v13824_v47, 0.0  ;;  %v14188_v47 = vmul.f32 %v26226_v25, %v14151_v6 }
 0xb69   : > { %v26242_v46 = vadd.f32 %v14243_v17, %v14108_v58  ;;  %v14965_v58 = vmul.f32 %v26268_v55, %v26200_v33  ;;  %v14379_v17 = vmul.f32 %v25963_v5, %v13787_v41 }
 0xb6a   : > { %14651 = vadd.xlane.f32.xlu0 %v14650_v4 }
 0xb6b   : > { %14266 = vadd.xlane.f32.xlu1 %v14265_v9  ;;  %v14825_v62 = vpop.xlane.xlu0 %14824  ;;  %v15029_v4 = vsel %vm389_vm2, %v14965_v58, 0.0 }
 0xb6c   : > { %v14428_v44 = vpop.xlane.xlu1 %14427 }
 0xb6d   : > { %v14498_v39 = vadd.f32 %v14428_v44, %v26087_v37  ;;  %v14647_v37 = vsel %vm389_vm2, %v14575_v36, 0.0 }
 0xb6e   : > { %14848 = vadd.xlane.f32.xlu0 %v14847_v29  ;;  %v14966_v29 = vmul.f32 %v26268_v55, %v13787_v41 }
 0xb6f   : > { %14451 = vadd.xlane.f32.xlu1 %v14450_v2  ;;  %v15207_v35 = vpop.xlane.xlu0 %15206  ;;  %v15226_v2 = vsel %vm389_vm2, %v15162_v51, 0.0 }
 0xb70   : > { %v14625_v26 = vpop.xlane.xlu1 %14624 }
 0xb71   : > { %v14695_v11 = vadd.f32 %v14625_v26, %v14498_v39  ;;  %v14453_v39 = vsel %vm389_vm2, %v14379_v17, 0.0  ;;  %v26287_v26 = vld [vmem:[#allocation4 + $0x138] sm:$0xff]  ;;  %v14274_v17 = vsel %vm389_vm2, %v14188_v47, 0.0 }
 0xb72   : > { %15230 = vadd.xlane.f32.xlu0 %v15229_v61  ;;  %v13825_v21 = vmul.f32 %v26180_v28, %v26287_v26 }
 0xb73   : > { %14648 = vadd.xlane.f32.xlu1 %v14647_v37  ;;  %v15404_v34 = vpop.xlane.xlu0 %15403 }
 0xb74   : > { %v14822_v38 = vpop.xlane.xlu1 %14821  ;;  %v13909_v58 = vsel %vm389_vm2, %v13825_v21, 0.0 }
 0xb75   : > { %v26260_v23 = vadd.f32 %v14822_v38, %v14695_v11 }
 0xb76   : > { %15427 = vadd.xlane.f32.xlu0 %v15426_v27 }
 0xb77   : > { %14845 = vadd.xlane.f32.xlu1 %v14844_v60  ;;  %v13884_v30 = vpop.xlane.xlu0 %13883 }
 0xb78   : > { %v14109_v63 = vadd.f32 %v26216_v49, %v13884_v30  ;;  %v15007_v22 = vpop.xlane.xlu1 %15006 }
 0xb79   : > { %v15085_v49 = vadd.f32 %v15007_v22, %v26105_v24  ;;  %v26310_v22 = vld [vmem:[#allocation4 + $0x13c] sm:$0xff] }
 0xb7a   : > { %13907 = vadd.xlane.f32.xlu0 %v13906_v59  ;;  %v26278_v9 = vadd.f32 %v14246_v40, %v14109_v63 }
 0xb7b   : > { %15030 = vadd.xlane.f32.xlu1 %v15029_v4  ;;  %v14431_v20 = vpop.xlane.xlu0 %14430  ;;  %v14578_v4 = vmul.f32 %v25932_v19, %v13954_v54 }
 0xb7c   : > { %v14499_v33 = vadd.f32 %v14431_v20, %v26117_v18  ;;  %v15204_v44 = vpop.xlane.xlu1 %15203  ;;  %v14187_v20 = vmul.f32 %v26226_v25, %v26310_v22 }
 0xb7d   : > { %v15282_v40 = vadd.f32 %v15204_v44, %v15085_v49 }
 0xb7e   : > { %v14696_v14 = vadd.f32 %v14628_v1, %v14499_v33  ;;  %14454 = vadd.xlane.f32.xlu0 %v14453_v39  ;;  %v15032_v1 = vsel %vm389_vm2, %v14966_v29, 0.0  ;;  %v14656_v39 = vsel %vm389_vm2, %v14578_v4, 0.0  ;;  %v14775_v29 = vmul.f32 %v25944_v12, %v14151_v6 }
 0xb7f   : > { %15227 = vadd.xlane.f32.xlu1 %v15226_v2  ;;  %v15010_v36 = vpop.xlane.xlu0 %15009  ;;  %v14380_v2 = vmul.f32 %v25963_v5, %v26287_v26 }
 0xb80   : > { %v15086_v18 = vadd.f32 %v15010_v36, %v26129_v42  ;;  %v15401_v24 = vpop.xlane.xlu1 %15400  ;;  %v26290_v11 = vadd.f32 %v14825_v62, %v14696_v14  ;;  %v26300_v62 = vld [vmem:[#allocation4 + $0x13a] sm:$0xff]  ;;  %v14271_v14 = vsel %vm389_vm2, %v14187_v20, 0.0 }
 0xb81   : > { %v15479_v61 = vadd.f32 %v15401_v24, %v15282_v40  ;;  %v13990_v30 = vmul.f32 %v26209_v32, %v26300_v62  ;;  %v26331_v24 = vld [vmem:[%s26725_s9 + $0x7] ss:$0 sm:$0xff] }
 0xb82   : > { %v15283_v37 = vadd.f32 %v15207_v35, %v15086_v18  ;;  %15033 = vadd.xlane.f32.xlu0 %v15032_v1  ;;  %v14077_v35 = vsel %vm389_vm2, %v13991_v16, 0.0  ;;  %v14853_v18 = vsel %vm389_vm2, %v14775_v29, 0.0  ;;  %v14456_v1 = vsel %vm389_vm2, %v14380_v2, 0.0 }
 0xb83   : > { %v15518_v41 = vadd.f32 %v25980_v53, %v15479_v61  ;;  %15424 = vadd.xlane.f32.xlu1 %v15423_v31  ;;  %v26298_v42 = vpop.xlane.xlu0 %14054  ;;  %v14074_v51 = vsel %vm389_vm2, %v13990_v30, 0.0  ;;  %v15165_v61 = vmul.f32 %v26331_v24, %v13954_v54  ;;  %v14577_v16 = vmul.f32 %v25932_v19, %v26300_v62  ;;  %v13789_v19 = vld [vmem:[#allocation4 + $0x140] sm:$0xff] }
 0xb84   : > { %v15480_v38 = vadd.f32 %v15404_v34, %v15283_v37  ;;  %v13887_v27 = vpop.xlane.xlu1 %13886  ;;  %v13826_v30 = vmul.f32 %v26180_v28, %v13789_v19 }
 0xb85   : > { %15550 = vst.msk [vmem:[%s25993_s18 + $0x40] sm:$0xff] %vm484_vm0, %v15518_v41  ;;  %v26341_v41 = vld [vmem:[%s26725_s9 + $0x8] ss:$0 sm:$0xff]  ;;  %v14653_v54 = vsel %vm389_vm2, %v14577_v16, 0.0 }
 0xb86   : > { %v15519_v60 = vadd.f32 %v25980_v53, %v15480_v38  ;;  %14078 = vadd.xlane.f32.xlu0 %v14077_v35  ;;  %v15362_v38 = vmul.f32 %v26341_v41, %v14151_v6  ;;  %v14967_v6 = vmul.f32 %v26268_v55, %v26287_v26  ;;  %v13912_v4 = vsel %vm389_vm2, %v13826_v30, 0.0  ;;  %v26388_v30 = vld [vmem:[#allocation5] ss:$0 sm:$0xff] }
 0xb87   : > { %13910 = vadd.xlane.f32.xlu1 %v13909_v58  ;;  %v14252_v63 = vpop.xlane.xlu0 %14251 }
 0xb88   : > { %15551 = vst.msk [vmem:[%s25993_s18 + $0x48] sm:$0xff] %vm484_vm0, %v15519_v60  ;;  %v14052_v34 = vpop.xlane.xlu1 %14051  ;;  %v15432_v58 = vsel %vm389_vm2, %v15362_v38, 0.0  ;;  %v15035_v20 = vsel %vm389_vm2, %v14967_v6, 0.0 }
 0xb89   : > { %v14110_v59 = vadd.f32 %v14052_v34, %v13887_v27  ;;  %v14774_v27 = vmul.f32 %v25944_v12, %v26310_v22 }
 0xb8a   : > { %14275 = vadd.xlane.f32.xlu0 %v14274_v17 }
 0xb8b   : > { %14075 = vadd.xlane.f32.xlu1 %v14074_v51  ;;  %v14634_v33 = vpop.xlane.xlu0 %14633  ;;  %v14850_v34 = vsel %vm389_vm2, %v14774_v27, 0.0  ;;  %v14381_v51 = vmul.f32 %v25963_v5, %v13789_v19 }
 0xb8c   : > { %v14249_v44 = vpop.xlane.xlu1 %14248 }
 0xb8d   : > { %v26319_v49 = vadd.f32 %v14249_v44, %v14110_v59  ;;  %v15164_v44 = vmul.f32 %v26331_v24, %v26300_v62  ;;  %v14459_v2 = vsel %vm389_vm2, %v14381_v51, 0.0  ;;  %v15361_v62 = vmul.f32 %v26341_v41, %v26310_v22  ;;  %v26402_v51 = vld [vmem:[%s26725_s9 + $0x4] ss:$0 sm:$0xff] }
 0xb8e   : > { %14657 = vadd.xlane.f32.xlu0 %v14656_v39 }
 0xb8f   : > { %14272 = vadd.xlane.f32.xlu1 %v14271_v14  ;;  %v14831_v3 = vpop.xlane.xlu0 %14830  ;;  %v15429_v22 = vsel %vm389_vm2, %v15361_v62, 0.0  ;;  %v26421_v62 = vld [vmem:[%s26725_s9 + $0x3] ss:$0 sm:$0xff] }
 0xb90   : > { %v14434_v40 = vpop.xlane.xlu1 %14433 }
 0xb91   : > { %v14500_v36 = vadd.f32 %v14434_v40, %v26156_v7  ;;  %v15235_v7 = vsel %vm389_vm2, %v15165_v61, 0.0  ;;  %v14968_v40 = vmul.f32 %v26268_v55, %v13789_v19 }
 0xb92   : > { %14854 = vadd.xlane.f32.xlu0 %v14853_v18 }
 0xb93   : > { %14457 = vadd.xlane.f32.xlu1 %v14456_v1  ;;  %v15213_v37 = vpop.xlane.xlu0 %15212  ;;  %v26369_v1 = vld [vmem:[#allocation4 + $0x150] sm:$0xff] }
 0xb94   : > { %v14631_v31 = vpop.xlane.xlu1 %14630  ;;  %v13827_v38 = vmul.f32 %v26180_v28, %v26369_v1 }
 0xb95   : > { %v14697_v21 = vadd.f32 %v14631_v31, %v14500_v36  ;;  %v15232_v36 = vsel %vm389_vm2, %v15164_v44, 0.0 }
 0xb96   : > { %15236 = vadd.xlane.f32.xlu0 %v15235_v7 }
 0xb97   : > { %14654 = vadd.xlane.f32.xlu1 %v14653_v54  ;;  %v15410_v35 = vpop.xlane.xlu0 %15409  ;;  %v14153_v54 = vld [vmem:[#allocation4 + $0x15c] sm:$0xff] }
 0xb98   : > { %v14828_v47 = vpop.xlane.xlu1 %14827 }
 0xb99   : > { %v26347_v60 = vadd.f32 %v14828_v47, %v14697_v21 }
 0xb9a   : > { %15433 = vadd.xlane.f32.xlu0 %v15432_v58  ;;  %v14190_v58 = vmul.f32 %v26226_v25, %v14153_v54 }
 0xb9b   : > { %14851 = vadd.xlane.f32.xlu1 %v14850_v34  ;;  %v13890_v59 = vpop.xlane.xlu0 %13889 }
 0xb9c   : > { %v14111_v12 = vadd.f32 %v26298_v42, %v13890_v59  ;;  %v15013_v17 = vpop.xlane.xlu1 %15012 }
 0xb9d   : > { %v15087_v42 = vadd.f32 %v15013_v17, %v26174_v10 }
 0xb9e   : > { %13913 = vadd.xlane.f32.xlu0 %v13912_v4  ;;  %v26360_v39 = vadd.f32 %v14252_v63, %v14111_v12  ;;  %v13956_v63 = vld [vmem:[#allocation4 + $0x15a] sm:$0xff]  ;;  %v14280_v4 = vsel %vm389_vm2, %v14190_v58, 0.0 }
 0xb9f   : > { %15036 = vadd.xlane.f32.xlu1 %v15035_v20  ;;  %v14437_v29 = vpop.xlane.xlu0 %14436  ;;  %v13993_v21 = vmul.f32 %v26209_v32, %v13956_v63  ;;  %v14580_v20 = vmul.f32 %v26402_v51, %v13956_v63 }
 0xba0   : > { %v14501_v26 = vadd.f32 %v14437_v29, %v26191_v57  ;;  %v15210_v14 = vpop.xlane.xlu1 %15209 }
 0xba1   : > { %v15284_v18 = vadd.f32 %v15210_v14, %v15087_v42 }
 0xba2   : > { %v14698_v5 = vadd.f32 %v14634_v33, %v14501_v26  ;;  %14460 = vadd.xlane.f32.xlu0 %v14459_v2  ;;  %v15038_v33 = vsel %vm389_vm2, %v14968_v40, 0.0  ;;  %v14662_v2 = vsel %vm389_vm2, %v14580_v20, 0.0  ;;  %v26414_v40 = vld [vmem:[%s26725_s9 + $0x5] ss:$0 sm:$0xff] }
 0xba3   : > { %15233 = vadd.xlane.f32.xlu1 %v15232_v36  ;;  %v15016_v61 = vpop.xlane.xlu0 %15015 }
 0xba4   : > { %v15088_v57 = vadd.f32 %v15016_v61, %v26203_v8  ;;  %v15407_v10 = vpop.xlane.xlu1 %15406  ;;  %v26372_v16 = vadd.f32 %v14831_v3, %v14698_v5  ;;  %v26382_v3 = vld [vmem:[#allocation4 + $0x152] sm:$0xff]  ;;  %v14777_v5 = vmul.f32 %v26414_v40, %v14153_v54 }
 0xba5   : > { %v15481_v31 = vadd.f32 %v15407_v10, %v15284_v18  ;;  %v13992_v6 = vmul.f32 %v26209_v32, %v26382_v3  ;;  %v14382_v18 = vmul.f32 %v26421_v62, %v26369_v1 }
 0xba6   : > { %v15285_v7 = vadd.f32 %v15213_v37, %v15088_v57  ;;  %15039 = vadd.xlane.f32.xlu0 %v15038_v33  ;;  %v14083_v37 = vsel %vm389_vm2, %v13993_v21, 0.0  ;;  %v15167_v33 = vmul.f32 %v26331_v24, %v13956_v63 }
 0xba7   : > { %v15520_v27 = vadd.f32 %v25980_v53, %v15481_v31  ;;  %15430 = vadd.xlane.f32.xlu1 %v15429_v22  ;;  %v26380_v8 = vpop.xlane.xlu0 %14060  ;;  %v13915_v53 = vsel %vm389_vm2, %v13827_v38, 0.0  ;;  %v14080_v44 = vsel %vm389_vm2, %v13992_v6, 0.0  ;;  %v14859_v31 = vsel %vm389_vm2, %v14777_v5, 0.0 }
 0xba8   : > { %v15482_v19 = vadd.f32 %v15410_v35, %v15285_v7  ;;  %v13893_v47 = vpop.xlane.xlu1 %13892  ;;  %v26394_v35 = vld [vmem:[#allocation4 + $0x154] sm:$0xff]  ;;  %v14462_v21 = vsel %vm389_vm2, %v14382_v18, 0.0  ;;  %v14579_v7 = vmul.f32 %v26402_v51, %v26382_v3  ;;  %v15166_v5 = vmul.f32 %v26331_v24, %v26382_v3 }
 0xba9   : > { %15552 = vst.msk [vmem:[%s25993_s18 + $0x50] sm:$0xff] %vm484_vm0, %v15520_v27  ;;  %v14189_v29 = vmul.f32 %v26226_v25, %v26394_v35  ;;  %v14776_v63 = vmul.f32 %v26414_v40, %v26394_v35  ;;  %v15363_v3 = vmul.f32 %v26341_v41, %v26394_v35 }
 0xbaa   : > { %v15521_v34 = vadd.f32 %v26388_v30, %v15482_v19  ;;  %14084 = vadd.xlane.f32.xlu0 %v14083_v37  ;;  %v15241_v19 = vsel %vm389_vm2, %v15167_v33, 0.0  ;;  %v13791_v37 = vld [vmem:[#allocation4 + $0x158] sm:$0xff] }
 0xbab   : > { %13916 = vadd.xlane.f32.xlu1 %v13915_v53  ;;  %v14258_v59 = vpop.xlane.xlu0 %14257  ;;  %v14277_v36 = vsel %vm389_vm2, %v14189_v29, 0.0  ;;  %v15435_v35 = vsel %vm389_vm2, %v15363_v3, 0.0 }
 0xbac   : > { %15553 = vst.msk [vmem:[%s25993_s18 + $0x58] sm:$0xff] %vm484_vm0, %v15521_v34  ;;  %v14058_v12 = vpop.xlane.xlu1 %14057 }
 0xbad   : > { %v14112_v17 = vadd.f32 %v14058_v12, %v13893_v47  ;;  %v15364_v47 = vmul.f32 %v26341_v41, %v14153_v54  ;;  %v13828_v12 = vmul.f32 %v26180_v28, %v13791_v37  ;;  %v14969_v54 = vmul.f32 %v26268_v55, %v26369_v1 }
 0xbae   : > { %14281 = vadd.xlane.f32.xlu0 %v14280_v4 }
 0xbaf   : > { %14081 = vadd.xlane.f32.xlu1 %v14080_v44  ;;  %v14640_v26 = vpop.xlane.xlu0 %14639  ;;  %v15438_v6 = vsel %vm389_vm2, %v15364_v47, 0.0  ;;  %v13918_v29 = vsel %vm389_vm2, %v13828_v12, 0.0 }
 0xbb0   : > { %v14255_v14 = vpop.xlane.xlu1 %14254 }
 0xbb1   : > { %v26408_v42 = vadd.f32 %v14255_v14, %v14112_v17  ;;  %v14856_v17 = vsel %vm389_vm2, %v14776_v63, 0.0  ;;  %v14383_v14 = vmul.f32 %v26421_v62, %v13791_v37 }
 0xbb2   : > { %14663 = vadd.xlane.f32.xlu0 %v14662_v2  ;;  %v15041_v2 = vsel %vm389_vm2, %v14969_v54, 0.0 }
 0xbb3   : > { %14278 = vadd.xlane.f32.xlu1 %v14277_v36  ;;  %v14837_v61 = vpop.xlane.xlu0 %14836 }
 0xbb4   : > { %v14440_v57 = vpop.xlane.xlu1 %14439 }
 0xbb5   : > { %v14502_v10 = vadd.f32 %v14440_v57, %v26242_v46  ;;  %v14659_v46 = vsel %vm389_vm2, %v14579_v7, 0.0 }
 0xbb6   : > { %14860 = vadd.xlane.f32.xlu0 %v14859_v31  ;;  %v14970_v31 = vmul.f32 %v26268_v55, %v13791_v37 }
 0xbb7   : > { %14463 = vadd.xlane.f32.xlu1 %v14462_v21  ;;  %v15219_v22 = vpop.xlane.xlu0 %15218  ;;  %v15238_v21 = vsel %vm389_vm2, %v15166_v5, 0.0 }
 0xbb8   : > { %v14637_v38 = vpop.xlane.xlu1 %14636 }
 0xbb9   : > { %v14699_v27 = vadd.f32 %v14637_v38, %v14502_v10  ;;  %v14465_v10 = vsel %vm389_vm2, %v14383_v14, 0.0  ;;  %v26479_v14 = vld [vmem:[#allocation4 + $0x16c] sm:$0xff] }
 0xbba   : > { %15242 = vadd.xlane.f32.xlu0 %v15241_v19 }
 0xbbb   : > { %14660 = vadd.xlane.f32.xlu1 %v14659_v46  ;;  %v15416_v58 = vpop.xlane.xlu0 %15415 }
 0xbbc   : > { %v14834_v34 = vpop.xlane.xlu1 %14833 }
 0xbbd   : > { %v26436_v53 = vadd.f32 %v14834_v34, %v14699_v27  ;;  %v26458_v27 = vld [vmem:[#allocation4 + $0x168] sm:$0xff]  ;;  %v14155_v34 = vld [vmem:[#allocation4 + $0x174] sm:$0xff] }
 0xbbe   : > { %15439 = vadd.xlane.f32.xlu0 %v15438_v6  ;;  %v13829_v37 = vmul.f32 %v26180_v28, %v26458_v27  ;;  %v14192_v54 = vmul.f32 %v26226_v25, %v14155_v34  ;;  %v14384_v3 = vmul.f32 %v26421_v62, %v26458_v27 }
 0xbbf   : > { %14857 = vadd.xlane.f32.xlu1 %v14856_v17  ;;  %v13896_v4 = vpop.xlane.xlu0 %13895 }
 0xbc0   : > { %v14113_v20 = vadd.f32 %v26380_v8, %v13896_v4  ;;  %v15019_v44 = vpop.xlane.xlu1 %15018  ;;  %v14286_v5 = vsel %vm389_vm2, %v14192_v54, 0.0 }
 0xbc1   : > { %v15089_v8 = vadd.f32 %v15019_v44, %v26260_v23 }
 0xbc2   : > { %13919 = vadd.xlane.f32.xlu0 %v13918_v29  ;;  %v26449_v36 = vadd.f32 %v14258_v59, %v14113_v20  ;;  %v13958_v59 = vld [vmem:[#allocation4 + $0x172] sm:$0xff]  ;;  %v13921_v20 = vsel %vm389_vm2, %v13829_v37, 0.0 }
 0xbc3   : > { %15042 = vadd.xlane.f32.xlu1 %v15041_v2  ;;  %v14443_v18 = vpop.xlane.xlu0 %14442  ;;  %v13995_v46 = vmul.f32 %v26209_v32, %v13958_v59 }
 0xbc4   : > { %v14503_v1 = vadd.f32 %v14443_v18, %v26278_v9  ;;  %v15216_v57 = vpop.xlane.xlu1 %15215  ;;  %v14582_v18 = vmul.f32 %v26402_v51, %v13958_v59 }
 0xbc5   : > { %v15286_v7 = vadd.f32 %v15216_v57, %v15089_v8  ;;  %v14191_v57 = vmul.f32 %v26226_v25, %v26479_v14 }
 0xbc6   : > { %v14700_v33 = vadd.f32 %v14640_v26, %v14503_v1  ;;  %14466 = vadd.xlane.f32.xlu0 %v14465_v10  ;;  %v15044_v26 = vsel %vm389_vm2, %v14970_v31, 0.0  ;;  %v14668_v31 = vsel %vm389_vm2, %v14582_v18, 0.0 }
 0xbc7   : > { %15239 = vadd.xlane.f32.xlu1 %v15238_v21  ;;  %v15022_v38 = vpop.xlane.xlu0 %15021  ;;  %v14283_v21 = vsel %vm389_vm2, %v14191_v57, 0.0 }
 0xbc8   : > { %v15090_v9 = vadd.f32 %v15022_v38, %v26290_v11  ;;  %v15413_v23 = vpop.xlane.xlu1 %15412  ;;  %v26461_v19 = vadd.f32 %v14837_v61, %v14700_v33  ;;  %v26469_v61 = vld [vmem:[#allocation4 + $0x16a] sm:$0xff]  ;;  %v14779_v33 = vmul.f32 %v26414_v40, %v14155_v34 }
 0xbc9   : > { %v15483_v47 = vadd.f32 %v15413_v23, %v15286_v7  ;;  %v13994_v44 = vmul.f32 %v26209_v32, %v26469_v61  ;;  %v15169_v23 = vmul.f32 %v26331_v24, %v13958_v59  ;;  %v14778_v59 = vmul.f32 %v26414_v40, %v26479_v14 }
 0xbca   : > { %v15287_v63 = vadd.f32 %v15219_v22, %v15090_v9  ;;  %15045 = vadd.xlane.f32.xlu0 %v15044_v26  ;;  %v14089_v22 = vsel %vm389_vm2, %v13995_v46, 0.0  ;;  %v14865_v9 = vsel %vm389_vm2, %v14779_v33, 0.0  ;;  %v14581_v26 = vmul.f32 %v26402_v51, %v26469_v61 }
 0xbcb   : > { %v15522_v6 = vadd.f32 %v26388_v30, %v15483_v47  ;;  %15436 = vadd.xlane.f32.xlu1 %v15435_v35  ;;  %v14067_v11 = vpop.xlane.xlu0 %14066  ;;  %v14086_v1 = vsel %vm389_vm2, %v13994_v44, 0.0  ;;  %v14468_v47 = vsel %vm389_vm2, %v14384_v3, 0.0  ;;  %v15247_v37 = vsel %vm389_vm2, %v15169_v23, 0.0 }
 0xbcc   : > { %v15484_v12 = vadd.f32 %v15416_v58, %v15287_v63  ;;  %v13899_v17 = vpop.xlane.xlu1 %13898  ;;  %v14862_v44 = vsel %vm389_vm2, %v14778_v59, 0.0 }
 0xbcd   : > { %15554 = vst.msk [vmem:[%s25993_s18 + $0x60] sm:$0xff] %vm484_vm0, %v15522_v6  ;;  %v15366_v6 = vmul.f32 %v26341_v41, %v14155_v34  ;;  %v14971_v34 = vmul.f32 %v26268_v55, %v26458_v27 }
 0xbce   : > { %v15523_v4 = vadd.f32 %v26388_v30, %v15484_v12  ;;  %14090 = vadd.xlane.f32.xlu0 %v14089_v22  ;;  %v13793_v12 = vld [vmem:[#allocation4 + $0x170] sm:$0xff] }
 0xbcf   : > { %13922 = vadd.xlane.f32.xlu1 %v13921_v20  ;;  %v14264_v29 = vpop.xlane.xlu0 %14263  ;;  %v13830_v20 = vmul.f32 %v26180_v28, %v13793_v12  ;;  %v15047_v57 = vsel %vm389_vm2, %v14971_v34, 0.0  ;;  %v15168_v28 = vmul.f32 %v26331_v24, %v26469_v61  ;;  %v14972_v3 = vmul.f32 %v26268_v55, %v13793_v12 }
 0xbd0   : > { %15555 = vst.msk [vmem:[%s25993_s18 + $0x68] sm:$0xff] %vm484_vm0, %v15523_v4  ;;  %v14064_v58 = vpop.xlane.xlu1 %14063  ;;  %v15444_v4 = vsel %vm389_vm2, %v15366_v6, 0.0  ;;  %v15365_v61 = vmul.f32 %v26341_v41, %v26479_v14 }
 0xbd1   : > { %v14114_v2 = vadd.f32 %v14064_v58, %v13899_v17  ;;  %v13924_v18 = vsel %vm389_vm2, %v13830_v20, 0.0 }
 0xbd2   : > { %14287 = vadd.xlane.f32.xlu0 %v14286_v5  ;;  %v15441_v14 = vsel %vm389_vm2, %v15365_v61, 0.0 }
 0xbd3   : > { %14087 = vadd.xlane.f32.xlu1 %v14086_v1  ;;  %v14646_v32 = vpop.xlane.xlu0 %14645  ;;  %v14385_v1 = vmul.f32 %v26421_v62, %v13793_v12 }
 0xbd4   : > { %v14261_v8 = vpop.xlane.xlu1 %14260 }
 0xbd5   : > { %v26488_v10 = vadd.f32 %v14261_v8, %v14114_v2 }
 0xbd6   : > { %14669 = vadd.xlane.f32.xlu0 %v14668_v31 }
 0xbd7   : > { %14284 = vadd.xlane.f32.xlu1 %v14283_v21  ;;  %v14843_v7 = vpop.xlane.xlu0 %14842  ;;  %v14471_v21 = vsel %vm389_vm2, %v14385_v1, 0.0 }
 0xbd8   : > { %v14446_v38 = vpop.xlane.xlu1 %14445 }
 0xbd9   : > { %v14504_v25 = vadd.f32 %v14446_v38, %v26319_v49  ;;  %v14665_v49 = vsel %vm389_vm2, %v14581_v26, 0.0 }
 0xbda   : > { %14866 = vadd.xlane.f32.xlu0 %v14865_v9 }
 0xbdb   : > { %14469 = vadd.xlane.f32.xlu1 %v14468_v47  ;;  %v15225_v46 = vpop.xlane.xlu0 %15224  ;;  %v14349_v47 = vld [vmem:[#allocation4 + $0x180] sm:$0xff] }
 0xbdc   : > { %v14643_v63 = vpop.xlane.xlu1 %14642  ;;  %v14386_v6 = vmul.f32 %v26421_v62, %v14349_v47 }
 0xbdd   : > { %v14701_v35 = vadd.f32 %v14643_v63, %v14504_v25  ;;  %v15244_v25 = vsel %vm389_vm2, %v15168_v28, 0.0 }
 0xbde   : > { %15248 = vadd.xlane.f32.xlu0 %v15247_v37 }
 0xbdf   : > { %14666 = vadd.xlane.f32.xlu1 %v14665_v49  ;;  %v15422_v17 = vpop.xlane.xlu0 %15421  ;;  %v14744_v49 = vld [vmem:[#allocation4 + $0x18c] sm:$0xff] }
 0xbe0   : > { %v14840_v22 = vpop.xlane.xlu1 %14839 }
 0xbe1   : > { %v26506_v54 = vadd.f32 %v14840_v22, %v14701_v35 }
 0xbe2   : > { %15445 = vadd.xlane.f32.xlu0 %v15444_v4 }
 0xbe3   : > { %14863 = vadd.xlane.f32.xlu1 %v14862_v44  ;;  %v13902_v58 = vpop.xlane.xlu0 %13901  ;;  %v14474_v44 = vsel %vm389_vm2, %v14386_v6, 0.0 }
 0xbe4   : > { %v14115_v2 = vadd.f32 %v14067_v11, %v13902_v58  ;;  %v15025_v5 = vpop.xlane.xlu1 %15024 }
 0xbe5   : > { %v15091_v11 = vadd.f32 %v15025_v5, %v26347_v60 }
 0xbe6   : > { %13925 = vadd.xlane.f32.xlu0 %v13924_v18  ;;  %v26518_v8 = vadd.f32 %v14264_v29, %v14115_v2  ;;  %v14547_v29 = vld [vmem:[#allocation4 + $0x18a] sm:$0xff] }
 0xbe7   : > { %15048 = vadd.xlane.f32.xlu1 %v15047_v57  ;;  %v14449_v31 = vpop.xlane.xlu0 %14448  ;;  %v14584_v35 = vmul.f32 %v26402_v51, %v14547_v29  ;;  %v14743_v2 = vld [vmem:[#allocation4 + $0x184] sm:$0xff]  ;;  %v15171_v1 = vmul.f32 %v26331_v24, %v14547_v29 }
 0xbe8   : > { %v14505_v27 = vadd.f32 %v14449_v31, %v26360_v39  ;;  %v15222_v33 = vpop.xlane.xlu1 %15221  ;;  %v14780_v28 = vmul.f32 %v26414_v40, %v14743_v2  ;;  %v15367_v6 = vmul.f32 %v26341_v41, %v14743_v2  ;;  %v14548_v2 = vld [vmem:[#allocation4 + $0x19a] sm:$0xff] }
 0xbe9   : > { %v15288_v9 = vadd.f32 %v15222_v33, %v15091_v11  ;;  %v14674_v4 = vsel %vm389_vm2, %v14584_v35, 0.0  ;;  %v15253_v11 = vsel %vm389_vm2, %v15171_v1, 0.0 }
 0xbea   : > { %v14702_v38 = vadd.f32 %v14646_v32, %v14505_v27  ;;  %14472 = vadd.xlane.f32.xlu0 %v14471_v21  ;;  %v15050_v32 = vsel %vm389_vm2, %v14972_v3, 0.0  ;;  %v15368_v21 = vmul.f32 %v26341_v41, %v14744_v49  ;;  %v14868_v3 = vsel %vm389_vm2, %v14780_v28, 0.0 }
 0xbeb   : > { %15245 = vadd.xlane.f32.xlu1 %v15244_v25  ;;  %v15028_v23 = vpop.xlane.xlu0 %15027  ;;  %v14350_v25 = vld [vmem:[#allocation4 + $0x188] sm:$0xff] }
 0xbec   : > { %v15092_v39 = vadd.f32 %v15028_v23, %v26372_v16  ;;  %v15419_v26 = vpop.xlane.xlu1 %15418  ;;  %v26528_v60 = vadd.f32 %v14843_v7, %v14702_v38  ;;  %v14546_v7 = vld [vmem:[#allocation4 + $0x182] sm:$0xff]  ;;  %v14973_v38 = vmul.f32 %v26268_v55, %v14349_v47  ;;  %v15450_v23 = vsel %vm389_vm2, %v15368_v21, 0.0 }
 0xbed   : > { %v15485_v63 = vadd.f32 %v15419_v26, %v15288_v9  ;;  %v14583_v34 = vmul.f32 %v26402_v51, %v14546_v7 }
 0xbee   : > { %v15289_v37 = vadd.f32 %v15225_v46, %v15092_v39  ;;  %15051 = vadd.xlane.f32.xlu0 %v15050_v32  ;;  %v14781_v46 = vmul.f32 %v26414_v40, %v14744_v49  ;;  %v14387_v39 = vmul.f32 %v26421_v62, %v14350_v25  ;;  %v15053_v26 = vsel %vm389_vm2, %v14973_v38, 0.0  ;;  %v14549_v49 = vld [vmem:[#allocation4 + $0x1a2] sm:$0xff] }
 0xbef   : > { %v15524_v59 = vadd.f32 %v26388_v30, %v15485_v63  ;;  %15442 = vadd.xlane.f32.xlu1 %v15441_v14  ;;  %v26535_v16 = vpop.xlane.xlu0 %14072  ;;  %v14671_v57 = vsel %vm389_vm2, %v14583_v34, 0.0  ;;  %v15170_v63 = vmul.f32 %v26331_v24, %v14546_v7  ;;  %v14974_v14 = vmul.f32 %v26268_v55, %v14350_v25  ;;  %v14746_v34 = vld [vmem:[#allocation4 + $0x1a4] sm:$0xff] }
 0xbf0   : > { %v15486_v12 = vadd.f32 %v15422_v17, %v15289_v37  ;;  %v13905_v22 = vpop.xlane.xlu1 %13904  ;;  %v14871_v18 = vsel %vm389_vm2, %v14781_v46, 0.0  ;;  %v14477_v47 = vsel %vm389_vm2, %v14387_v39, 0.0  ;;  %v14586_v46 = vmul.f32 %v26402_v51, %v14549_v49 }
 0xbf1   : > { %15556 = vst.msk [vmem:[%s25993_s18 + $0x70] sm:$0xff] %vm484_vm0, %v15524_v59  ;;  %v15056_v7 = vsel %vm389_vm2, %v14974_v14, 0.0 }
 0xbf2   : > { %v15525_v20 = vadd.f32 %v26388_v30, %v15486_v12  ;;  %14675 = vadd.xlane.f32.xlu0 %v14674_v4  ;;  %v14351_v12 = vld [vmem:[#allocation4 + $0x198] sm:$0xff]  ;;  %v14680_v1 = vsel %vm389_vm2, %v14586_v46, 0.0 }
 0xbf3   : > { %14475 = vadd.xlane.f32.xlu1 %v14474_v44  ;;  %v14270_v58 = vpop.xlane.xlu0 %14269  ;;  %v14388_v44 = vmul.f32 %v26421_v62, %v14351_v12 }
 0xbf4   : > { %15557 = vst.msk [vmem:[%s25993_s18 + $0x78] sm:$0xff] %vm484_vm0, %v15525_v20  ;;  %v14070_v17 = vpop.xlane.xlu1 %14069  ;;  %v15447_v20 = vsel %vm389_vm2, %v15367_v6, 0.0 }
 0xbf5   : > { %v14116_v5 = vadd.f32 %v14070_v17, %v13905_v22  ;;  %v14480_v28 = vsel %vm389_vm2, %v14388_v44, 0.0 }
 0xbf6   : > { %14872 = vadd.xlane.f32.xlu0 %v14871_v18 }
 0xbf7   : > { %14672 = vadd.xlane.f32.xlu1 %v14671_v57  ;;  %v14652_v31 = vpop.xlane.xlu0 %14651  ;;  %v14783_v57 = vmul.f32 %v26414_v40, %v14746_v34 }
 0xbf8   : > { %v14267_v27 = vpop.xlane.xlu1 %14266 }
 0xbf9   : > { %v26550_v33 = vadd.f32 %v14267_v27, %v14116_v5  ;;  %v14585_v27 = vmul.f32 %v26402_v51, %v14548_v2 }
 0xbfa   : > { %15254 = vadd.xlane.f32.xlu0 %v15253_v11 }
 0xbfb   : > { %14869 = vadd.xlane.f32.xlu1 %v14868_v3  ;;  %v14849_v61 = vpop.xlane.xlu0 %14848  ;;  %v14745_v3 = vld [vmem:[#allocation4 + $0x19c] sm:$0xff]  ;;  %v14677_v39 = vsel %vm389_vm2, %v14585_v27, 0.0  ;;  %v15337_v27 = vld [vmem:[#allocation4 + $0x1d4] sm:$0xff] }
 0xbfc   : > { %v14452_v29 = vpop.xlane.xlu1 %14451  ;;  %v14782_v51 = vmul.f32 %v26414_v40, %v14745_v3  ;;  %v14975_v40 = vmul.f32 %v26268_v55, %v14351_v12 }
 0xbfd   : > { %v14506_v9 = vadd.f32 %v14452_v29, %v26408_v42  ;;  %v15250_v42 = vsel %vm389_vm2, %v15170_v63, 0.0  ;;  %v14877_v29 = vsel %vm389_vm2, %v14783_v57, 0.0 }
 0xbfe   : > { %15451 = vadd.xlane.f32.xlu0 %v15450_v23  ;;  %v14874_v14 = vsel %vm389_vm2, %v14782_v51, 0.0  ;;  %v15059_v12 = vsel %vm389_vm2, %v14975_v40, 0.0 }
 0xbff   : > { %15054 = vadd.xlane.f32.xlu1 %v15053_v26  ;;  %v15231_v32 = vpop.xlane.xlu0 %15230 }
 0xc00   : > { %v14649_v35 = vpop.xlane.xlu1 %14648 }
 0xc01   : > { %v14703_v37 = vadd.f32 %v14649_v35, %v14506_v9  ;;  %v15173_v9 = vmul.f32 %v26331_v24, %v14549_v49 }
 0xc02   : > { %14478 = vadd.xlane.f32.xlu0 %v14477_v47  ;;  %v15370_v47 = vmul.f32 %v26341_v41, %v14746_v34 }
 0xc03   : > { %15251 = vadd.xlane.f32.xlu1 %v15250_v42  ;;  %v15428_v59 = vpop.xlane.xlu0 %15427  ;;  %v14352_v42 = vld [vmem:[#allocation4 + $0x1a0] sm:$0xff] }
 0xc04   : > { %v14846_v22 = vpop.xlane.xlu1 %14845 }
 0xc05   : > { %v26565_v4 = vadd.f32 %v14846_v22, %v14703_v37  ;;  %v15259_v37 = vsel %vm389_vm2, %v15173_v9, 0.0  ;;  %v15335_v22 = vld [vmem:[#allocation4 + $0x1bc] sm:$0xff] }
 0xc06   : > { %15057 = vadd.xlane.f32.xlu0 %v15056_v7  ;;  %v15456_v7 = vsel %vm389_vm2, %v15370_v47, 0.0  ;;  %v15372_v34 = vmul.f32 %v26341_v41, %v15335_v22 }
 0xc07   : > { %15448 = vadd.xlane.f32.xlu1 %v15447_v20  ;;  %v13908_v17 = vpop.xlane.xlu0 %13907  ;;  %v15172_v20 = vmul.f32 %v26331_v24, %v14548_v2 }
 0xc08   : > { %v14117_v5 = vadd.f32 %v26535_v16, %v13908_v17  ;;  %v15031_v18 = vpop.xlane.xlu1 %15030  ;;  %v15462_v24 = vsel %vm389_vm2, %v15372_v34, 0.0 }
 0xc09   : > { %v15093_v16 = vadd.f32 %v15031_v18, %v26436_v53  ;;  %v15336_v18 = vld [vmem:[#allocation4 + $0x1cc] sm:$0xff] }
 0xc0a   : > { %14681 = vadd.xlane.f32.xlu0 %v14680_v1  ;;  %v26576_v11 = vadd.f32 %v14270_v58, %v14117_v5  ;;  %v15369_v1 = vmul.f32 %v26341_v41, %v14745_v3 }
 0xc0b   : > { %14481 = vadd.xlane.f32.xlu1 %v14480_v28  ;;  %v14455_v21 = vpop.xlane.xlu0 %14454  ;;  %v15373_v28 = vmul.f32 %v26341_v41, %v15336_v18 }
 0xc0c   : > { %v14507_v38 = vadd.f32 %v14455_v21, %v26449_v36  ;;  %v15228_v25 = vpop.xlane.xlu1 %15227 }
 0xc0d   : > { %v15290_v58 = vadd.f32 %v15228_v25, %v15093_v16  ;;  %v15453_v25 = vsel %vm389_vm2, %v15369_v1, 0.0  ;;  %v15465_v9 = vsel %vm389_vm2, %v15373_v28, 0.0 }
 0xc0e   : > { %v14704_v23 = vadd.f32 %v14652_v31, %v14507_v38  ;;  %14878 = vadd.xlane.f32.xlu0 %v14877_v29  ;;  %v14976_v38 = vmul.f32 %v26268_v55, %v14352_v42  ;;  %v15374_v29 = vmul.f32 %v26341_v41, %v15337_v27 }
 0xc0f   : > { %14678 = vadd.xlane.f32.xlu1 %v14677_v39  ;;  %v15034_v26 = vpop.xlane.xlu0 %15033 }
 0xc10   : > { %v15094_v63 = vadd.f32 %v15034_v26, %v26461_v19  ;;  %v15425_v35 = vpop.xlane.xlu1 %15424  ;;  %v26585_v36 = vadd.f32 %v14849_v61, %v14704_v23  ;;  %v15062_v39 = vsel %vm389_vm2, %v14976_v38, 0.0 }
 0xc11   : > { %v15487_v53 = vadd.f32 %v15425_v35, %v15290_v58  ;;  %v15468_v58 = vsel %vm389_vm2, %v15374_v29, 0.0 }
 0xc12   : > { %v15291_v31 = vadd.f32 %v15231_v32, %v15094_v63  ;;  %15260 = vadd.xlane.f32.xlu0 %v15259_v37  ;;  %v14389_v32 = vmul.f32 %v26421_v62, %v14352_v42  ;;  %v15256_v62 = vsel %vm389_vm2, %v15172_v20, 0.0 }
 0xc13   : > { %v15526_v6 = vadd.f32 %v26388_v30, %v15487_v53  ;;  %14875 = vadd.xlane.f32.xlu1 %v14874_v14  ;;  %v14079_v19 = vpop.xlane.xlu0 %14078 }
 0xc14   : > { %v15488_v49 = vadd.f32 %v15428_v59, %v15291_v31  ;;  %v13911_v61 = vpop.xlane.xlu1 %13910  ;;  %v14483_v5 = vsel %vm389_vm2, %v14389_v32, 0.0 }
 0xc15   : > { %15558 = vst.msk [vmem:[%s25993_s18 + $0x80] sm:$0xff] %vm484_vm0, %v15526_v6 }
 0xc16   : > { %v15527_v46 = vadd.f32 %v26388_v30, %v15488_v49  ;;  %15457 = vadd.xlane.f32.xlu0 %v15456_v7 }
 0xc17   : > { %15060 = vadd.xlane.f32.xlu1 %v15059_v12  ;;  %v14276_v44 = vpop.xlane.xlu0 %14275 }
 0xc18   : > { %15559 = vst.msk [vmem:[%s25993_s18 + $0x88] sm:$0xff] %vm484_vm0, %v15527_v46  ;;  %v14076_v59 = vpop.xlane.xlu1 %14075 }
 0xc19   : > { %v14118_v17 = vadd.f32 %v14076_v59, %v13911_v61 }
 0xc1a   : > { %14484 = vadd.xlane.f32.xlu0 %v14483_v5 }
 0xc1b   : > { %15257 = vadd.xlane.f32.xlu1 %v15256_v62  ;;  %v14658_v57 = vpop.xlane.xlu0 %14657 }
 0xc1c   : > { %v14273_v2 = vpop.xlane.xlu1 %14272 }
 0xc1d   : > { %v26607_v21 = vadd.f32 %v14273_v2, %v14118_v17 }
 0xc1e   : > { %15463 = vadd.xlane.f32.xlu0 %v15462_v24 }
 0xc1f   : > { %15454 = vadd.xlane.f32.xlu1 %v15453_v25  ;;  %v14855_v16 = vpop.xlane.xlu0 %14854 }
 0xc20   : > { %v14458_v3 = vpop.xlane.xlu1 %14457 }
 0xc21   : > { %v14508_v23 = vadd.f32 %v14458_v3, %v26488_v10 }
 0xc22   : > { %15063 = vadd.xlane.f32.xlu0 %v15062_v39 }
 0xc23   : > { %15466 = vadd.xlane.f32.xlu1 %v15465_v9  ;;  %v15237_v51 = vpop.xlane.xlu0 %15236 }
 0xc24   : > { %v14655_v55 = vpop.xlane.xlu1 %14654 }
 0xc25   : > { %v14705_v26 = vadd.f32 %v14655_v55, %v14508_v23 }
 0xc26   : > { %15469 = vadd.xlane.f32.xlu0 %v15468_v58 }
 0xc27   : > { %v15434_v63 = vpop.xlane.xlu0 %15433 }
 0xc28   : > { %v14852_v35 = vpop.xlane.xlu1 %14851 }
 0xc29   : > { %v26616_v53 = vadd.f32 %v14852_v35, %v14705_v26 }
 0xc2b   : > { %v13914_v41 = vpop.xlane.xlu0 %13913 }
 0xc2c   : > { %v14119_v37 = vadd.f32 %v14079_v19, %v13914_v41  ;;  %v15037_v47 = vpop.xlane.xlu1 %15036 }
 0xc2d   : > { %v15095_v42 = vadd.f32 %v15037_v47, %v26506_v54 }
 0xc2e   : > { %v26618_v31 = vadd.f32 %v14276_v44, %v14119_v37 }
 0xc2f   : > { %v14461_v10 = vpop.xlane.xlu0 %14460 }
 0xc30   : > { %v14509_v14 = vadd.f32 %v14461_v10, %v26518_v8  ;;  %v15234_v40 = vpop.xlane.xlu1 %15233 }
 0xc31   : > { %v15292_v49 = vadd.f32 %v15234_v40, %v15095_v42 }
 0xc32   : > { %v14706_v6 = vadd.f32 %v14658_v57, %v14509_v14 }
 0xc33   : > { %v15040_v61 = vpop.xlane.xlu0 %15039 }
 0xc34   : > { %v15096_v22 = vadd.f32 %v15040_v61, %v26528_v60  ;;  %v15431_v7 = vpop.xlane.xlu1 %15430  ;;  %v26623_v32 = vadd.f32 %v14855_v16, %v14706_v6 }
 0xc35   : > { %v15489_v19 = vadd.f32 %v15431_v7, %v15292_v49 }
 0xc36   : > { %v15293_v46 = vadd.f32 %v15237_v51, %v15096_v22 }
 0xc37   : > { %v15528_v12 = vadd.f32 %v26388_v30, %v15489_v19  ;;  %v14085_v20 = vpop.xlane.xlu0 %14084 }
 0xc38   : > { %v15490_v44 = vadd.f32 %v15434_v63, %v15293_v46  ;;  %v13917_v34 = vpop.xlane.xlu1 %13916 }
 0xc39   : > { %15560 = vst.msk [vmem:[%s25993_s18 + $0x90] sm:$0xff] %vm484_vm0, %v15528_v12 }
 0xc3a   : > { %v15529_v54 = vadd.f32 %v26388_v30, %v15490_v44 }
 0xc3b   : > { %v14282_v8 = vpop.xlane.xlu0 %14281 }
 0xc3c   : > { %15561 = vst.msk [vmem:[%s25993_s18 + $0x98] sm:$0xff] %vm484_vm0, %v15529_v54  ;;  %v14082_v59 = vpop.xlane.xlu1 %14081 }
 0xc3d   : > { %v14120_v17 = vadd.f32 %v14082_v59, %v13917_v34 }
 0xc3f   : > { %v14664_v60 = vpop.xlane.xlu0 %14663 }
 0xc40   : > { %v14279_v5 = vpop.xlane.xlu1 %14278 }
 0xc41   : > { %v26631_v18 = vadd.f32 %v14279_v5, %v14120_v17 }
 0xc43   : > { %v14861_v62 = vpop.xlane.xlu0 %14860 }
 0xc44   : > { %v14464_v1 = vpop.xlane.xlu1 %14463 }
 0xc45   : > { %v14510_v57 = vadd.f32 %v14464_v1, %v26550_v33 }
 0xc47   : > { %v15243_v24 = vpop.xlane.xlu0 %15242 }
 0xc48   : > { %v14661_v2 = vpop.xlane.xlu1 %14660 }
 0xc49   : > { %v14707_v28 = vadd.f32 %v14661_v2, %v14510_v57 }
 0xc4b   : > { %v15440_v27 = vpop.xlane.xlu0 %15439 }
 0xc4c   : > { %v14858_v38 = vpop.xlane.xlu1 %14857 }
 0xc4d   : > { %v26634_v25 = vadd.f32 %v14858_v38, %v14707_v28 }
 0xc4f   : > { %v13920_v16 = vpop.xlane.xlu0 %13919 }
 0xc50   : > { %v14121_v29 = vadd.f32 %v14085_v20, %v13920_v16  ;;  %v15043_v3 = vpop.xlane.xlu1 %15042 }
 0xc51   : > { %v15097_v58 = vadd.f32 %v15043_v3, %v26565_v4 }
 0xc52   : > { %v26636_v9 = vadd.f32 %v14282_v8, %v14121_v29 }
 0xc53   : > { %v14467_v23 = vpop.xlane.xlu0 %14466 }
 0xc54   : > { %v14511_v39 = vadd.f32 %v14467_v23, %v26576_v11  ;;  %v15240_v51 = vpop.xlane.xlu1 %15239 }
 0xc55   : > { %v15294_v55 = vadd.f32 %v15240_v51, %v15097_v58 }
 0xc56   : > { %v14708_v33 = vadd.f32 %v14664_v60, %v14511_v39 }
 0xc57   : > { %v15046_v26 = vpop.xlane.xlu0 %15045 }
 0xc58   : > { %v15098_v63 = vadd.f32 %v15046_v26, %v26585_v36  ;;  %v15437_v35 = vpop.xlane.xlu1 %15436  ;;  %v26641_v41 = vadd.f32 %v14861_v62, %v14708_v33 }
 0xc59   : > { %v15491_v37 = vadd.f32 %v15437_v35, %v15294_v55 }
 0xc5a   : > { %v15295_v47 = vadd.f32 %v15243_v24, %v15098_v63 }
 0xc5b   : > { %v15530_v10 = vadd.f32 %v26388_v30, %v15491_v37  ;;  %v14091_v14 = vpop.xlane.xlu0 %14090 }
 0xc5c   : > { %v15492_v40 = vadd.f32 %v15440_v27, %v15295_v47  ;;  %v13923_v42 = vpop.xlane.xlu1 %13922 }
 0xc5d   : > { %15562 = vst.msk [vmem:[%s25993_s18 + $0xa0] sm:$0xff] %vm484_vm0, %v15530_v10 }
 0xc5e   : > { %v15531_v4 = vadd.f32 %v26388_v30, %v15492_v40 }
 0xc5f   : > { %v14288_v11 = vpop.xlane.xlu0 %14287 }
 0xc60   : > { %15563 = vst.msk [vmem:[%s25993_s18 + $0xa8] sm:$0xff] %vm484_vm0, %v15531_v4  ;;  %v14088_v6 = vpop.xlane.xlu1 %14087 }
 0xc61   : > { %v14122_v49 = vadd.f32 %v14088_v6, %v13923_v42 }
 0xc63   : > { %v14670_v36 = vpop.xlane.xlu0 %14669 }
 0xc64   : > { %v14285_v61 = vpop.xlane.xlu1 %14284 }
 0xc65   : > { %v26649_v22 = vadd.f32 %v14285_v61, %v14122_v49 }
 0xc67   : > { %v14867_v7 = vpop.xlane.xlu0 %14866 }
 0xc68   : > { %v26651_v19 = vpop.xlane.xlu1 %14469 }
 0xc6b   : > { %v15249_v46 = vpop.xlane.xlu0 %15248 }
 0xc6c   : > { %v26653_v12 = vpop.xlane.xlu1 %14666 }
 0xc6f   : > { %v15446_v20 = vpop.xlane.xlu0 %15445 }
 0xc70   : > { %v26655_v44 = vpop.xlane.xlu1 %14863 }
 0xc73   : > { %v13926_v34 = vpop.xlane.xlu0 %13925 }
 0xc74   : > { %v14123_v54 = vadd.f32 %v14091_v14, %v13926_v34  ;;  %v15049_v8 = vpop.xlane.xlu1 %15048 }
 0xc75   : > { %v15099_v62 = vadd.f32 %v15049_v8, %v26616_v53 }
 0xc76   : > { %v26657_v59 = vadd.f32 %v14288_v11, %v14123_v54 }
 0xc77   : > { %v14473_v17 = vpop.xlane.xlu0 %14472 }
 0xc78   : > { %v14513_v60 = vadd.f32 %v14473_v17, %v26618_v31  ;;  %v15246_v5 = vpop.xlane.xlu1 %15245 }
 0xc79   : > { %v15296_v57 = vadd.f32 %v15246_v5, %v15099_v62 }
 0xc7a   : > { %v14710_v1 = vadd.f32 %v14670_v36, %v14513_v60  ;;  %v14512_v60 = vadd.f32 %v26651_v19, %v26607_v21 }
 0xc7b   : > { %v15052_v24 = vpop.xlane.xlu0 %15051 }
 0xc7c   : > { %v15100_v2 = vadd.f32 %v15052_v24, %v26623_v32  ;;  %v15443_v28 = vpop.xlane.xlu1 %15442  ;;  %v26662_v27 = vadd.f32 %v14867_v7, %v14710_v1 }
 0xc7d   : > { %v15493_v38 = vadd.f32 %v15443_v28, %v15296_v57  ;;  %v14709_v57 = vadd.f32 %v26653_v12, %v14512_v60 }
 0xc7e   : > { %v15297_v16 = vadd.f32 %v15249_v46, %v15100_v2 }
 0xc7f   : > { %v15532_v29 = vadd.f32 %v26388_v30, %v15493_v38  ;;  %v14676_v3 = vpop.xlane.xlu0 %14675  ;;  %v14906_v2 = vadd.f32 %v26655_v44, %v14709_v57 }
 0xc80   : > { %v15494_v23 = vadd.f32 %v15446_v20, %v15297_v16  ;;  %v14476_v39 = vpop.xlane.xlu1 %14475 }
 0xc81   : > { %15564 = vst.msk [vmem:[%s25993_s18 + $0xb0] sm:$0xff] %vm484_vm0, %v15532_v29  ;;  %v14514_v32 = vadd.f32 %v14476_v39, %v26631_v18 }
 0xc82   : > { %v15533_v53 = vadd.f32 %v26388_v30, %v15494_v23 }
 0xc83   : > { %v14873_v31 = vpop.xlane.xlu0 %14872 }
 0xc84   : > { %15565 = vst.msk [vmem:[%s25993_s18 + $0xb8] sm:$0xff] %vm484_vm0, %v15533_v53  ;;  %v14673_v51 = vpop.xlane.xlu1 %14672 }
 0xc85   : > { %v14711_v58 = vadd.f32 %v14673_v51, %v14514_v32 }
 0xc87   : > { %v15255_v33 = vpop.xlane.xlu0 %15254 }
 0xc88   : > { %v14870_v55 = vpop.xlane.xlu1 %14869 }
 0xc89   : > { %v14908_v26 = vadd.f32 %v14870_v55, %v14711_v58 }
 0xc8b   : > { %v15105_v63 = vadd.f32 %v25732_v0, %v14908_v26  ;;  %v15452_v35 = vpop.xlane.xlu0 %15451 }
 0xc8c   : > { %v15055_v37 = vpop.xlane.xlu1 %15054 }
 0xc8d   : > { %v15302_v47 = vadd.f32 %v25764_v50, %v15105_v63  ;;  %v15101_v4 = vadd.f32 %v15055_v37, %v26634_v25 }
 0xc8f   : > { %v15499_v10 = vadd.f32 %v25783_v45, %v15302_v47  ;;  %v14479_v14 = vpop.xlane.xlu0 %14478  ;;  %v20596_v47 = vld [vmem:[#allocation5] ss:$0 sm:$0xff] }
 0xc90   : > { %v15252_v40 = vpop.xlane.xlu1 %15251  ;;  %v14515_v46 = vadd.f32 %v14479_v14, %v26636_v9 }
 0xc91   : > { %v15538_v42 = vadd.f32 %v26388_v30, %v15499_v10  ;;  %v15298_v18 = vadd.f32 %v15252_v40, %v15101_v4 }
 0xc92   : > { %v14712_v54 = vadd.f32 %v14676_v3, %v14515_v46 }
 0xc93   : > { %15570 = vst.msk [vmem:[%s25993_s18 + $0xe0] sm:$0xff] %vm484_vm0, %v15538_v42  ;;  %v15058_v11 = vpop.xlane.xlu0 %15057 }
 0xc94   : > { %v15102_v0 = vadd.f32 %v15058_v11, %v26641_v41  ;;  %v15449_v6 = vpop.xlane.xlu1 %15448  ;;  %v14909_v17 = vadd.f32 %v14873_v31, %v14712_v54 }
 0xc95   : > { %v15495_v49 = vadd.f32 %v15449_v6, %v15298_v18 }
 0xc96   : > { %v15299_v36 = vadd.f32 %v15255_v33, %v15102_v0  ;;  %v15106_v24 = vadd.f32 %v25745_v43, %v14909_v17 }
 0xc97   : > { %v15534_v50 = vadd.f32 %v26388_v30, %v15495_v49  ;;  %v14682_v45 = vpop.xlane.xlu0 %14681 }
 0xc98   : > { %v15496_v61 = vadd.f32 %v15452_v35, %v15299_v36  ;;  %v14482_v7 = vpop.xlane.xlu1 %14481  ;;  %v15303_v21 = vadd.f32 %v25770_v56, %v15106_v24 }
 0xc99   : > { %15566 = vst.msk [vmem:[%s25993_s18 + $0xc0] sm:$0xff] %vm484_vm0, %v15534_v50  ;;  %v14516_v5 = vadd.f32 %v14482_v7, %v26649_v22 }
 0xc9a   : > { %v15535_v25 = vadd.f32 %v26388_v30, %v15496_v61 }
 0xc9b   : > { %v14879_v20 = vpop.xlane.xlu0 %14878 }
 0xc9c   : > { %15567 = vst.msk [vmem:[%s25993_s18 + $0xc8] sm:$0xff] %vm484_vm0, %v15535_v25  ;;  %v14679_v34 = vpop.xlane.xlu1 %14678 }
 0xc9d   : > { %v14713_v9 = vadd.f32 %v14679_v34, %v14516_v5 }
 0xc9f   : > { %v15261_v41 = vpop.xlane.xlu0 %15260 }
 0xca0   : > { %v14876_v8 = vpop.xlane.xlu1 %14875 }
 0xca1   : > { %v14910_v28 = vadd.f32 %v14876_v8, %v14713_v9 }
 0xca3   : > { %v15458_v62 = vpop.xlane.xlu0 %15457  ;;  %v15107_v22 = vadd.f32 %v25747_v15, %v14910_v28 }
 0xca4   : > { %v15061_v1 = vpop.xlane.xlu1 %15060 }
 0xca5   : > { %v15103_v3 = vadd.f32 %v15061_v1, %v14906_v2  ;;  %v15304_v58 = vadd.f32 %v25772_v48, %v15107_v22 }
 0xca7   : > { %v14485_v38 = vpop.xlane.xlu0 %14484 }
 0xca8   : > { %v14517_v16 = vadd.f32 %v14485_v38, %v26657_v59  ;;  %v15258_v29 = vpop.xlane.xlu1 %15257 }
 0xca9   : > { %v15300_v19 = vadd.f32 %v15258_v29, %v15103_v3 }
 0xcaa   : > { %v14714_v23 = vadd.f32 %v14682_v45, %v14517_v16 }
 0xcab   : > { %v15464_v12 = vpop.xlane.xlu0 %15463 }
 0xcac   : > { %v14911_v39 = vadd.f32 %v14879_v20, %v14714_v23  ;;  %v15500_v53 = vadd.f32 %v15464_v12, %v15303_v21  ;;  %v15455_v43 = vpop.xlane.xlu1 %15454 }
 0xcad   : > { %v15497_v31 = vadd.f32 %v15455_v43, %v15300_v19 }
 0xcae   : > { %v15539_v44 = vadd.f32 %v26388_v30, %v15500_v53  ;;  %v15108_v59 = vadd.f32 %v25760_v13, %v14911_v39 }
 0xcaf   : > { %v15536_v51 = vadd.f32 %v26388_v30, %v15497_v31  ;;  %v15064_v32 = vpop.xlane.xlu0 %15063 }
 0xcb0   : > { %15571 = vst.msk [vmem:[%s25993_s18 + $0xe8] sm:$0xff] %vm484_vm0, %v15539_v44  ;;  %v15104_v15 = vadd.f32 %v15064_v32, %v26662_v27  ;;  %v15467_v56 = vpop.xlane.xlu1 %15466  ;;  %v15305_v26 = vadd.f32 %v25779_v52, %v15108_v59 }
 0xcb1   : > { %15568 = vst.msk [vmem:[%s25993_s18 + $0xd0] sm:$0xff] %vm484_vm0, %v15536_v51  ;;  %v15501_v33 = vadd.f32 %v15467_v56, %v15304_v58 }
 0xcb2   : > { %v15301_v55 = vadd.f32 %v15261_v41, %v15104_v15 }
 0xcb3   : > { %v15540_v13 = vadd.f32 %v26388_v30, %v15501_v33  ;;  %v15470_v63 = vpop.xlane.xlu0 %15469 }
 0xcb4   : > { %v15498_v35 = vadd.f32 %v15458_v62, %v15301_v55  ;;  %v15502_v37 = vadd.f32 %v15470_v63, %v15305_v26 }
 0xcb5   : > { %15572 = vst.msk [vmem:[%s25993_s18 + $0xf0] sm:$0xff] %vm484_vm0, %v15540_v13 }
 0xcb6   : > { %v15537_v48 = vadd.f32 %v26388_v30, %v15498_v35  ;;  %v15541_v10 = vadd.f32 %v20596_v47, %v15502_v37 }
 0xcb8   : > { %15569 = vst.msk [vmem:[%s25993_s18 + $0xd8] sm:$0xff] %vm484_vm0, %v15537_v48  ;;  %15573 = vst.msk [vmem:[%s25993_s18 + $0xf8] sm:$0xff] %vm484_vm0, %v15541_v10 }
 0xcb9 PF: > { %s23_s19 = sadd.s32 1, %s20603_s19  }
 0xcba   : > { %p20_p4 = scmp.ge.s32.totalorder %s23_s19, 4  }
 0xcbc   :  { %22 = sbr.rel (!%p20_p4) target bundleno = 3 (0x3), region = 102 }

</bundles_post_ra>
